<compile_context>
chip_gen: v7x
topology: tpu7x:2x2x1
jax: 0.10.0
libtpu: 0.0.40
codegen_flags: <defaults>
</compile_context>

<pallas_src>
from functools import partial

import jax
import jax.numpy as jnp
from jax import lax
from jax.experimental import pallas as pl
from jax.experimental.pallas import tpu as pltpu

# ---------------- model config (scaled-down resnet50-style) ----------------
BASE = 16
EXPANSION = 4
BLOCKS = (2, 2, 2, 2)
PLANES = (BASE, BASE * 2, BASE * 4, BASE * 8)
STRIDES = (1, 2, 2, 2)
NUM_CLASSES = 10
NUM_CLASSES_PAD = 128  # lane-dense classifier output; sliced back to NUM_CLASSES outside

_VMEM = pl.BlockSpec(memory_space=pltpu.MemorySpace.VMEM)


# ------------------------------ Pallas kernels --------------------------------
def _mm_bn_kernel(x_ref, w_ref, s_ref, t_ref, o_ref, *, relu):
    # y = (x @ w) * scale + shift   [+ relu]; bf16 operands, f32 accumulation.
    acc = jnp.dot(x_ref[...], w_ref[...], preferred_element_type=jnp.float32)
    y = acc * s_ref[...] + t_ref[...]
    o_ref[...] = jnp.maximum(y, 0.0) if relu else y


def _mm_bn_res_relu_kernel(x_ref, w_ref, s_ref, t_ref, r_ref, o_ref):
    # bottleneck tail: relu( bn(x @ w) + residual )
    acc = jnp.dot(x_ref[...], w_ref[...], preferred_element_type=jnp.float32)
    o_ref[...] = jnp.maximum(acc * s_ref[...] + t_ref[...] + r_ref[...], 0.0)


def _maxpool_kernel(x_ref, o_ref):
    # x: (tm, K, C) pool-window patches -> max over the window axis (single reduce).
    o_ref[...] = jnp.max(x_ref[...], axis=1)


def _head_kernel(x_ref, w_ref, b_ref, o_ref):
    # fused global-avg-pool + linear: x (B, HW, C) -> mean over HW -> @ (C, Npad) + b.
    pooled = jnp.mean(x_ref[...], axis=1)
    o_ref[...] = jnp.dot(pooled, w_ref[...], preferred_element_type=jnp.float32) + b_ref[...]


# ------------------------------ Pallas wrappers --------------------------------
def _pick_tm(m):
    for tm in (256, 128, 64, 32, 16, 8):
        if m % tm == 0:
            return tm
    return m


def pallas_conv_mm(x2d, w, scale, shift, *, relu=True, residual=None):
    """(M, K) @ (K, N) with fused BN epilogue (+ optional ReLU / residual-add+ReLU)."""
    m, k = x2d.shape
    n = w.shape[1]
    tm = _pick_tm(m)
    grid = (m // tm,)

    x_bf = x2d.astype(jnp.bfloat16)
    w_bf = w.astype(jnp.bfloat16)
    scale = scale.astype(jnp.float32)
    shift = shift.astype(jnp.float32)

    in_specs = [
        pl.BlockSpec((tm, k), lambda i: (i, 0)),
        pl.BlockSpec((k, n), lambda i: (0, 0)),
        pl.BlockSpec((1, n), lambda i: (0, 0)),
        pl.BlockSpec((1, n), lambda i: (0, 0)),
    ]
    args = [x_bf, w_bf, scale, shift]

    if residual is None:
        kernel = partial(_mm_bn_kernel, relu=relu)
    else:
        kernel = _mm_bn_res_relu_kernel
        in_specs.append(pl.BlockSpec((tm, n), lambda i: (i, 0)))
        args.append(residual.astype(jnp.float32))

    return pl.pallas_call(
        kernel,
        out_shape=jax.ShapeDtypeStruct((m, n), jnp.float32),
        grid=grid,
        in_specs=in_specs,
        out_specs=pl.BlockSpec((tm, n), lambda i: (i, 0)),
        compiler_params=pltpu.CompilerParams(dimension_semantics=("parallel",)),
    )(*args)


def pallas_maxpool(patches3d):
    m, kk, c = patches3d.shape
    tm = _pick_tm(m)
    return pl.pallas_call(
        _maxpool_kernel,
        out_shape=jax.ShapeDtypeStruct((m, c), jnp.float32),
        grid=(m // tm,),
        in_specs=[pl.BlockSpec((tm, kk, c), lambda i: (i, 0, 0))],
        out_specs=pl.BlockSpec((tm, c), lambda i: (i, 0)),
        compiler_params=pltpu.CompilerParams(dimension_semantics=("parallel",)),
    )(patches3d)


def pallas_head(x3d, w_pad, b_pad):
    b, hw, c = x3d.shape
    npad = w_pad.shape[1]
    return pl.pallas_call(
        _head_kernel,
        out_shape=jax.ShapeDtypeStruct((b, npad), jnp.float32),
        in_specs=[_VMEM, _VMEM, _VMEM],
        out_specs=_VMEM,
    )(x3d.astype(jnp.float32), w_pad.astype(jnp.float32), b_pad.astype(jnp.float32))


# ------------------------------ plain-JAX glue ---------------------------------
def conv2d_bn(x, p, kh, kw, stride, pad, *, relu=True, residual2d=None):
    """Conv + folded-BN (+ReLU / +residual+ReLU) via im2col + Pallas matmul.

    The weight matrix p["w"] is (K, cout), K flattened consistently with the patch layout
    produced by lax.conv_general_dilated_patches (channel-major, filter-spatial-minor).
    """
    if kh == 1 and kw == 1:
        if stride > 1:
            x = x[:, ::stride, ::stride, :]
        b, oh, ow, k = x.shape
        patches2d = x.reshape(b * oh * ow, k)
    else:
        patches = lax.conv_general_dilated_patches(
            x, (kh, kw), (stride, stride), ((pad, pad), (pad, pad)),
            dimension_numbers=("NHWC", "HWIO", "NHWC"))
        b, oh, ow, k = patches.shape
        patches2d = patches.reshape(b * oh * ow, k)
    y2d = pallas_conv_mm(patches2d, p["w"], p["scale"], p["shift"],
                         relu=relu, residual=residual2d)
    return y2d.reshape(b, oh, ow, p["w"].shape[1])


def _extract_pool_patches(x, k, stride, pad, pad_value):
    """x: (B, H, W, C) -> (B, OH, OW, k*k, C) sliding windows (max-pool only)."""
    if pad > 0:
        x = jnp.pad(x, ((0, 0), (pad, pad), (pad, pad), (0, 0)),
                    constant_values=pad_value)
    _, h, w, _ = x.shape
    oh = (h - k) // stride + 1
    ow = (w - k) // stride + 1
    cols = []
    for i in range(k):
        for j in range(k):
            cols.append(x[:, i:i + (oh - 1) * stride + 1:stride,
                           j:j + (ow - 1) * stride + 1:stride, :])
    return jnp.stack(cols, axis=3)


def max_pool(x, k, stride, pad):
    # PyTorch max_pool2d pads with -inf; -1e30 is equivalent post-ReLU.
    patches = _extract_pool_patches(x, k, stride, pad, -1e30)
    b, oh, ow, kk, c = patches.shape
    y = pallas_maxpool(patches.reshape(b * oh * ow, kk, c))
    return y.reshape(b, oh, ow, c)


# ------------------------------ parameter init ---------------------------------
def _make_conv_bn(key, k_in, cout):
    kw_, kg, kb, km, kv = jax.random.split(key, 5)
    w = jax.random.normal(kw_, (k_in, cout), jnp.float32) * (2.0 / k_in) ** 0.5
    gamma = 1.0 + 0.1 * jax.random.normal(kg, (cout,), jnp.float32)
    beta = 0.1 * jax.random.normal(kb, (cout,), jnp.float32)
    mean = 0.1 * jax.random.normal(km, (cout,), jnp.float32)
    var = 0.5 + 0.1 * jnp.abs(jax.random.normal(kv, (cout,), jnp.float32))
    eps = 1e-5
    scale = gamma / jnp.sqrt(var + eps)
    shift = beta - mean * scale
    return {"w": w, "scale": scale.reshape(1, cout), "shift": shift.reshape(1, cout)}


def make_params(key):
    counter = [0]

    def nk():
        counter[0] += 1
        return jax.random.fold_in(key, counter[0])

    params = {"conv0": _make_conv_bn(nk(), 3 * 7 * 7, BASE)}

    in_ch = BASE
    for li, (n_blocks, planes, stride) in enumerate(zip(BLOCKS, PLANES, STRIDES)):
        out_ch = planes * EXPANSION
        for bi in range(n_blocks):
            s = stride if bi == 0 else 1
            bp = {
                "conv1": _make_conv_bn(nk(), in_ch, planes),
                "conv2": _make_conv_bn(nk(), planes * 9, planes),
                "conv3": _make_conv_bn(nk(), planes, out_ch),
            }
            if s != 1 or in_ch != out_ch:
                bp["down"] = _make_conv_bn(nk(), in_ch, out_ch)
            params[f"layer{li}_block{bi}"] = bp
            in_ch = out_ch

    # classifier (fresh Linear in the PyTorch module), padded to 128 output lanes
    w = 0.05 * jax.random.normal(nk(), (in_ch, NUM_CLASSES), jnp.float32)
    b = 0.05 * jax.random.normal(nk(), (NUM_CLASSES,), jnp.float32)
    params["fc_w"] = jnp.pad(w, ((0, 0), (0, NUM_CLASSES_PAD - NUM_CLASSES)))
    params["fc_b"] = jnp.pad(b, (0, NUM_CLASSES_PAD - NUM_CLASSES)).reshape(1, NUM_CLASSES_PAD)
    return params


# ------------------------------ forward pass ------------------------------------
def _bottleneck(x, p, stride):
    # 1x1 conv+bn+relu -> 3x3 conv(stride)+bn+relu -> 1x1 conv+bn + shortcut + relu.
    y = conv2d_bn(x, p["conv1"], 1, 1, 1, 0, relu=True)
    y = conv2d_bn(y, p["conv2"], 3, 3, stride, 1, relu=True)
    if "down" in p:
        idn = conv2d_bn(x, p["down"], 1, 1, stride, 0, relu=False)
    else:
        idn = x
    b, oh, ow, c = idn.shape
    return conv2d_bn(y, p["conv3"], 1, 1, 1, 0,
                     residual2d=idn.reshape(b * oh * ow, c))


def resnet_forward(x_nchw, params):
    # layout: NCHW in (PyTorch), NHWC inside.
    x = jnp.transpose(x_nchw, (0, 2, 3, 1)).astype(jnp.float32)

    # stem: conv1 7x7/2 + bn1 + relu (fused) + maxpool 3x3/2
    x = conv2d_bn(x, params["conv0"], 7, 7, 2, 3, relu=True)
    x = max_pool(x, 3, 2, 1)

    # residual stages
    for li, (n_blocks, _planes, stride) in enumerate(zip(BLOCKS, PLANES, STRIDES)):
        for bi in range(n_blocks):
            s = stride if bi == 0 else 1
            x = _bottleneck(x, params[f"layer{li}_block{bi}"], s)

    # head: AvgPool(x.shape[2:]) + Linear, fused into one kernel (N padded to 128)
    b, h, w, c = x.shape
    logits_pad = pallas_head(x.reshape(b, h * w, c), params["fc_w"], params["fc_b"])
    return logits_pad[:, :NUM_CLASSES]


if __name__ == "__main__":
    key = jax.random.PRNGKey(0)
    pkey, xkey = jax.random.split(key)
    params = make_params(pkey)
    x = jax.random.normal(xkey, (2, 3, 32, 32), jnp.float32)  # NCHW, like PyTorch

    fwd = jax.jit(resnet_forward)
    out = fwd(x, params)
    out = jax.block_until_ready(out)
    assert out.shape == (2, NUM_CLASSES), out.shape
    assert out.dtype == jnp.float32
    assert bool(jnp.all(jnp.isfinite(out)))
    print("KERNEL_OK")
</pallas_src>

<mosaic_0001>
module attributes {stable_mosaic.version = 11 : i64} {
  func.func @_mm_bn_kernel(%arg0: i32, %arg1: memref<256x147xbf16, #tpu.memory_space<vmem>>, %arg2: memref<147x16xbf16, #tpu.memory_space<vmem>>, %arg3: memref<1x16xf32, #tpu.memory_space<vmem>>, %arg4: memref<1x16xf32, #tpu.memory_space<vmem>>, %arg5: memref<256x16xf32, #tpu.memory_space<vmem>>) attributes {dimension_semantics = [#tpu.dimension_semantics<parallel>], iteration_bounds = array<i64: 2>, scalar_prefetch = 0 : i64, scratch_operands = 0 : i64, tpu.core_type = #tpu.core_type<tc>, window_params = [{transform_indices = @transform_0, window_bounds = array<i64: 256, 147>}, {pipeline_mode = #tpu.pipeline_mode<synchronous>, transform_indices = @transform_1, window_bounds = array<i64: 147, 16>}, {pipeline_mode = #tpu.pipeline_mode<synchronous>, transform_indices = @transform_2, window_bounds = array<i64: 1, 16>}, {pipeline_mode = #tpu.pipeline_mode<synchronous>, transform_indices = @transform_3, window_bounds = array<i64: 1, 16>}, {transform_indices = @transform_4, window_bounds = array<i64: 256, 16>}]} {
    %c0 = arith.constant 0 : index
    %c0_0 = arith.constant 0 : index
    %0 = vector.load %arg1[%c0, %c0_0] : memref<256x147xbf16, #tpu.memory_space<vmem>>, vector<256x147xbf16>
    %c0_1 = arith.constant 0 : index
    %c0_2 = arith.constant 0 : index
    %1 = vector.load %arg2[%c0_1, %c0_2] : memref<147x16xbf16, #tpu.memory_space<vmem>>, vector<147x16xbf16>
    %cst = arith.constant dense<0.000000e+00> : vector<256x16xf32>
    %2 = tpu.matmul %0, %1, %cst {dimension_numbers = #tpu.dot_dimension_numbers<[1], [0], [0], [1], [0, 0, 1, 1], [], []>} : vector<256x147xbf16>, vector<147x16xbf16>, vector<256x16xf32> -> vector<256x16xf32>
    %c0_3 = arith.constant 0 : index
    %c0_4 = arith.constant 0 : index
    %3 = vector.load %arg3[%c0_3, %c0_4] : memref<1x16xf32, #tpu.memory_space<vmem>>, vector<1x16xf32>
    %4 = vector.broadcast %3 : vector<1x16xf32> to vector<256x16xf32>
    %5 = arith.mulf %2, %4 : vector<256x16xf32>
    %c0_5 = arith.constant 0 : index
    %c0_6 = arith.constant 0 : index
    %6 = vector.load %arg4[%c0_5, %c0_6] : memref<1x16xf32, #tpu.memory_space<vmem>>, vector<1x16xf32>
    %7 = vector.broadcast %6 : vector<1x16xf32> to vector<256x16xf32>
    %8 = arith.addf %5, %7 : vector<256x16xf32>
    %cst_7 = arith.constant 0.000000e+00 : f32
    %9 = vector.broadcast %cst_7 : f32 to vector<256x16xf32>
    %10 = arith.maximumf %8, %9 : vector<256x16xf32>
    %c0_8 = arith.constant 0 : index
    %c0_9 = arith.constant 0 : index
    %11 = vector.load %arg5[%c0_8, %c0_9] : memref<256x16xf32, #tpu.memory_space<vmem>>, vector<256x16xf32>
    tpu.vector_store %arg5[%c0_8, %c0_9], %10 {strides = array<i32>} : memref<256x16xf32, #tpu.memory_space<vmem>>, vector<256x16xf32>,
    return
  }
  func.func @transform_0(%arg0: i32) -> (i32, i32) {
    %c0_i32 = arith.constant 0 : i32
    %c0_i32_0 = arith.constant 0 : i32
    return %arg0, %c0_i32 : i32, i32
  }
  func.func @transform_1(%arg0: i32) -> (i32, i32) {
    %c0_i32 = arith.constant 0 : i32
    %c0_i32_0 = arith.constant 0 : i32
    %c0_i32_1 = arith.constant 0 : i32
    return %c0_i32, %c0_i32_0 : i32, i32
  }
  func.func @transform_2(%arg0: i32) -> (i32, i32) {
    %c0_i32 = arith.constant 0 : i32
    %c0_i32_0 = arith.constant 0 : i32
    %c0_i32_1 = arith.constant 0 : i32
    return %c0_i32, %c0_i32_0 : i32, i32
  }
  func.func @transform_3(%arg0: i32) -> (i32, i32) {
    %c0_i32 = arith.constant 0 : i32
    %c0_i32_0 = arith.constant 0 : i32
    %c0_i32_1 = arith.constant 0 : i32
    return %c0_i32, %c0_i32_0 : i32, i32
  }
  func.func @transform_4(%arg0: i32) -> (i32, i32) {
    %c0_i32 = arith.constant 0 : i32
    %c0_i32_0 = arith.constant 0 : i32
    return %arg0, %c0_i32 : i32, i32
  }
}

module attributes {stable_mosaic.version = 11 : i64} {
  func.func @_maxpool_kernel(%arg0: i32, %arg1: memref<128x9x16xf32, #tpu.memory_space<vmem>>, %arg2: memref<128x16xf32, #tpu.memory_space<vmem>>) attributes {dimension_semantics = [#tpu.dimension_semantics<parallel>], iteration_bounds = array<i64: 1>, scalar_prefetch = 0 : i64, scratch_operands = 0 : i64, tpu.core_type = #tpu.core_type<tc>, window_params = [{transform_indices = @transform_0, window_bounds = array<i64: 128, 9, 16>}, {transform_indices = @transform_1, window_bounds = array<i64: 128, 16>}]} {
    %c0 = arith.constant 0 : index
    %c0_0 = arith.constant 0 : index
    %c0_1 = arith.constant 0 : index
    %0 = vector.load %arg1[%c0, %c0_0, %c0_1] : memref<128x9x16xf32, #tpu.memory_space<vmem>>, vector<128x9x16xf32>
    %cst = arith.constant dense<0xFF800000> : vector<128x16xf32>
    %1 = vector.multi_reduction <maximumf>, %0, %cst [1] : vector<128x9x16xf32> to vector<128x16xf32>
    %c0_2 = arith.constant 0 : index
    %c0_3 = arith.constant 0 : index
    %2 = vector.load %arg2[%c0_2, %c0_3] : memref<128x16xf32, #tpu.memory_space<vmem>>, vector<128x16xf32>
    tpu.vector_store %arg2[%c0_2, %c0_3], %1 {strides = array<i32>} : memref<128x16xf32, #tpu.memory_space<vmem>>, vector<128x16xf32>,
    return
  }
  func.func @transform_0(%arg0: i32) -> (i32, i32, i32) {
    %c0_i32 = arith.constant 0 : i32
    %c0_i32_0 = arith.constant 0 : i32
    %c0_i32_1 = arith.constant 0 : i32
    return %arg0, %c0_i32, %c0_i32_0 : i32, i32, i32
  }
  func.func @transform_1(%arg0: i32) -> (i32, i32) {
    %c0_i32 = arith.constant 0 : i32
    %c0_i32_0 = arith.constant 0 : i32
    return %arg0, %c0_i32 : i32, i32
  }
}

module attributes {stable_mosaic.version = 11 : i64} {
  func.func @_mm_bn_kernel(%arg0: i32, %arg1: memref<128x16xbf16, #tpu.memory_space<vmem>>, %arg2: memref<16x16xbf16, #tpu.memory_space<vmem>>, %arg3: memref<1x16xf32, #tpu.memory_space<vmem>>, %arg4: memref<1x16xf32, #tpu.memory_space<vmem>>, %arg5: memref<128x16xf32, #tpu.memory_space<vmem>>) attributes {dimension_semantics = [#tpu.dimension_semantics<parallel>], iteration_bounds = array<i64: 1>, scalar_prefetch = 0 : i64, scratch_operands = 0 : i64, tpu.core_type = #tpu.core_type<tc>, window_params = [{transform_indices = @transform_0, window_bounds = array<i64: 128, 16>}, {pipeline_mode = #tpu.pipeline_mode<synchronous>, transform_indices = @transform_1, window_bounds = array<i64: 16, 16>}, {pipeline_mode = #tpu.pipeline_mode<synchronous>, transform_indices = @transform_2, window_bounds = array<i64: 1, 16>}, {pipeline_mode = #tpu.pipeline_mode<synchronous>, transform_indices = @transform_3, window_bounds = array<i64: 1, 16>}, {transform_indices = @transform_4, window_bounds = array<i64: 128, 16>}]} {
    %c0 = arith.constant 0 : index
    %c0_0 = arith.constant 0 : index
    %0 = vector.load %arg1[%c0, %c0_0] : memref<128x16xbf16, #tpu.memory_space<vmem>>, vector<128x16xbf16>
    %c0_1 = arith.constant 0 : index
    %c0_2 = arith.constant 0 : index
    %1 = vector.load %arg2[%c0_1, %c0_2] : memref<16x16xbf16, #tpu.memory_space<vmem>>, vector<16x16xbf16>
    %cst = arith.constant dense<0.000000e+00> : vector<128x16xf32>
    %2 = tpu.matmul %0, %1, %cst {dimension_numbers = #tpu.dot_dimension_numbers<[1], [0], [0], [1], [0, 0, 1, 1], [], []>} : vector<128x16xbf16>, vector<16x16xbf16>, vector<128x16xf32> -> vector<128x16xf32>
    %c0_3 = arith.constant 0 : index
    %c0_4 = arith.constant 0 : index
    %3 = vector.load %arg3[%c0_3, %c0_4] : memref<1x16xf32, #tpu.memory_space<vmem>>, vector<1x16xf32>
    %4 = vector.broadcast %3 : vector<1x16xf32> to vector<128x16xf32>
    %5 = arith.mulf %2, %4 : vector<128x16xf32>
    %c0_5 = arith.constant 0 : index
    %c0_6 = arith.constant 0 : index
    %6 = vector.load %arg4[%c0_5, %c0_6] : memref<1x16xf32, #tpu.memory_space<vmem>>, vector<1x16xf32>
    %7 = vector.broadcast %6 : vector<1x16xf32> to vector<128x16xf32>
    %8 = arith.addf %5, %7 : vector<128x16xf32>
    %cst_7 = arith.constant 0.000000e+00 : f32
    %9 = vector.broadcast %cst_7 : f32 to vector<128x16xf32>
    %10 = arith.maximumf %8, %9 : vector<128x16xf32>
    %c0_8 = arith.constant 0 : index
    %c0_9 = arith.constant 0 : index
    %11 = vector.load %arg5[%c0_8, %c0_9] : memref<128x16xf32, #tpu.memory_space<vmem>>, vector<128x16xf32>
    tpu.vector_store %arg5[%c0_8, %c0_9], %10 {strides = array<i32>} : memref<128x16xf32, #tpu.memory_space<vmem>>, vector<128x16xf32>,
    return
  }
  func.func @transform_0(%arg0: i32) -> (i32, i32) {
    %c0_i32 = arith.constant 0 : i32
    %c0_i32_0 = arith.constant 0 : i32
    return %arg0, %c0_i32 : i32, i32
  }
  func.func @transform_1(%arg0: i32) -> (i32, i32) {
    %c0_i32 = arith.constant 0 : i32
    %c0_i32_0 = arith.constant 0 : i32
    %c0_i32_1 = arith.constant 0 : i32
    return %c0_i32, %c0_i32_0 : i32, i32
  }
  func.func @transform_2(%arg0: i32) -> (i32, i32) {
    %c0_i32 = arith.constant 0 : i32
    %c0_i32_0 = arith.constant 0 : i32
    %c0_i32_1 = arith.constant 0 : i32
    return %c0_i32, %c0_i32_0 : i32, i32
  }
  func.func @transform_3(%arg0: i32) -> (i32, i32) {
    %c0_i32 = arith.constant 0 : i32
    %c0_i32_0 = arith.constant 0 : i32
    %c0_i32_1 = arith.constant 0 : i32
    return %c0_i32, %c0_i32_0 : i32, i32
  }
  func.func @transform_4(%arg0: i32) -> (i32, i32) {
    %c0_i32 = arith.constant 0 : i32
    %c0_i32_0 = arith.constant 0 : i32
    return %arg0, %c0_i32 : i32, i32
  }
}

module attributes {stable_mosaic.version = 11 : i64} {
  func.func @_mm_bn_kernel(%arg0: i32, %arg1: memref<128x144xbf16, #tpu.memory_space<vmem>>, %arg2: memref<144x16xbf16, #tpu.memory_space<vmem>>, %arg3: memref<1x16xf32, #tpu.memory_space<vmem>>, %arg4: memref<1x16xf32, #tpu.memory_space<vmem>>, %arg5: memref<128x16xf32, #tpu.memory_space<vmem>>) attributes {dimension_semantics = [#tpu.dimension_semantics<parallel>], iteration_bounds = array<i64: 1>, scalar_prefetch = 0 : i64, scratch_operands = 0 : i64, tpu.core_type = #tpu.core_type<tc>, window_params = [{transform_indices = @transform_0, window_bounds = array<i64: 128, 144>}, {pipeline_mode = #tpu.pipeline_mode<synchronous>, transform_indices = @transform_1, window_bounds = array<i64: 144, 16>}, {pipeline_mode = #tpu.pipeline_mode<synchronous>, transform_indices = @transform_2, window_bounds = array<i64: 1, 16>}, {pipeline_mode = #tpu.pipeline_mode<synchronous>, transform_indices = @transform_3, window_bounds = array<i64: 1, 16>}, {transform_indices = @transform_4, window_bounds = array<i64: 128, 16>}]} {
    %c0 = arith.constant 0 : index
    %c0_0 = arith.constant 0 : index
    %0 = vector.load %arg1[%c0, %c0_0] : memref<128x144xbf16, #tpu.memory_space<vmem>>, vector<128x144xbf16>
    %c0_1 = arith.constant 0 : index
    %c0_2 = arith.constant 0 : index
    %1 = vector.load %arg2[%c0_1, %c0_2] : memref<144x16xbf16, #tpu.memory_space<vmem>>, vector<144x16xbf16>
    %cst = arith.constant dense<0.000000e+00> : vector<128x16xf32>
    %2 = tpu.matmul %0, %1, %cst {dimension_numbers = #tpu.dot_dimension_numbers<[1], [0], [0], [1], [0, 0, 1, 1], [], []>} : vector<128x144xbf16>, vector<144x16xbf16>, vector<128x16xf32> -> vector<128x16xf32>
    %c0_3 = arith.constant 0 : index
    %c0_4 = arith.constant 0 : index
    %3 = vector.load %arg3[%c0_3, %c0_4] : memref<1x16xf32, #tpu.memory_space<vmem>>, vector<1x16xf32>
    %4 = vector.broadcast %3 : vector<1x16xf32> to vector<128x16xf32>
    %5 = arith.mulf %2, %4 : vector<128x16xf32>
    %c0_5 = arith.constant 0 : index
    %c0_6 = arith.constant 0 : index
    %6 = vector.load %arg4[%c0_5, %c0_6] : memref<1x16xf32, #tpu.memory_space<vmem>>, vector<1x16xf32>
    %7 = vector.broadcast %6 : vector<1x16xf32> to vector<128x16xf32>
    %8 = arith.addf %5, %7 : vector<128x16xf32>
    %cst_7 = arith.constant 0.000000e+00 : f32
    %9 = vector.broadcast %cst_7 : f32 to vector<128x16xf32>
    %10 = arith.maximumf %8, %9 : vector<128x16xf32>
    %c0_8 = arith.constant 0 : index
    %c0_9 = arith.constant 0 : index
    %11 = vector.load %arg5[%c0_8, %c0_9] : memref<128x16xf32, #tpu.memory_space<vmem>>, vector<128x16xf32>
    tpu.vector_store %arg5[%c0_8, %c0_9], %10 {strides = array<i32>} : memref<128x16xf32, #tpu.memory_space<vmem>>, vector<128x16xf32>,
    return
  }
  func.func @transform_0(%arg0: i32) -> (i32, i32) {
    %c0_i32 = arith.constant 0 : i32
    %c0_i32_0 = arith.constant 0 : i32
    return %arg0, %c0_i32 : i32, i32
  }
  func.func @transform_1(%arg0: i32) -> (i32, i32) {
    %c0_i32 = arith.constant 0 : i32
    %c0_i32_0 = arith.constant 0 : i32
    %c0_i32_1 = arith.constant 0 : i32
    return %c0_i32, %c0_i32_0 : i32, i32
  }
  func.func @transform_2(%arg0: i32) -> (i32, i32) {
    %c0_i32 = arith.constant 0 : i32
    %c0_i32_0 = arith.constant 0 : i32
    %c0_i32_1 = arith.constant 0 : i32
    return %c0_i32, %c0_i32_0 : i32, i32
  }
  func.func @transform_3(%arg0: i32) -> (i32, i32) {
    %c0_i32 = arith.constant 0 : i32
    %c0_i32_0 = arith.constant 0 : i32
    %c0_i32_1 = arith.constant 0 : i32
    return %c0_i32, %c0_i32_0 : i32, i32
  }
  func.func @transform_4(%arg0: i32) -> (i32, i32) {
    %c0_i32 = arith.constant 0 : i32
    %c0_i32_0 = arith.constant 0 : i32
    return %arg0, %c0_i32 : i32, i32
  }
}

module attributes {stable_mosaic.version = 11 : i64} {
  func.func @_mm_bn_kernel(%arg0: i32, %arg1: memref<128x16xbf16, #tpu.memory_space<vmem>>, %arg2: memref<16x64xbf16, #tpu.memory_space<vmem>>, %arg3: memref<1x64xf32, #tpu.memory_space<vmem>>, %arg4: memref<1x64xf32, #tpu.memory_space<vmem>>, %arg5: memref<128x64xf32, #tpu.memory_space<vmem>>) attributes {dimension_semantics = [#tpu.dimension_semantics<parallel>], iteration_bounds = array<i64: 1>, scalar_prefetch = 0 : i64, scratch_operands = 0 : i64, tpu.core_type = #tpu.core_type<tc>, window_params = [{transform_indices = @transform_0, window_bounds = array<i64: 128, 16>}, {pipeline_mode = #tpu.pipeline_mode<synchronous>, transform_indices = @transform_1, window_bounds = array<i64: 16, 64>}, {pipeline_mode = #tpu.pipeline_mode<synchronous>, transform_indices = @transform_2, window_bounds = array<i64: 1, 64>}, {pipeline_mode = #tpu.pipeline_mode<synchronous>, transform_indices = @transform_3, window_bounds = array<i64: 1, 64>}, {transform_indices = @transform_4, window_bounds = array<i64: 128, 64>}]} {
    %c0 = arith.constant 0 : index
    %c0_0 = arith.constant 0 : index
    %0 = vector.load %arg1[%c0, %c0_0] : memref<128x16xbf16, #tpu.memory_space<vmem>>, vector<128x16xbf16>
    %c0_1 = arith.constant 0 : index
    %c0_2 = arith.constant 0 : index
    %1 = vector.load %arg2[%c0_1, %c0_2] : memref<16x64xbf16, #tpu.memory_space<vmem>>, vector<16x64xbf16>
    %cst = arith.constant dense<0.000000e+00> : vector<128x64xf32>
    %2 = tpu.matmul %0, %1, %cst {dimension_numbers = #tpu.dot_dimension_numbers<[1], [0], [0], [1], [0, 0, 1, 1], [], []>} : vector<128x16xbf16>, vector<16x64xbf16>, vector<128x64xf32> -> vector<128x64xf32>
    %c0_3 = arith.constant 0 : index
    %c0_4 = arith.constant 0 : index
    %3 = vector.load %arg3[%c0_3, %c0_4] : memref<1x64xf32, #tpu.memory_space<vmem>>, vector<1x64xf32>
    %4 = vector.broadcast %3 : vector<1x64xf32> to vector<128x64xf32>
    %5 = arith.mulf %2, %4 : vector<128x64xf32>
    %c0_5 = arith.constant 0 : index
    %c0_6 = arith.constant 0 : index
    %6 = vector.load %arg4[%c0_5, %c0_6] : memref<1x64xf32, #tpu.memory_space<vmem>>, vector<1x64xf32>
    %7 = vector.broadcast %6 : vector<1x64xf32> to vector<128x64xf32>
    %8 = arith.addf %5, %7 : vector<128x64xf32>
    %c0_7 = arith.constant 0 : index
    %c0_8 = arith.constant 0 : index
    %9 = vector.load %arg5[%c0_7, %c0_8] : memref<128x64xf32, #tpu.memory_space<vmem>>, vector<128x64xf32>
    tpu.vector_store %arg5[%c0_7, %c0_8], %8 {strides = array<i32>} : memref<128x64xf32, #tpu.memory_space<vmem>>, vector<128x64xf32>,
    return
  }
  func.func @transform_0(%arg0: i32) -> (i32, i32) {
    %c0_i32 = arith.constant 0 : i32
    %c0_i32_0 = arith.constant 0 : i32
    return %arg0, %c0_i32 : i32, i32
  }
  func.func @transform_1(%arg0: i32) -> (i32, i32) {
    %c0_i32 = arith.constant 0 : i32
    %c0_i32_0 = arith.constant 0 : i32
    %c0_i32_1 = arith.constant 0 : i32
    return %c0_i32, %c0_i32_0 : i32, i32
  }
  func.func @transform_2(%arg0: i32) -> (i32, i32) {
    %c0_i32 = arith.constant 0 : i32
    %c0_i32_0 = arith.constant 0 : i32
    %c0_i32_1 = arith.constant 0 : i32
    return %c0_i32, %c0_i32_0 : i32, i32
  }
  func.func @transform_3(%arg0: i32) -> (i32, i32) {
    %c0_i32 = arith.constant 0 : i32
    %c0_i32_0 = arith.constant 0 : i32
    %c0_i32_1 = arith.constant 0 : i32
    return %c0_i32, %c0_i32_0 : i32, i32
  }
  func.func @transform_4(%arg0: i32) -> (i32, i32) {
    %c0_i32 = arith.constant 0 : i32
    %c0_i32_0 = arith.constant 0 : i32
    return %arg0, %c0_i32 : i32, i32
  }
}

module attributes {stable_mosaic.version = 11 : i64} {
  func.func @_mm_bn_res_relu_kernel(%arg0: i32, %arg1: memref<128x16xbf16, #tpu.memory_space<vmem>>, %arg2: memref<16x64xbf16, #tpu.memory_space<vmem>>, %arg3: memref<1x64xf32, #tpu.memory_space<vmem>>, %arg4: memref<1x64xf32, #tpu.memory_space<vmem>>, %arg5: memref<128x64xf32, #tpu.memory_space<vmem>>, %arg6: memref<128x64xf32, #tpu.memory_space<vmem>>) attributes {dimension_semantics = [#tpu.dimension_semantics<parallel>], iteration_bounds = array<i64: 1>, scalar_prefetch = 0 : i64, scratch_operands = 0 : i64, tpu.core_type = #tpu.core_type<tc>, window_params = [{transform_indices = @transform_0, window_bounds = array<i64: 128, 16>}, {pipeline_mode = #tpu.pipeline_mode<synchronous>, transform_indices = @transform_1, window_bounds = array<i64: 16, 64>}, {pipeline_mode = #tpu.pipeline_mode<synchronous>, transform_indices = @transform_2, window_bounds = array<i64: 1, 64>}, {pipeline_mode = #tpu.pipeline_mode<synchronous>, transform_indices = @transform_3, window_bounds = array<i64: 1, 64>}, {transform_indices = @transform_4, window_bounds = array<i64: 128, 64>}, {transform_indices = @transform_5, window_bounds = array<i64: 128, 64>}]} {
    %c0 = arith.constant 0 : index
    %c0_0 = arith.constant 0 : index
    %0 = vector.load %arg1[%c0, %c0_0] : memref<128x16xbf16, #tpu.memory_space<vmem>>, vector<128x16xbf16>
    %c0_1 = arith.constant 0 : index
    %c0_2 = arith.constant 0 : index
    %1 = vector.load %arg2[%c0_1, %c0_2] : memref<16x64xbf16, #tpu.memory_space<vmem>>, vector<16x64xbf16>
    %cst = arith.constant dense<0.000000e+00> : vector<128x64xf32>
    %2 = tpu.matmul %0, %1, %cst {dimension_numbers = #tpu.dot_dimension_numbers<[1], [0], [0], [1], [0, 0, 1, 1], [], []>} : vector<128x16xbf16>, vector<16x64xbf16>, vector<128x64xf32> -> vector<128x64xf32>
    %c0_3 = arith.constant 0 : index
    %c0_4 = arith.constant 0 : index
    %3 = vector.load %arg3[%c0_3, %c0_4] : memref<1x64xf32, #tpu.memory_space<vmem>>, vector<1x64xf32>
    %4 = vector.broadcast %3 : vector<1x64xf32> to vector<128x64xf32>
    %5 = arith.mulf %2, %4 : vector<128x64xf32>
    %c0_5 = arith.constant 0 : index
    %c0_6 = arith.constant 0 : index
    %6 = vector.load %arg4[%c0_5, %c0_6] : memref<1x64xf32, #tpu.memory_space<vmem>>, vector<1x64xf32>
    %7 = vector.broadcast %6 : vector<1x64xf32> to vector<128x64xf32>
    %8 = arith.addf %5, %7 : vector<128x64xf32>
    %c0_7 = arith.constant 0 : index
    %c0_8 = arith.constant 0 : index
    %9 = vector.load %arg5[%c0_7, %c0_8] : memref<128x64xf32, #tpu.memory_space<vmem>>, vector<128x64xf32>
    %10 = arith.addf %8, %9 : vector<128x64xf32>
    %cst_9 = arith.constant 0.000000e+00 : f32
    %11 = vector.broadcast %cst_9 : f32 to vector<128x64xf32>
    %12 = arith.maximumf %10, %11 : vector<128x64xf32>
    %c0_10 = arith.constant 0 : index
    %c0_11 = arith.constant 0 : index
    %13 = vector.load %arg6[%c0_10, %c0_11] : memref<128x64xf32, #tpu.memory_space<vmem>>, vector<128x64xf32>
    tpu.vector_store %arg6[%c0_10, %c0_11], %12 {strides = array<i32>} : memref<128x64xf32, #tpu.memory_space<vmem>>, vector<128x64xf32>,
    return
  }
  func.func @transform_0(%arg0: i32) -> (i32, i32) {
    %c0_i32 = arith.constant 0 : i32
    %c0_i32_0 = arith.constant 0 : i32
    return %arg0, %c0_i32 : i32, i32
  }
  func.func @transform_1(%arg0: i32) -> (i32, i32) {
    %c0_i32 = arith.constant 0 : i32
    %c0_i32_0 = arith.constant 0 : i32
    %c0_i32_1 = arith.constant 0 : i32
    return %c0_i32, %c0_i32_0 : i32, i32
  }
  func.func @transform_2(%arg0: i32) -> (i32, i32) {
    %c0_i32 = arith.constant 0 : i32
    %c0_i32_0 = arith.constant 0 : i32
    %c0_i32_1 = arith.constant 0 : i32
    return %c0_i32, %c0_i32_0 : i32, i32
  }
  func.func @transform_3(%arg0: i32) -> (i32, i32) {
    %c0_i32 = arith.constant 0 : i32
    %c0_i32_0 = arith.constant 0 : i32
    %c0_i32_1 = arith.constant 0 : i32
    return %c0_i32, %c0_i32_0 : i32, i32
  }
  func.func @transform_4(%arg0: i32) -> (i32, i32) {
    %c0_i32 = arith.constant 0 : i32
    %c0_i32_0 = arith.constant 0 : i32
    return %arg0, %c0_i32 : i32, i32
  }
  func.func @transform_5(%arg0: i32) -> (i32, i32) {
    %c0_i32 = arith.constant 0 : i32
    %c0_i32_0 = arith.constant 0 : i32
    return %arg0, %c0_i32 : i32, i32
  }
}

module attributes {stable_mosaic.version = 11 : i64} {
  func.func @_mm_bn_kernel(%arg0: i32, %arg1: memref<128x64xbf16, #tpu.memory_space<vmem>>, %arg2: memref<64x16xbf16, #tpu.memory_space<vmem>>, %arg3: memref<1x16xf32, #tpu.memory_space<vmem>>, %arg4: memref<1x16xf32, #tpu.memory_space<vmem>>, %arg5: memref<128x16xf32, #tpu.memory_space<vmem>>) attributes {dimension_semantics = [#tpu.dimension_semantics<parallel>], iteration_bounds = array<i64: 1>, scalar_prefetch = 0 : i64, scratch_operands = 0 : i64, tpu.core_type = #tpu.core_type<tc>, window_params = [{transform_indices = @transform_0, window_bounds = array<i64: 128, 64>}, {pipeline_mode = #tpu.pipeline_mode<synchronous>, transform_indices = @transform_1, window_bounds = array<i64: 64, 16>}, {pipeline_mode = #tpu.pipeline_mode<synchronous>, transform_indices = @transform_2, window_bounds = array<i64: 1, 16>}, {pipeline_mode = #tpu.pipeline_mode<synchronous>, transform_indices = @transform_3, window_bounds = array<i64: 1, 16>}, {transform_indices = @transform_4, window_bounds = array<i64: 128, 16>}]} {
    %c0 = arith.constant 0 : index
    %c0_0 = arith.constant 0 : index
    %0 = vector.load %arg1[%c0, %c0_0] : memref<128x64xbf16, #tpu.memory_space<vmem>>, vector<128x64xbf16>
    %c0_1 = arith.constant 0 : index
    %c0_2 = arith.constant 0 : index
    %1 = vector.load %arg2[%c0_1, %c0_2] : memref<64x16xbf16, #tpu.memory_space<vmem>>, vector<64x16xbf16>
    %cst = arith.constant dense<0.000000e+00> : vector<128x16xf32>
    %2 = tpu.matmul %0, %1, %cst {dimension_numbers = #tpu.dot_dimension_numbers<[1], [0], [0], [1], [0, 0, 1, 1], [], []>} : vector<128x64xbf16>, vector<64x16xbf16>, vector<128x16xf32> -> vector<128x16xf32>
    %c0_3 = arith.constant 0 : index
    %c0_4 = arith.constant 0 : index
    %3 = vector.load %arg3[%c0_3, %c0_4] : memref<1x16xf32, #tpu.memory_space<vmem>>, vector<1x16xf32>
    %4 = vector.broadcast %3 : vector<1x16xf32> to vector<128x16xf32>
    %5 = arith.mulf %2, %4 : vector<128x16xf32>
    %c0_5 = arith.constant 0 : index
    %c0_6 = arith.constant 0 : index
    %6 = vector.load %arg4[%c0_5, %c0_6] : memref<1x16xf32, #tpu.memory_space<vmem>>, vector<1x16xf32>
    %7 = vector.broadcast %6 : vector<1x16xf32> to vector<128x16xf32>
    %8 = arith.addf %5, %7 : vector<128x16xf32>
    %cst_7 = arith.constant 0.000000e+00 : f32
    %9 = vector.broadcast %cst_7 : f32 to vector<128x16xf32>
    %10 = arith.maximumf %8, %9 : vector<128x16xf32>
    %c0_8 = arith.constant 0 : index
    %c0_9 = arith.constant 0 : index
    %11 = vector.load %arg5[%c0_8, %c0_9] : memref<128x16xf32, #tpu.memory_space<vmem>>, vector<128x16xf32>
    tpu.vector_store %arg5[%c0_8, %c0_9], %10 {strides = array<i32>} : memref<128x16xf32, #tpu.memory_space<vmem>>, vector<128x16xf32>,
    return
  }
  func.func @transform_0(%arg0: i32) -> (i32, i32) {
    %c0_i32 = arith.constant 0 : i32
    %c0_i32_0 = arith.constant 0 : i32
    return %arg0, %c0_i32 : i32, i32
  }
  func.func @transform_1(%arg0: i32) -> (i32, i32) {
    %c0_i32 = arith.constant 0 : i32
    %c0_i32_0 = arith.constant 0 : i32
    %c0_i32_1 = arith.constant 0 : i32
    return %c0_i32, %c0_i32_0 : i32, i32
  }
  func.func @transform_2(%arg0: i32) -> (i32, i32) {
    %c0_i32 = arith.constant 0 : i32
    %c0_i32_0 = arith.constant 0 : i32
    %c0_i32_1 = arith.constant 0 : i32
    return %c0_i32, %c0_i32_0 : i32, i32
  }
  func.func @transform_3(%arg0: i32) -> (i32, i32) {
    %c0_i32 = arith.constant 0 : i32
    %c0_i32_0 = arith.constant 0 : i32
    %c0_i32_1 = arith.constant 0 : i32
    return %c0_i32, %c0_i32_0 : i32, i32
  }
  func.func @transform_4(%arg0: i32) -> (i32, i32) {
    %c0_i32 = arith.constant 0 : i32
    %c0_i32_0 = arith.constant 0 : i32
    return %arg0, %c0_i32 : i32, i32
  }
}

module attributes {stable_mosaic.version = 11 : i64} {
  func.func @_mm_bn_kernel(%arg0: i32, %arg1: memref<128x64xbf16, #tpu.memory_space<vmem>>, %arg2: memref<64x32xbf16, #tpu.memory_space<vmem>>, %arg3: memref<1x32xf32, #tpu.memory_space<vmem>>, %arg4: memref<1x32xf32, #tpu.memory_space<vmem>>, %arg5: memref<128x32xf32, #tpu.memory_space<vmem>>) attributes {dimension_semantics = [#tpu.dimension_semantics<parallel>], iteration_bounds = array<i64: 1>, scalar_prefetch = 0 : i64, scratch_operands = 0 : i64, tpu.core_type = #tpu.core_type<tc>, window_params = [{transform_indices = @transform_0, window_bounds = array<i64: 128, 64>}, {pipeline_mode = #tpu.pipeline_mode<synchronous>, transform_indices = @transform_1, window_bounds = array<i64: 64, 32>}, {pipeline_mode = #tpu.pipeline_mode<synchronous>, transform_indices = @transform_2, window_bounds = array<i64: 1, 32>}, {pipeline_mode = #tpu.pipeline_mode<synchronous>, transform_indices = @transform_3, window_bounds = array<i64: 1, 32>}, {transform_indices = @transform_4, window_bounds = array<i64: 128, 32>}]} {
    %c0 = arith.constant 0 : index
    %c0_0 = arith.constant 0 : index
    %0 = vector.load %arg1[%c0, %c0_0] : memref<128x64xbf16, #tpu.memory_space<vmem>>, vector<128x64xbf16>
    %c0_1 = arith.constant 0 : index
    %c0_2 = arith.constant 0 : index
    %1 = vector.load %arg2[%c0_1, %c0_2] : memref<64x32xbf16, #tpu.memory_space<vmem>>, vector<64x32xbf16>
    %cst = arith.constant dense<0.000000e+00> : vector<128x32xf32>
    %2 = tpu.matmul %0, %1, %cst {dimension_numbers = #tpu.dot_dimension_numbers<[1], [0], [0], [1], [0, 0, 1, 1], [], []>} : vector<128x64xbf16>, vector<64x32xbf16>, vector<128x32xf32> -> vector<128x32xf32>
    %c0_3 = arith.constant 0 : index
    %c0_4 = arith.constant 0 : index
    %3 = vector.load %arg3[%c0_3, %c0_4] : memref<1x32xf32, #tpu.memory_space<vmem>>, vector<1x32xf32>
    %4 = vector.broadcast %3 : vector<1x32xf32> to vector<128x32xf32>
    %5 = arith.mulf %2, %4 : vector<128x32xf32>
    %c0_5 = arith.constant 0 : index
    %c0_6 = arith.constant 0 : index
    %6 = vector.load %arg4[%c0_5, %c0_6] : memref<1x32xf32, #tpu.memory_space<vmem>>, vector<1x32xf32>
    %7 = vector.broadcast %6 : vector<1x32xf32> to vector<128x32xf32>
    %8 = arith.addf %5, %7 : vector<128x32xf32>
    %cst_7 = arith.constant 0.000000e+00 : f32
    %9 = vector.broadcast %cst_7 : f32 to vector<128x32xf32>
    %10 = arith.maximumf %8, %9 : vector<128x32xf32>
    %c0_8 = arith.constant 0 : index
    %c0_9 = arith.constant 0 : index
    %11 = vector.load %arg5[%c0_8, %c0_9] : memref<128x32xf32, #tpu.memory_space<vmem>>, vector<128x32xf32>
    tpu.vector_store %arg5[%c0_8, %c0_9], %10 {strides = array<i32>} : memref<128x32xf32, #tpu.memory_space<vmem>>, vector<128x32xf32>,
    return
  }
  func.func @transform_0(%arg0: i32) -> (i32, i32) {
    %c0_i32 = arith.constant 0 : i32
    %c0_i32_0 = arith.constant 0 : i32
    return %arg0, %c0_i32 : i32, i32
  }
  func.func @transform_1(%arg0: i32) -> (i32, i32) {
    %c0_i32 = arith.constant 0 : i32
    %c0_i32_0 = arith.constant 0 : i32
    %c0_i32_1 = arith.constant 0 : i32
    return %c0_i32, %c0_i32_0 : i32, i32
  }
  func.func @transform_2(%arg0: i32) -> (i32, i32) {
    %c0_i32 = arith.constant 0 : i32
    %c0_i32_0 = arith.constant 0 : i32
    %c0_i32_1 = arith.constant 0 : i32
    return %c0_i32, %c0_i32_0 : i32, i32
  }
  func.func @transform_3(%arg0: i32) -> (i32, i32) {
    %c0_i32 = arith.constant 0 : i32
    %c0_i32_0 = arith.constant 0 : i32
    %c0_i32_1 = arith.constant 0 : i32
    return %c0_i32, %c0_i32_0 : i32, i32
  }
  func.func @transform_4(%arg0: i32) -> (i32, i32) {
    %c0_i32 = arith.constant 0 : i32
    %c0_i32_0 = arith.constant 0 : i32
    return %arg0, %c0_i32 : i32, i32
  }
}

module attributes {stable_mosaic.version = 11 : i64} {
  func.func @_mm_bn_kernel(%arg0: i32, %arg1: memref<32x288xbf16, #tpu.memory_space<vmem>>, %arg2: memref<288x32xbf16, #tpu.memory_space<vmem>>, %arg3: memref<1x32xf32, #tpu.memory_space<vmem>>, %arg4: memref<1x32xf32, #tpu.memory_space<vmem>>, %arg5: memref<32x32xf32, #tpu.memory_space<vmem>>) attributes {dimension_semantics = [#tpu.dimension_semantics<parallel>], iteration_bounds = array<i64: 1>, scalar_prefetch = 0 : i64, scratch_operands = 0 : i64, tpu.core_type = #tpu.core_type<tc>, window_params = [{transform_indices = @transform_0, window_bounds = array<i64: 32, 288>}, {pipeline_mode = #tpu.pipeline_mode<synchronous>, transform_indices = @transform_1, window_bounds = array<i64: 288, 32>}, {pipeline_mode = #tpu.pipeline_mode<synchronous>, transform_indices = @transform_2, window_bounds = array<i64: 1, 32>}, {pipeline_mode = #tpu.pipeline_mode<synchronous>, transform_indices = @transform_3, window_bounds = array<i64: 1, 32>}, {transform_indices = @transform_4, window_bounds = array<i64: 32, 32>}]} {
    %c0 = arith.constant 0 : index
    %c0_0 = arith.constant 0 : index
    %0 = vector.load %arg1[%c0, %c0_0] : memref<32x288xbf16, #tpu.memory_space<vmem>>, vector<32x288xbf16>
    %c0_1 = arith.constant 0 : index
    %c0_2 = arith.constant 0 : index
    %1 = vector.load %arg2[%c0_1, %c0_2] : memref<288x32xbf16, #tpu.memory_space<vmem>>, vector<288x32xbf16>
    %cst = arith.constant dense<0.000000e+00> : vector<32x32xf32>
    %2 = tpu.matmul %0, %1, %cst {dimension_numbers = #tpu.dot_dimension_numbers<[1], [0], [0], [1], [0, 0, 1, 1], [], []>} : vector<32x288xbf16>, vector<288x32xbf16>, vector<32x32xf32> -> vector<32x32xf32>
    %c0_3 = arith.constant 0 : index
    %c0_4 = arith.constant 0 : index
    %3 = vector.load %arg3[%c0_3, %c0_4] : memref<1x32xf32, #tpu.memory_space<vmem>>, vector<1x32xf32>
    %4 = vector.broadcast %3 : vector<1x32xf32> to vector<32x32xf32>
    %5 = arith.mulf %2, %4 : vector<32x32xf32>
    %c0_5 = arith.constant 0 : index
    %c0_6 = arith.constant 0 : index
    %6 = vector.load %arg4[%c0_5, %c0_6] : memref<1x32xf32, #tpu.memory_space<vmem>>, vector<1x32xf32>
    %7 = vector.broadcast %6 : vector<1x32xf32> to vector<32x32xf32>
    %8 = arith.addf %5, %7 : vector<32x32xf32>
    %cst_7 = arith.constant 0.000000e+00 : f32
    %9 = vector.broadcast %cst_7 : f32 to vector<32x32xf32>
    %10 = arith.maximumf %8, %9 : vector<32x32xf32>
    %c0_8 = arith.constant 0 : index
    %c0_9 = arith.constant 0 : index
    %11 = vector.load %arg5[%c0_8, %c0_9] : memref<32x32xf32, #tpu.memory_space<vmem>>, vector<32x32xf32>
    tpu.vector_store %arg5[%c0_8, %c0_9], %10 {strides = array<i32>} : memref<32x32xf32, #tpu.memory_space<vmem>>, vector<32x32xf32>,
    return
  }
  func.func @transform_0(%arg0: i32) -> (i32, i32) {
    %c0_i32 = arith.constant 0 : i32
    %c0_i32_0 = arith.constant 0 : i32
    return %arg0, %c0_i32 : i32, i32
  }
  func.func @transform_1(%arg0: i32) -> (i32, i32) {
    %c0_i32 = arith.constant 0 : i32
    %c0_i32_0 = arith.constant 0 : i32
    %c0_i32_1 = arith.constant 0 : i32
    return %c0_i32, %c0_i32_0 : i32, i32
  }
  func.func @transform_2(%arg0: i32) -> (i32, i32) {
    %c0_i32 = arith.constant 0 : i32
    %c0_i32_0 = arith.constant 0 : i32
    %c0_i32_1 = arith.constant 0 : i32
    return %c0_i32, %c0_i32_0 : i32, i32
  }
  func.func @transform_3(%arg0: i32) -> (i32, i32) {
    %c0_i32 = arith.constant 0 : i32
    %c0_i32_0 = arith.constant 0 : i32
    %c0_i32_1 = arith.constant 0 : i32
    return %c0_i32, %c0_i32_0 : i32, i32
  }
  func.func @transform_4(%arg0: i32) -> (i32, i32) {
    %c0_i32 = arith.constant 0 : i32
    %c0_i32_0 = arith.constant 0 : i32
    return %arg0, %c0_i32 : i32, i32
  }
}

module attributes {stable_mosaic.version = 11 : i64} {
  func.func @_mm_bn_kernel(%arg0: i32, %arg1: memref<32x64xbf16, #tpu.memory_space<vmem>>, %arg2: memref<64x128xbf16, #tpu.memory_space<vmem>>, %arg3: memref<1x128xf32, #tpu.memory_space<vmem>>, %arg4: memref<1x128xf32, #tpu.memory_space<vmem>>, %arg5: memref<32x128xf32, #tpu.memory_space<vmem>>) attributes {dimension_semantics = [#tpu.dimension_semantics<parallel>], iteration_bounds = array<i64: 1>, scalar_prefetch = 0 : i64, scratch_operands = 0 : i64, tpu.core_type = #tpu.core_type<tc>, window_params = [{transform_indices = @transform_0, window_bounds = array<i64: 32, 64>}, {pipeline_mode = #tpu.pipeline_mode<synchronous>, transform_indices = @transform_1, window_bounds = array<i64: 64, 128>}, {pipeline_mode = #tpu.pipeline_mode<synchronous>, transform_indices = @transform_2, window_bounds = array<i64: 1, 128>}, {pipeline_mode = #tpu.pipeline_mode<synchronous>, transform_indices = @transform_3, window_bounds = array<i64: 1, 128>}, {transform_indices = @transform_4, window_bounds = array<i64: 32, 128>}]} {
    %c0 = arith.constant 0 : index
    %c0_0 = arith.constant 0 : index
    %0 = vector.load %arg1[%c0, %c0_0] : memref<32x64xbf16, #tpu.memory_space<vmem>>, vector<32x64xbf16>
    %c0_1 = arith.constant 0 : index
    %c0_2 = arith.constant 0 : index
    %1 = vector.load %arg2[%c0_1, %c0_2] : memref<64x128xbf16, #tpu.memory_space<vmem>>, vector<64x128xbf16>
    %cst = arith.constant dense<0.000000e+00> : vector<32x128xf32>
    %2 = tpu.matmul %0, %1, %cst {dimension_numbers = #tpu.dot_dimension_numbers<[1], [0], [0], [1], [0, 0, 1, 1], [], []>} : vector<32x64xbf16>, vector<64x128xbf16>, vector<32x128xf32> -> vector<32x128xf32>
    %c0_3 = arith.constant 0 : index
    %c0_4 = arith.constant 0 : index
    %3 = vector.load %arg3[%c0_3, %c0_4] : memref<1x128xf32, #tpu.memory_space<vmem>>, vector<1x128xf32>
    %4 = vector.broadcast %3 : vector<1x128xf32> to vector<32x128xf32>
    %5 = arith.mulf %2, %4 : vector<32x128xf32>
    %c0_5 = arith.constant 0 : index
    %c0_6 = arith.constant 0 : index
    %6 = vector.load %arg4[%c0_5, %c0_6] : memref<1x128xf32, #tpu.memory_space<vmem>>, vector<1x128xf32>
    %7 = vector.broadcast %6 : vector<1x128xf32> to vector<32x128xf32>
    %8 = arith.addf %5, %7 : vector<32x128xf32>
    %c0_7 = arith.constant 0 : index
    %c0_8 = arith.constant 0 : index
    %9 = vector.load %arg5[%c0_7, %c0_8] : memref<32x128xf32, #tpu.memory_space<vmem>>, vector<32x128xf32>
    tpu.vector_store %arg5[%c0_7, %c0_8], %8 {strides = array<i32>} : memref<32x128xf32, #tpu.memory_space<vmem>>, vector<32x128xf32>,
    return
  }
  func.func @transform_0(%arg0: i32) -> (i32, i32) {
    %c0_i32 = arith.constant 0 : i32
    %c0_i32_0 = arith.constant 0 : i32
    return %arg0, %c0_i32 : i32, i32
  }
  func.func @transform_1(%arg0: i32) -> (i32, i32) {
    %c0_i32 = arith.constant 0 : i32
    %c0_i32_0 = arith.constant 0 : i32
    %c0_i32_1 = arith.constant 0 : i32
    return %c0_i32, %c0_i32_0 : i32, i32
  }
  func.func @transform_2(%arg0: i32) -> (i32, i32) {
    %c0_i32 = arith.constant 0 : i32
    %c0_i32_0 = arith.constant 0 : i32
    %c0_i32_1 = arith.constant 0 : i32
    return %c0_i32, %c0_i32_0 : i32, i32
  }
  func.func @transform_3(%arg0: i32) -> (i32, i32) {
    %c0_i32 = arith.constant 0 : i32
    %c0_i32_0 = arith.constant 0 : i32
    %c0_i32_1 = arith.constant 0 : i32
    return %c0_i32, %c0_i32_0 : i32, i32
  }
  func.func @transform_4(%arg0: i32) -> (i32, i32) {
    %c0_i32 = arith.constant 0 : i32
    %c0_i32_0 = arith.constant 0 : i32
    return %arg0, %c0_i32 : i32, i32
  }
}

module attributes {stable_mosaic.version = 11 : i64} {
  func.func @_mm_bn_res_relu_kernel(%arg0: i32, %arg1: memref<32x32xbf16, #tpu.memory_space<vmem>>, %arg2: memref<32x128xbf16, #tpu.memory_space<vmem>>, %arg3: memref<1x128xf32, #tpu.memory_space<vmem>>, %arg4: memref<1x128xf32, #tpu.memory_space<vmem>>, %arg5: memref<32x128xf32, #tpu.memory_space<vmem>>, %arg6: memref<32x128xf32, #tpu.memory_space<vmem>>) attributes {dimension_semantics = [#tpu.dimension_semantics<parallel>], iteration_bounds = array<i64: 1>, scalar_prefetch = 0 : i64, scratch_operands = 0 : i64, tpu.core_type = #tpu.core_type<tc>, window_params = [{transform_indices = @transform_0, window_bounds = array<i64: 32, 32>}, {pipeline_mode = #tpu.pipeline_mode<synchronous>, transform_indices = @transform_1, window_bounds = array<i64: 32, 128>}, {pipeline_mode = #tpu.pipeline_mode<synchronous>, transform_indices = @transform_2, window_bounds = array<i64: 1, 128>}, {pipeline_mode = #tpu.pipeline_mode<synchronous>, transform_indices = @transform_3, window_bounds = array<i64: 1, 128>}, {transform_indices = @transform_4, window_bounds = array<i64: 32, 128>}, {transform_indices = @transform_5, window_bounds = array<i64: 32, 128>}]} {
    %c0 = arith.constant 0 : index
    %c0_0 = arith.constant 0 : index
    %0 = vector.load %arg1[%c0, %c0_0] : memref<32x32xbf16, #tpu.memory_space<vmem>>, vector<32x32xbf16>
    %c0_1 = arith.constant 0 : index
    %c0_2 = arith.constant 0 : index
    %1 = vector.load %arg2[%c0_1, %c0_2] : memref<32x128xbf16, #tpu.memory_space<vmem>>, vector<32x128xbf16>
    %cst = arith.constant dense<0.000000e+00> : vector<32x128xf32>
    %2 = tpu.matmul %0, %1, %cst {dimension_numbers = #tpu.dot_dimension_numbers<[1], [0], [0], [1], [0, 0, 1, 1], [], []>} : vector<32x32xbf16>, vector<32x128xbf16>, vector<32x128xf32> -> vector<32x128xf32>
    %c0_3 = arith.constant 0 : index
    %c0_4 = arith.constant 0 : index
    %3 = vector.load %arg3[%c0_3, %c0_4] : memref<1x128xf32, #tpu.memory_space<vmem>>, vector<1x128xf32>
    %4 = vector.broadcast %3 : vector<1x128xf32> to vector<32x128xf32>
    %5 = arith.mulf %2, %4 : vector<32x128xf32>
    %c0_5 = arith.constant 0 : index
    %c0_6 = arith.constant 0 : index
    %6 = vector.load %arg4[%c0_5, %c0_6] : memref<1x128xf32, #tpu.memory_space<vmem>>, vector<1x128xf32>
    %7 = vector.broadcast %6 : vector<1x128xf32> to vector<32x128xf32>
    %8 = arith.addf %5, %7 : vector<32x128xf32>
    %c0_7 = arith.constant 0 : index
    %c0_8 = arith.constant 0 : index
    %9 = vector.load %arg5[%c0_7, %c0_8] : memref<32x128xf32, #tpu.memory_space<vmem>>, vector<32x128xf32>
    %10 = arith.addf %8, %9 : vector<32x128xf32>
    %cst_9 = arith.constant 0.000000e+00 : f32
    %11 = vector.broadcast %cst_9 : f32 to vector<32x128xf32>
    %12 = arith.maximumf %10, %11 : vector<32x128xf32>
    %c0_10 = arith.constant 0 : index
    %c0_11 = arith.constant 0 : index
    %13 = vector.load %arg6[%c0_10, %c0_11] : memref<32x128xf32, #tpu.memory_space<vmem>>, vector<32x128xf32>
    tpu.vector_store %arg6[%c0_10, %c0_11], %12 {strides = array<i32>} : memref<32x128xf32, #tpu.memory_space<vmem>>, vector<32x128xf32>,
    return
  }
  func.func @transform_0(%arg0: i32) -> (i32, i32) {
    %c0_i32 = arith.constant 0 : i32
    %c0_i32_0 = arith.constant 0 : i32
    return %arg0, %c0_i32 : i32, i32
  }
  func.func @transform_1(%arg0: i32) -> (i32, i32) {
    %c0_i32 = arith.constant 0 : i32
    %c0_i32_0 = arith.constant 0 : i32
    %c0_i32_1 = arith.constant 0 : i32
    return %c0_i32, %c0_i32_0 : i32, i32
  }
  func.func @transform_2(%arg0: i32) -> (i32, i32) {
    %c0_i32 = arith.constant 0 : i32
    %c0_i32_0 = arith.constant 0 : i32
    %c0_i32_1 = arith.constant 0 : i32
    return %c0_i32, %c0_i32_0 : i32, i32
  }
  func.func @transform_3(%arg0: i32) -> (i32, i32) {
    %c0_i32 = arith.constant 0 : i32
    %c0_i32_0 = arith.constant 0 : i32
    %c0_i32_1 = arith.constant 0 : i32
    return %c0_i32, %c0_i32_0 : i32, i32
  }
  func.func @transform_4(%arg0: i32) -> (i32, i32) {
    %c0_i32 = arith.constant 0 : i32
    %c0_i32_0 = arith.constant 0 : i32
    return %arg0, %c0_i32 : i32, i32
  }
  func.func @transform_5(%arg0: i32) -> (i32, i32) {
    %c0_i32 = arith.constant 0 : i32
    %c0_i32_0 = arith.constant 0 : i32
    return %arg0, %c0_i32 : i32, i32
  }
}

module attributes {stable_mosaic.version = 11 : i64} {
  func.func @_mm_bn_kernel(%arg0: i32, %arg1: memref<32x128xbf16, #tpu.memory_space<vmem>>, %arg2: memref<128x32xbf16, #tpu.memory_space<vmem>>, %arg3: memref<1x32xf32, #tpu.memory_space<vmem>>, %arg4: memref<1x32xf32, #tpu.memory_space<vmem>>, %arg5: memref<32x32xf32, #tpu.memory_space<vmem>>) attributes {dimension_semantics = [#tpu.dimension_semantics<parallel>], iteration_bounds = array<i64: 1>, scalar_prefetch = 0 : i64, scratch_operands = 0 : i64, tpu.core_type = #tpu.core_type<tc>, window_params = [{transform_indices = @transform_0, window_bounds = array<i64: 32, 128>}, {pipeline_mode = #tpu.pipeline_mode<synchronous>, transform_indices = @transform_1, window_bounds = array<i64: 128, 32>}, {pipeline_mode = #tpu.pipeline_mode<synchronous>, transform_indices = @transform_2, window_bounds = array<i64: 1, 32>}, {pipeline_mode = #tpu.pipeline_mode<synchronous>, transform_indices = @transform_3, window_bounds = array<i64: 1, 32>}, {transform_indices = @transform_4, window_bounds = array<i64: 32, 32>}]} {
    %c0 = arith.constant 0 : index
    %c0_0 = arith.constant 0 : index
    %0 = vector.load %arg1[%c0, %c0_0] : memref<32x128xbf16, #tpu.memory_space<vmem>>, vector<32x128xbf16>
    %c0_1 = arith.constant 0 : index
    %c0_2 = arith.constant 0 : index
    %1 = vector.load %arg2[%c0_1, %c0_2] : memref<128x32xbf16, #tpu.memory_space<vmem>>, vector<128x32xbf16>
    %cst = arith.constant dense<0.000000e+00> : vector<32x32xf32>
    %2 = tpu.matmul %0, %1, %cst {dimension_numbers = #tpu.dot_dimension_numbers<[1], [0], [0], [1], [0, 0, 1, 1], [], []>} : vector<32x128xbf16>, vector<128x32xbf16>, vector<32x32xf32> -> vector<32x32xf32>
    %c0_3 = arith.constant 0 : index
    %c0_4 = arith.constant 0 : index
    %3 = vector.load %arg3[%c0_3, %c0_4] : memref<1x32xf32, #tpu.memory_space<vmem>>, vector<1x32xf32>
    %4 = vector.broadcast %3 : vector<1x32xf32> to vector<32x32xf32>
    %5 = arith.mulf %2, %4 : vector<32x32xf32>
    %c0_5 = arith.constant 0 : index
    %c0_6 = arith.constant 0 : index
    %6 = vector.load %arg4[%c0_5, %c0_6] : memref<1x32xf32, #tpu.memory_space<vmem>>, vector<1x32xf32>
    %7 = vector.broadcast %6 : vector<1x32xf32> to vector<32x32xf32>
    %8 = arith.addf %5, %7 : vector<32x32xf32>
    %cst_7 = arith.constant 0.000000e+00 : f32
    %9 = vector.broadcast %cst_7 : f32 to vector<32x32xf32>
    %10 = arith.maximumf %8, %9 : vector<32x32xf32>
    %c0_8 = arith.constant 0 : index
    %c0_9 = arith.constant 0 : index
    %11 = vector.load %arg5[%c0_8, %c0_9] : memref<32x32xf32, #tpu.memory_space<vmem>>, vector<32x32xf32>
    tpu.vector_store %arg5[%c0_8, %c0_9], %10 {strides = array<i32>} : memref<32x32xf32, #tpu.memory_space<vmem>>, vector<32x32xf32>,
    return
  }
  func.func @transform_0(%arg0: i32) -> (i32, i32) {
    %c0_i32 = arith.constant 0 : i32
    %c0_i32_0 = arith.constant 0 : i32
    return %arg0, %c0_i32 : i32, i32
  }
  func.func @transform_1(%arg0: i32) -> (i32, i32) {
    %c0_i32 = arith.constant 0 : i32
    %c0_i32_0 = arith.constant 0 : i32
    %c0_i32_1 = arith.constant 0 : i32
    return %c0_i32, %c0_i32_0 : i32, i32
  }
  func.func @transform_2(%arg0: i32) -> (i32, i32) {
    %c0_i32 = arith.constant 0 : i32
    %c0_i32_0 = arith.constant 0 : i32
    %c0_i32_1 = arith.constant 0 : i32
    return %c0_i32, %c0_i32_0 : i32, i32
  }
  func.func @transform_3(%arg0: i32) -> (i32, i32) {
    %c0_i32 = arith.constant 0 : i32
    %c0_i32_0 = arith.constant 0 : i32
    %c0_i32_1 = arith.constant 0 : i32
    return %c0_i32, %c0_i32_0 : i32, i32
  }
  func.func @transform_4(%arg0: i32) -> (i32, i32) {
    %c0_i32 = arith.constant 0 : i32
    %c0_i32_0 = arith.constant 0 : i32
    return %arg0, %c0_i32 : i32, i32
  }
}

module attributes {stable_mosaic.version = 11 : i64} {
  func.func @_mm_bn_kernel(%arg0: i32, %arg1: memref<32x128xbf16, #tpu.memory_space<vmem>>, %arg2: memref<128x64xbf16, #tpu.memory_space<vmem>>, %arg3: memref<1x64xf32, #tpu.memory_space<vmem>>, %arg4: memref<1x64xf32, #tpu.memory_space<vmem>>, %arg5: memref<32x64xf32, #tpu.memory_space<vmem>>) attributes {dimension_semantics = [#tpu.dimension_semantics<parallel>], iteration_bounds = array<i64: 1>, scalar_prefetch = 0 : i64, scratch_operands = 0 : i64, tpu.core_type = #tpu.core_type<tc>, window_params = [{transform_indices = @transform_0, window_bounds = array<i64: 32, 128>}, {pipeline_mode = #tpu.pipeline_mode<synchronous>, transform_indices = @transform_1, window_bounds = array<i64: 128, 64>}, {pipeline_mode = #tpu.pipeline_mode<synchronous>, transform_indices = @transform_2, window_bounds = array<i64: 1, 64>}, {pipeline_mode = #tpu.pipeline_mode<synchronous>, transform_indices = @transform_3, window_bounds = array<i64: 1, 64>}, {transform_indices = @transform_4, window_bounds = array<i64: 32, 64>}]} {
    %c0 = arith.constant 0 : index
    %c0_0 = arith.constant 0 : index
    %0 = vector.load %arg1[%c0, %c0_0] : memref<32x128xbf16, #tpu.memory_space<vmem>>, vector<32x128xbf16>
    %c0_1 = arith.constant 0 : index
    %c0_2 = arith.constant 0 : index
    %1 = vector.load %arg2[%c0_1, %c0_2] : memref<128x64xbf16, #tpu.memory_space<vmem>>, vector<128x64xbf16>
    %cst = arith.constant dense<0.000000e+00> : vector<32x64xf32>
    %2 = tpu.matmul %0, %1, %cst {dimension_numbers = #tpu.dot_dimension_numbers<[1], [0], [0], [1], [0, 0, 1, 1], [], []>} : vector<32x128xbf16>, vector<128x64xbf16>, vector<32x64xf32> -> vector<32x64xf32>
    %c0_3 = arith.constant 0 : index
    %c0_4 = arith.constant 0 : index
    %3 = vector.load %arg3[%c0_3, %c0_4] : memref<1x64xf32, #tpu.memory_space<vmem>>, vector<1x64xf32>
    %4 = vector.broadcast %3 : vector<1x64xf32> to vector<32x64xf32>
    %5 = arith.mulf %2, %4 : vector<32x64xf32>
    %c0_5 = arith.constant 0 : index
    %c0_6 = arith.constant 0 : index
    %6 = vector.load %arg4[%c0_5, %c0_6] : memref<1x64xf32, #tpu.memory_space<vmem>>, vector<1x64xf32>
    %7 = vector.broadcast %6 : vector<1x64xf32> to vector<32x64xf32>
    %8 = arith.addf %5, %7 : vector<32x64xf32>
    %cst_7 = arith.constant 0.000000e+00 : f32
    %9 = vector.broadcast %cst_7 : f32 to vector<32x64xf32>
    %10 = arith.maximumf %8, %9 : vector<32x64xf32>
    %c0_8 = arith.constant 0 : index
    %c0_9 = arith.constant 0 : index
    %11 = vector.load %arg5[%c0_8, %c0_9] : memref<32x64xf32, #tpu.memory_space<vmem>>, vector<32x64xf32>
    tpu.vector_store %arg5[%c0_8, %c0_9], %10 {strides = array<i32>} : memref<32x64xf32, #tpu.memory_space<vmem>>, vector<32x64xf32>,
    return
  }
  func.func @transform_0(%arg0: i32) -> (i32, i32) {
    %c0_i32 = arith.constant 0 : i32
    %c0_i32_0 = arith.constant 0 : i32
    return %arg0, %c0_i32 : i32, i32
  }
  func.func @transform_1(%arg0: i32) -> (i32, i32) {
    %c0_i32 = arith.constant 0 : i32
    %c0_i32_0 = arith.constant 0 : i32
    %c0_i32_1 = arith.constant 0 : i32
    return %c0_i32, %c0_i32_0 : i32, i32
  }
  func.func @transform_2(%arg0: i32) -> (i32, i32) {
    %c0_i32 = arith.constant 0 : i32
    %c0_i32_0 = arith.constant 0 : i32
    %c0_i32_1 = arith.constant 0 : i32
    return %c0_i32, %c0_i32_0 : i32, i32
  }
  func.func @transform_3(%arg0: i32) -> (i32, i32) {
    %c0_i32 = arith.constant 0 : i32
    %c0_i32_0 = arith.constant 0 : i32
    %c0_i32_1 = arith.constant 0 : i32
    return %c0_i32, %c0_i32_0 : i32, i32
  }
  func.func @transform_4(%arg0: i32) -> (i32, i32) {
    %c0_i32 = arith.constant 0 : i32
    %c0_i32_0 = arith.constant 0 : i32
    return %arg0, %c0_i32 : i32, i32
  }
}

module attributes {stable_mosaic.version = 11 : i64} {
  func.func @_mm_bn_kernel(%arg0: i32, %arg1: memref<8x576xbf16, #tpu.memory_space<vmem>>, %arg2: memref<576x64xbf16, #tpu.memory_space<vmem>>, %arg3: memref<1x64xf32, #tpu.memory_space<vmem>>, %arg4: memref<1x64xf32, #tpu.memory_space<vmem>>, %arg5: memref<8x64xf32, #tpu.memory_space<vmem>>) attributes {dimension_semantics = [#tpu.dimension_semantics<parallel>], iteration_bounds = array<i64: 1>, scalar_prefetch = 0 : i64, scratch_operands = 0 : i64, tpu.core_type = #tpu.core_type<tc>, window_params = [{transform_indices = @transform_0, window_bounds = array<i64: 8, 576>}, {pipeline_mode = #tpu.pipeline_mode<synchronous>, transform_indices = @transform_1, window_bounds = array<i64: 576, 64>}, {pipeline_mode = #tpu.pipeline_mode<synchronous>, transform_indices = @transform_2, window_bounds = array<i64: 1, 64>}, {pipeline_mode = #tpu.pipeline_mode<synchronous>, transform_indices = @transform_3, window_bounds = array<i64: 1, 64>}, {transform_indices = @transform_4, window_bounds = array<i64: 8, 64>}]} {
    %c0 = arith.constant 0 : index
    %c0_0 = arith.constant 0 : index
    %0 = vector.load %arg1[%c0, %c0_0] : memref<8x576xbf16, #tpu.memory_space<vmem>>, vector<8x576xbf16>
    %c0_1 = arith.constant 0 : index
    %c0_2 = arith.constant 0 : index
    %1 = vector.load %arg2[%c0_1, %c0_2] : memref<576x64xbf16, #tpu.memory_space<vmem>>, vector<576x64xbf16>
    %cst = arith.constant dense<0.000000e+00> : vector<8x64xf32>
    %2 = tpu.matmul %0, %1, %cst {dimension_numbers = #tpu.dot_dimension_numbers<[1], [0], [0], [1], [0, 0, 1, 1], [], []>} : vector<8x576xbf16>, vector<576x64xbf16>, vector<8x64xf32> -> vector<8x64xf32>
    %c0_3 = arith.constant 0 : index
    %c0_4 = arith.constant 0 : index
    %3 = vector.load %arg3[%c0_3, %c0_4] : memref<1x64xf32, #tpu.memory_space<vmem>>, vector<1x64xf32>
    %4 = vector.broadcast %3 : vector<1x64xf32> to vector<8x64xf32>
    %5 = arith.mulf %2, %4 : vector<8x64xf32>
    %c0_5 = arith.constant 0 : index
    %c0_6 = arith.constant 0 : index
    %6 = vector.load %arg4[%c0_5, %c0_6] : memref<1x64xf32, #tpu.memory_space<vmem>>, vector<1x64xf32>
    %7 = vector.broadcast %6 : vector<1x64xf32> to vector<8x64xf32>
    %8 = arith.addf %5, %7 : vector<8x64xf32>
    %cst_7 = arith.constant 0.000000e+00 : f32
    %9 = vector.broadcast %cst_7 : f32 to vector<8x64xf32>
    %10 = arith.maximumf %8, %9 : vector<8x64xf32>
    %c0_8 = arith.constant 0 : index
    %c0_9 = arith.constant 0 : index
    %11 = vector.load %arg5[%c0_8, %c0_9] : memref<8x64xf32, #tpu.memory_space<vmem>>, vector<8x64xf32>
    tpu.vector_store %arg5[%c0_8, %c0_9], %10 {strides = array<i32>} : memref<8x64xf32, #tpu.memory_space<vmem>>, vector<8x64xf32>,
    return
  }
  func.func @transform_0(%arg0: i32) -> (i32, i32) {
    %c0_i32 = arith.constant 0 : i32
    %c0_i32_0 = arith.constant 0 : i32
    return %arg0, %c0_i32 : i32, i32
  }
  func.func @transform_1(%arg0: i32) -> (i32, i32) {
    %c0_i32 = arith.constant 0 : i32
    %c0_i32_0 = arith.constant 0 : i32
    %c0_i32_1 = arith.constant 0 : i32
    return %c0_i32, %c0_i32_0 : i32, i32
  }
  func.func @transform_2(%arg0: i32) -> (i32, i32) {
    %c0_i32 = arith.constant 0 : i32
    %c0_i32_0 = arith.constant 0 : i32
    %c0_i32_1 = arith.constant 0 : i32
    return %c0_i32, %c0_i32_0 : i32, i32
  }
  func.func @transform_3(%arg0: i32) -> (i32, i32) {
    %c0_i32 = arith.constant 0 : i32
    %c0_i32_0 = arith.constant 0 : i32
    %c0_i32_1 = arith.constant 0 : i32
    return %c0_i32, %c0_i32_0 : i32, i32
  }
  func.func @transform_4(%arg0: i32) -> (i32, i32) {
    %c0_i32 = arith.constant 0 : i32
    %c0_i32_0 = arith.constant 0 : i32
    return %arg0, %c0_i32 : i32, i32
  }
}

module attributes {stable_mosaic.version = 11 : i64} {
  func.func @_mm_bn_kernel(%arg0: i32, %arg1: memref<8x128xbf16, #tpu.memory_space<vmem>>, %arg2: memref<128x256xbf16, #tpu.memory_space<vmem>>, %arg3: memref<1x256xf32, #tpu.memory_space<vmem>>, %arg4: memref<1x256xf32, #tpu.memory_space<vmem>>, %arg5: memref<8x256xf32, #tpu.memory_space<vmem>>) attributes {dimension_semantics = [#tpu.dimension_semantics<parallel>], iteration_bounds = array<i64: 1>, scalar_prefetch = 0 : i64, scratch_operands = 0 : i64, tpu.core_type = #tpu.core_type<tc>, window_params = [{transform_indices = @transform_0, window_bounds = array<i64: 8, 128>}, {pipeline_mode = #tpu.pipeline_mode<synchronous>, transform_indices = @transform_1, window_bounds = array<i64: 128, 256>}, {pipeline_mode = #tpu.pipeline_mode<synchronous>, transform_indices = @transform_2, window_bounds = array<i64: 1, 256>}, {pipeline_mode = #tpu.pipeline_mode<synchronous>, transform_indices = @transform_3, window_bounds = array<i64: 1, 256>}, {transform_indices = @transform_4, window_bounds = array<i64: 8, 256>}]} {
    %c0 = arith.constant 0 : index
    %c0_0 = arith.constant 0 : index
    %0 = vector.load %arg1[%c0, %c0_0] : memref<8x128xbf16, #tpu.memory_space<vmem>>, vector<8x128xbf16>
    %c0_1 = arith.constant 0 : index
    %c0_2 = arith.constant 0 : index
    %1 = vector.load %arg2[%c0_1, %c0_2] : memref<128x256xbf16, #tpu.memory_space<vmem>>, vector<128x256xbf16>
    %cst = arith.constant dense<0.000000e+00> : vector<8x256xf32>
    %2 = tpu.matmul %0, %1, %cst {dimension_numbers = #tpu.dot_dimension_numbers<[1], [0], [0], [1], [0, 0, 1, 1], [], []>} : vector<8x128xbf16>, vector<128x256xbf16>, vector<8x256xf32> -> vector<8x256xf32>
    %c0_3 = arith.constant 0 : index
    %c0_4 = arith.constant 0 : index
    %3 = vector.load %arg3[%c0_3, %c0_4] : memref<1x256xf32, #tpu.memory_space<vmem>>, vector<1x256xf32>
    %4 = vector.broadcast %3 : vector<1x256xf32> to vector<8x256xf32>
    %5 = arith.mulf %2, %4 : vector<8x256xf32>
    %c0_5 = arith.constant 0 : index
    %c0_6 = arith.constant 0 : index
    %6 = vector.load %arg4[%c0_5, %c0_6] : memref<1x256xf32, #tpu.memory_space<vmem>>, vector<1x256xf32>
    %7 = vector.broadcast %6 : vector<1x256xf32> to vector<8x256xf32>
    %8 = arith.addf %5, %7 : vector<8x256xf32>
    %c0_7 = arith.constant 0 : index
    %c0_8 = arith.constant 0 : index
    %9 = vector.load %arg5[%c0_7, %c0_8] : memref<8x256xf32, #tpu.memory_space<vmem>>, vector<8x256xf32>
    tpu.vector_store %arg5[%c0_7, %c0_8], %8 {strides = array<i32>} : memref<8x256xf32, #tpu.memory_space<vmem>>, vector<8x256xf32>,
    return
  }
  func.func @transform_0(%arg0: i32) -> (i32, i32) {
    %c0_i32 = arith.constant 0 : i32
    %c0_i32_0 = arith.constant 0 : i32
    return %arg0, %c0_i32 : i32, i32
  }
  func.func @transform_1(%arg0: i32) -> (i32, i32) {
    %c0_i32 = arith.constant 0 : i32
    %c0_i32_0 = arith.constant 0 : i32
    %c0_i32_1 = arith.constant 0 : i32
    return %c0_i32, %c0_i32_0 : i32, i32
  }
  func.func @transform_2(%arg0: i32) -> (i32, i32) {
    %c0_i32 = arith.constant 0 : i32
    %c0_i32_0 = arith.constant 0 : i32
    %c0_i32_1 = arith.constant 0 : i32
    return %c0_i32, %c0_i32_0 : i32, i32
  }
  func.func @transform_3(%arg0: i32) -> (i32, i32) {
    %c0_i32 = arith.constant 0 : i32
    %c0_i32_0 = arith.constant 0 : i32
    %c0_i32_1 = arith.constant 0 : i32
    return %c0_i32, %c0_i32_0 : i32, i32
  }
  func.func @transform_4(%arg0: i32) -> (i32, i32) {
    %c0_i32 = arith.constant 0 : i32
    %c0_i32_0 = arith.constant 0 : i32
    return %arg0, %c0_i32 : i32, i32
  }
}

module attributes {stable_mosaic.version = 11 : i64} {
  func.func @_mm_bn_res_relu_kernel(%arg0: i32, %arg1: memref<8x64xbf16, #tpu.memory_space<vmem>>, %arg2: memref<64x256xbf16, #tpu.memory_space<vmem>>, %arg3: memref<1x256xf32, #tpu.memory_space<vmem>>, %arg4: memref<1x256xf32, #tpu.memory_space<vmem>>, %arg5: memref<8x256xf32, #tpu.memory_space<vmem>>, %arg6: memref<8x256xf32, #tpu.memory_space<vmem>>) attributes {dimension_semantics = [#tpu.dimension_semantics<parallel>], iteration_bounds = array<i64: 1>, scalar_prefetch = 0 : i64, scratch_operands = 0 : i64, tpu.core_type = #tpu.core_type<tc>, window_params = [{transform_indices = @transform_0, window_bounds = array<i64: 8, 64>}, {pipeline_mode = #tpu.pipeline_mode<synchronous>, transform_indices = @transform_1, window_bounds = array<i64: 64, 256>}, {pipeline_mode = #tpu.pipeline_mode<synchronous>, transform_indices = @transform_2, window_bounds = array<i64: 1, 256>}, {pipeline_mode = #tpu.pipeline_mode<synchronous>, transform_indices = @transform_3, window_bounds = array<i64: 1, 256>}, {transform_indices = @transform_4, window_bounds = array<i64: 8, 256>}, {transform_indices = @transform_5, window_bounds = array<i64: 8, 256>}]} {
    %c0 = arith.constant 0 : index
    %c0_0 = arith.constant 0 : index
    %0 = vector.load %arg1[%c0, %c0_0] : memref<8x64xbf16, #tpu.memory_space<vmem>>, vector<8x64xbf16>
    %c0_1 = arith.constant 0 : index
    %c0_2 = arith.constant 0 : index
    %1 = vector.load %arg2[%c0_1, %c0_2] : memref<64x256xbf16, #tpu.memory_space<vmem>>, vector<64x256xbf16>
    %cst = arith.constant dense<0.000000e+00> : vector<8x256xf32>
    %2 = tpu.matmul %0, %1, %cst {dimension_numbers = #tpu.dot_dimension_numbers<[1], [0], [0], [1], [0, 0, 1, 1], [], []>} : vector<8x64xbf16>, vector<64x256xbf16>, vector<8x256xf32> -> vector<8x256xf32>
    %c0_3 = arith.constant 0 : index
    %c0_4 = arith.constant 0 : index
    %3 = vector.load %arg3[%c0_3, %c0_4] : memref<1x256xf32, #tpu.memory_space<vmem>>, vector<1x256xf32>
    %4 = vector.broadcast %3 : vector<1x256xf32> to vector<8x256xf32>
    %5 = arith.mulf %2, %4 : vector<8x256xf32>
    %c0_5 = arith.constant 0 : index
    %c0_6 = arith.constant 0 : index
    %6 = vector.load %arg4[%c0_5, %c0_6] : memref<1x256xf32, #tpu.memory_space<vmem>>, vector<1x256xf32>
    %7 = vector.broadcast %6 : vector<1x256xf32> to vector<8x256xf32>
    %8 = arith.addf %5, %7 : vector<8x256xf32>
    %c0_7 = arith.constant 0 : index
    %c0_8 = arith.constant 0 : index
    %9 = vector.load %arg5[%c0_7, %c0_8] : memref<8x256xf32, #tpu.memory_space<vmem>>, vector<8x256xf32>
    %10 = arith.addf %8, %9 : vector<8x256xf32>
    %cst_9 = arith.constant 0.000000e+00 : f32
    %11 = vector.broadcast %cst_9 : f32 to vector<8x256xf32>
    %12 = arith.maximumf %10, %11 : vector<8x256xf32>
    %c0_10 = arith.constant 0 : index
    %c0_11 = arith.constant 0 : index
    %13 = vector.load %arg6[%c0_10, %c0_11] : memref<8x256xf32, #tpu.memory_space<vmem>>, vector<8x256xf32>
    tpu.vector_store %arg6[%c0_10, %c0_11], %12 {strides = array<i32>} : memref<8x256xf32, #tpu.memory_space<vmem>>, vector<8x256xf32>,
    return
  }
  func.func @transform_0(%arg0: i32) -> (i32, i32) {
    %c0_i32 = arith.constant 0 : i32
    %c0_i32_0 = arith.constant 0 : i32
    return %arg0, %c0_i32 : i32, i32
  }
  func.func @transform_1(%arg0: i32) -> (i32, i32) {
    %c0_i32 = arith.constant 0 : i32
    %c0_i32_0 = arith.constant 0 : i32
    %c0_i32_1 = arith.constant 0 : i32
    return %c0_i32, %c0_i32_0 : i32, i32
  }
  func.func @transform_2(%arg0: i32) -> (i32, i32) {
    %c0_i32 = arith.constant 0 : i32
    %c0_i32_0 = arith.constant 0 : i32
    %c0_i32_1 = arith.constant 0 : i32
    return %c0_i32, %c0_i32_0 : i32, i32
  }
  func.func @transform_3(%arg0: i32) -> (i32, i32) {
    %c0_i32 = arith.constant 0 : i32
    %c0_i32_0 = arith.constant 0 : i32
    %c0_i32_1 = arith.constant 0 : i32
    return %c0_i32, %c0_i32_0 : i32, i32
  }
  func.func @transform_4(%arg0: i32) -> (i32, i32) {
    %c0_i32 = arith.constant 0 : i32
    %c0_i32_0 = arith.constant 0 : i32
    return %arg0, %c0_i32 : i32, i32
  }
  func.func @transform_5(%arg0: i32) -> (i32, i32) {
    %c0_i32 = arith.constant 0 : i32
    %c0_i32_0 = arith.constant 0 : i32
    return %arg0, %c0_i32 : i32, i32
  }
}

module attributes {stable_mosaic.version = 11 : i64} {
  func.func @_mm_bn_kernel(%arg0: i32, %arg1: memref<8x256xbf16, #tpu.memory_space<vmem>>, %arg2: memref<256x64xbf16, #tpu.memory_space<vmem>>, %arg3: memref<1x64xf32, #tpu.memory_space<vmem>>, %arg4: memref<1x64xf32, #tpu.memory_space<vmem>>, %arg5: memref<8x64xf32, #tpu.memory_space<vmem>>) attributes {dimension_semantics = [#tpu.dimension_semantics<parallel>], iteration_bounds = array<i64: 1>, scalar_prefetch = 0 : i64, scratch_operands = 0 : i64, tpu.core_type = #tpu.core_type<tc>, window_params = [{transform_indices = @transform_0, window_bounds = array<i64: 8, 256>}, {pipeline_mode = #tpu.pipeline_mode<synchronous>, transform_indices = @transform_1, window_bounds = array<i64: 256, 64>}, {pipeline_mode = #tpu.pipeline_mode<synchronous>, transform_indices = @transform_2, window_bounds = array<i64: 1, 64>}, {pipeline_mode = #tpu.pipeline_mode<synchronous>, transform_indices = @transform_3, window_bounds = array<i64: 1, 64>}, {transform_indices = @transform_4, window_bounds = array<i64: 8, 64>}]} {
    %c0 = arith.constant 0 : index
    %c0_0 = arith.constant 0 : index
    %0 = vector.load %arg1[%c0, %c0_0] : memref<8x256xbf16, #tpu.memory_space<vmem>>, vector<8x256xbf16>
    %c0_1 = arith.constant 0 : index
    %c0_2 = arith.constant 0 : index
    %1 = vector.load %arg2[%c0_1, %c0_2] : memref<256x64xbf16, #tpu.memory_space<vmem>>, vector<256x64xbf16>
    %cst = arith.constant dense<0.000000e+00> : vector<8x64xf32>
    %2 = tpu.matmul %0, %1, %cst {dimension_numbers = #tpu.dot_dimension_numbers<[1], [0], [0], [1], [0, 0, 1, 1], [], []>} : vector<8x256xbf16>, vector<256x64xbf16>, vector<8x64xf32> -> vector<8x64xf32>
    %c0_3 = arith.constant 0 : index
    %c0_4 = arith.constant 0 : index
    %3 = vector.load %arg3[%c0_3, %c0_4] : memref<1x64xf32, #tpu.memory_space<vmem>>, vector<1x64xf32>
    %4 = vector.broadcast %3 : vector<1x64xf32> to vector<8x64xf32>
    %5 = arith.mulf %2, %4 : vector<8x64xf32>
    %c0_5 = arith.constant 0 : index
    %c0_6 = arith.constant 0 : index
    %6 = vector.load %arg4[%c0_5, %c0_6] : memref<1x64xf32, #tpu.memory_space<vmem>>, vector<1x64xf32>
    %7 = vector.broadcast %6 : vector<1x64xf32> to vector<8x64xf32>
    %8 = arith.addf %5, %7 : vector<8x64xf32>
    %cst_7 = arith.constant 0.000000e+00 : f32
    %9 = vector.broadcast %cst_7 : f32 to vector<8x64xf32>
    %10 = arith.maximumf %8, %9 : vector<8x64xf32>
    %c0_8 = arith.constant 0 : index
    %c0_9 = arith.constant 0 : index
    %11 = vector.load %arg5[%c0_8, %c0_9] : memref<8x64xf32, #tpu.memory_space<vmem>>, vector<8x64xf32>
    tpu.vector_store %arg5[%c0_8, %c0_9], %10 {strides = array<i32>} : memref<8x64xf32, #tpu.memory_space<vmem>>, vector<8x64xf32>,
    return
  }
  func.func @transform_0(%arg0: i32) -> (i32, i32) {
    %c0_i32 = arith.constant 0 : i32
    %c0_i32_0 = arith.constant 0 : i32
    return %arg0, %c0_i32 : i32, i32
  }
  func.func @transform_1(%arg0: i32) -> (i32, i32) {
    %c0_i32 = arith.constant 0 : i32
    %c0_i32_0 = arith.constant 0 : i32
    %c0_i32_1 = arith.constant 0 : i32
    return %c0_i32, %c0_i32_0 : i32, i32
  }
  func.func @transform_2(%arg0: i32) -> (i32, i32) {
    %c0_i32 = arith.constant 0 : i32
    %c0_i32_0 = arith.constant 0 : i32
    %c0_i32_1 = arith.constant 0 : i32
    return %c0_i32, %c0_i32_0 : i32, i32
  }
  func.func @transform_3(%arg0: i32) -> (i32, i32) {
    %c0_i32 = arith.constant 0 : i32
    %c0_i32_0 = arith.constant 0 : i32
    %c0_i32_1 = arith.constant 0 : i32
    return %c0_i32, %c0_i32_0 : i32, i32
  }
  func.func @transform_4(%arg0: i32) -> (i32, i32) {
    %c0_i32 = arith.constant 0 : i32
    %c0_i32_0 = arith.constant 0 : i32
    return %arg0, %c0_i32 : i32, i32
  }
}

module attributes {stable_mosaic.version = 11 : i64} {
  func.func @_mm_bn_kernel(%arg0: i32, %arg1: memref<8x256xbf16, #tpu.memory_space<vmem>>, %arg2: memref<256x128xbf16, #tpu.memory_space<vmem>>, %arg3: memref<1x128xf32, #tpu.memory_space<vmem>>, %arg4: memref<1x128xf32, #tpu.memory_space<vmem>>, %arg5: memref<8x128xf32, #tpu.memory_space<vmem>>) attributes {dimension_semantics = [#tpu.dimension_semantics<parallel>], iteration_bounds = array<i64: 1>, scalar_prefetch = 0 : i64, scratch_operands = 0 : i64, tpu.core_type = #tpu.core_type<tc>, window_params = [{transform_indices = @transform_0, window_bounds = array<i64: 8, 256>}, {pipeline_mode = #tpu.pipeline_mode<synchronous>, transform_indices = @transform_1, window_bounds = array<i64: 256, 128>}, {pipeline_mode = #tpu.pipeline_mode<synchronous>, transform_indices = @transform_2, window_bounds = array<i64: 1, 128>}, {pipeline_mode = #tpu.pipeline_mode<synchronous>, transform_indices = @transform_3, window_bounds = array<i64: 1, 128>}, {transform_indices = @transform_4, window_bounds = array<i64: 8, 128>}]} {
    %c0 = arith.constant 0 : index
    %c0_0 = arith.constant 0 : index
    %0 = vector.load %arg1[%c0, %c0_0] : memref<8x256xbf16, #tpu.memory_space<vmem>>, vector<8x256xbf16>
    %c0_1 = arith.constant 0 : index
    %c0_2 = arith.constant 0 : index
    %1 = vector.load %arg2[%c0_1, %c0_2] : memref<256x128xbf16, #tpu.memory_space<vmem>>, vector<256x128xbf16>
    %cst = arith.constant dense<0.000000e+00> : vector<8x128xf32>
    %2 = tpu.matmul %0, %1, %cst {dimension_numbers = #tpu.dot_dimension_numbers<[1], [0], [0], [1], [0, 0, 1, 1], [], []>} : vector<8x256xbf16>, vector<256x128xbf16>, vector<8x128xf32> -> vector<8x128xf32>
    %c0_3 = arith.constant 0 : index
    %c0_4 = arith.constant 0 : index
    %3 = vector.load %arg3[%c0_3, %c0_4] : memref<1x128xf32, #tpu.memory_space<vmem>>, vector<1x128xf32>
    %4 = vector.broadcast %3 : vector<1x128xf32> to vector<8x128xf32>
    %5 = arith.mulf %2, %4 : vector<8x128xf32>
    %c0_5 = arith.constant 0 : index
    %c0_6 = arith.constant 0 : index
    %6 = vector.load %arg4[%c0_5, %c0_6] : memref<1x128xf32, #tpu.memory_space<vmem>>, vector<1x128xf32>
    %7 = vector.broadcast %6 : vector<1x128xf32> to vector<8x128xf32>
    %8 = arith.addf %5, %7 : vector<8x128xf32>
    %cst_7 = arith.constant 0.000000e+00 : f32
    %9 = vector.broadcast %cst_7 : f32 to vector<8x128xf32>
    %10 = arith.maximumf %8, %9 : vector<8x128xf32>
    %c0_8 = arith.constant 0 : index
    %c0_9 = arith.constant 0 : index
    %11 = vector.load %arg5[%c0_8, %c0_9] : memref<8x128xf32, #tpu.memory_space<vmem>>, vector<8x128xf32>
    tpu.vector_store %arg5[%c0_8, %c0_9], %10 {strides = array<i32>} : memref<8x128xf32, #tpu.memory_space<vmem>>, vector<8x128xf32>,
    return
  }
  func.func @transform_0(%arg0: i32) -> (i32, i32) {
    %c0_i32 = arith.constant 0 : i32
    %c0_i32_0 = arith.constant 0 : i32
    return %arg0, %c0_i32 : i32, i32
  }
  func.func @transform_1(%arg0: i32) -> (i32, i32) {
    %c0_i32 = arith.constant 0 : i32
    %c0_i32_0 = arith.constant 0 : i32
    %c0_i32_1 = arith.constant 0 : i32
    return %c0_i32, %c0_i32_0 : i32, i32
  }
  func.func @transform_2(%arg0: i32) -> (i32, i32) {
    %c0_i32 = arith.constant 0 : i32
    %c0_i32_0 = arith.constant 0 : i32
    %c0_i32_1 = arith.constant 0 : i32
    return %c0_i32, %c0_i32_0 : i32, i32
  }
  func.func @transform_3(%arg0: i32) -> (i32, i32) {
    %c0_i32 = arith.constant 0 : i32
    %c0_i32_0 = arith.constant 0 : i32
    %c0_i32_1 = arith.constant 0 : i32
    return %c0_i32, %c0_i32_0 : i32, i32
  }
  func.func @transform_4(%arg0: i32) -> (i32, i32) {
    %c0_i32 = arith.constant 0 : i32
    %c0_i32_0 = arith.constant 0 : i32
    return %arg0, %c0_i32 : i32, i32
  }
}

module attributes {stable_mosaic.version = 11 : i64} {
  func.func @_mm_bn_kernel(%arg0: i32, %arg1: memref<2x1152xbf16, #tpu.memory_space<vmem>>, %arg2: memref<1152x128xbf16, #tpu.memory_space<vmem>>, %arg3: memref<1x128xf32, #tpu.memory_space<vmem>>, %arg4: memref<1x128xf32, #tpu.memory_space<vmem>>, %arg5: memref<2x128xf32, #tpu.memory_space<vmem>>) attributes {dimension_semantics = [#tpu.dimension_semantics<parallel>], iteration_bounds = array<i64: 1>, scalar_prefetch = 0 : i64, scratch_operands = 0 : i64, tpu.core_type = #tpu.core_type<tc>, window_params = [{transform_indices = @transform_0, window_bounds = array<i64: 2, 1152>}, {pipeline_mode = #tpu.pipeline_mode<synchronous>, transform_indices = @transform_1, window_bounds = array<i64: 1152, 128>}, {pipeline_mode = #tpu.pipeline_mode<synchronous>, transform_indices = @transform_2, window_bounds = array<i64: 1, 128>}, {pipeline_mode = #tpu.pipeline_mode<synchronous>, transform_indices = @transform_3, window_bounds = array<i64: 1, 128>}, {transform_indices = @transform_4, window_bounds = array<i64: 2, 128>}]} {
    %c0 = arith.constant 0 : index
    %c0_0 = arith.constant 0 : index
    %0 = vector.load %arg1[%c0, %c0_0] : memref<2x1152xbf16, #tpu.memory_space<vmem>>, vector<2x1152xbf16>
    %c0_1 = arith.constant 0 : index
    %c0_2 = arith.constant 0 : index
    %1 = vector.load %arg2[%c0_1, %c0_2] : memref<1152x128xbf16, #tpu.memory_space<vmem>>, vector<1152x128xbf16>
    %cst = arith.constant dense<0.000000e+00> : vector<2x128xf32>
    %2 = tpu.matmul %0, %1, %cst {dimension_numbers = #tpu.dot_dimension_numbers<[1], [0], [0], [1], [0, 0, 1, 1], [], []>} : vector<2x1152xbf16>, vector<1152x128xbf16>, vector<2x128xf32> -> vector<2x128xf32>
    %c0_3 = arith.constant 0 : index
    %c0_4 = arith.constant 0 : index
    %3 = vector.load %arg3[%c0_3, %c0_4] : memref<1x128xf32, #tpu.memory_space<vmem>>, vector<1x128xf32>
    %4 = vector.broadcast %3 : vector<1x128xf32> to vector<2x128xf32>
    %5 = arith.mulf %2, %4 : vector<2x128xf32>
    %c0_5 = arith.constant 0 : index
    %c0_6 = arith.constant 0 : index
    %6 = vector.load %arg4[%c0_5, %c0_6] : memref<1x128xf32, #tpu.memory_space<vmem>>, vector<1x128xf32>
    %7 = vector.broadcast %6 : vector<1x128xf32> to vector<2x128xf32>
    %8 = arith.addf %5, %7 : vector<2x128xf32>
    %cst_7 = arith.constant 0.000000e+00 : f32
    %9 = vector.broadcast %cst_7 : f32 to vector<2x128xf32>
    %10 = arith.maximumf %8, %9 : vector<2x128xf32>
    %c0_8 = arith.constant 0 : index
    %c0_9 = arith.constant 0 : index
    %11 = vector.load %arg5[%c0_8, %c0_9] : memref<2x128xf32, #tpu.memory_space<vmem>>, vector<2x128xf32>
    tpu.vector_store %arg5[%c0_8, %c0_9], %10 {strides = array<i32>} : memref<2x128xf32, #tpu.memory_space<vmem>>, vector<2x128xf32>,
    return
  }
  func.func @transform_0(%arg0: i32) -> (i32, i32) {
    %c0_i32 = arith.constant 0 : i32
    %c0_i32_0 = arith.constant 0 : i32
    return %arg0, %c0_i32 : i32, i32
  }
  func.func @transform_1(%arg0: i32) -> (i32, i32) {
    %c0_i32 = arith.constant 0 : i32
    %c0_i32_0 = arith.constant 0 : i32
    %c0_i32_1 = arith.constant 0 : i32
    return %c0_i32, %c0_i32_0 : i32, i32
  }
  func.func @transform_2(%arg0: i32) -> (i32, i32) {
    %c0_i32 = arith.constant 0 : i32
    %c0_i32_0 = arith.constant 0 : i32
    %c0_i32_1 = arith.constant 0 : i32
    return %c0_i32, %c0_i32_0 : i32, i32
  }
  func.func @transform_3(%arg0: i32) -> (i32, i32) {
    %c0_i32 = arith.constant 0 : i32
    %c0_i32_0 = arith.constant 0 : i32
    %c0_i32_1 = arith.constant 0 : i32
    return %c0_i32, %c0_i32_0 : i32, i32
  }
  func.func @transform_4(%arg0: i32) -> (i32, i32) {
    %c0_i32 = arith.constant 0 : i32
    %c0_i32_0 = arith.constant 0 : i32
    return %arg0, %c0_i32 : i32, i32
  }
}

module attributes {stable_mosaic.version = 11 : i64} {
  func.func @_mm_bn_res_relu_kernel(%arg0: i32, %arg1: memref<2x128xbf16, #tpu.memory_space<vmem>>, %arg2: memref<128x512xbf16, #tpu.memory_space<vmem>>, %arg3: memref<1x512xf32, #tpu.memory_space<vmem>>, %arg4: memref<1x512xf32, #tpu.memory_space<vmem>>, %arg5: memref<2x512xf32, #tpu.memory_space<vmem>>, %arg6: memref<2x512xf32, #tpu.memory_space<vmem>>) attributes {dimension_semantics = [#tpu.dimension_semantics<parallel>], iteration_bounds = array<i64: 1>, scalar_prefetch = 0 : i64, scratch_operands = 0 : i64, tpu.core_type = #tpu.core_type<tc>, window_params = [{transform_indices = @transform_0, window_bounds = array<i64: 2, 128>}, {pipeline_mode = #tpu.pipeline_mode<synchronous>, transform_indices = @transform_1, window_bounds = array<i64: 128, 512>}, {pipeline_mode = #tpu.pipeline_mode<synchronous>, transform_indices = @transform_2, window_bounds = array<i64: 1, 512>}, {pipeline_mode = #tpu.pipeline_mode<synchronous>, transform_indices = @transform_3, window_bounds = array<i64: 1, 512>}, {transform_indices = @transform_4, window_bounds = array<i64: 2, 512>}, {transform_indices = @transform_5, window_bounds = array<i64: 2, 512>}]} {
    %c0 = arith.constant 0 : index
    %c0_0 = arith.constant 0 : index
    %0 = vector.load %arg1[%c0, %c0_0] : memref<2x128xbf16, #tpu.memory_space<vmem>>, vector<2x128xbf16>
    %c0_1 = arith.constant 0 : index
    %c0_2 = arith.constant 0 : index
    %1 = vector.load %arg2[%c0_1, %c0_2] : memref<128x512xbf16, #tpu.memory_space<vmem>>, vector<128x512xbf16>
    %cst = arith.constant dense<0.000000e+00> : vector<2x512xf32>
    %2 = tpu.matmul %0, %1, %cst {dimension_numbers = #tpu.dot_dimension_numbers<[1], [0], [0], [1], [0, 0, 1, 1], [], []>} : vector<2x128xbf16>, vector<128x512xbf16>, vector<2x512xf32> -> vector<2x512xf32>
    %c0_3 = arith.constant 0 : index
    %c0_4 = arith.constant 0 : index
    %3 = vector.load %arg3[%c0_3, %c0_4] : memref<1x512xf32, #tpu.memory_space<vmem>>, vector<1x512xf32>
    %4 = vector.broadcast %3 : vector<1x512xf32> to vector<2x512xf32>
    %5 = arith.mulf %2, %4 : vector<2x512xf32>
    %c0_5 = arith.constant 0 : index
    %c0_6 = arith.constant 0 : index
    %6 = vector.load %arg4[%c0_5, %c0_6] : memref<1x512xf32, #tpu.memory_space<vmem>>, vector<1x512xf32>
    %7 = vector.broadcast %6 : vector<1x512xf32> to vector<2x512xf32>
    %8 = arith.addf %5, %7 : vector<2x512xf32>
    %c0_7 = arith.constant 0 : index
    %c0_8 = arith.constant 0 : index
    %9 = vector.load %arg5[%c0_7, %c0_8] : memref<2x512xf32, #tpu.memory_space<vmem>>, vector<2x512xf32>
    %10 = arith.addf %8, %9 : vector<2x512xf32>
    %cst_9 = arith.constant 0.000000e+00 : f32
    %11 = vector.broadcast %cst_9 : f32 to vector<2x512xf32>
    %12 = arith.maximumf %10, %11 : vector<2x512xf32>
    %c0_10 = arith.constant 0 : index
    %c0_11 = arith.constant 0 : index
    %13 = vector.load %arg6[%c0_10, %c0_11] : memref<2x512xf32, #tpu.memory_space<vmem>>, vector<2x512xf32>
    tpu.vector_store %arg6[%c0_10, %c0_11], %12 {strides = array<i32>} : memref<2x512xf32, #tpu.memory_space<vmem>>, vector<2x512xf32>,
    return
  }
  func.func @transform_0(%arg0: i32) -> (i32, i32) {
    %c0_i32 = arith.constant 0 : i32
    %c0_i32_0 = arith.constant 0 : i32
    return %arg0, %c0_i32 : i32, i32
  }
  func.func @transform_1(%arg0: i32) -> (i32, i32) {
    %c0_i32 = arith.constant 0 : i32
    %c0_i32_0 = arith.constant 0 : i32
    %c0_i32_1 = arith.constant 0 : i32
    return %c0_i32, %c0_i32_0 : i32, i32
  }
  func.func @transform_2(%arg0: i32) -> (i32, i32) {
    %c0_i32 = arith.constant 0 : i32
    %c0_i32_0 = arith.constant 0 : i32
    %c0_i32_1 = arith.constant 0 : i32
    return %c0_i32, %c0_i32_0 : i32, i32
  }
  func.func @transform_3(%arg0: i32) -> (i32, i32) {
    %c0_i32 = arith.constant 0 : i32
    %c0_i32_0 = arith.constant 0 : i32
    %c0_i32_1 = arith.constant 0 : i32
    return %c0_i32, %c0_i32_0 : i32, i32
  }
  func.func @transform_4(%arg0: i32) -> (i32, i32) {
    %c0_i32 = arith.constant 0 : i32
    %c0_i32_0 = arith.constant 0 : i32
    return %arg0, %c0_i32 : i32, i32
  }
  func.func @transform_5(%arg0: i32) -> (i32, i32) {
    %c0_i32 = arith.constant 0 : i32
    %c0_i32_0 = arith.constant 0 : i32
    return %arg0, %c0_i32 : i32, i32
  }
}

module attributes {stable_mosaic.version = 11 : i64} {
  func.func @_mm_bn_kernel(%arg0: i32, %arg1: memref<2x256xbf16, #tpu.memory_space<vmem>>, %arg2: memref<256x512xbf16, #tpu.memory_space<vmem>>, %arg3: memref<1x512xf32, #tpu.memory_space<vmem>>, %arg4: memref<1x512xf32, #tpu.memory_space<vmem>>, %arg5: memref<2x512xf32, #tpu.memory_space<vmem>>) attributes {dimension_semantics = [#tpu.dimension_semantics<parallel>], iteration_bounds = array<i64: 1>, scalar_prefetch = 0 : i64, scratch_operands = 0 : i64, tpu.core_type = #tpu.core_type<tc>, window_params = [{transform_indices = @transform_0, window_bounds = array<i64: 2, 256>}, {pipeline_mode = #tpu.pipeline_mode<synchronous>, transform_indices = @transform_1, window_bounds = array<i64: 256, 512>}, {pipeline_mode = #tpu.pipeline_mode<synchronous>, transform_indices = @transform_2, window_bounds = array<i64: 1, 512>}, {pipeline_mode = #tpu.pipeline_mode<synchronous>, transform_indices = @transform_3, window_bounds = array<i64: 1, 512>}, {transform_indices = @transform_4, window_bounds = array<i64: 2, 512>}]} {
    %c0 = arith.constant 0 : index
    %c0_0 = arith.constant 0 : index
    %0 = vector.load %arg1[%c0, %c0_0] : memref<2x256xbf16, #tpu.memory_space<vmem>>, vector<2x256xbf16>
    %c0_1 = arith.constant 0 : index
    %c0_2 = arith.constant 0 : index
    %1 = vector.load %arg2[%c0_1, %c0_2] : memref<256x512xbf16, #tpu.memory_space<vmem>>, vector<256x512xbf16>
    %cst = arith.constant dense<0.000000e+00> : vector<2x512xf32>
    %2 = tpu.matmul %0, %1, %cst {dimension_numbers = #tpu.dot_dimension_numbers<[1], [0], [0], [1], [0, 0, 1, 1], [], []>} : vector<2x256xbf16>, vector<256x512xbf16>, vector<2x512xf32> -> vector<2x512xf32>
    %c0_3 = arith.constant 0 : index
    %c0_4 = arith.constant 0 : index
    %3 = vector.load %arg3[%c0_3, %c0_4] : memref<1x512xf32, #tpu.memory_space<vmem>>, vector<1x512xf32>
    %4 = vector.broadcast %3 : vector<1x512xf32> to vector<2x512xf32>
    %5 = arith.mulf %2, %4 : vector<2x512xf32>
    %c0_5 = arith.constant 0 : index
    %c0_6 = arith.constant 0 : index
    %6 = vector.load %arg4[%c0_5, %c0_6] : memref<1x512xf32, #tpu.memory_space<vmem>>, vector<1x512xf32>
    %7 = vector.broadcast %6 : vector<1x512xf32> to vector<2x512xf32>
    %8 = arith.addf %5, %7 : vector<2x512xf32>
    %c0_7 = arith.constant 0 : index
    %c0_8 = arith.constant 0 : index
    %9 = vector.load %arg5[%c0_7, %c0_8] : memref<2x512xf32, #tpu.memory_space<vmem>>, vector<2x512xf32>
    tpu.vector_store %arg5[%c0_7, %c0_8], %8 {strides = array<i32>} : memref<2x512xf32, #tpu.memory_space<vmem>>, vector<2x512xf32>,
    return
  }
  func.func @transform_0(%arg0: i32) -> (i32, i32) {
    %c0_i32 = arith.constant 0 : i32
    %c0_i32_0 = arith.constant 0 : i32
    return %arg0, %c0_i32 : i32, i32
  }
  func.func @transform_1(%arg0: i32) -> (i32, i32) {
    %c0_i32 = arith.constant 0 : i32
    %c0_i32_0 = arith.constant 0 : i32
    %c0_i32_1 = arith.constant 0 : i32
    return %c0_i32, %c0_i32_0 : i32, i32
  }
  func.func @transform_2(%arg0: i32) -> (i32, i32) {
    %c0_i32 = arith.constant 0 : i32
    %c0_i32_0 = arith.constant 0 : i32
    %c0_i32_1 = arith.constant 0 : i32
    return %c0_i32, %c0_i32_0 : i32, i32
  }
  func.func @transform_3(%arg0: i32) -> (i32, i32) {
    %c0_i32 = arith.constant 0 : i32
    %c0_i32_0 = arith.constant 0 : i32
    %c0_i32_1 = arith.constant 0 : i32
    return %c0_i32, %c0_i32_0 : i32, i32
  }
  func.func @transform_4(%arg0: i32) -> (i32, i32) {
    %c0_i32 = arith.constant 0 : i32
    %c0_i32_0 = arith.constant 0 : i32
    return %arg0, %c0_i32 : i32, i32
  }
}

module attributes {stable_mosaic.version = 11 : i64} {
  func.func @_mm_bn_kernel(%arg0: i32, %arg1: memref<2x512xbf16, #tpu.memory_space<vmem>>, %arg2: memref<512x128xbf16, #tpu.memory_space<vmem>>, %arg3: memref<1x128xf32, #tpu.memory_space<vmem>>, %arg4: memref<1x128xf32, #tpu.memory_space<vmem>>, %arg5: memref<2x128xf32, #tpu.memory_space<vmem>>) attributes {dimension_semantics = [#tpu.dimension_semantics<parallel>], iteration_bounds = array<i64: 1>, scalar_prefetch = 0 : i64, scratch_operands = 0 : i64, tpu.core_type = #tpu.core_type<tc>, window_params = [{transform_indices = @transform_0, window_bounds = array<i64: 2, 512>}, {pipeline_mode = #tpu.pipeline_mode<synchronous>, transform_indices = @transform_1, window_bounds = array<i64: 512, 128>}, {pipeline_mode = #tpu.pipeline_mode<synchronous>, transform_indices = @transform_2, window_bounds = array<i64: 1, 128>}, {pipeline_mode = #tpu.pipeline_mode<synchronous>, transform_indices = @transform_3, window_bounds = array<i64: 1, 128>}, {transform_indices = @transform_4, window_bounds = array<i64: 2, 128>}]} {
    %c0 = arith.constant 0 : index
    %c0_0 = arith.constant 0 : index
    %0 = vector.load %arg1[%c0, %c0_0] : memref<2x512xbf16, #tpu.memory_space<vmem>>, vector<2x512xbf16>
    %c0_1 = arith.constant 0 : index
    %c0_2 = arith.constant 0 : index
    %1 = vector.load %arg2[%c0_1, %c0_2] : memref<512x128xbf16, #tpu.memory_space<vmem>>, vector<512x128xbf16>
    %cst = arith.constant dense<0.000000e+00> : vector<2x128xf32>
    %2 = tpu.matmul %0, %1, %cst {dimension_numbers = #tpu.dot_dimension_numbers<[1], [0], [0], [1], [0, 0, 1, 1], [], []>} : vector<2x512xbf16>, vector<512x128xbf16>, vector<2x128xf32> -> vector<2x128xf32>
    %c0_3 = arith.constant 0 : index
    %c0_4 = arith.constant 0 : index
    %3 = vector.load %arg3[%c0_3, %c0_4] : memref<1x128xf32, #tpu.memory_space<vmem>>, vector<1x128xf32>
    %4 = vector.broadcast %3 : vector<1x128xf32> to vector<2x128xf32>
    %5 = arith.mulf %2, %4 : vector<2x128xf32>
    %c0_5 = arith.constant 0 : index
    %c0_6 = arith.constant 0 : index
    %6 = vector.load %arg4[%c0_5, %c0_6] : memref<1x128xf32, #tpu.memory_space<vmem>>, vector<1x128xf32>
    %7 = vector.broadcast %6 : vector<1x128xf32> to vector<2x128xf32>
    %8 = arith.addf %5, %7 : vector<2x128xf32>
    %cst_7 = arith.constant 0.000000e+00 : f32
    %9 = vector.broadcast %cst_7 : f32 to vector<2x128xf32>
    %10 = arith.maximumf %8, %9 : vector<2x128xf32>
    %c0_8 = arith.constant 0 : index
    %c0_9 = arith.constant 0 : index
    %11 = vector.load %arg5[%c0_8, %c0_9] : memref<2x128xf32, #tpu.memory_space<vmem>>, vector<2x128xf32>
    tpu.vector_store %arg5[%c0_8, %c0_9], %10 {strides = array<i32>} : memref<2x128xf32, #tpu.memory_space<vmem>>, vector<2x128xf32>,
    return
  }
  func.func @transform_0(%arg0: i32) -> (i32, i32) {
    %c0_i32 = arith.constant 0 : i32
    %c0_i32_0 = arith.constant 0 : i32
    return %arg0, %c0_i32 : i32, i32
  }
  func.func @transform_1(%arg0: i32) -> (i32, i32) {
    %c0_i32 = arith.constant 0 : i32
    %c0_i32_0 = arith.constant 0 : i32
    %c0_i32_1 = arith.constant 0 : i32
    return %c0_i32, %c0_i32_0 : i32, i32
  }
  func.func @transform_2(%arg0: i32) -> (i32, i32) {
    %c0_i32 = arith.constant 0 : i32
    %c0_i32_0 = arith.constant 0 : i32
    %c0_i32_1 = arith.constant 0 : i32
    return %c0_i32, %c0_i32_0 : i32, i32
  }
  func.func @transform_3(%arg0: i32) -> (i32, i32) {
    %c0_i32 = arith.constant 0 : i32
    %c0_i32_0 = arith.constant 0 : i32
    %c0_i32_1 = arith.constant 0 : i32
    return %c0_i32, %c0_i32_0 : i32, i32
  }
  func.func @transform_4(%arg0: i32) -> (i32, i32) {
    %c0_i32 = arith.constant 0 : i32
    %c0_i32_0 = arith.constant 0 : i32
    return %arg0, %c0_i32 : i32, i32
  }
}

module attributes {stable_mosaic.version = 11 : i64} {
  func.func @_head_kernel(%arg0: memref<2x1x512xf32, #tpu.memory_space<vmem>>, %arg1: memref<512x128xf32, #tpu.memory_space<vmem>>, %arg2: memref<1x128xf32, #tpu.memory_space<vmem>>, %arg3: memref<2x128xf32, #tpu.memory_space<vmem>>) attributes {dimension_semantics = [], scalar_prefetch = 0 : i64, scratch_operands = 0 : i64, tpu.core_type = #tpu.core_type<tc>} {
    %c0 = arith.constant 0 : index
    %c0_0 = arith.constant 0 : index
    %c0_1 = arith.constant 0 : index
    %0 = vector.load %arg0[%c0, %c0_0, %c0_1] : memref<2x1x512xf32, #tpu.memory_space<vmem>>, vector<2x1x512xf32>
    %cst = arith.constant dense<0.000000e+00> : vector<2x512xf32>
    %1 = vector.multi_reduction <add>, %0, %cst [1] : vector<2x1x512xf32> to vector<2x512xf32>
    %cst_2 = arith.constant 1.000000e+00 : f32
    %2 = vector.broadcast %cst_2 : f32 to vector<2x512xf32>
    %3 = arith.divf %1, %2 : vector<2x512xf32>
    %c0_3 = arith.constant 0 : index
    %c0_4 = arith.constant 0 : index
    %4 = vector.load %arg1[%c0_3, %c0_4] : memref<512x128xf32, #tpu.memory_space<vmem>>, vector<512x128xf32>
    %cst_5 = arith.constant dense<0.000000e+00> : vector<2x128xf32>
    %5 = tpu.matmul %3, %4, %cst_5 {dimension_numbers = #tpu.dot_dimension_numbers<[1], [0], [0], [1], [0, 0, 1, 1], [], []>} : vector<2x512xf32>, vector<512x128xf32>, vector<2x128xf32> -> vector<2x128xf32>
    %c0_6 = arith.constant 0 : index
    %c0_7 = arith.constant 0 : index
    %6 = vector.load %arg2[%c0_6, %c0_7] : memref<1x128xf32, #tpu.memory_space<vmem>>, vector<1x128xf32>
    %7 = vector.broadcast %6 : vector<1x128xf32> to vector<2x128xf32>
    %8 = arith.addf %5, %7 : vector<2x128xf32>
    %c0_8 = arith.constant 0 : index
    %c0_9 = arith.constant 0 : index
    %9 = vector.load %arg3[%c0_8, %c0_9] : memref<2x128xf32, #tpu.memory_space<vmem>>, vector<2x128xf32>
    tpu.vector_store %arg3[%c0_8, %c0_9], %8 {strides = array<i32>} : memref<2x128xf32, #tpu.memory_space<vmem>>, vector<2x128xf32>,
    return
  }
}

</mosaic_0001>

<bundles_post_ra>
// kernel: resnet_forward.31
= control target key start
LH: loop header
LB: loop body
LE: loop exit
PB: predicated region body
PF: predicated region fallthrough
CT: control target
= control target key end

     0   :  { %s1069_s15 = smov 0   ;;  %s1313_s0 = inlined_call_operand.vmem [shape: bf16[512,147], index: 0, kind: input, shape index: {}]   ;;  %s1314_s1 = inlined_call_operand.vmem [shape: bf16[147,16], index: 1, kind: input, shape index: {}]   ;;  %s1315_s2 = inlined_call_operand.vmem [shape: f32[1,16], index: 2, kind: input, shape index: {}]   ;;  %s1316_s3 = inlined_call_operand.vmem [shape: f32[1,16], index: 3, kind: input, shape index: {}]   ;;  %s1317_s4 = inlined_call_operand.vmem [shape: f32[512,16], index: 4, kind: output, shape index: {}]  }
   0x1 LB: > { %s873_s16 = sadd.s32 4294967295, %s1040_s15   ;;  %p877_p0 = scmp.ge.s32.totalorder %s1040_s15, 1  ;;  %s1040_s15 = sphi %s1069_s15, %s14_s15  }
   0x2   : > { %p164_p1 = scmp.lt.s32.totalorder %s1040_s15, 3 }
   0x4   : > { %p165_p2 = pnand %p877_p0, %p164_p1 }
   0x5   : > { %v976_v0 = vld [vmem:[%s1314_s1] sm:$0xff] (!%p165_p2)   ;;  %v1042_v1 = vmov (!%p165_p2), 0   ;;  %v977_v2 = vld [vmem:[%s1314_s1 + $0x8] sm:$0xff] (!%p165_p2)   ;;  %v978_v3 = vld [vmem:[%s1314_s1 + $0x10] sm:$0xff] (!%p165_p2)   ;;  %s878_s23 = sshll.u32 (!%p165_p2), %s873_s16, 5  ;;  %vm457_vm0 = vcmask (!%p165_p2), 154624  }
   0x6   : > { %168 = sbr.rel (%p165_p2) target bundleno = 323 (0x143), region = 36  ;;  %513 = vmatprep.subr.bf16.mxu0 (!%p165_p2), %v1042_v1  ;;  %946 = vmatprep.subr.bf16.mxu1 (!%p165_p2), %v1042_v1  ;;  %p192_p3 = scmp.lt.s32.totalorder (!%p165_p2), %s878_s23, 63  ;;  %v979_v4 = vld [vmem:[%s1314_s1 + $0x18] sm:$0xff] (!%p165_p2)   ;;  %v980_v5 = vld [vmem:[%s1314_s1 + $0x20] sm:$0xff] (!%p165_p2)   ;;  %v981_v8 = vld [vmem:[%s1314_s1 + $0x28] sm:$0xff] (!%p165_p2)   ;;  %vm506_vm1 = vcmask (!%p165_p2), 1040384  }
   0x7   : > { %514 = vmatpush1.bf16.msra.mxu0 (!%p165_p2), %v976_v0  ;;  %956 = vmatpush1.bf16.msra.mxu1 (!%p165_p2), %v976_v0  ;;  %v982_v9 = vld [vmem:[%s1314_s1 + $0x30] sm:$0xff] (!%p165_p2)   ;;  %v983_v10 = vld [vmem:[%s1314_s1 + $0x38] sm:$0xff] (!%p165_p2)   ;;  %vm507_vm2 = vcmask (!%p165_p2), 1041408   ;;  %v1043_v11 = vmov (!%p165_p2), 65535   ;;  %v984_v13 = vld [vmem:[%s1314_s1 + $0x40] sm:$0xff] (!%p165_p2)   ;;  %vm784_vm3 = vcmask (!%p165_p2), 130048  }
   0x8   : > { %515 = vmatprep.subr.bf16.mxu0 (!%p165_p2), %v1042_v1  ;;  %947 = vmatprep.subr.bf16.mxu1 (!%p165_p2), %v1042_v1  ;;  %v508_v12 = vsel (!%p165_p2), %vm506_vm1, 4294967295, %v1043_v11  ;;  %v985_v14 = vld [vmem:[%s1314_s1 + $0x48] ss:$0 sps:$4 sm:$0x33] (!%p165_p2)   ;;  %v1168_v47 = vld [vmem:[%s1315_s2] ss:$0 sm:$0xff] (!%p165_p2) }
   0x9   : > { %v509_v15 = vsel (!%p165_p2), %vm507_vm2, %v508_v12, 0  ;;  %v1173_v49 = vld [vmem:[%s1316_s3] ss:$0 sm:$0xff] (!%p165_p2) }
   0xa   : > { %v511_v16 = vand.u32 (!%p165_p2), %v985_v14, %v509_v15 }
   0xb   : > { %516 = vmatpush1.bf16.msra.mxu0 (!%p165_p2), %v977_v2  ;;  %957 = vmatpush1.bf16.msra.mxu1 (!%p165_p2), %v977_v2 }
   0xc   : > { %517 = vmatprep.subr.bf16.mxu0 (!%p165_p2), %v1042_v1  ;;  %948 = vmatprep.subr.bf16.mxu1 (!%p165_p2), %v1042_v1 }
   0xd   : > { %s1319_s23 = smov (!%p192_p3, %s878_s23), 63 }
   0xe   : > { %s945_s26 = sshll.u32 %s1319_s23, 3 }
   0xf   : > { %518 = vmatpush1.bf16.msra.mxu0 %v978_v3  ;;  %958 = vmatpush1.bf16.msra.mxu1 %v978_v3  ;;  %s1097_s29 = scalar_lea.vmem %s1313_s0, %s945_s26  ;;  %s1186_s24 = scalar_lea.vmem %s1317_s4, %s945_s26 }
  0x10   : > { %519 = vmatprep.subr.bf16.mxu0 %v1042_v1  ;;  %949 = vmatprep.subr.bf16.mxu1 %v1042_v1  ;;  %v988_v6 = vld [vmem:[%s1097_s29 + $0x4] ss:$8 sps:$4 sm:$0xff]   ;;  %v986_v17 = vld [vmem:[%s1097_s29] ss:$8 sps:$4 sm:$0xff]   ;;  %v992_v19 = vld [vmem:[%s1097_s29 + $0x14] ss:$8 sps:$4 sm:$0xff]  }
  0x11   : > { %v991_v7 = vld [vmem:[%s1097_s29 + $0x84] ss:$8 sps:$4 sm:$0xff]   ;;  %925 = vmatprep.mubr.msk.bf16.mxu0 %vm457_vm0, %v988_v6  ;;  %v989_v18 = vld [vmem:[%s1097_s29 + $0x80] ss:$8 sps:$4 sm:$0xff]   ;;  %v994_v20 = vld [vmem:[%s1097_s29 + $0x94] ss:$8 sps:$4 sm:$0xff]  }
  0x12   : > { %933 = vmatprep.mubr.msk.bf16.mxu1 %vm457_vm0, %v991_v7  ;;  %v996_v21 = vld [vmem:[%s1097_s29 + $0x10] ss:$8 sps:$4 sm:$0xff]   ;;  %v998_v23 = vld [vmem:[%s1097_s29 + $0x24] ss:$8 sps:$4 sm:$0xff]   ;;  %v1002_v25 = vld [vmem:[%s1097_s29 + $0x20] ss:$8 sps:$4 sm:$0xff]  }
  0x13   : > { %520 = vmatpush1.bf16.msra.mxu0 %v979_v4  ;;  %959 = vmatpush1.bf16.msra.mxu1 %v979_v4  ;;  %v997_v22 = vld [vmem:[%s1097_s29 + $0x90] ss:$8 sps:$4 sm:$0xff]   ;;  %v1000_v24 = vld [vmem:[%s1097_s29 + $0xa4] ss:$8 sps:$4 sm:$0xff]   ;;  %v1003_v26 = vld [vmem:[%s1097_s29 + $0xa0] ss:$8 sps:$4 sm:$0xff]  }
  0x14   : > { %521 = vmatprep.subr.bf16.mxu0 %v1042_v1  ;;  %950 = vmatprep.subr.bf16.mxu1 %v1042_v1  ;;  %v1004_v27 = vld [vmem:[%s1097_s29 + $0x34] ss:$8 sps:$4 sm:$0xff]   ;;  %v1008_v29 = vld [vmem:[%s1097_s29 + $0x30] ss:$8 sps:$4 sm:$0xff]   ;;  %v1010_v31 = vld [vmem:[%s1097_s29 + $0x44] ss:$8 sps:$4 sm:$0xff]  }
  0x15   : > { %v1006_v28 = vld [vmem:[%s1097_s29 + $0xb4] ss:$8 sps:$4 sm:$0xff]   ;;  %v1009_v30 = vld [vmem:[%s1097_s29 + $0xb0] ss:$8 sps:$4 sm:$0xff]   ;;  %v1012_v32 = vld [vmem:[%s1097_s29 + $0xc4] ss:$8 sps:$4 sm:$0xff]  }
  0x16   : > { %v1014_v33 = vld [vmem:[%s1097_s29 + $0x40] ss:$8 sps:$4 sm:$0xff]   ;;  %v1016_v35 = vld [vmem:[%s1097_s29 + $0x54] ss:$8 sps:$4 sm:$0xff]   ;;  %v1020_v37 = vld [vmem:[%s1097_s29 + $0x50] ss:$8 sps:$4 sm:$0xff]  }
  0x17   : > { %522 = vmatpush1.bf16.msra.mxu0 %v980_v5  ;;  %960 = vmatpush1.bf16.msra.mxu1 %v980_v5  ;;  %v1015_v34 = vld [vmem:[%s1097_s29 + $0xc0] ss:$8 sps:$4 sm:$0xff]   ;;  %v1018_v36 = vld [vmem:[%s1097_s29 + $0xd4] ss:$8 sps:$4 sm:$0xff]   ;;  %v1021_v38 = vld [vmem:[%s1097_s29 + $0xd0] ss:$8 sps:$4 sm:$0xff]  }
  0x18   : > { %523 = vmatprep.subr.bf16.mxu0 %v1042_v1  ;;  %951 = vmatprep.subr.bf16.mxu1 %v1042_v1  ;;  %v1022_v39 = vld [vmem:[%s1097_s29 + $0x64] ss:$8 sps:$4 sm:$0xff]   ;;  %v1026_v41 = vld [vmem:[%s1097_s29 + $0x60] ss:$8 sps:$4 sm:$0xff]   ;;  %v1028_v43 = vld [vmem:[%s1097_s29 + $0x74] ss:$8 sps:$4 sm:$0xff]  }
  0x19   : > { %v1024_v40 = vld [vmem:[%s1097_s29 + $0xe4] ss:$8 sps:$4 sm:$0xff]   ;;  %v1027_v42 = vld [vmem:[%s1097_s29 + $0xe0] ss:$8 sps:$4 sm:$0xff]   ;;  %v1030_v44 = vld [vmem:[%s1097_s29 + $0xf4] ss:$8 sps:$4 sm:$0xff]  }
  0x1a   : > { %v1032_v45 = vld [vmem:[%s1097_s29 + $0x70] ss:$8 sps:$4 sm:$0xff]  }
  0x1b   : > { %524 = vmatpush1.bf16.msra.mxu0 %v981_v8  ;;  %961 = vmatpush1.bf16.msra.mxu1 %v981_v8  ;;  %v1033_v46 = vld [vmem:[%s1097_s29 + $0xf0] ss:$8 sps:$4 sm:$0xff]  }
  0x1c   : > { %525 = vmatprep.subr.bf16.mxu0 %v1042_v1  ;;  %952 = vmatprep.subr.bf16.mxu1 %v1042_v1 }
  0x1f   : > { %526 = vmatpush1.bf16.msra.mxu0 %v982_v9  ;;  %962 = vmatpush1.bf16.msra.mxu1 %v982_v9 }
  0x20   : > { %527 = vmatprep.subr.bf16.mxu0 %v1042_v1  ;;  %953 = vmatprep.subr.bf16.mxu1 %v1042_v1 }
  0x23   : > { %528 = vmatpush1.bf16.msra.mxu0 %v983_v10  ;;  %963 = vmatpush1.bf16.msra.mxu1 %v983_v10 }
  0x24   : > { %529 = vmatprep.subr.bf16.mxu0 %v1042_v1  ;;  %954 = vmatprep.subr.bf16.mxu1 %v1042_v1 }
  0x27   : > { %530 = vmatpush1.bf16.msra.mxu0 %v984_v13  ;;  %964 = vmatpush1.bf16.msra.mxu1 %v984_v13 }
  0x28   : > { %531 = vmatprep.subr.bf16.mxu0 %v1042_v1  ;;  %955 = vmatprep.subr.bf16.mxu1 %v1042_v1 }
  0x2b   : > { %532 = vmatpush1.bf16.msra.mxu0 %v511_v16  ;;  %965 = vmatpush1.bf16.msra.mxu1 %v511_v16 }
  0x2e   : > { %546 = vmatmul.mubr.bf16.vlgmr.msra.gmra.mrb[0].mxu0 %v986_v17  ;;  %610 = vmatmul.mubr.bf16.vlgmr.msra.gmra.mrb[0].mxu1 %v989_v18 }
  0x2f   : > { %926 = vmatprep.mubr.msk.bf16.mxu0 %vm457_vm0, %v992_v19  ;;  %934 = vmatprep.mubr.msk.bf16.mxu1 %vm457_vm0, %v994_v20 }
  0x36   : > { %554 = vmatmul.mubr.bf16.gmra.mrb[4].mxu0 %v996_v21  ;;  %618 = vmatmul.mubr.bf16.gmra.mrb[4].mxu1 %v997_v22 }
  0x37   : > { %927 = vmatprep.mubr.msk.bf16.mxu0 %vm457_vm0, %v998_v23  ;;  %935 = vmatprep.mubr.msk.bf16.mxu1 %vm457_vm0, %v1000_v24 }
  0x3e   : > { %562 = vmatmul.mubr.bf16.gmra.mrb[8].mxu0 %v1002_v25  ;;  %626 = vmatmul.mubr.bf16.gmra.mrb[8].mxu1 %v1003_v26 }
  0x3f   : > { %928 = vmatprep.mubr.msk.bf16.mxu0 %vm457_vm0, %v1004_v27  ;;  %936 = vmatprep.mubr.msk.bf16.mxu1 %vm457_vm0, %v1006_v28 }
  0x46   : > { %570 = vmatmul.mubr.bf16.gmra.mrb[12].mxu0 %v1008_v29  ;;  %634 = vmatmul.mubr.bf16.gmra.mrb[12].mxu1 %v1009_v30 }
  0x47   : > { %929 = vmatprep.mubr.msk.bf16.mxu0 %vm457_vm0, %v1010_v31  ;;  %937 = vmatprep.mubr.msk.bf16.mxu1 %vm457_vm0, %v1012_v32 }
  0x4e   : > { %578 = vmatmul.mubr.bf16.gmra.mrb[16].mxu0 %v1014_v33  ;;  %642 = vmatmul.mubr.bf16.gmra.mrb[16].mxu1 %v1015_v34 }
  0x4f   : > { %930 = vmatprep.mubr.msk.bf16.mxu0 %vm457_vm0, %v1016_v35  ;;  %938 = vmatprep.mubr.msk.bf16.mxu1 %vm457_vm0, %v1018_v36 }
  0x56   : > { %586 = vmatmul.mubr.bf16.gmra.mrb[20].mxu0 %v1020_v37  ;;  %650 = vmatmul.mubr.bf16.gmra.mrb[20].mxu1 %v1021_v38 }
  0x57   : > { %931 = vmatprep.mubr.msk.bf16.mxu0 %vm457_vm0, %v1022_v39  ;;  %939 = vmatprep.mubr.msk.bf16.mxu1 %vm457_vm0, %v1024_v40 }
  0x5e   : > { %594 = vmatmul.mubr.bf16.gmra.mrb[24].mxu0 %v1026_v41  ;;  %658 = vmatmul.mubr.bf16.gmra.mrb[24].mxu1 %v1027_v42 }
  0x5f   : > { %932 = vmatprep.mubr.msk.bf16.mxu0 %vm457_vm0, %v1028_v43  ;;  %940 = vmatprep.mubr.msk.bf16.mxu1 %vm457_vm0, %v1030_v44 }
  0x66   : > { %602 = vmatmul.mubr.bf16.gmra.mrb[28].mxu0 %v1032_v45  ;;  %666 = vmatmul.mubr.bf16.gmra.mrb[28].mxu1 %v1033_v46 }
 0x101   : > { %v547_v48 = vpop.f32.mrb[0].mxu0  ;;  %v611_v50 = vpop.f32.mrb[0].mxu1 }
 0x102   : > { %v681_v51 = vmul.f32 %v1168_v47, %v547_v48  ;;  %v697_v52 = vmul.f32 %v1168_v47, %v611_v50  ;;  %v549_v53 = vpop.f32.mrb[1].mxu0  ;;  %v613_v54 = vpop.f32.mrb[1].mxu1 }
 0x103   : > { %v550_v55 = vpop.f32.mrb[2].mxu0  ;;  %v614_v56 = vpop.f32.mrb[2].mxu1 }
 0x104   : > { %v720_v57 = vadd.f32 %v1173_v49, %v681_v51  ;;  %v736_v58 = vadd.f32 %v1173_v49, %v697_v52  ;;  %v682_v59 = vmul.f32 %v1168_v47, %v550_v55  ;;  %v698_v60 = vmul.f32 %v1168_v47, %v614_v56  ;;  %v552_v61 = vpop.f32.mrb[3].mxu0  ;;  %v616_v62 = vpop.f32.mrb[3].mxu1 }
 0x106   : > { %v752_v63 = vmax.f32 %v720_v57, 0.0  ;;  %v768_v0 = vmax.f32 %v736_v58, 0.0  ;;  %v721_v1 = vadd.f32 %v1173_v49, %v682_v59  ;;  %v737_v2 = vadd.f32 %v1173_v49, %v698_v60 }
 0x108   : > { %785 = vst.msk [vmem:[%s1186_s24] sm:$0xff] %vm784_vm3, %v752_v63  ;;  %801 = vst.msk [vmem:[%s1186_s24 + $0x80] sm:$0xff] %vm784_vm3, %v768_v0  ;;  %v753_v3 = vmax.f32 %v721_v1, 0.0  ;;  %v769_v4 = vmax.f32 %v737_v2, 0.0 }
 0x109   : > { %v555_v5 = vpop.f32.mrb[4].mxu0  ;;  %v619_v6 = vpop.f32.mrb[4].mxu1 }
 0x10a   : > { %786 = vst.msk [vmem:[%s1186_s24 + $0x8] sm:$0xff] %vm784_vm3, %v753_v3  ;;  %802 = vst.msk [vmem:[%s1186_s24 + $0x88] sm:$0xff] %vm784_vm3, %v769_v4  ;;  %v683_v7 = vmul.f32 %v1168_v47, %v555_v5  ;;  %v699_v8 = vmul.f32 %v1168_v47, %v619_v6  ;;  %v557_v9 = vpop.f32.mrb[5].mxu0  ;;  %v621_v10 = vpop.f32.mrb[5].mxu1 }
 0x10b   : > { %v558_v11 = vpop.f32.mrb[6].mxu0  ;;  %v622_v12 = vpop.f32.mrb[6].mxu1 }
 0x10c   : > { %v722_v13 = vadd.f32 %v1173_v49, %v683_v7  ;;  %v738_v14 = vadd.f32 %v1173_v49, %v699_v8  ;;  %v684_v15 = vmul.f32 %v1168_v47, %v558_v11  ;;  %v700_v16 = vmul.f32 %v1168_v47, %v622_v12  ;;  %v560_v17 = vpop.f32.mrb[7].mxu0  ;;  %v624_v18 = vpop.f32.mrb[7].mxu1 }
 0x10e   : > { %v754_v19 = vmax.f32 %v722_v13, 0.0  ;;  %v770_v20 = vmax.f32 %v738_v14, 0.0  ;;  %v723_v21 = vadd.f32 %v1173_v49, %v684_v15  ;;  %v739_v22 = vadd.f32 %v1173_v49, %v700_v16 }
 0x110   : > { %787 = vst.msk [vmem:[%s1186_s24 + $0x10] sm:$0xff] %vm784_vm3, %v754_v19  ;;  %803 = vst.msk [vmem:[%s1186_s24 + $0x90] sm:$0xff] %vm784_vm3, %v770_v20  ;;  %v755_v23 = vmax.f32 %v723_v21, 0.0  ;;  %v771_v24 = vmax.f32 %v739_v22, 0.0 }
 0x111   : > { %v563_v25 = vpop.f32.mrb[8].mxu0  ;;  %v627_v26 = vpop.f32.mrb[8].mxu1 }
 0x112   : > { %788 = vst.msk [vmem:[%s1186_s24 + $0x18] sm:$0xff] %vm784_vm3, %v755_v23  ;;  %804 = vst.msk [vmem:[%s1186_s24 + $0x98] sm:$0xff] %vm784_vm3, %v771_v24  ;;  %v685_v27 = vmul.f32 %v1168_v47, %v563_v25  ;;  %v701_v28 = vmul.f32 %v1168_v47, %v627_v26  ;;  %v565_v29 = vpop.f32.mrb[9].mxu0  ;;  %v629_v30 = vpop.f32.mrb[9].mxu1 }
 0x113   : > { %v566_v31 = vpop.f32.mrb[10].mxu0  ;;  %v630_v32 = vpop.f32.mrb[10].mxu1 }
 0x114   : > { %v724_v33 = vadd.f32 %v1173_v49, %v685_v27  ;;  %v740_v34 = vadd.f32 %v1173_v49, %v701_v28  ;;  %v686_v35 = vmul.f32 %v1168_v47, %v566_v31  ;;  %v702_v36 = vmul.f32 %v1168_v47, %v630_v32  ;;  %v568_v37 = vpop.f32.mrb[11].mxu0  ;;  %v632_v38 = vpop.f32.mrb[11].mxu1 }
 0x116   : > { %v756_v39 = vmax.f32 %v724_v33, 0.0  ;;  %v772_v40 = vmax.f32 %v740_v34, 0.0  ;;  %v725_v41 = vadd.f32 %v1173_v49, %v686_v35  ;;  %v741_v42 = vadd.f32 %v1173_v49, %v702_v36 }
 0x118   : > { %789 = vst.msk [vmem:[%s1186_s24 + $0x20] sm:$0xff] %vm784_vm3, %v756_v39  ;;  %805 = vst.msk [vmem:[%s1186_s24 + $0xa0] sm:$0xff] %vm784_vm3, %v772_v40  ;;  %v757_v43 = vmax.f32 %v725_v41, 0.0  ;;  %v773_v44 = vmax.f32 %v741_v42, 0.0 }
 0x119   : > { %v571_v45 = vpop.f32.mrb[12].mxu0  ;;  %v635_v46 = vpop.f32.mrb[12].mxu1 }
 0x11a   : > { %790 = vst.msk [vmem:[%s1186_s24 + $0x28] sm:$0xff] %vm784_vm3, %v757_v43  ;;  %806 = vst.msk [vmem:[%s1186_s24 + $0xa8] sm:$0xff] %vm784_vm3, %v773_v44  ;;  %v687_v48 = vmul.f32 %v1168_v47, %v571_v45  ;;  %v703_v50 = vmul.f32 %v1168_v47, %v635_v46  ;;  %v573_v51 = vpop.f32.mrb[13].mxu0  ;;  %v637_v52 = vpop.f32.mrb[13].mxu1 }
 0x11b   : > { %v574_v53 = vpop.f32.mrb[14].mxu0  ;;  %v638_v54 = vpop.f32.mrb[14].mxu1 }
 0x11c   : > { %v726_v55 = vadd.f32 %v1173_v49, %v687_v48  ;;  %v742_v56 = vadd.f32 %v1173_v49, %v703_v50  ;;  %v688_v57 = vmul.f32 %v1168_v47, %v574_v53  ;;  %v704_v58 = vmul.f32 %v1168_v47, %v638_v54  ;;  %v576_v59 = vpop.f32.mrb[15].mxu0  ;;  %v640_v60 = vpop.f32.mrb[15].mxu1 }
 0x11e   : > { %v758_v61 = vmax.f32 %v726_v55, 0.0  ;;  %v774_v62 = vmax.f32 %v742_v56, 0.0  ;;  %v727_v63 = vadd.f32 %v1173_v49, %v688_v57  ;;  %v743_v0 = vadd.f32 %v1173_v49, %v704_v58 }
 0x120   : > { %791 = vst.msk [vmem:[%s1186_s24 + $0x30] sm:$0xff] %vm784_vm3, %v758_v61  ;;  %807 = vst.msk [vmem:[%s1186_s24 + $0xb0] sm:$0xff] %vm784_vm3, %v774_v62  ;;  %v759_v1 = vmax.f32 %v727_v63, 0.0  ;;  %v775_v2 = vmax.f32 %v743_v0, 0.0 }
 0x121   : > { %v579_v3 = vpop.f32.mrb[16].mxu0  ;;  %v643_v4 = vpop.f32.mrb[16].mxu1 }
 0x122   : > { %792 = vst.msk [vmem:[%s1186_s24 + $0x38] sm:$0xff] %vm784_vm3, %v759_v1  ;;  %808 = vst.msk [vmem:[%s1186_s24 + $0xb8] sm:$0xff] %vm784_vm3, %v775_v2  ;;  %v689_v5 = vmul.f32 %v1168_v47, %v579_v3  ;;  %v705_v6 = vmul.f32 %v1168_v47, %v643_v4  ;;  %v581_v7 = vpop.f32.mrb[17].mxu0  ;;  %v645_v8 = vpop.f32.mrb[17].mxu1 }
 0x123   : > { %v582_v9 = vpop.f32.mrb[18].mxu0  ;;  %v646_v10 = vpop.f32.mrb[18].mxu1 }
 0x124   : > { %v728_v11 = vadd.f32 %v1173_v49, %v689_v5  ;;  %v744_v12 = vadd.f32 %v1173_v49, %v705_v6  ;;  %v690_v13 = vmul.f32 %v1168_v47, %v582_v9  ;;  %v706_v14 = vmul.f32 %v1168_v47, %v646_v10  ;;  %v584_v15 = vpop.f32.mrb[19].mxu0  ;;  %v648_v16 = vpop.f32.mrb[19].mxu1 }
 0x126   : > { %v760_v17 = vmax.f32 %v728_v11, 0.0  ;;  %v776_v18 = vmax.f32 %v744_v12, 0.0  ;;  %v729_v19 = vadd.f32 %v1173_v49, %v690_v13  ;;  %v745_v20 = vadd.f32 %v1173_v49, %v706_v14 }
 0x128   : > { %793 = vst.msk [vmem:[%s1186_s24 + $0x40] sm:$0xff] %vm784_vm3, %v760_v17  ;;  %809 = vst.msk [vmem:[%s1186_s24 + $0xc0] sm:$0xff] %vm784_vm3, %v776_v18  ;;  %v761_v21 = vmax.f32 %v729_v19, 0.0  ;;  %v777_v22 = vmax.f32 %v745_v20, 0.0 }
 0x129   : > { %v587_v23 = vpop.f32.mrb[20].mxu0  ;;  %v651_v24 = vpop.f32.mrb[20].mxu1 }
 0x12a   : > { %794 = vst.msk [vmem:[%s1186_s24 + $0x48] sm:$0xff] %vm784_vm3, %v761_v21  ;;  %810 = vst.msk [vmem:[%s1186_s24 + $0xc8] sm:$0xff] %vm784_vm3, %v777_v22  ;;  %v691_v25 = vmul.f32 %v1168_v47, %v587_v23  ;;  %v707_v26 = vmul.f32 %v1168_v47, %v651_v24  ;;  %v589_v27 = vpop.f32.mrb[21].mxu0  ;;  %v653_v28 = vpop.f32.mrb[21].mxu1 }
 0x12b   : > { %v590_v29 = vpop.f32.mrb[22].mxu0  ;;  %v654_v30 = vpop.f32.mrb[22].mxu1 }
 0x12c   : > { %v730_v31 = vadd.f32 %v1173_v49, %v691_v25  ;;  %v746_v32 = vadd.f32 %v1173_v49, %v707_v26  ;;  %v692_v33 = vmul.f32 %v1168_v47, %v590_v29  ;;  %v708_v34 = vmul.f32 %v1168_v47, %v654_v30  ;;  %v592_v35 = vpop.f32.mrb[23].mxu0  ;;  %v656_v36 = vpop.f32.mrb[23].mxu1 }
 0x12e   : > { %v762_v37 = vmax.f32 %v730_v31, 0.0  ;;  %v778_v38 = vmax.f32 %v746_v32, 0.0  ;;  %v731_v39 = vadd.f32 %v1173_v49, %v692_v33  ;;  %v747_v40 = vadd.f32 %v1173_v49, %v708_v34 }
 0x130   : > { %795 = vst.msk [vmem:[%s1186_s24 + $0x50] sm:$0xff] %vm784_vm3, %v762_v37  ;;  %811 = vst.msk [vmem:[%s1186_s24 + $0xd0] sm:$0xff] %vm784_vm3, %v778_v38  ;;  %v763_v41 = vmax.f32 %v731_v39, 0.0  ;;  %v779_v42 = vmax.f32 %v747_v40, 0.0 }
 0x131   : > { %v595_v43 = vpop.f32.mrb[24].mxu0  ;;  %v659_v44 = vpop.f32.mrb[24].mxu1 }
 0x132   : > { %796 = vst.msk [vmem:[%s1186_s24 + $0x58] sm:$0xff] %vm784_vm3, %v763_v41  ;;  %812 = vst.msk [vmem:[%s1186_s24 + $0xd8] sm:$0xff] %vm784_vm3, %v779_v42  ;;  %v693_v45 = vmul.f32 %v1168_v47, %v595_v43  ;;  %v709_v46 = vmul.f32 %v1168_v47, %v659_v44  ;;  %v597_v48 = vpop.f32.mrb[25].mxu0  ;;  %v661_v50 = vpop.f32.mrb[25].mxu1 }
 0x133   : > { %v598_v51 = vpop.f32.mrb[26].mxu0  ;;  %v662_v52 = vpop.f32.mrb[26].mxu1 }
 0x134   : > { %v732_v53 = vadd.f32 %v1173_v49, %v693_v45  ;;  %v748_v54 = vadd.f32 %v1173_v49, %v709_v46  ;;  %v694_v55 = vmul.f32 %v1168_v47, %v598_v51  ;;  %v710_v56 = vmul.f32 %v1168_v47, %v662_v52  ;;  %v600_v57 = vpop.f32.mrb[27].mxu0  ;;  %v664_v58 = vpop.f32.mrb[27].mxu1 }
 0x136   : > { %v764_v59 = vmax.f32 %v732_v53, 0.0  ;;  %v780_v60 = vmax.f32 %v748_v54, 0.0  ;;  %v733_v61 = vadd.f32 %v1173_v49, %v694_v55  ;;  %v749_v62 = vadd.f32 %v1173_v49, %v710_v56 }
 0x138   : > { %797 = vst.msk [vmem:[%s1186_s24 + $0x60] sm:$0xff] %vm784_vm3, %v764_v59  ;;  %813 = vst.msk [vmem:[%s1186_s24 + $0xe0] sm:$0xff] %vm784_vm3, %v780_v60  ;;  %v765_v63 = vmax.f32 %v733_v61, 0.0  ;;  %v781_v0 = vmax.f32 %v749_v62, 0.0 }
 0x139   : > { %v603_v1 = vpop.f32.mrb[28].mxu0  ;;  %v667_v2 = vpop.f32.mrb[28].mxu1 }
 0x13a   : > { %798 = vst.msk [vmem:[%s1186_s24 + $0x68] sm:$0xff] %vm784_vm3, %v765_v63  ;;  %814 = vst.msk [vmem:[%s1186_s24 + $0xe8] sm:$0xff] %vm784_vm3, %v781_v0  ;;  %v695_v3 = vmul.f32 %v1168_v47, %v603_v1  ;;  %v711_v4 = vmul.f32 %v1168_v47, %v667_v2  ;;  %v605_v5 = vpop.f32.mrb[29].mxu0  ;;  %v669_v6 = vpop.f32.mrb[29].mxu1 }
 0x13b   : > { %v606_v7 = vpop.f32.mrb[30].mxu0  ;;  %v670_v8 = vpop.f32.mrb[30].mxu1 }
 0x13c   : > { %v734_v9 = vadd.f32 %v1173_v49, %v695_v3  ;;  %v750_v10 = vadd.f32 %v1173_v49, %v711_v4  ;;  %v696_v11 = vmul.f32 %v1168_v47, %v606_v7  ;;  %v712_v12 = vmul.f32 %v1168_v47, %v670_v8  ;;  %v608_v13 = vpop.f32.mrb[31].mxu0  ;;  %v672_v14 = vpop.f32.mrb[31].mxu1 }
 0x13e   : > { %v766_v15 = vmax.f32 %v734_v9, 0.0  ;;  %v782_v16 = vmax.f32 %v750_v10, 0.0  ;;  %v735_v17 = vadd.f32 %v1173_v49, %v696_v11  ;;  %v751_v18 = vadd.f32 %v1173_v49, %v712_v12 }
 0x140   : > { %799 = vst.msk [vmem:[%s1186_s24 + $0x70] sm:$0xff] %vm784_vm3, %v766_v15  ;;  %815 = vst.msk [vmem:[%s1186_s24 + $0xf0] sm:$0xff] %vm784_vm3, %v782_v16  ;;  %v767_v19 = vmax.f32 %v735_v17, 0.0  ;;  %v783_v20 = vmax.f32 %v751_v18, 0.0 }
 0x142   : > { %800 = vst.msk [vmem:[%s1186_s24 + $0x78] sm:$0xff] %vm784_vm3, %v767_v19  ;;  %816 = vst.msk [vmem:[%s1186_s24 + $0xf8] sm:$0xff] %vm784_vm3, %v783_v20 }
 0x143 PF: > { %s14_s15 = sadd.s32 1, %s1040_s15  }
 0x144   : > { %p11_p4 = scmp.ge.s32.totalorder %s14_s15, 4  }
 0x146   :  { %13 = sbr.rel (!%p11_p4) target bundleno = 1 (0x1), region = 66 }

// kernel: resnet_forward.32
= control target key start
LH: loop header
LB: loop body
LE: loop exit
PB: predicated region body
PF: predicated region fallthrough
CT: control target
= control target key end

     0   :  { %vm264_vm0 = vcmask 130048   ;;  %vm266_vm1 = vcmask 122880   ;;  %vm1546_vm2 = vcmask 1041409   ;;  %vm1548_vm3 = vcmask 1042434   ;;  %s3295_s0 = inlined_call_operand.vmem [shape: f32[128,9,16], index: 0, kind: input, shape index: {}]   ;;  %s3296_s1 = inlined_call_operand.vmem [shape: f32[128,16], index: 1, kind: output, shape index: {}]  }
   0x1   :  { %v8_v0 = vld [vmem:[%s3295_s0] sm:$0xff]  ;;  %v9_v1 = vld [vmem:[%s3295_s0 + $0x8] sm:$0x1]  ;;  %v10_v2 = vld [vmem:[%s3295_s0 + $0x10] sm:$0xff]  ;;  %vm1550_vm4 = vcmask 1043459   ;;  %vm1552_vm5 = vcmask 1044484  }
   0x2   :  { %v11_v3 = vld [vmem:[%s3295_s0 + $0x18] sm:$0x1]  ;;  %v12_v4 = vld [vmem:[%s3295_s0 + $0x20] sm:$0xff]  ;;  %v13_v5 = vld [vmem:[%s3295_s0 + $0x28] sm:$0x1]  ;;  %v265_v6 = vsel %vm264_vm0, %v8_v0, -inf }
   0x3   :  { %v267_v7 = vsel %vm266_vm1, %v9_v1, -inf  ;;  %v14_v8 = vld [vmem:[%s3295_s0 + $0x30] sm:$0xff]  ;;  %v275_v9 = vsel %vm264_vm0, %v10_v2, -inf  ;;  %v276_v10 = vsel %vm266_vm1, %v11_v3, -inf  ;;  %v284_v11 = vsel %vm264_vm0, %v12_v4, -inf  ;;  %v16_v14 = vld [vmem:[%s3295_s0 + $0x40] sm:$0xff] }
   0x4   :  { %v285_v12 = vsel %vm266_vm1, %v13_v5, -inf  ;;  %v15_v13 = vld [vmem:[%s3295_s0 + $0x38] sm:$0x1]  ;;  %v17_v15 = vld [vmem:[%s3295_s0 + $0x48] sm:$0x1]  ;;  %v268_v16 = vmax.f32 %v265_v6, %v267_v7  ;;  %v18_v17 = vld [vmem:[%s3295_s0 + $0x50] sm:$0xff]  ;;  %v277_v19 = vmax.f32 %v275_v9, %v276_v10 }
   0x5   :  { %v19_v18 = vld [vmem:[%s3295_s0 + $0x58] sm:$0x1]  ;;  %v286_v20 = vmax.f32 %v284_v11, %v285_v12  ;;  %v293_v21 = vsel %vm264_vm0, %v14_v8, -inf  ;;  %v294_v22 = vsel %vm266_vm1, %v15_v13, -inf  ;;  %v302_v23 = vsel %vm264_vm0, %v16_v14, -inf  ;;  %v20_v28 = vld [vmem:[%s3295_s0 + $0x60] sm:$0xff] }
   0x6   :  { %v303_v24 = vsel %vm266_vm1, %v17_v15, -inf  ;;  %v269_v25 = vrot.slane %v268_v16, 4  ;;  %v311_v26 = vsel %vm264_vm0, %v18_v17, -inf  ;;  %v312_v27 = vsel %vm266_vm1, %v19_v18, -inf  ;;  %v21_v29 = vld [vmem:[%s3295_s0 + $0x68] sm:$0x1] }
   0x7   :  { %v278_v30 = vrot.slane %v277_v19, 4  ;;  %v287_v31 = vrot.slane %v286_v20, 4  ;;  %v295_v32 = vmax.f32 %v293_v21, %v294_v22  ;;  %v304_v33 = vmax.f32 %v302_v23, %v303_v24  ;;  %v22_v38 = vld [vmem:[%s3295_s0 + $0x70] sm:$0xff]  ;;  %v23_v39 = vld [vmem:[%s3295_s0 + $0x78] sm:$0x1]  ;;  %v24_v44 = vld [vmem:[%s3295_s0 + $0x80] sm:$0xff] }
   0x8   :  { %v313_v34 = vmax.f32 %v311_v26, %v312_v27  ;;  %v270_v35 = vmax.f32 %v268_v16, %v269_v25  ;;  %v320_v36 = vsel %vm264_vm0, %v20_v28, -inf  ;;  %v321_v37 = vsel %vm266_vm1, %v21_v29, -inf  ;;  %v25_v45 = vld [vmem:[%s3295_s0 + $0x88] sm:$0x1]  ;;  %v26_v46 = vld [vmem:[%s3295_s0 + $0x90] sm:$0xff]  ;;  %v28_v0 = vld [vmem:[%s3295_s0 + $0xa0] sm:$0xff] }
   0x9   :  { %v279_v40 = vmax.f32 %v277_v19, %v278_v30  ;;  %v288_v41 = vmax.f32 %v286_v20, %v287_v31  ;;  %v296_v42 = vrot.slane %v295_v32, 4  ;;  %v305_v43 = vrot.slane %v304_v33, 4  ;;  %v27_v47 = vld [vmem:[%s3295_s0 + $0x98] sm:$0x1]  ;;  %v29_v1 = vld [vmem:[%s3295_s0 + $0xa8] sm:$0x1] }
   0xa   :  { %v314_v48 = vrot.slane %v313_v34, 4  ;;  %v322_v49 = vmax.f32 %v320_v36, %v321_v37  ;;  %v271_v50 = vrot.slane %v270_v35, 2  ;;  %v329_v51 = vsel %vm264_vm0, %v22_v38, -inf  ;;  %v30_v12 = vld [vmem:[%s3295_s0 + $0xb0] sm:$0xff]  ;;  %v31_v13 = vld [vmem:[%s3295_s0 + $0xb8] sm:$0x1] }
   0xb   :  { %v330_v52 = vsel %vm266_vm1, %v23_v39, -inf  ;;  %v280_v53 = vrot.slane %v279_v40, 2  ;;  %v289_v54 = vrot.slane %v288_v41, 2  ;;  %v297_v55 = vmax.f32 %v295_v32, %v296_v42  ;;  %v32_v16 = vld [vmem:[%s3295_s0 + $0xc0] sm:$0xff]  ;;  %v33_v17 = vld [vmem:[%s3295_s0 + $0xc8] sm:$0x1] }
   0xc   :  { %v306_v56 = vmax.f32 %v304_v33, %v305_v43  ;;  %v338_v57 = vsel %vm264_vm0, %v24_v44, -inf  ;;  %v339_v58 = vsel %vm266_vm1, %v25_v45, -inf  ;;  %v347_v59 = vsel %vm264_vm0, %v26_v46, -inf  ;;  %v34_v21 = vld [vmem:[%s3295_s0 + $0xd0] sm:$0xff]  ;;  %v35_v22 = vld [vmem:[%s3295_s0 + $0xd8] sm:$0x1] }
   0xd   :  { %v348_v60 = vsel %vm266_vm1, %v27_v47, -inf  ;;  %v315_v61 = vmax.f32 %v313_v34, %v314_v48  ;;  %v323_v62 = vrot.slane %v322_v49, 4  ;;  %v331_v63 = vmax.f32 %v329_v51, %v330_v52  ;;  %v36_v39 = vld [vmem:[%s3295_s0 + $0xe0] sm:$0xff]  ;;  %v38_v46 = vld [vmem:[%s3295_s0 + $0xf0] sm:$0xff]  ;;  %v41_v48 = vld [vmem:[%s3295_s0 + $0x108] sm:$0x1] }
   0xe   :  { %v272_v2 = vmax.f32 %v270_v35, %v271_v50  ;;  %v340_v3 = vmax.f32 %v338_v57, %v339_v58  ;;  %v349_v4 = vmax.f32 %v347_v59, %v348_v60  ;;  %v281_v5 = vmax.f32 %v279_v40, %v280_v53  ;;  %v37_v40 = vld [vmem:[%s3295_s0 + $0xe8] sm:$0x1]  ;;  %v40_v47 = vld [vmem:[%s3295_s0 + $0x100] sm:$0xff]  ;;  %v42_v53 = vld [vmem:[%s3295_s0 + $0x110] sm:$0xff] }
   0xf   :  { %v290_v6 = vmax.f32 %v288_v41, %v289_v54  ;;  %v298_v7 = vrot.slane %v297_v55, 2  ;;  %v307_v8 = vrot.slane %v306_v56, 2  ;;  %v316_v9 = vrot.slane %v315_v61, 2  ;;  %v39_v41 = vld [vmem:[%s3295_s0 + $0xf8] sm:$0x1] }
  0x10   :  { %v324_v10 = vmax.f32 %v322_v49, %v323_v62  ;;  %v332_v11 = vrot.slane %v331_v63, 4  ;;  %v356_v14 = vsel %vm264_vm0, %v28_v0, -inf  ;;  %v357_v15 = vsel %vm266_vm1, %v29_v1, -inf  ;;  %v43_v58 = vld [vmem:[%s3295_s0 + $0x118] sm:$0x1] }
  0x11   :  { %v273_v18 = vrot.slane %v272_v2, 1  ;;  %v341_v19 = vrot.slane %v340_v3, 4  ;;  %v350_v20 = vrot.slane %v349_v4, 4  ;;  %v282_v23 = vrot.slane %v281_v5, 1 }
  0x12   :  { %v291_v24 = vrot.slane %v290_v6, 1  ;;  %v299_v25 = vmax.f32 %v297_v55, %v298_v7  ;;  %v308_v26 = vmax.f32 %v306_v56, %v307_v8  ;;  %v317_v27 = vmax.f32 %v315_v61, %v316_v9 }
  0x13   :  { %v325_v28 = vrot.slane %v324_v10, 2  ;;  %v333_v29 = vmax.f32 %v331_v63, %v332_v11  ;;  %v358_v30 = vmax.f32 %v356_v14, %v357_v15  ;;  %v365_v31 = vsel %vm264_vm0, %v30_v12, -inf  ;;  %v44_v11 = vld [vmem:[%s3295_s0 + $0x120] sm:$0xff]  ;;  %v45_v12 = vld [vmem:[%s3295_s0 + $0x128] sm:$0x1] }
  0x14   :  { %v366_v32 = vsel %vm266_vm1, %v31_v13, -inf  ;;  %v374_v33 = vsel %vm264_vm0, %v32_v16, -inf  ;;  %v375_v34 = vsel %vm266_vm1, %v33_v17, -inf  ;;  %v342_v35 = vmax.f32 %v340_v3, %v341_v19 }
  0x15   :  { %v351_v36 = vmax.f32 %v349_v4, %v350_v20  ;;  %v383_v37 = vsel %vm264_vm0, %v34_v21, -inf  ;;  %v384_v38 = vsel %vm266_vm1, %v35_v22, -inf  ;;  %v1832_v42 = vmax.f32 %v272_v2, %v273_v18  ;;  %v46_v21 = vld [vmem:[%s3295_s0 + $0x130] sm:$0xff] }
  0x16   :  { %v1834_v43 = vmax.f32 %v281_v5, %v282_v23  ;;  %v1836_v44 = vmax.f32 %v290_v6, %v291_v24  ;;  %v300_v45 = vrot.slane %v299_v25, 1  ;;  %v309_v49 = vrot.slane %v308_v26, 1 }
  0x17   :  { %v359_v50 = vrot.slane %v358_v30, 4  ;;  %v367_v51 = vmax.f32 %v365_v31, %v366_v32  ;;  %v376_v52 = vmax.f32 %v374_v33, %v375_v34  ;;  %v318_v54 = vrot.slane %v317_v27, 1 }
  0x18   :  { %v326_v55 = vmax.f32 %v324_v10, %v325_v28  ;;  %v334_v56 = vrot.slane %v333_v29, 2  ;;  %v385_v57 = vmax.f32 %v383_v37, %v384_v38  ;;  %v343_v59 = vrot.slane %v342_v35, 2 }
  0x19   :  { %v352_v60 = vrot.slane %v351_v36, 2  ;;  %v392_v61 = vsel %vm264_vm0, %v36_v39, -inf  ;;  %v393_v62 = vsel %vm266_vm1, %v37_v40, -inf  ;;  %v401_v63 = vsel %vm264_vm0, %v38_v46, -inf  ;;  %v49_v40 = vld [vmem:[%s3295_s0 + $0x148] sm:$0x1] }
  0x1a   :  { %v402_v0 = vsel %vm266_vm1, %v39_v41, -inf  ;;  %v410_v1 = vsel %vm264_vm0, %v40_v47, -inf  ;;  %v411_v2 = vsel %vm266_vm1, %v41_v48, -inf  ;;  %v360_v3 = vmax.f32 %v358_v30, %v359_v50 }
  0x1b   :  { %v368_v4 = vrot.slane %v367_v51, 4  ;;  %v377_v5 = vrot.slane %v376_v52, 4  ;;  %v419_v6 = vsel %vm264_vm0, %v42_v53, -inf  ;;  %v1860_v7 = vmax.f32 %v299_v25, %v300_v45 }
  0x1c   :  { %v386_v8 = vrot.slane %v385_v57, 4  ;;  %v394_v9 = vmax.f32 %v392_v61, %v393_v62  ;;  %v420_v10 = vsel %vm266_vm1, %v43_v58, -inf  ;;  %v1869_v13 = vmax.f32 %v308_v26, %v309_v49  ;;  %v51_v61 = vld [vmem:[%s3295_s0 + $0x158] sm:$0x1] }
  0x1d   :  { %v327_v14 = vrot.slane %v326_v55, 1  ;;  %v403_v15 = vmax.f32 %v401_v63, %v402_v0  ;;  %v412_v16 = vmax.f32 %v410_v1, %v411_v2  ;;  %v1871_v17 = vmax.f32 %v317_v27, %v318_v54  ;;  %v47_v27 = vld [vmem:[%s3295_s0 + $0x138] sm:$0x1] }
  0x1e   :  { %v335_v18 = vmax.f32 %v333_v29, %v334_v56  ;;  %v344_v19 = vmax.f32 %v342_v35, %v343_v59  ;;  %v421_v20 = vmax.f32 %v419_v6, %v420_v10  ;;  %v353_v22 = vmax.f32 %v351_v36, %v352_v60  ;;  %v48_v35 = vld [vmem:[%s3295_s0 + $0x140] sm:$0xff]  ;;  %v50_v60 = vld [vmem:[%s3295_s0 + $0x150] sm:$0xff] }
  0x1f   :  { %v361_v23 = vrot.slane %v360_v3, 2  ;;  %v369_v24 = vmax.f32 %v367_v51, %v368_v4  ;;  %v378_v25 = vmax.f32 %v376_v52, %v377_v5  ;;  %v387_v28 = vmax.f32 %v385_v57, %v386_v8  ;;  %v52_v6 = vld [vmem:[%s3295_s0 + $0x160] sm:$0xff] }
  0x20   :  { %v395_v30 = vrot.slane %v394_v9, 4  ;;  %v428_v26 = vsel %vm264_vm0, %v44_v11, -inf  ;;  %v429_v31 = vsel %vm266_vm1, %v45_v12, -inf  ;;  %v1881_v29 = vmax.f32 %v326_v55, %v327_v14 }
  0x21   :  { %v404_v32 = vrot.slane %v403_v15, 4  ;;  %v413_v33 = vrot.slane %v412_v16, 4  ;;  %v430_v34 = vmax.f32 %v428_v26, %v429_v31  ;;  %v336_v36 = vrot.slane %v335_v18, 1  ;;  %v55_v26 = vld [vmem:[%s3295_s0 + $0x178] sm:$0x1] }
  0x22   :  { %v345_v37 = vrot.slane %v344_v19, 1  ;;  %v422_v38 = vrot.slane %v421_v20, 4  ;;  %v437_v39 = vsel %vm264_vm0, %v46_v21, -inf  ;;  %v354_v41 = vrot.slane %v353_v22, 1 }
  0x23   :  { %v362_v45 = vmax.f32 %v360_v3, %v361_v23  ;;  %v370_v46 = vrot.slane %v369_v24, 2  ;;  %v379_v47 = vrot.slane %v378_v25, 2  ;;  %v388_v48 = vrot.slane %v387_v28, 2  ;;  %v54_v23 = vld [vmem:[%s3295_s0 + $0x170] sm:$0xff] }
  0x24   :  { %v396_v49 = vmax.f32 %v394_v9, %v395_v30  ;;  %v431_v50 = vrot.slane %v430_v34, 4  ;;  %v438_v51 = vsel %vm266_vm1, %v47_v27, -inf  ;;  %v405_v52 = vmax.f32 %v403_v15, %v404_v32 }
  0x25   :  { %v414_v53 = vmax.f32 %v412_v16, %v413_v33  ;;  %v439_v54 = vmax.f32 %v437_v39, %v438_v51  ;;  %v446_v55 = vsel %vm264_vm0, %v48_v35, -inf  ;;  %v1892_v56 = vmax.f32 %v335_v18, %v336_v36  ;;  %v53_v18 = vld [vmem:[%s3295_s0 + $0x168] sm:$0x1] }
  0x26   :  { %v1894_v57 = vmax.f32 %v344_v19, %v345_v37  ;;  %v423_v58 = vmax.f32 %v421_v20, %v422_v38  ;;  %v447_v59 = vsel %vm266_vm1, %v49_v40, -inf  ;;  %v1903_v62 = vmax.f32 %v353_v22, %v354_v41 }
  0x27   :  { %v371_v63 = vmax.f32 %v369_v24, %v370_v46  ;;  %v432_v0 = vmax.f32 %v430_v34, %v431_v50  ;;  %v448_v1 = vmax.f32 %v446_v55, %v447_v59  ;;  %v363_v2 = vrot.slane %v362_v45, 1  ;;  %v57_v50 = vld [vmem:[%s3295_s0 + $0x188] sm:$0x1] }
  0x28   :  { %v380_v3 = vmax.f32 %v378_v25, %v379_v47  ;;  %v397_v4 = vrot.slane %v396_v49, 2  ;;  %v440_v5 = vrot.slane %v439_v54, 4  ;;  %v389_v8 = vmax.f32 %v387_v28, %v388_v48 }
  0x29   :  { %v406_v9 = vrot.slane %v405_v52, 2  ;;  %v415_v10 = vrot.slane %v414_v53, 2  ;;  %v449_v11 = vrot.slane %v448_v1, 4  ;;  %v424_v12 = vrot.slane %v423_v58, 2 }
  0x2a   :  { %v441_v14 = vmax.f32 %v439_v54, %v440_v5  ;;  %v455_v15 = vsel %vm264_vm0, %v50_v60, -inf  ;;  %v456_v16 = vsel %vm266_vm1, %v51_v61, -inf  ;;  %v372_v19 = vrot.slane %v371_v63, 1  ;;  %v58_v61 = vld [vmem:[%s3295_s0 + $0x190] sm:$0xff] }
  0x2b   :  { %v433_v20 = vrot.slane %v432_v0, 2  ;;  %v450_v21 = vmax.f32 %v448_v1, %v449_v11  ;;  %v457_v22 = vmax.f32 %v455_v15, %v456_v16  ;;  %v1916_v24 = vmax.f32 %v362_v45, %v363_v2 }
  0x2c   :  { %v381_v25 = vrot.slane %v380_v3, 1  ;;  %v442_v28 = vrot.slane %v441_v14, 2  ;;  %v464_v30 = vsel %vm264_vm0, %v52_v6, -inf  ;;  %v390_v31 = vrot.slane %v389_v8, 1 }
  0x2d   :  { %v398_v27 = vmax.f32 %v396_v49, %v397_v4  ;;  %v407_v32 = vmax.f32 %v405_v52, %v406_v9  ;;  %v451_v33 = vrot.slane %v450_v21, 2  ;;  %v416_v34 = vmax.f32 %v414_v53, %v415_v10  ;;  %v56_v49 = vld [vmem:[%s3295_s0 + $0x180] sm:$0xff] }
  0x2e   :  { %v425_v35 = vmax.f32 %v423_v58, %v424_v12  ;;  %v458_v36 = vrot.slane %v457_v22, 4  ;;  %v465_v37 = vsel %vm266_vm1, %v53_v18, -inf  ;;  %v434_v38 = vmax.f32 %v432_v0, %v433_v20  ;;  %v61_v20 = vld [vmem:[%s3295_s0 + $0x1a8] sm:$0x1] }
  0x2f   :  { %v443_v39 = vmax.f32 %v441_v14, %v442_v28  ;;  %v466_v40 = vmax.f32 %v464_v30, %v465_v37  ;;  %v473_v41 = vsel %vm264_vm0, %v54_v23, -inf  ;;  %v1924_v45 = vmax.f32 %v371_v63, %v372_v19  ;;  %v60_v14 = vld [vmem:[%s3295_s0 + $0x1a0] sm:$0xff]  ;;  %v62_v28 = vld [vmem:[%s3295_s0 + $0x1b0] sm:$0xff] }
  0x30   :  { %v1926_v46 = vmax.f32 %v380_v3, %v381_v25  ;;  %v459_v47 = vmax.f32 %v457_v22, %v458_v36  ;;  %v474_v48 = vsel %vm266_vm1, %v55_v26, -inf  ;;  %v1935_v51 = vmax.f32 %v389_v8, %v390_v31  ;;  %v59_v8 = vld [vmem:[%s3295_s0 + $0x198] sm:$0x1] }
  0x31   :  { %v399_v52 = vrot.slane %v398_v27, 1  ;;  %v452_v53 = vmax.f32 %v450_v21, %v451_v33  ;;  %v475_v54 = vmax.f32 %v473_v41, %v474_v48  ;;  %v408_v55 = vrot.slane %v407_v32, 1  ;;  %v64_v33 = vld [vmem:[%s3295_s0 + $0x1c0] sm:$0xff]  ;;  %v66_v48 = vld [vmem:[%s3295_s0 + $0x1d0] sm:$0xff] }
  0x32   :  { %v417_v58 = vrot.slane %v416_v34, 1  ;;  %v460_v59 = vrot.slane %v459_v47, 2  ;;  %v467_v60 = vrot.slane %v466_v40, 4  ;;  %v426_v63 = vrot.slane %v425_v35, 1 }
  0x33   :  { %v435_v0 = vrot.slane %v434_v38, 1  ;;  %v444_v1 = vrot.slane %v443_v39, 1  ;;  %v476_v2 = vrot.slane %v475_v54, 4  ;;  %v482_v5 = vsel %vm264_vm0, %v56_v49, -inf  ;;  %v67_v49 = vld [vmem:[%s3295_s0 + $0x1d8] sm:$0x1] }
  0x34   :  { %v461_v3 = vmax.f32 %v459_v47, %v460_v59  ;;  %v468_v4 = vmax.f32 %v466_v40, %v467_v60  ;;  %v483_v6 = vsel %vm266_vm1, %v57_v50, -inf  ;;  %v1945_v9 = vmax.f32 %v398_v27, %v399_v52 }
  0x35   :  { %v453_v10 = vrot.slane %v452_v53, 1  ;;  %v477_v11 = vmax.f32 %v475_v54, %v476_v2  ;;  %v484_v12 = vmax.f32 %v482_v5, %v483_v6  ;;  %v1950_v15 = vmax.f32 %v407_v32, %v408_v55  ;;  %v63_v32 = vld [vmem:[%s3295_s0 + $0x1b8] sm:$0x1] }
  0x36   :  { %v462_v16 = vrot.slane %v461_v3, 1  ;;  %v469_v18 = vrot.slane %v468_v4, 2  ;;  %v491_v19 = vsel %vm264_vm0, %v58_v61, -inf  ;;  %v1956_v21 = vmax.f32 %v416_v34, %v417_v58  ;;  %v68_v61 = vld [vmem:[%s3295_s0 + $0x1e0] sm:$0xff] }
  0x37   :  { %v1958_v22 = vmax.f32 %v425_v35, %v426_v63  ;;  %v1960_v23 = vmax.f32 %v434_v38, %v435_v0  ;;  %v478_v25 = vrot.slane %v477_v11, 2  ;;  %v1965_v30 = vmax.f32 %v443_v39, %v444_v1  ;;  %v65_v38 = vld [vmem:[%s3295_s0 + $0x1c8] sm:$0x1] }
  0x38   :  { %v470_v26 = vmax.f32 %v468_v4, %v469_v18  ;;  %v485_v31 = vrot.slane %v484_v12, 4  ;;  %v492_v27 = vsel %vm266_vm1, %v59_v8, -inf  ;;  %v1974_v34 = vmax.f32 %v452_v53, %v453_v10  ;;  %v69_v63 = vld [vmem:[%s3295_s0 + $0x1e8] sm:$0x1]  ;;  %v70_v10 = vld [vmem:[%s3295_s0 + $0x1f0] sm:$0xff] }
  0x39   :  { %v479_v35 = vmax.f32 %v477_v11, %v478_v25  ;;  %v493_v36 = vmax.f32 %v491_v19, %v492_v27  ;;  %v500_v37 = vsel %vm264_vm0, %v60_v14, -inf  ;;  %v1980_v39 = vmax.f32 %v461_v3, %v462_v16 }
  0x3a   :  { %v471_v40 = vrot.slane %v470_v26, 1  ;;  %v486_v41 = vmax.f32 %v484_v12, %v485_v31  ;;  %v501_v47 = vsel %vm266_vm1, %v61_v20, -inf  ;;  %v509_v54 = vsel %vm264_vm0, %v62_v28, -inf  ;;  %v71_v28 = vld [vmem:[%s3295_s0 + $0x1f8] sm:$0x1] }
  0x3b   :  { %v480_v50 = vrot.slane %v479_v35, 1  ;;  %v494_v52 = vrot.slane %v493_v36, 4  ;;  %v502_v53 = vmax.f32 %v500_v37, %v501_v47  ;;  %v510_v59 = vsel %vm266_vm1, %v63_v32, -inf }
  0x3c   :  { %v1990_v55 = vmax.f32 %v470_v26, %v471_v40  ;;  %v487_v58 = vrot.slane %v486_v41, 2  ;;  %v518_v60 = vsel %vm264_vm0, %v64_v33, -inf  ;;  %v511_v3 = vmax.f32 %v509_v54, %v510_v59  ;;  %v72_v26 = vld [vmem:[%s3295_s0 + $0x200] sm:$0xff]  ;;  %v73_v40 = vld [vmem:[%s3295_s0 + $0x208] sm:$0x1] }
  0x3d   :  { %v2000_v0 = vmax.f32 %v479_v35, %v480_v50  ;;  %v495_v1 = vmax.f32 %v493_v36, %v494_v52  ;;  %v503_v2 = vrot.slane %v502_v53, 4  ;;  %v519_v5 = vsel %vm266_vm1, %v65_v38, -inf }
  0x3e   :  { %v488_v4 = vmax.f32 %v486_v41, %v487_v58  ;;  %v527_v6 = vsel %vm264_vm0, %v66_v48, -inf  ;;  %v528_v8 = vsel %vm266_vm1, %v67_v49, -inf  ;;  %v512_v14 = vrot.slane %v511_v3, 4  ;;  %v74_v58 = vld [vmem:[%s3295_s0 + $0x210] sm:$0xff] }
  0x3f   :  { %v496_v11 = vrot.slane %v495_v1, 2  ;;  %v504_v12 = vmax.f32 %v502_v53, %v503_v2  ;;  %v520_v16 = vmax.f32 %v518_v60, %v519_v5  ;;  %v529_v19 = vmax.f32 %v527_v6, %v528_v8 }
  0x40   :  { %v489_v18 = vrot.slane %v488_v4, 1  ;;  %v536_v20 = vsel %vm264_vm0, %v68_v61, -inf  ;;  %v537_v25 = vsel %vm266_vm1, %v69_v63, -inf  ;;  %v513_v32 = vmax.f32 %v511_v3, %v512_v14  ;;  %v77_v14 = vld [vmem:[%s3295_s0 + $0x228] sm:$0x1] }
  0x41   :  { %v497_v31 = vmax.f32 %v495_v1, %v496_v11  ;;  %v505_v27 = vrot.slane %v504_v12, 2  ;;  %v521_v33 = vrot.slane %v520_v16, 4  ;;  %v530_v36 = vrot.slane %v529_v19, 4  ;;  %v75_v1 = vld [vmem:[%s3295_s0 + $0x218] sm:$0x1] }
  0x42   :  { %v2016_v35 = vmax.f32 %v488_v4, %v489_v18  ;;  %v538_v37 = vmax.f32 %v536_v20, %v537_v25  ;;  %v545_v38 = vsel %vm264_vm0, %v70_v10, -inf  ;;  %v514_v48 = vrot.slane %v513_v32, 2 }
  0x43   :  { %v498_v41 = vrot.slane %v497_v31, 1  ;;  %v506_v47 = vmax.f32 %v504_v12, %v505_v27  ;;  %v522_v49 = vmax.f32 %v520_v16, %v521_v33  ;;  %v531_v50 = vmax.f32 %v529_v19, %v530_v36  ;;  %v76_v12 = vld [vmem:[%s3295_s0 + $0x220] sm:$0xff]  ;;  %v78_v27 = vld [vmem:[%s3295_s0 + $0x230] sm:$0xff] }
  0x44   :  { %v539_v52 = vrot.slane %v538_v37, 4  ;;  %v546_v53 = vsel %vm266_vm1, %v71_v28, -inf  ;;  %v554_v54 = vsel %vm264_vm0, %v72_v26, -inf  ;;  %v515_v61 = vmax.f32 %v513_v32, %v514_v48  ;;  %v79_v32 = vld [vmem:[%s3295_s0 + $0x238] sm:$0x1] }
  0x45   :  { %v2027_v59 = vmax.f32 %v497_v31, %v498_v41  ;;  %v507_v60 = vrot.slane %v506_v47, 1  ;;  %v523_v63 = vrot.slane %v522_v49, 2  ;;  %v532_v2 = vrot.slane %v531_v50, 2 }
  0x46   :  { %v540_v3 = vmax.f32 %v538_v37, %v539_v52  ;;  %v547_v4 = vmax.f32 %v545_v38, %v546_v53  ;;  %v555_v5 = vsel %vm266_vm1, %v73_v40, -inf  ;;  %v516_v8 = vrot.slane %v515_v61, 1 }
  0x47   :  { %v2033_v6 = vmax.f32 %v506_v47, %v507_v60  ;;  %v524_v10 = vmax.f32 %v522_v49, %v523_v63  ;;  %v556_v11 = vmax.f32 %v554_v54, %v555_v5  ;;  %v533_v16 = vmax.f32 %v531_v50, %v532_v2  ;;  %v80_v49 = vld [vmem:[%s3295_s0 + $0x240] sm:$0xff]  ;;  %v81_v50 = vld [vmem:[%s3295_s0 + $0x248] sm:$0x1]  ;;  %v82_v2 = vld [vmem:[%s3295_s0 + $0x250] sm:$0xff] }
  0x48   :  { %v541_v18 = vrot.slane %v540_v3, 2  ;;  %v548_v19 = vrot.slane %v547_v4, 4  ;;  %v563_v20 = vsel %vm264_vm0, %v74_v58, -inf  ;;  %v2042_v25 = vmax.f32 %v515_v61, %v516_v8 }
  0x49   :  { %v525_v28 = vrot.slane %v524_v10, 1  ;;  %v557_v26 = vrot.slane %v556_v11, 4  ;;  %v564_v31 = vsel %vm266_vm1, %v75_v1, -inf  ;;  %v534_v33 = vrot.slane %v533_v16, 1 }
  0x4a   :  { %v542_v36 = vmax.f32 %v540_v3, %v541_v18  ;;  %v549_v37 = vmax.f32 %v547_v4, %v548_v19  ;;  %v565_v38 = vmax.f32 %v563_v20, %v564_v31  ;;  %v572_v47 = vsel %vm264_vm0, %v76_v12, -inf  ;;  %v83_v3 = vld [vmem:[%s3295_s0 + $0x258] sm:$0x1]  ;;  %v84_v18 = vld [vmem:[%s3295_s0 + $0x260] sm:$0xff]  ;;  %v85_v31 = vld [vmem:[%s3295_s0 + $0x268] sm:$0x1] }
  0x4b   :  { %v2051_v40 = vmax.f32 %v524_v10, %v525_v28  ;;  %v558_v41 = vmax.f32 %v556_v11, %v557_v26  ;;  %v573_v48 = vsel %vm266_vm1, %v77_v14, -inf  ;;  %v2061_v52 = vmax.f32 %v533_v16, %v534_v33 }
  0x4c   :  { %v543_v53 = vrot.slane %v542_v36, 1  ;;  %v550_v54 = vrot.slane %v549_v37, 2  ;;  %v566_v58 = vrot.slane %v565_v38, 4  ;;  %v574_v61 = vmax.f32 %v572_v47, %v573_v48 }
  0x4d   :  { %v559_v60 = vrot.slane %v558_v41, 2  ;;  %v581_v63 = vsel %vm264_vm0, %v78_v27, -inf  ;;  %v582_v1 = vsel %vm266_vm1, %v79_v32, -inf  ;;  %v590_v14 = vsel %vm264_vm0, %v80_v49, -inf  ;;  %v87_v49 = vld [vmem:[%s3295_s0 + $0x278] sm:$0x1] }
  0x4e   :  { %v2071_v4 = vmax.f32 %v542_v36, %v543_v53  ;;  %v551_v5 = vmax.f32 %v549_v37, %v550_v54  ;;  %v567_v8 = vmax.f32 %v565_v38, %v566_v58  ;;  %v583_v10 = vmax.f32 %v581_v63, %v582_v1  ;;  %v86_v37 = vld [vmem:[%s3295_s0 + $0x270] sm:$0xff] }
  0x4f   :  { %v560_v11 = vmax.f32 %v558_v41, %v559_v60  ;;  %v575_v12 = vrot.slane %v574_v61, 4  ;;  %v591_v16 = vsel %vm266_vm1, %v81_v50, -inf  ;;  %v599_v33 = vsel %vm264_vm0, %v82_v2, -inf  ;;  %v88_v2 = vld [vmem:[%s3295_s0 + $0x280] sm:$0xff] }
  0x50   :  { %v552_v19 = vrot.slane %v551_v5, 1  ;;  %v568_v20 = vrot.slane %v567_v8, 2  ;;  %v584_v28 = vrot.slane %v583_v10, 4  ;;  %v592_v26 = vmax.f32 %v590_v14, %v591_v16 }
  0x51   :  { %v561_v27 = vrot.slane %v560_v11, 1  ;;  %v576_v32 = vmax.f32 %v574_v61, %v575_v12  ;;  %v600_v36 = vsel %vm266_vm1, %v83_v3, -inf  ;;  %v608_v58 = vsel %vm264_vm0, %v84_v18, -inf  ;;  %v89_v3 = vld [vmem:[%s3295_s0 + $0x288] sm:$0x1] }
  0x52   :  { %v2086_v38 = vmax.f32 %v551_v5, %v552_v19  ;;  %v569_v41 = vmax.f32 %v567_v8, %v568_v20  ;;  %v585_v47 = vmax.f32 %v583_v10, %v584_v28  ;;  %v593_v48 = vrot.slane %v592_v26, 4  ;;  %v90_v19 = vld [vmem:[%s3295_s0 + $0x290] sm:$0xff] }
  0x53   :  { %v2091_v50 = vmax.f32 %v560_v11, %v561_v27  ;;  %v577_v53 = vrot.slane %v576_v32, 2  ;;  %v601_v54 = vmax.f32 %v599_v33, %v600_v36  ;;  %v609_v1 = vsel %vm266_vm1, %v85_v31, -inf  ;;  %v91_v27 = vld [vmem:[%s3295_s0 + $0x298] sm:$0x1] }
  0x54   :  { %v570_v60 = vrot.slane %v569_v41, 1  ;;  %v586_v61 = vrot.slane %v585_v47, 2  ;;  %v594_v63 = vmax.f32 %v592_v26, %v593_v48  ;;  %v610_v10 = vmax.f32 %v608_v58, %v609_v1  ;;  %v94_v1 = vld [vmem:[%s3295_s0 + $0x2b0] sm:$0xff] }
  0x55   :  { %v578_v5 = vmax.f32 %v576_v32, %v577_v53  ;;  %v602_v8 = vrot.slane %v601_v54, 4  ;;  %v617_v11 = vsel %vm264_vm0, %v86_v37, -inf  ;;  %v618_v18 = vsel %vm266_vm1, %v87_v49, -inf }
  0x56   :  { %v2102_v12 = vmax.f32 %v569_v41, %v570_v60  ;;  %v587_v14 = vmax.f32 %v585_v47, %v586_v61  ;;  %v595_v16 = vrot.slane %v594_v63, 2  ;;  %v611_v26 = vrot.slane %v610_v10, 4  ;;  %v92_v41 = vld [vmem:[%s3295_s0 + $0x2a0] sm:$0xff] }
  0x57   :  { %v579_v20 = vrot.slane %v578_v5, 1  ;;  %v603_v28 = vmax.f32 %v601_v54, %v602_v8  ;;  %v619_v31 = vmax.f32 %v617_v11, %v618_v18  ;;  %v626_v36 = vsel %vm264_vm0, %v88_v2, -inf  ;;  %v93_v54 = vld [vmem:[%s3295_s0 + $0x2a8] sm:$0x1] }
  0x58   :  { %v588_v32 = vrot.slane %v587_v14, 1  ;;  %v596_v33 = vmax.f32 %v594_v63, %v595_v16  ;;  %v627_v37 = vsel %vm266_vm1, %v89_v3, -inf  ;;  %v612_v49 = vmax.f32 %v610_v10, %v611_v26  ;;  %v95_v10 = vld [vmem:[%s3295_s0 + $0x2b8] sm:$0x1] }
  0x59   :  { %v2116_v47 = vmax.f32 %v578_v5, %v579_v20  ;;  %v604_v48 = vrot.slane %v603_v28, 2  ;;  %v620_v53 = vrot.slane %v619_v31, 4  ;;  %v628_v61 = vmax.f32 %v626_v36, %v627_v37 }
  0x5a   :  { %v2121_v58 = vmax.f32 %v587_v14, %v588_v32  ;;  %v597_v60 = vrot.slane %v596_v33, 1  ;;  %v635_v63 = vsel %vm264_vm0, %v90_v19, -inf  ;;  %v613_v3 = vrot.slane %v612_v49, 2 }
  0x5b   :  { %v605_v2 = vmax.f32 %v603_v28, %v604_v48  ;;  %v621_v5 = vmax.f32 %v619_v31, %v620_v53  ;;  %v636_v8 = vsel %vm266_vm1, %v91_v27, -inf  ;;  %v629_v14 = vrot.slane %v628_v61, 4  ;;  %v96_v28 = vld [vmem:[%s3295_s0 + $0x2c0] sm:$0xff]  ;;  %v97_v31 = vld [vmem:[%s3295_s0 + $0x2c8] sm:$0x1] }
  0x5c   :  { %3297 = vst [vmem:[#allocation2_spill] sm:$0xff] %v2121_v58  ;;  %v2131_v11 = vmax.f32 %v596_v33, %v597_v60  ;;  %v637_v16 = vmax.f32 %v635_v63, %v636_v8  ;;  %v644_v18 = vsel %vm264_vm0, %v92_v41, -inf  ;;  %v614_v20 = vmax.f32 %v612_v49, %v613_v3  ;;  %v99_v60 = vld [vmem:[%s3295_s0 + $0x2d8] sm:$0x1] }
  0x5d   :  { %v606_v19 = vrot.slane %v605_v2, 1  ;;  %v622_v26 = vrot.slane %v621_v5, 2  ;;  %v645_v32 = vsel %vm266_vm1, %v93_v54, -inf  ;;  %v630_v27 = vmax.f32 %v628_v61, %v629_v14  ;;  %v98_v54 = vld [vmem:[%s3295_s0 + $0x2d0] sm:$0xff] }
  0x5e   :  { %3298 = vst [vmem:[#allocation3_spill] sm:$0xff] %v2131_v11  ;;  %v638_v33 = vrot.slane %v637_v16, 4  ;;  %v646_v36 = vmax.f32 %v644_v18, %v645_v32  ;;  %v653_v37 = vsel %vm264_vm0, %v94_v1, -inf  ;;  %v615_v41 = vrot.slane %v614_v20, 1  ;;  %v101_v18 = vld [vmem:[%s3295_s0 + $0x2e8] sm:$0x1] }
  0x5f   :  { %v2142_v48 = vmax.f32 %v605_v2, %v606_v19  ;;  %v623_v49 = vmax.f32 %v621_v5, %v622_v26  ;;  %v654_v53 = vsel %vm266_vm1, %v95_v10, -inf  ;;  %v631_v63 = vrot.slane %v630_v27, 2  ;;  %v100_v10 = vld [vmem:[%s3295_s0 + $0x2e0] sm:$0xff] }
  0x60   :  { %v639_v61 = vmax.f32 %v637_v16, %v638_v33  ;;  %v647_v3 = vrot.slane %v646_v36, 4  ;;  %v655_v8 = vmax.f32 %v653_v37, %v654_v53  ;;  %v2151_v14 = vmax.f32 %v614_v20, %v615_v41 }
  0x61   :  { %3299 = vst [vmem:[#allocation4_spill] sm:$0xff] %v2142_v48  ;;  %v624_v1 = vrot.slane %v623_v49, 1  ;;  %v662_v2 = vsel %vm264_vm0, %v96_v28, -inf  ;;  %v663_v5 = vsel %vm266_vm1, %v97_v31, -inf  ;;  %v632_v19 = vmax.f32 %v630_v27, %v631_v63  ;;  %v102_v31 = vld [vmem:[%s3295_s0 + $0x2f0] sm:$0xff] }
  0x62   :  { %3300 = vst [vmem:[#allocation5_spill] sm:$0xff] %v2151_v14  ;;  %v640_v26 = vrot.slane %v639_v61, 2  ;;  %v648_v16 = vmax.f32 %v646_v36, %v647_v3  ;;  %v656_v32 = vrot.slane %v655_v8, 4  ;;  %v664_v20 = vmax.f32 %v662_v2, %v663_v5  ;;  %v103_v27 = vld [vmem:[%s3295_s0 + $0x2f8] sm:$0x1] }
  0x63   :  { %v2161_v33 = vmax.f32 %v623_v49, %v624_v1  ;;  %v671_v37 = vsel %vm264_vm0, %v98_v54, -inf  ;;  %v672_v28 = vsel %vm266_vm1, %v99_v60, -inf  ;;  %v633_v41 = vrot.slane %v632_v19, 1 }
  0x64   :  { %v641_v53 = vmax.f32 %v639_v61, %v640_v26  ;;  %v649_v14 = vrot.slane %v648_v16, 2  ;;  %v657_v48 = vmax.f32 %v655_v8, %v656_v32  ;;  %v665_v36 = vrot.slane %v664_v20, 4  ;;  %v104_v61 = vld [vmem:[%s3295_s0 + $0x300] sm:$0xff]  ;;  %v105_v8 = vld [vmem:[%s3295_s0 + $0x308] sm:$0x1] }
  0x65   :  { %3301 = vst [vmem:[#allocation6_spill] sm:$0xff] %v2161_v33  ;;  %v673_v49 = vmax.f32 %v671_v37, %v672_v28  ;;  %v680_v63 = vsel %vm264_vm0, %v100_v10, -inf  ;;  %v681_v54 = vsel %vm266_vm1, %v101_v18, -inf  ;;  %v2173_v3 = vmax.f32 %v632_v19, %v633_v41  ;;  %v107_v28 = vld [vmem:[%s3295_s0 + $0x318] sm:$0x1] }
  0x66   :  { %v642_v60 = vrot.slane %v641_v53, 1  ;;  %v650_v1 = vmax.f32 %v648_v16, %v649_v14  ;;  %v658_v2 = vrot.slane %v657_v48, 2  ;;  %v666_v5 = vmax.f32 %v664_v20, %v665_v36  ;;  %v106_v16 = vld [vmem:[%s3295_s0 + $0x310] sm:$0xff] }
  0x67   :  { %3302 = vst [vmem:[#allocation7_spill] sm:$0xff] %v2173_v3  ;;  %v674_v26 = vrot.slane %v673_v49, 4  ;;  %v682_v32 = vmax.f32 %v680_v63, %v681_v54  ;;  %v689_v10 = vsel %vm264_vm0, %v102_v31, -inf  ;;  %v690_v14 = vsel %vm266_vm1, %v103_v27, -inf  ;;  %v108_v27 = vld [vmem:[%s3295_s0 + $0x320] sm:$0xff] }
  0x68   :  { %v2182_v37 = vmax.f32 %v641_v53, %v642_v60  ;;  %v651_v18 = vrot.slane %v650_v1, 1  ;;  %v659_v19 = vmax.f32 %v657_v48, %v658_v2  ;;  %v667_v41 = vrot.slane %v666_v5, 2  ;;  %v109_v60 = vld [vmem:[%s3295_s0 + $0x328] sm:$0x1] }
  0x69   :  { %v675_v20 = vmax.f32 %v673_v49, %v674_v26  ;;  %v683_v36 = vrot.slane %v682_v32, 4  ;;  %v691_v63 = vmax.f32 %v689_v10, %v690_v14  ;;  %v698_v53 = vsel %vm264_vm0, %v104_v61, -inf }
  0x6a   :  { %3303 = vst [vmem:[#allocation8_spill] sm:$0xff] %v2182_v37  ;;  %v2191_v54 = vmax.f32 %v650_v1, %v651_v18  ;;  %v660_v31 = vrot.slane %v659_v19, 1  ;;  %v699_v48 = vsel %vm266_vm1, %v105_v8, -inf  ;;  %v668_v2 = vmax.f32 %v666_v5, %v667_v41  ;;  %v110_v8 = vld [vmem:[%s3295_s0 + $0x330] sm:$0xff]  ;;  %v111_v5 = vld [vmem:[%s3295_s0 + $0x338] sm:$0x1] }
  0x6b   :  { %v676_v33 = vrot.slane %v675_v20, 2  ;;  %v684_v49 = vmax.f32 %v682_v32, %v683_v36  ;;  %v692_v26 = vrot.slane %v691_v63, 4  ;;  %v700_v1 = vmax.f32 %v698_v53, %v699_v48 }
  0x6c   :  { %3304 = vst [vmem:[#allocation9_spill] sm:$0xff] %v2191_v54  ;;  %v2201_v10 = vmax.f32 %v659_v19, %v660_v31  ;;  %v707_v18 = vsel %vm264_vm0, %v106_v16, -inf  ;;  %v708_v61 = vsel %vm266_vm1, %v107_v28, -inf  ;;  %v669_v14 = vrot.slane %v668_v2, 1 }
  0x6d   :  { %v677_v54 = vmax.f32 %v675_v20, %v676_v33  ;;  %v685_v11 = vrot.slane %v684_v49, 2  ;;  %v693_v37 = vmax.f32 %v691_v63, %v692_v26  ;;  %v701_v32 = vrot.slane %v700_v1, 4  ;;  %v112_v33 = vld [vmem:[%s3295_s0 + $0x340] sm:$0xff]  ;;  %v113_v20 = vld [vmem:[%s3295_s0 + $0x348] sm:$0x1] }
  0x6e   :  { %3305 = vst [vmem:[#allocation10_spill] sm:$0xff] %v2201_v10  ;;  %v709_v19 = vmax.f32 %v707_v18, %v708_v61  ;;  %v716_v41 = vsel %vm264_vm0, %v108_v27, -inf  ;;  %v717_v16 = vsel %vm266_vm1, %v109_v60, -inf  ;;  %v2213_v36 = vmax.f32 %v668_v2, %v669_v14  ;;  %v115_v61 = vld [vmem:[%s3295_s0 + $0x358] sm:$0x1] }
  0x6f   :  { %v678_v28 = vrot.slane %v677_v54, 1  ;;  %v686_v31 = vmax.f32 %v684_v49, %v685_v11  ;;  %v694_v53 = vrot.slane %v693_v37, 2  ;;  %v702_v63 = vmax.f32 %v700_v1, %v701_v32  ;;  %v114_v49 = vld [vmem:[%s3295_s0 + $0x350] sm:$0xff] }
  0x70   :  { %3306 = vst [vmem:[#allocation11_spill] sm:$0xff] %v2213_v36  ;;  %v710_v48 = vrot.slane %v709_v19, 4  ;;  %v718_v26 = vmax.f32 %v716_v41, %v717_v16  ;;  %v725_v27 = vsel %vm264_vm0, %v110_v8, -inf  ;;  %v726_v11 = vsel %vm266_vm1, %v111_v5, -inf  ;;  %v116_v5 = vld [vmem:[%s3295_s0 + $0x360] sm:$0xff] }
  0x71   :  { %v2222_v18 = vmax.f32 %v677_v54, %v678_v28  ;;  %v687_v60 = vrot.slane %v686_v31, 1  ;;  %v695_v2 = vmax.f32 %v693_v37, %v694_v53  ;;  %v703_v14 = vrot.slane %v702_v63, 2  ;;  %v117_v28 = vld [vmem:[%s3295_s0 + $0x368] sm:$0x1] }
  0x72   :  { %v711_v1 = vmax.f32 %v709_v19, %v710_v48  ;;  %v719_v32 = vrot.slane %v718_v26, 4  ;;  %v727_v41 = vmax.f32 %v725_v27, %v726_v11  ;;  %v734_v8 = vsel %vm264_vm0, %v112_v33, -inf }
  0x73   :  { %3307 = vst [vmem:[#allocation12_spill] sm:$0xff] %v2222_v18  ;;  %v2231_v16 = vmax.f32 %v686_v31, %v687_v60  ;;  %v696_v54 = vrot.slane %v695_v2, 1  ;;  %v735_v37 = vsel %vm266_vm1, %v113_v20, -inf  ;;  %v704_v53 = vmax.f32 %v702_v63, %v703_v14  ;;  %v118_v20 = vld [vmem:[%s3295_s0 + $0x370] sm:$0xff]  ;;  %v119_v63 = vld [vmem:[%s3295_s0 + $0x378] sm:$0x1] }
  0x74   :  { %v712_v18 = vrot.slane %v711_v1, 2  ;;  %v720_v19 = vmax.f32 %v718_v26, %v719_v32  ;;  %v728_v48 = vrot.slane %v727_v41, 4  ;;  %v736_v31 = vmax.f32 %v734_v8, %v735_v37 }
  0x75   :  { %3308 = vst [vmem:[#allocation13_spill] sm:$0xff] %v2231_v16  ;;  %v2241_v27 = vmax.f32 %v695_v2, %v696_v54  ;;  %v743_v60 = vsel %vm264_vm0, %v114_v49, -inf  ;;  %v744_v33 = vsel %vm266_vm1, %v115_v61, -inf  ;;  %v705_v11 = vrot.slane %v704_v53, 1 }
  0x76   :  { %v713_v16 = vmax.f32 %v711_v1, %v712_v18  ;;  %v721_v36 = vrot.slane %v720_v19, 2  ;;  %v729_v10 = vmax.f32 %v727_v41, %v728_v48  ;;  %v737_v26 = vrot.slane %v736_v31, 4  ;;  %v120_v18 = vld [vmem:[%s3295_s0 + $0x380] sm:$0xff]  ;;  %v121_v1 = vld [vmem:[%s3295_s0 + $0x388] sm:$0x1] }
  0x77   :  { %3309 = vst [vmem:[#allocation14_spill] sm:$0xff] %v2241_v27  ;;  %v745_v2 = vmax.f32 %v743_v60, %v744_v33  ;;  %v752_v14 = vsel %vm264_vm0, %v116_v5, -inf  ;;  %v753_v49 = vsel %vm266_vm1, %v117_v28, -inf  ;;  %v2253_v32 = vmax.f32 %v704_v53, %v705_v11  ;;  %v123_v33 = vld [vmem:[%s3295_s0 + $0x398] sm:$0x1] }
  0x78   :  { %v714_v61 = vrot.slane %v713_v16, 1  ;;  %v722_v54 = vmax.f32 %v720_v19, %v721_v36  ;;  %v730_v8 = vrot.slane %v729_v10, 2  ;;  %v738_v41 = vmax.f32 %v736_v31, %v737_v26  ;;  %v122_v19 = vld [vmem:[%s3295_s0 + $0x390] sm:$0xff] }
  0x79   :  { %3310 = vst [vmem:[#allocation15_spill] sm:$0xff] %v2253_v32  ;;  %v746_v37 = vrot.slane %v745_v2, 4  ;;  %v754_v48 = vmax.f32 %v752_v14, %v753_v49  ;;  %v761_v5 = vsel %vm264_vm0, %v118_v20, -inf  ;;  %v762_v36 = vsel %vm266_vm1, %v119_v63, -inf  ;;  %v124_v63 = vld [vmem:[%s3295_s0 + $0x3a0] sm:$0xff] }
  0x7a   :  { %v2262_v60 = vmax.f32 %v713_v16, %v714_v61  ;;  %v723_v28 = vrot.slane %v722_v54, 1  ;;  %v731_v53 = vmax.f32 %v729_v10, %v730_v8  ;;  %v739_v11 = vrot.slane %v738_v41, 2  ;;  %v125_v61 = vld [vmem:[%s3295_s0 + $0x3a8] sm:$0x1] }
  0x7b   :  { %v747_v31 = vmax.f32 %v745_v2, %v746_v37  ;;  %v755_v26 = vrot.slane %v754_v48, 4  ;;  %v763_v14 = vmax.f32 %v761_v5, %v762_v36  ;;  %v770_v20 = vsel %vm264_vm0, %v120_v18, -inf }
  0x7c   :  { %3311 = vst [vmem:[#allocation16_spill] sm:$0xff] %v2262_v60  ;;  %v2271_v49 = vmax.f32 %v722_v54, %v723_v28  ;;  %v732_v16 = vrot.slane %v731_v53, 1  ;;  %v771_v10 = vsel %vm266_vm1, %v121_v1, -inf  ;;  %v740_v8 = vmax.f32 %v738_v41, %v739_v11  ;;  %v126_v1 = vld [vmem:[%s3295_s0 + $0x3b0] sm:$0xff]  ;;  %v127_v41 = vld [vmem:[%s3295_s0 + $0x3b8] sm:$0x1] }
  0x7d   :  { %v748_v27 = vrot.slane %v747_v31, 2  ;;  %v756_v2 = vmax.f32 %v754_v48, %v755_v26  ;;  %v764_v37 = vrot.slane %v763_v14, 4  ;;  %v772_v54 = vmax.f32 %v770_v20, %v771_v10 }
  0x7e   :  { %3312 = vst [vmem:[#allocation17_spill] sm:$0xff] %v2271_v49  ;;  %v2281_v5 = vmax.f32 %v731_v53, %v732_v16  ;;  %v779_v28 = vsel %vm264_vm0, %v122_v19, -inf  ;;  %v780_v18 = vsel %vm266_vm1, %v123_v33, -inf  ;;  %v741_v36 = vrot.slane %v740_v8, 1 }
  0x7f   :  { %v749_v49 = vmax.f32 %v747_v31, %v748_v27  ;;  %v757_v60 = vrot.slane %v756_v2, 2  ;;  %v765_v32 = vmax.f32 %v763_v14, %v764_v37  ;;  %v773_v48 = vrot.slane %v772_v54, 4  ;;  %v128_v27 = vld [vmem:[%s3295_s0 + $0x3c0] sm:$0xff]  ;;  %v129_v31 = vld [vmem:[%s3295_s0 + $0x3c8] sm:$0x1] }
  0x80   :  { %3313 = vst [vmem:[#allocation18_spill] sm:$0xff] %v2281_v5  ;;  %v781_v53 = vmax.f32 %v779_v28, %v780_v18  ;;  %v788_v11 = vsel %vm264_vm0, %v124_v63, -inf  ;;  %v789_v19 = vsel %vm266_vm1, %v125_v61, -inf  ;;  %v2293_v26 = vmax.f32 %v740_v8, %v741_v36  ;;  %v131_v18 = vld [vmem:[%s3295_s0 + $0x3d8] sm:$0x1] }
  0x81   :  { %v750_v33 = vrot.slane %v749_v49, 1  ;;  %v758_v16 = vmax.f32 %v756_v2, %v757_v60  ;;  %v766_v20 = vrot.slane %v765_v32, 2  ;;  %v774_v14 = vmax.f32 %v772_v54, %v773_v48  ;;  %v130_v2 = vld [vmem:[%s3295_s0 + $0x3d0] sm:$0xff] }
  0x82   :  { %3314 = vst [vmem:[#allocation19_spill] sm:$0xff] %v2293_v26  ;;  %v782_v10 = vrot.slane %v781_v53, 4  ;;  %v790_v37 = vmax.f32 %v788_v11, %v789_v19  ;;  %v797_v63 = vsel %vm264_vm0, %v126_v1, -inf  ;;  %v798_v60 = vsel %vm266_vm1, %v127_v41, -inf  ;;  %v132_v41 = vld [vmem:[%s3295_s0 + $0x3e0] sm:$0xff] }
  0x83   :  { %v2302_v28 = vmax.f32 %v749_v49, %v750_v33  ;;  %v759_v61 = vrot.slane %v758_v16, 1  ;;  %v767_v8 = vmax.f32 %v765_v32, %v766_v20  ;;  %v775_v36 = vrot.slane %v774_v14, 2  ;;  %v133_v33 = vld [vmem:[%s3295_s0 + $0x3e8] sm:$0x1] }
  0x84   :  { %v783_v54 = vmax.f32 %v781_v53, %v782_v10  ;;  %v791_v48 = vrot.slane %v790_v37, 4  ;;  %v799_v11 = vmax.f32 %v797_v63, %v798_v60  ;;  %v806_v1 = vsel %vm264_vm0, %v128_v27, -inf }
  0x85   :  { %3315 = vst [vmem:[#allocation20_spill] sm:$0xff] %v2302_v28  ;;  %v2311_v19 = vmax.f32 %v758_v16, %v759_v61  ;;  %v768_v49 = vrot.slane %v767_v8, 1  ;;  %v807_v32 = vsel %vm266_vm1, %v129_v31, -inf  ;;  %v776_v20 = vmax.f32 %v774_v14, %v775_v36  ;;  %v134_v31 = vld [vmem:[%s3295_s0 + $0x3f0] sm:$0xff]  ;;  %v135_v14 = vld [vmem:[%s3295_s0 + $0x3f8] sm:$0x1] }
  0x86   :  { %v784_v28 = vrot.slane %v783_v54, 2  ;;  %v792_v53 = vmax.f32 %v790_v37, %v791_v48  ;;  %v800_v10 = vrot.slane %v799_v11, 4  ;;  %v808_v16 = vmax.f32 %v806_v1, %v807_v32 }
  0x87   :  { %3316 = vst [vmem:[#allocation21_spill] sm:$0xff] %v2311_v19  ;;  %v2321_v63 = vmax.f32 %v767_v8, %v768_v49  ;;  %v815_v61 = vsel %vm264_vm0, %v130_v2, -inf  ;;  %v816_v27 = vsel %vm266_vm1, %v131_v18, -inf  ;;  %v777_v60 = vrot.slane %v776_v20, 1 }
  0x88   :  { %v785_v19 = vmax.f32 %v783_v54, %v784_v28  ;;  %v793_v26 = vrot.slane %v792_v53, 2  ;;  %v801_v5 = vmax.f32 %v799_v11, %v800_v10  ;;  %v809_v37 = vrot.slane %v808_v16, 4  ;;  %v136_v28 = vld [vmem:[%s3295_s0 + $0x400] sm:$0xff]  ;;  %v137_v54 = vld [vmem:[%s3295_s0 + $0x408] sm:$0x1] }
  0x89   :  { %3317 = vst [vmem:[#allocation22_spill] sm:$0xff] %v2321_v63  ;;  %v817_v8 = vmax.f32 %v815_v61, %v816_v27  ;;  %v824_v36 = vsel %vm264_vm0, %v132_v41, -inf  ;;  %v825_v2 = vsel %vm266_vm1, %v133_v33, -inf  ;;  %v2333_v48 = vmax.f32 %v776_v20, %v777_v60  ;;  %v139_v27 = vld [vmem:[%s3295_s0 + $0x418] sm:$0x1] }
  0x8a   :  { %v786_v18 = vrot.slane %v785_v19, 1  ;;  %v794_v49 = vmax.f32 %v792_v53, %v793_v26  ;;  %v802_v1 = vrot.slane %v801_v5, 2  ;;  %v810_v11 = vmax.f32 %v808_v16, %v809_v37  ;;  %v138_v53 = vld [vmem:[%s3295_s0 + $0x410] sm:$0xff] }
  0x8b   :  { %3318 = vst [vmem:[#allocation23_spill] sm:$0xff] %v2333_v48  ;;  %v818_v32 = vrot.slane %v817_v8, 4  ;;  %v826_v10 = vmax.f32 %v824_v36, %v825_v2  ;;  %v833_v41 = vsel %vm264_vm0, %v134_v31, -inf  ;;  %v834_v26 = vsel %vm266_vm1, %v135_v14, -inf  ;;  %v140_v14 = vld [vmem:[%s3295_s0 + $0x420] sm:$0xff] }
  0x8c   :  { %v2342_v61 = vmax.f32 %v785_v19, %v786_v18  ;;  %v795_v33 = vrot.slane %v794_v49, 1  ;;  %v803_v20 = vmax.f32 %v801_v5, %v802_v1  ;;  %v811_v60 = vrot.slane %v810_v11, 2  ;;  %v141_v18 = vld [vmem:[%s3295_s0 + $0x428] sm:$0x1] }
  0x8d   :  { %v819_v16 = vmax.f32 %v817_v8, %v818_v32  ;;  %v827_v37 = vrot.slane %v826_v10, 4  ;;  %v835_v36 = vmax.f32 %v833_v41, %v834_v26  ;;  %v842_v31 = vsel %vm264_vm0, %v136_v28, -inf }
  0x8e   :  { %3319 = vst [vmem:[#allocation24_spill] sm:$0xff] %v2342_v61  ;;  %v2351_v2 = vmax.f32 %v794_v49, %v795_v33  ;;  %v804_v19 = vrot.slane %v803_v20, 1  ;;  %v843_v5 = vsel %vm266_vm1, %v137_v54, -inf  ;;  %v812_v1 = vmax.f32 %v810_v11, %v811_v60  ;;  %v142_v54 = vld [vmem:[%s3295_s0 + $0x430] sm:$0xff]  ;;  %v143_v11 = vld [vmem:[%s3295_s0 + $0x438] sm:$0x1] }
  0x8f   :  { %v820_v63 = vrot.slane %v819_v16, 2  ;;  %v828_v8 = vmax.f32 %v826_v10, %v827_v37  ;;  %v836_v32 = vrot.slane %v835_v36, 4  ;;  %v844_v49 = vmax.f32 %v842_v31, %v843_v5 }
  0x90   :  { %3320 = vst [vmem:[#allocation25_spill] sm:$0xff] %v2351_v2  ;;  %v2361_v41 = vmax.f32 %v803_v20, %v804_v19  ;;  %v851_v33 = vsel %vm264_vm0, %v138_v53, -inf  ;;  %v852_v28 = vsel %vm266_vm1, %v139_v27, -inf  ;;  %v813_v26 = vrot.slane %v812_v1, 1 }
  0x91   :  { %v821_v2 = vmax.f32 %v819_v16, %v820_v63  ;;  %v829_v61 = vrot.slane %v828_v8, 2  ;;  %v837_v48 = vmax.f32 %v835_v36, %v836_v32  ;;  %v845_v10 = vrot.slane %v844_v49, 4  ;;  %v144_v63 = vld [vmem:[%s3295_s0 + $0x440] sm:$0xff]  ;;  %v145_v16 = vld [vmem:[%s3295_s0 + $0x448] sm:$0x1] }
  0x92   :  { %3321 = vst [vmem:[#allocation26_spill] sm:$0xff] %v2361_v41  ;;  %v853_v20 = vmax.f32 %v851_v33, %v852_v28  ;;  %v860_v60 = vsel %vm264_vm0, %v140_v14, -inf  ;;  %v861_v53 = vsel %vm266_vm1, %v141_v18, -inf  ;;  %v2373_v37 = vmax.f32 %v812_v1, %v813_v26  ;;  %v147_v28 = vld [vmem:[%s3295_s0 + $0x458] sm:$0x1] }
  0x93   :  { %v822_v27 = vrot.slane %v821_v2, 1  ;;  %v830_v19 = vmax.f32 %v828_v8, %v829_v61  ;;  %v838_v31 = vrot.slane %v837_v48, 2  ;;  %v846_v36 = vmax.f32 %v844_v49, %v845_v10  ;;  %v146_v8 = vld [vmem:[%s3295_s0 + $0x450] sm:$0xff] }
  0x94   :  { %3322 = vst [vmem:[#allocation27_spill] sm:$0xff] %v2373_v37  ;;  %v854_v5 = vrot.slane %v853_v20, 4  ;;  %v862_v32 = vmax.f32 %v860_v60, %v861_v53  ;;  %v869_v14 = vsel %vm264_vm0, %v142_v54, -inf  ;;  %v870_v61 = vsel %vm266_vm1, %v143_v11, -inf  ;;  %v148_v11 = vld [vmem:[%s3295_s0 + $0x460] sm:$0xff] }
  0x95   :  { %v2382_v33 = vmax.f32 %v821_v2, %v822_v27  ;;  %v831_v18 = vrot.slane %v830_v19, 1  ;;  %v839_v1 = vmax.f32 %v837_v48, %v838_v31  ;;  %v847_v26 = vrot.slane %v846_v36, 2  ;;  %v149_v27 = vld [vmem:[%s3295_s0 + $0x468] sm:$0x1] }
  0x96   :  { %v855_v49 = vmax.f32 %v853_v20, %v854_v5  ;;  %v863_v10 = vrot.slane %v862_v32, 4  ;;  %v871_v60 = vmax.f32 %v869_v14, %v870_v61  ;;  %v878_v54 = vsel %vm264_vm0, %v144_v63, -inf }
  0x97   :  { %3323 = vst [vmem:[#allocation28_spill] sm:$0xff] %v2382_v33  ;;  %v2391_v53 = vmax.f32 %v830_v19, %v831_v18  ;;  %v840_v2 = vrot.slane %v839_v1, 1  ;;  %v879_v48 = vsel %vm266_vm1, %v145_v16, -inf  ;;  %v848_v31 = vmax.f32 %v846_v36, %v847_v26  ;;  %v150_v16 = vld [vmem:[%s3295_s0 + $0x470] sm:$0xff]  ;;  %v151_v36 = vld [vmem:[%s3295_s0 + $0x478] sm:$0x1] }
  0x98   :  { %v856_v33 = vrot.slane %v855_v49, 2  ;;  %v864_v20 = vmax.f32 %v862_v32, %v863_v10  ;;  %v872_v5 = vrot.slane %v871_v60, 4  ;;  %v880_v19 = vmax.f32 %v878_v54, %v879_v48 }
  0x99   :  { %3324 = vst [vmem:[#allocation29_spill] sm:$0xff] %v2391_v53  ;;  %v2401_v14 = vmax.f32 %v839_v1, %v840_v2  ;;  %v887_v18 = vsel %vm264_vm0, %v146_v8, -inf  ;;  %v888_v63 = vsel %vm266_vm1, %v147_v28, -inf  ;;  %v849_v61 = vrot.slane %v848_v31, 1 }
  0x9a   :  { %v857_v53 = vmax.f32 %v855_v49, %v856_v33  ;;  %v865_v37 = vrot.slane %v864_v20, 2  ;;  %v873_v41 = vmax.f32 %v871_v60, %v872_v5  ;;  %v881_v32 = vrot.slane %v880_v19, 4  ;;  %v152_v33 = vld [vmem:[%s3295_s0 + $0x480] sm:$0xff]  ;;  %v153_v49 = vld [vmem:[%s3295_s0 + $0x488] sm:$0x1] }
  0x9b   :  { %3325 = vst [vmem:[#allocation30_spill] sm:$0xff] %v2401_v14  ;;  %v889_v1 = vmax.f32 %v887_v18, %v888_v63  ;;  %v896_v26 = vsel %vm264_vm0, %v148_v11, -inf  ;;  %v897_v8 = vsel %vm266_vm1, %v149_v27, -inf  ;;  %v2413_v10 = vmax.f32 %v848_v31, %v849_v61  ;;  %v155_v63 = vld [vmem:[%s3295_s0 + $0x498] sm:$0x1] }
  0x9c   :  { %v858_v28 = vrot.slane %v857_v53, 1  ;;  %v866_v2 = vmax.f32 %v864_v20, %v865_v37  ;;  %v874_v54 = vrot.slane %v873_v41, 2  ;;  %v882_v60 = vmax.f32 %v880_v19, %v881_v32  ;;  %v154_v20 = vld [vmem:[%s3295_s0 + $0x490] sm:$0xff] }
  0x9d   :  { %3326 = vst [vmem:[#allocation31_spill] sm:$0xff] %v2413_v10  ;;  %v890_v48 = vrot.slane %v889_v1, 4  ;;  %v898_v5 = vmax.f32 %v896_v26, %v897_v8  ;;  %v905_v11 = vsel %vm264_vm0, %v150_v16, -inf  ;;  %v906_v37 = vsel %vm266_vm1, %v151_v36, -inf  ;;  %v156_v36 = vld [vmem:[%s3295_s0 + $0x4a0] sm:$0xff] }
  0x9e   :  { %v2422_v18 = vmax.f32 %v857_v53, %v858_v28  ;;  %v867_v27 = vrot.slane %v866_v2, 1  ;;  %v875_v31 = vmax.f32 %v873_v41, %v874_v54  ;;  %v883_v61 = vrot.slane %v882_v60, 2  ;;  %v157_v28 = vld [vmem:[%s3295_s0 + $0x4a8] sm:$0x1] }
  0x9f   :  { %v891_v19 = vmax.f32 %v889_v1, %v890_v48  ;;  %v899_v32 = vrot.slane %v898_v5, 4  ;;  %v907_v26 = vmax.f32 %v905_v11, %v906_v37  ;;  %v914_v16 = vsel %vm264_vm0, %v152_v33, -inf }
  0xa0   :  { %3327 = vst [vmem:[#allocation32_spill] sm:$0xff] %v2422_v18  ;;  %v2431_v8 = vmax.f32 %v866_v2, %v867_v27  ;;  %v876_v53 = vrot.slane %v875_v31, 1  ;;  %v915_v41 = vsel %vm266_vm1, %v153_v49, -inf  ;;  %v884_v54 = vmax.f32 %v882_v60, %v883_v61  ;;  %v158_v49 = vld [vmem:[%s3295_s0 + $0x4b0] sm:$0xff]  ;;  %v159_v60 = vld [vmem:[%s3295_s0 + $0x4b8] sm:$0x1] }
  0xa1   :  { %v892_v14 = vrot.slane %v891_v19, 2  ;;  %v900_v1 = vmax.f32 %v898_v5, %v899_v32  ;;  %v908_v48 = vrot.slane %v907_v26, 4  ;;  %v916_v2 = vmax.f32 %v914_v16, %v915_v41 }
  0xa2   :  { %3328 = vst [vmem:[#allocation33_spill] sm:$0xff] %v2431_v8  ;;  %v2441_v11 = vmax.f32 %v875_v31, %v876_v53  ;;  %v923_v27 = vsel %vm264_vm0, %v154_v20, -inf  ;;  %v924_v33 = vsel %vm266_vm1, %v155_v63, -inf  ;;  %v885_v37 = vrot.slane %v884_v54, 1 }
  0xa3   :  { %v893_v8 = vmax.f32 %v891_v19, %v892_v14  ;;  %v901_v18 = vrot.slane %v900_v1, 2  ;;  %v909_v10 = vmax.f32 %v907_v26, %v908_v48  ;;  %v917_v5 = vrot.slane %v916_v2, 4  ;;  %v160_v14 = vld [vmem:[%s3295_s0 + $0x4c0] sm:$0xff]  ;;  %v161_v19 = vld [vmem:[%s3295_s0 + $0x4c8] sm:$0x1] }
  0xa4   :  { %3329 = vst [vmem:[#allocation34_spill] sm:$0xff] %v2441_v11  ;;  %v925_v31 = vmax.f32 %v923_v27, %v924_v33  ;;  %v932_v61 = vsel %vm264_vm0, %v156_v36, -inf  ;;  %v933_v20 = vsel %vm266_vm1, %v157_v28, -inf  ;;  %v2453_v32 = vmax.f32 %v884_v54, %v885_v37  ;;  %v163_v33 = vld [vmem:[%s3295_s0 + $0x4d8] sm:$0x1] }
  0xa5   :  { %v894_v63 = vrot.slane %v893_v8, 1  ;;  %v902_v53 = vmax.f32 %v900_v1, %v901_v18  ;;  %v910_v16 = vrot.slane %v909_v10, 2  ;;  %v918_v26 = vmax.f32 %v916_v2, %v917_v5  ;;  %v162_v1 = vld [vmem:[%s3295_s0 + $0x4d0] sm:$0xff] }
  0xa6   :  { %3330 = vst [vmem:[#allocation35_spill] sm:$0xff] %v2453_v32  ;;  %v926_v41 = vrot.slane %v925_v31, 4  ;;  %v934_v48 = vmax.f32 %v932_v61, %v933_v20  ;;  %v941_v36 = vsel %vm264_vm0, %v158_v49, -inf  ;;  %v942_v18 = vsel %vm266_vm1, %v159_v60, -inf  ;;  %v164_v60 = vld [vmem:[%s3295_s0 + $0x4e0] sm:$0xff] }
  0xa7   :  { %v2462_v27 = vmax.f32 %v893_v8, %v894_v63  ;;  %v903_v28 = vrot.slane %v902_v53, 1  ;;  %v911_v54 = vmax.f32 %v909_v10, %v910_v16  ;;  %v919_v37 = vrot.slane %v918_v26, 2  ;;  %v165_v63 = vld [vmem:[%s3295_s0 + $0x4e8] sm:$0x1] }
  0xa8   :  { %v927_v2 = vmax.f32 %v925_v31, %v926_v41  ;;  %v935_v5 = vrot.slane %v934_v48, 4  ;;  %v943_v61 = vmax.f32 %v941_v36, %v942_v18  ;;  %v950_v49 = vsel %vm264_vm0, %v160_v14, -inf }
  0xa9   :  { %3331 = vst [vmem:[#allocation36_spill] sm:$0xff] %v2462_v27  ;;  %v2471_v20 = vmax.f32 %v902_v53, %v903_v28  ;;  %v912_v8 = vrot.slane %v911_v54, 1  ;;  %v951_v10 = vsel %vm266_vm1, %v161_v19, -inf  ;;  %v920_v16 = vmax.f32 %v918_v26, %v919_v37  ;;  %v166_v19 = vld [vmem:[%s3295_s0 + $0x4f0] sm:$0xff]  ;;  %v167_v26 = vld [vmem:[%s3295_s0 + $0x4f8] sm:$0x1] }
  0xaa   :  { %v928_v27 = vrot.slane %v927_v2, 2  ;;  %v936_v31 = vmax.f32 %v934_v48, %v935_v5  ;;  %v944_v41 = vrot.slane %v943_v61, 4  ;;  %v952_v53 = vmax.f32 %v950_v49, %v951_v10 }
  0xab   :  { %3332 = vst [vmem:[#allocation37_spill] sm:$0xff] %v2471_v20  ;;  %v2481_v36 = vmax.f32 %v911_v54, %v912_v8  ;;  %v959_v28 = vsel %vm264_vm0, %v162_v1, -inf  ;;  %v960_v14 = vsel %vm266_vm1, %v163_v33, -inf  ;;  %v921_v18 = vrot.slane %v920_v16, 1 }
  0xac   :  { %v929_v20 = vmax.f32 %v927_v2, %v928_v27  ;;  %v937_v32 = vrot.slane %v936_v31, 2  ;;  %v945_v11 = vmax.f32 %v943_v61, %v944_v41  ;;  %v953_v48 = vrot.slane %v952_v53, 4  ;;  %v168_v27 = vld [vmem:[%s3295_s0 + $0x500] sm:$0xff]  ;;  %v169_v2 = vld [vmem:[%s3295_s0 + $0x508] sm:$0x1] }
  0xad   :  { %3333 = vst [vmem:[#allocation38_spill] sm:$0xff] %v2481_v36  ;;  %v961_v54 = vmax.f32 %v959_v28, %v960_v14  ;;  %v968_v37 = vsel %vm264_vm0, %v164_v60, -inf  ;;  %v969_v1 = vsel %vm266_vm1, %v165_v63, -inf  ;;  %v2493_v5 = vmax.f32 %v920_v16, %v921_v18  ;;  %v171_v14 = vld [vmem:[%s3295_s0 + $0x518] sm:$0x1] }
  0xae   :  { %v930_v33 = vrot.slane %v929_v20, 1  ;;  %v938_v8 = vmax.f32 %v936_v31, %v937_v32  ;;  %v946_v49 = vrot.slane %v945_v11, 2  ;;  %v954_v61 = vmax.f32 %v952_v53, %v953_v48  ;;  %v170_v31 = vld [vmem:[%s3295_s0 + $0x510] sm:$0xff] }
  0xaf   :  { %3334 = vst [vmem:[#allocation39_spill] sm:$0xff] %v2493_v5  ;;  %v962_v10 = vrot.slane %v961_v54, 4  ;;  %v970_v41 = vmax.f32 %v968_v37, %v969_v1  ;;  %v977_v60 = vsel %vm264_vm0, %v166_v19, -inf  ;;  %v978_v32 = vsel %vm266_vm1, %v167_v26, -inf  ;;  %v172_v26 = vld [vmem:[%s3295_s0 + $0x520] sm:$0xff] }
  0xb0   :  { %v2502_v28 = vmax.f32 %v929_v20, %v930_v33  ;;  %v939_v63 = vrot.slane %v938_v8, 1  ;;  %v947_v16 = vmax.f32 %v945_v11, %v946_v49  ;;  %v955_v18 = vrot.slane %v954_v61, 2  ;;  %v173_v33 = vld [vmem:[%s3295_s0 + $0x528] sm:$0x1] }
  0xb1   :  { %v963_v53 = vmax.f32 %v961_v54, %v962_v10  ;;  %v971_v48 = vrot.slane %v970_v41, 4  ;;  %v979_v37 = vmax.f32 %v977_v60, %v978_v32  ;;  %v986_v19 = vsel %vm264_vm0, %v168_v27, -inf }
  0xb2   :  { %3335 = vst [vmem:[#allocation40_spill] sm:$0xff] %v2502_v28  ;;  %v2511_v1 = vmax.f32 %v938_v8, %v939_v63  ;;  %v948_v20 = vrot.slane %v947_v16, 1  ;;  %v987_v11 = vsel %vm266_vm1, %v169_v2, -inf  ;;  %v956_v49 = vmax.f32 %v954_v61, %v955_v18  ;;  %v174_v2 = vld [vmem:[%s3295_s0 + $0x530] sm:$0xff]  ;;  %v175_v61 = vld [vmem:[%s3295_s0 + $0x538] sm:$0x1] }
  0xb3   :  { %v964_v36 = vrot.slane %v963_v53, 2  ;;  %v972_v54 = vmax.f32 %v970_v41, %v971_v48  ;;  %v980_v10 = vrot.slane %v979_v37, 4  ;;  %v988_v8 = vmax.f32 %v986_v19, %v987_v11 }
  0xb4   :  { %3336 = vst [vmem:[#allocation41_spill] sm:$0xff] %v2511_v1  ;;  %v2521_v60 = vmax.f32 %v947_v16, %v948_v20  ;;  %v995_v63 = vsel %vm264_vm0, %v170_v31, -inf  ;;  %v996_v27 = vsel %vm266_vm1, %v171_v14, -inf  ;;  %v957_v32 = vrot.slane %v956_v49, 1 }
  0xb5   :  { %v965_v1 = vmax.f32 %v963_v53, %v964_v36  ;;  %v973_v28 = vrot.slane %v972_v54, 2  ;;  %v981_v5 = vmax.f32 %v979_v37, %v980_v10  ;;  %v989_v41 = vrot.slane %v988_v8, 4  ;;  %v176_v36 = vld [vmem:[%s3295_s0 + $0x540] sm:$0xff]  ;;  %v177_v53 = vld [vmem:[%s3295_s0 + $0x548] sm:$0x1] }
  0xb6   :  { %3337 = vst [vmem:[#allocation42_spill] sm:$0xff] %v2521_v60  ;;  %v997_v16 = vmax.f32 %v995_v63, %v996_v27  ;;  %v1004_v18 = vsel %vm264_vm0, %v172_v26, -inf  ;;  %v1005_v31 = vsel %vm266_vm1, %v173_v33, -inf  ;;  %v2533_v48 = vmax.f32 %v956_v49, %v957_v32  ;;  %v179_v27 = vld [vmem:[%s3295_s0 + $0x558] sm:$0x1] }
  0xb7   :  { %v966_v14 = vrot.slane %v965_v1, 1  ;;  %v974_v20 = vmax.f32 %v972_v54, %v973_v28  ;;  %v982_v19 = vrot.slane %v981_v5, 2  ;;  %v990_v37 = vmax.f32 %v988_v8, %v989_v41  ;;  %v178_v54 = vld [vmem:[%s3295_s0 + $0x550] sm:$0xff] }
  0xb8   :  { %3338 = vst [vmem:[#allocation43_spill] sm:$0xff] %v2533_v48  ;;  %v998_v11 = vrot.slane %v997_v16, 4  ;;  %v1006_v10 = vmax.f32 %v1004_v18, %v1005_v31  ;;  %v1013_v26 = vsel %vm264_vm0, %v174_v2, -inf  ;;  %v1014_v28 = vsel %vm266_vm1, %v175_v61, -inf  ;;  %v180_v61 = vld [vmem:[%s3295_s0 + $0x560] sm:$0xff] }
  0xb9   :  { %v2542_v63 = vmax.f32 %v965_v1, %v966_v14  ;;  %v975_v33 = vrot.slane %v974_v20, 1  ;;  %v983_v49 = vmax.f32 %v981_v5, %v982_v19  ;;  %v991_v32 = vrot.slane %v990_v37, 2  ;;  %v181_v14 = vld [vmem:[%s3295_s0 + $0x568] sm:$0x1] }
  0xba   :  { %v999_v8 = vmax.f32 %v997_v16, %v998_v11  ;;  %v1007_v41 = vrot.slane %v1006_v10, 4  ;;  %v1015_v18 = vmax.f32 %v1013_v26, %v1014_v28  ;;  %v1022_v2 = vsel %vm264_vm0, %v176_v36, -inf }
  0xbb   :  { %3339 = vst [vmem:[#allocation44_spill] sm:$0xff] %v2542_v63  ;;  %v2551_v31 = vmax.f32 %v974_v20, %v975_v33  ;;  %v984_v1 = vrot.slane %v983_v49, 1  ;;  %v1023_v5 = vsel %vm266_vm1, %v177_v53, -inf  ;;  %v992_v19 = vmax.f32 %v990_v37, %v991_v32  ;;  %v182_v53 = vld [vmem:[%s3295_s0 + $0x570] sm:$0xff]  ;;  %v183_v37 = vld [vmem:[%s3295_s0 + $0x578] sm:$0x1] }
  0xbc   :  { %v1000_v63 = vrot.slane %v999_v8, 2  ;;  %v1008_v16 = vmax.f32 %v1006_v10, %v1007_v41  ;;  %v1016_v11 = vrot.slane %v1015_v18, 4  ;;  %v1024_v20 = vmax.f32 %v1022_v2, %v1023_v5 }
  0xbd   :  { %3340 = vst [vmem:[#allocation45_spill] sm:$0xff] %v2551_v31  ;;  %v2561_v26 = vmax.f32 %v983_v49, %v984_v1  ;;  %v1031_v33 = vsel %vm264_vm0, %v178_v54, -inf  ;;  %v1032_v36 = vsel %vm266_vm1, %v179_v27, -inf  ;;  %v993_v28 = vrot.slane %v992_v19, 1 }
  0xbe   :  { %v1001_v31 = vmax.f32 %v999_v8, %v1000_v63  ;;  %v1009_v48 = vrot.slane %v1008_v16, 2  ;;  %v1017_v60 = vmax.f32 %v1015_v18, %v1016_v11  ;;  %v1025_v10 = vrot.slane %v1024_v20, 4  ;;  %v184_v63 = vld [vmem:[%s3295_s0 + $0x580] sm:$0xff]  ;;  %v185_v8 = vld [vmem:[%s3295_s0 + $0x588] sm:$0x1] }
  0xbf   :  { %3341 = vst [vmem:[#allocation46_spill] sm:$0xff] %v2561_v26  ;;  %v1033_v49 = vmax.f32 %v1031_v33, %v1032_v36  ;;  %v1040_v32 = vsel %vm264_vm0, %v180_v61, -inf  ;;  %v1041_v54 = vsel %vm266_vm1, %v181_v14, -inf  ;;  %v2573_v41 = vmax.f32 %v992_v19, %v993_v28  ;;  %v187_v36 = vld [vmem:[%s3295_s0 + $0x598] sm:$0x1] }
  0xc0   :  { %v1002_v27 = vrot.slane %v1001_v31, 1  ;;  %v1010_v1 = vmax.f32 %v1008_v16, %v1009_v48  ;;  %v1018_v2 = vrot.slane %v1017_v60, 2  ;;  %v1026_v18 = vmax.f32 %v1024_v20, %v1025_v10  ;;  %v186_v16 = vld [vmem:[%s3295_s0 + $0x590] sm:$0xff] }
  0xc1   :  { %3342 = vst [vmem:[#allocation47_spill] sm:$0xff] %v2573_v41  ;;  %v1034_v5 = vrot.slane %v1033_v49, 4  ;;  %v1042_v11 = vmax.f32 %v1040_v32, %v1041_v54  ;;  %v1049_v61 = vsel %vm264_vm0, %v182_v53, -inf  ;;  %v1050_v48 = vsel %vm266_vm1, %v183_v37, -inf  ;;  %v188_v37 = vld [vmem:[%s3295_s0 + $0x5a0] sm:$0xff] }
  0xc2   :  { %v2582_v33 = vmax.f32 %v1001_v31, %v1002_v27  ;;  %v1011_v14 = vrot.slane %v1010_v1, 1  ;;  %v1019_v19 = vmax.f32 %v1017_v60, %v1018_v2  ;;  %v1027_v28 = vrot.slane %v1026_v18, 2  ;;  %v189_v27 = vld [vmem:[%s3295_s0 + $0x5a8] sm:$0x1] }
  0xc3   :  { %v1035_v20 = vmax.f32 %v1033_v49, %v1034_v5  ;;  %v1043_v10 = vrot.slane %v1042_v11, 4  ;;  %v1051_v32 = vmax.f32 %v1049_v61, %v1050_v48  ;;  %v1058_v53 = vsel %vm264_vm0, %v184_v63, -inf }
  0xc4   :  { %3343 = vst [vmem:[#allocation48_spill] sm:$0xff] %v2582_v33  ;;  %v2591_v54 = vmax.f32 %v1010_v1, %v1011_v14  ;;  %v1020_v31 = vrot.slane %v1019_v19, 1  ;;  %v1059_v60 = vsel %vm266_vm1, %v185_v8, -inf  ;;  %v1028_v2 = vmax.f32 %v1026_v18, %v1027_v28  ;;  %v190_v8 = vld [vmem:[%s3295_s0 + $0x5b0] sm:$0xff]  ;;  %v191_v18 = vld [vmem:[%s3295_s0 + $0x5b8] sm:$0x1] }
  0xc5   :  { %v1036_v26 = vrot.slane %v1035_v20, 2  ;;  %v1044_v49 = vmax.f32 %v1042_v11, %v1043_v10  ;;  %v1052_v5 = vrot.slane %v1051_v32, 4  ;;  %v1060_v1 = vmax.f32 %v1058_v53, %v1059_v60 }
  0xc6   :  { %3344 = vst [vmem:[#allocation49_spill] sm:$0xff] %v2591_v54  ;;  %v2601_v61 = vmax.f32 %v1019_v19, %v1020_v31  ;;  %v1067_v14 = vsel %vm264_vm0, %v186_v16, -inf  ;;  %v1068_v63 = vsel %vm266_vm1, %v187_v36, -inf  ;;  %v1029_v48 = vrot.slane %v1028_v2, 1 }
  0xc7   :  { %v1037_v54 = vmax.f32 %v1035_v20, %v1036_v26  ;;  %v1045_v33 = vrot.slane %v1044_v49, 2  ;;  %v1053_v41 = vmax.f32 %v1051_v32, %v1052_v5  ;;  %v1061_v11 = vrot.slane %v1060_v1, 4  ;;  %v192_v26 = vld [vmem:[%s3295_s0 + $0x5c0] sm:$0xff]  ;;  %v193_v20 = vld [vmem:[%s3295_s0 + $0x5c8] sm:$0x1] }
  0xc8   :  { %3345 = vst [vmem:[#allocation50_spill] sm:$0xff] %v2601_v61  ;;  %v1069_v19 = vmax.f32 %v1067_v14, %v1068_v63  ;;  %v1076_v28 = vsel %vm264_vm0, %v188_v37, -inf  ;;  %v1077_v16 = vsel %vm266_vm1, %v189_v27, -inf  ;;  %v2613_v10 = vmax.f32 %v1028_v2, %v1029_v48  ;;  %v195_v63 = vld [vmem:[%s3295_s0 + $0x5d8] sm:$0x1] }
  0xc9   :  { %v1038_v36 = vrot.slane %v1037_v54, 1  ;;  %v1046_v31 = vmax.f32 %v1044_v49, %v1045_v33  ;;  %v1054_v53 = vrot.slane %v1053_v41, 2  ;;  %v1062_v32 = vmax.f32 %v1060_v1, %v1061_v11  ;;  %v194_v49 = vld [vmem:[%s3295_s0 + $0x5d0] sm:$0xff] }
  0xca   :  { %3346 = vst [vmem:[#allocation51_spill] sm:$0xff] %v2613_v10  ;;  %v1070_v60 = vrot.slane %v1069_v19, 4  ;;  %v1078_v5 = vmax.f32 %v1076_v28, %v1077_v16  ;;  %v1085_v37 = vsel %vm264_vm0, %v190_v8, -inf  ;;  %v1086_v33 = vsel %vm266_vm1, %v191_v18, -inf  ;;  %v196_v18 = vld [vmem:[%s3295_s0 + $0x5e0] sm:$0xff] }
  0xcb   :  { %v2622_v14 = vmax.f32 %v1037_v54, %v1038_v36  ;;  %v1047_v27 = vrot.slane %v1046_v31, 1  ;;  %v1055_v2 = vmax.f32 %v1053_v41, %v1054_v53  ;;  %v1063_v48 = vrot.slane %v1062_v32, 2  ;;  %v197_v36 = vld [vmem:[%s3295_s0 + $0x5e8] sm:$0x1] }
  0xcc   :  { %v1071_v1 = vmax.f32 %v1069_v19, %v1070_v60  ;;  %v1079_v11 = vrot.slane %v1078_v5, 4  ;;  %v1087_v28 = vmax.f32 %v1085_v37, %v1086_v33  ;;  %v1094_v8 = vsel %vm264_vm0, %v192_v26, -inf }
  0xcd   :  { %3347 = vst [vmem:[#allocation52_spill] sm:$0xff] %v2622_v14  ;;  %v2631_v16 = vmax.f32 %v1046_v31, %v1047_v27  ;;  %v1056_v54 = vrot.slane %v1055_v2, 1  ;;  %v1095_v41 = vsel %vm266_vm1, %v193_v20, -inf  ;;  %v1064_v53 = vmax.f32 %v1062_v32, %v1063_v48  ;;  %v198_v20 = vld [vmem:[%s3295_s0 + $0x5f0] sm:$0xff]  ;;  %v199_v32 = vld [vmem:[%s3295_s0 + $0x5f8] sm:$0x1] }
  0xce   :  { %v1072_v14 = vrot.slane %v1071_v1, 2  ;;  %v1080_v19 = vmax.f32 %v1078_v5, %v1079_v11  ;;  %v1088_v60 = vrot.slane %v1087_v28, 4  ;;  %v1096_v31 = vmax.f32 %v1094_v8, %v1095_v41 }
  0xcf   :  { %3348 = vst [vmem:[#allocation53_spill] sm:$0xff] %v2631_v16  ;;  %v2641_v37 = vmax.f32 %v1055_v2, %v1056_v54  ;;  %v1103_v27 = vsel %vm264_vm0, %v194_v49, -inf  ;;  %v1104_v26 = vsel %vm266_vm1, %v195_v63, -inf  ;;  %v1065_v33 = vrot.slane %v1064_v53, 1 }
  0xd0   :  { %v1073_v16 = vmax.f32 %v1071_v1, %v1072_v14  ;;  %v1081_v10 = vrot.slane %v1080_v19, 2  ;;  %v1089_v61 = vmax.f32 %v1087_v28, %v1088_v60  ;;  %v1097_v5 = vrot.slane %v1096_v31, 4  ;;  %v200_v14 = vld [vmem:[%s3295_s0 + $0x600] sm:$0xff]  ;;  %v201_v1 = vld [vmem:[%s3295_s0 + $0x608] sm:$0x1] }
  0xd1   :  { %3349 = vst [vmem:[#allocation54_spill] sm:$0xff] %v2641_v37  ;;  %v1105_v2 = vmax.f32 %v1103_v27, %v1104_v26  ;;  %v1112_v48 = vsel %vm264_vm0, %v196_v18, -inf  ;;  %v1113_v49 = vsel %vm266_vm1, %v197_v36, -inf  ;;  %v2653_v11 = vmax.f32 %v1064_v53, %v1065_v33  ;;  %v203_v26 = vld [vmem:[%s3295_s0 + $0x618] sm:$0x1] }
  0xd2   :  { %v1074_v63 = vrot.slane %v1073_v16, 1  ;;  %v1082_v54 = vmax.f32 %v1080_v19, %v1081_v10  ;;  %v1090_v8 = vrot.slane %v1089_v61, 2  ;;  %v1098_v28 = vmax.f32 %v1096_v31, %v1097_v5  ;;  %v202_v19 = vld [vmem:[%s3295_s0 + $0x610] sm:$0xff] }
  0xd3   :  { %3350 = vst [vmem:[#allocation55_spill] sm:$0xff] %v2653_v11  ;;  %v1106_v41 = vrot.slane %v1105_v2, 4  ;;  %v1114_v60 = vmax.f32 %v1112_v48, %v1113_v49  ;;  %v1121_v18 = vsel %vm264_vm0, %v198_v20, -inf  ;;  %v1122_v10 = vsel %vm266_vm1, %v199_v32, -inf  ;;  %v204_v32 = vld [vmem:[%s3295_s0 + $0x620] sm:$0xff] }
  0xd4   :  { %v2662_v27 = vmax.f32 %v1073_v16, %v1074_v63  ;;  %v1083_v36 = vrot.slane %v1082_v54, 1  ;;  %v1091_v53 = vmax.f32 %v1089_v61, %v1090_v8  ;;  %v1099_v33 = vrot.slane %v1098_v28, 2  ;;  %v205_v63 = vld [vmem:[%s3295_s0 + $0x628] sm:$0x1] }
  0xd5   :  { %v1107_v31 = vmax.f32 %v1105_v2, %v1106_v41  ;;  %v1115_v5 = vrot.slane %v1114_v60, 4  ;;  %v1123_v48 = vmax.f32 %v1121_v18, %v1122_v10  ;;  %v1130_v20 = vsel %vm264_vm0, %v200_v14, -inf }
  0xd6   :  { %3351 = vst [vmem:[#allocation56_spill] sm:$0xff] %v2662_v27  ;;  %v2671_v49 = vmax.f32 %v1082_v54, %v1083_v36  ;;  %v1092_v16 = vrot.slane %v1091_v53, 1  ;;  %v1131_v61 = vsel %vm266_vm1, %v201_v1, -inf  ;;  %v1100_v8 = vmax.f32 %v1098_v28, %v1099_v33  ;;  %v206_v1 = vld [vmem:[%s3295_s0 + $0x630] sm:$0xff]  ;;  %v207_v28 = vld [vmem:[%s3295_s0 + $0x638] sm:$0x1] }
  0xd7   :  { %v1108_v37 = vrot.slane %v1107_v31, 2  ;;  %v1116_v2 = vmax.f32 %v1114_v60, %v1115_v5  ;;  %v1124_v41 = vrot.slane %v1123_v48, 4  ;;  %v1132_v54 = vmax.f32 %v1130_v20, %v1131_v61 }
  0xd8   :  { %3352 = vst [vmem:[#allocation57_spill] sm:$0xff] %v2671_v49  ;;  %v2681_v18 = vmax.f32 %v1091_v53, %v1092_v16  ;;  %v1139_v36 = vsel %vm264_vm0, %v202_v19, -inf  ;;  %v1140_v14 = vsel %vm266_vm1, %v203_v26, -inf  ;;  %v1101_v10 = vrot.slane %v1100_v8, 1 }
  0xd9   :  { %v1109_v49 = vmax.f32 %v1107_v31, %v1108_v37  ;;  %v1117_v27 = vrot.slane %v1116_v2, 2  ;;  %v1125_v11 = vmax.f32 %v1123_v48, %v1124_v41  ;;  %v1133_v60 = vrot.slane %v1132_v54, 4  ;;  %v208_v37 = vld [vmem:[%s3295_s0 + $0x640] sm:$0xff]  ;;  %v209_v31 = vld [vmem:[%s3295_s0 + $0x648] sm:$0x1] }
  0xda   :  { %3353 = vst [vmem:[#allocation58_spill] sm:$0xff] %v2681_v18  ;;  %v1141_v53 = vmax.f32 %v1139_v36, %v1140_v14  ;;  %v1148_v33 = vsel %vm264_vm0, %v204_v32, -inf  ;;  %v1149_v19 = vsel %vm266_vm1, %v205_v63, -inf  ;;  %v2693_v5 = vmax.f32 %v1100_v8, %v1101_v10  ;;  %v211_v14 = vld [vmem:[%s3295_s0 + $0x658] sm:$0x1] }
  0xdb   :  { %v1110_v26 = vrot.slane %v1109_v49, 1  ;;  %v1118_v16 = vmax.f32 %v1116_v2, %v1117_v27  ;;  %v1126_v20 = vrot.slane %v1125_v11, 2  ;;  %v1134_v48 = vmax.f32 %v1132_v54, %v1133_v60  ;;  %v210_v2 = vld [vmem:[%s3295_s0 + $0x650] sm:$0xff] }
  0xdc   :  { %3354 = vst [vmem:[#allocation59_spill] sm:$0xff] %v2693_v5  ;;  %v1142_v61 = vrot.slane %v1141_v53, 4  ;;  %v1150_v41 = vmax.f32 %v1148_v33, %v1149_v19  ;;  %v1157_v32 = vsel %vm264_vm0, %v206_v1, -inf  ;;  %v1158_v27 = vsel %vm266_vm1, %v207_v28, -inf  ;;  %v212_v28 = vld [vmem:[%s3295_s0 + $0x660] sm:$0xff] }
  0xdd   :  { %v2702_v36 = vmax.f32 %v1109_v49, %v1110_v26  ;;  %v1119_v63 = vrot.slane %v1118_v16, 1  ;;  %v1127_v8 = vmax.f32 %v1125_v11, %v1126_v20  ;;  %v1135_v10 = vrot.slane %v1134_v48, 2  ;;  %v213_v26 = vld [vmem:[%s3295_s0 + $0x668] sm:$0x1] }
  0xde   :  { %v1143_v54 = vmax.f32 %v1141_v53, %v1142_v61  ;;  %v1151_v60 = vrot.slane %v1150_v41, 4  ;;  %v1159_v33 = vmax.f32 %v1157_v32, %v1158_v27  ;;  %v1166_v1 = vsel %vm264_vm0, %v208_v37, -inf }
  0xdf   :  { %3355 = vst [vmem:[#allocation60_spill] sm:$0xff] %v2702_v36  ;;  %v2711_v19 = vmax.f32 %v1118_v16, %v1119_v63  ;;  %v1128_v49 = vrot.slane %v1127_v8, 1  ;;  %v1167_v11 = vsel %vm266_vm1, %v209_v31, -inf  ;;  %v1136_v20 = vmax.f32 %v1134_v48, %v1135_v10  ;;  %v214_v31 = vld [vmem:[%s3295_s0 + $0x670] sm:$0xff]  ;;  %v215_v48 = vld [vmem:[%s3295_s0 + $0x678] sm:$0x1] }
  0xe0   :  { %v1144_v36 = vrot.slane %v1143_v54, 2  ;;  %v1152_v53 = vmax.f32 %v1150_v41, %v1151_v60  ;;  %v1160_v61 = vrot.slane %v1159_v33, 4  ;;  %v1168_v16 = vmax.f32 %v1166_v1, %v1167_v11 }
  0xe1   :  { %3356 = vst [vmem:[#allocation61_spill] sm:$0xff] %v2711_v19  ;;  %v2721_v32 = vmax.f32 %v1127_v8, %v1128_v49  ;;  %v1175_v63 = vsel %vm264_vm0, %v210_v2, -inf  ;;  %v1176_v37 = vsel %vm266_vm1, %v211_v14, -inf  ;;  %v1137_v27 = vrot.slane %v1136_v20, 1 }
  0xe2   :  { %v1145_v19 = vmax.f32 %v1143_v54, %v1144_v36  ;;  %v1153_v5 = vrot.slane %v1152_v53, 2  ;;  %v1161_v18 = vmax.f32 %v1159_v33, %v1160_v61  ;;  %v1169_v41 = vrot.slane %v1168_v16, 4  ;;  %v216_v36 = vld [vmem:[%s3295_s0 + $0x680] sm:$0xff]  ;;  %v217_v54 = vld [vmem:[%s3295_s0 + $0x688] sm:$0x1] }
  0xe3   :  { %3357 = vst [vmem:[#allocation62_spill] sm:$0xff] %v2721_v32  ;;  %v1177_v8 = vmax.f32 %v1175_v63, %v1176_v37  ;;  %v1184_v10 = vsel %vm264_vm0, %v212_v28, -inf  ;;  %v1185_v2 = vsel %vm266_vm1, %v213_v26, -inf  ;;  %v2733_v60 = vmax.f32 %v1136_v20, %v1137_v27  ;;  %v219_v37 = vld [vmem:[%s3295_s0 + $0x698] sm:$0x1] }
  0xe4   :  { %v1146_v14 = vrot.slane %v1145_v19, 1  ;;  %v1154_v49 = vmax.f32 %v1152_v53, %v1153_v5  ;;  %v1162_v1 = vrot.slane %v1161_v18, 2  ;;  %v1170_v33 = vmax.f32 %v1168_v16, %v1169_v41  ;;  %v218_v53 = vld [vmem:[%s3295_s0 + $0x690] sm:$0xff] }
  0xe5   :  { %3358 = vst [vmem:[#allocation63_spill] sm:$0xff] %v2733_v60  ;;  %v1178_v11 = vrot.slane %v1177_v8, 4  ;;  %v1186_v61 = vmax.f32 %v1184_v10, %v1185_v2  ;;  %v1193_v28 = vsel %vm264_vm0, %v214_v31, -inf  ;;  %v1194_v5 = vsel %vm266_vm1, %v215_v48, -inf  ;;  %v220_v48 = vld [vmem:[%s3295_s0 + $0x6a0] sm:$0xff] }
  0xe6   :  { %v2742_v63 = vmax.f32 %v1145_v19, %v1146_v14  ;;  %v1155_v26 = vrot.slane %v1154_v49, 1  ;;  %v1163_v20 = vmax.f32 %v1161_v18, %v1162_v1  ;;  %v1171_v27 = vrot.slane %v1170_v33, 2  ;;  %v221_v14 = vld [vmem:[%s3295_s0 + $0x6a8] sm:$0x1] }
  0xe7   :  { %v1179_v16 = vmax.f32 %v1177_v8, %v1178_v11  ;;  %v1187_v41 = vrot.slane %v1186_v61, 4  ;;  %v1195_v10 = vmax.f32 %v1193_v28, %v1194_v5  ;;  %v1202_v31 = vsel %vm264_vm0, %v216_v36, -inf }
  0xe8   :  { %3359 = vst [vmem:[#allocation64_spill] sm:$0xff] %v2742_v63  ;;  %v2751_v2 = vmax.f32 %v1154_v49, %v1155_v26  ;;  %v1164_v19 = vrot.slane %v1163_v20, 1  ;;  %v1203_v18 = vsel %vm266_vm1, %v217_v54, -inf  ;;  %v1172_v1 = vmax.f32 %v1170_v33, %v1171_v27  ;;  %v222_v54 = vld [vmem:[%s3295_s0 + $0x6b0] sm:$0xff]  ;;  %v223_v33 = vld [vmem:[%s3295_s0 + $0x6b8] sm:$0x1] }
  0xe9   :  { %v1180_v32 = vrot.slane %v1179_v16, 2  ;;  %v1188_v8 = vmax.f32 %v1186_v61, %v1187_v41  ;;  %v1196_v11 = vrot.slane %v1195_v10, 4  ;;  %v1204_v49 = vmax.f32 %v1202_v31, %v1203_v18 }
  0xea   :  { %3360 = vst [vmem:[#allocation65_spill] sm:$0xff] %v2751_v2  ;;  %v2761_v28 = vmax.f32 %v1163_v20, %v1164_v19  ;;  %v1211_v26 = vsel %vm264_vm0, %v218_v53, -inf  ;;  %v1212_v36 = vsel %vm266_vm1, %v219_v37, -inf  ;;  %v1173_v5 = vrot.slane %v1172_v1, 1 }
  0xeb   :  { %v1181_v2 = vmax.f32 %v1179_v16, %v1180_v32  ;;  %v1189_v63 = vrot.slane %v1188_v8, 2  ;;  %v1197_v60 = vmax.f32 %v1195_v10, %v1196_v11  ;;  %v1205_v61 = vrot.slane %v1204_v49, 4  ;;  %v224_v32 = vld [vmem:[%s3295_s0 + $0x6c0] sm:$0xff]  ;;  %v225_v16 = vld [vmem:[%s3295_s0 + $0x6c8] sm:$0x1] }
  0xec   :  { %3361 = vst [vmem:[#allocation66_spill] sm:$0xff] %v2761_v28  ;;  %v1213_v20 = vmax.f32 %v1211_v26, %v1212_v36  ;;  %v1220_v27 = vsel %vm264_vm0, %v220_v48, -inf  ;;  %v1221_v53 = vsel %vm266_vm1, %v221_v14, -inf  ;;  %v2773_v41 = vmax.f32 %v1172_v1, %v1173_v5  ;;  %v227_v36 = vld [vmem:[%s3295_s0 + $0x6d8] sm:$0x1] }
  0xed   :  { %v1182_v37 = vrot.slane %v1181_v2, 1  ;;  %v1190_v19 = vmax.f32 %v1188_v8, %v1189_v63  ;;  %v1198_v31 = vrot.slane %v1197_v60, 2  ;;  %v1206_v10 = vmax.f32 %v1204_v49, %v1205_v61  ;;  %v226_v8 = vld [vmem:[%s3295_s0 + $0x6d0] sm:$0xff] }
  0xee   :  { %3362 = vst [vmem:[#allocation67_spill] sm:$0xff] %v2773_v41  ;;  %v1214_v18 = vrot.slane %v1213_v20, 4  ;;  %v1222_v11 = vmax.f32 %v1220_v27, %v1221_v53  ;;  %v1229_v48 = vsel %vm264_vm0, %v222_v54, -inf  ;;  %v1230_v63 = vsel %vm266_vm1, %v223_v33, -inf  ;;  %v228_v33 = vld [vmem:[%s3295_s0 + $0x6e0] sm:$0xff] }
  0xef   :  { %v2782_v26 = vmax.f32 %v1181_v2, %v1182_v37  ;;  %v1191_v14 = vrot.slane %v1190_v19, 1  ;;  %v1199_v1 = vmax.f32 %v1197_v60, %v1198_v31  ;;  %v1207_v5 = vrot.slane %v1206_v10, 2  ;;  %v229_v37 = vld [vmem:[%s3295_s0 + $0x6e8] sm:$0x1] }
  0xf0   :  { %v1215_v49 = vmax.f32 %v1213_v20, %v1214_v18  ;;  %v1223_v61 = vrot.slane %v1222_v11, 4  ;;  %v1231_v27 = vmax.f32 %v1229_v48, %v1230_v63  ;;  %v1238_v54 = vsel %vm264_vm0, %v224_v32, -inf }
  0xf1   :  { %3363 = vst [vmem:[#allocation68_spill] sm:$0xff] %v2782_v26  ;;  %v2791_v53 = vmax.f32 %v1190_v19, %v1191_v14  ;;  %v1200_v2 = vrot.slane %v1199_v1, 1  ;;  %v1239_v60 = vsel %vm266_vm1, %v225_v16, -inf  ;;  %v1208_v31 = vmax.f32 %v1206_v10, %v1207_v5  ;;  %v230_v16 = vld [vmem:[%s3295_s0 + $0x6f0] sm:$0xff]  ;;  %v231_v10 = vld [vmem:[%s3295_s0 + $0x6f8] sm:$0x1] }
  0xf2   :  { %v1216_v26 = vrot.slane %v1215_v49, 2  ;;  %v1224_v20 = vmax.f32 %v1222_v11, %v1223_v61  ;;  %v1232_v18 = vrot.slane %v1231_v27, 4  ;;  %v1240_v19 = vmax.f32 %v1238_v54, %v1239_v60 }
  0xf3   :  { %3364 = vst [vmem:[#allocation69_spill] sm:$0xff] %v2791_v53  ;;  %v2801_v48 = vmax.f32 %v1199_v1, %v1200_v2  ;;  %v1247_v14 = vsel %vm264_vm0, %v226_v8, -inf  ;;  %v1248_v32 = vsel %vm266_vm1, %v227_v36, -inf  ;;  %v1209_v63 = vrot.slane %v1208_v31, 1 }
  0xf4   :  { %v1217_v53 = vmax.f32 %v1215_v49, %v1216_v26  ;;  %v1225_v41 = vrot.slane %v1224_v20, 2  ;;  %v1233_v28 = vmax.f32 %v1231_v27, %v1232_v18  ;;  %v1241_v11 = vrot.slane %v1240_v19, 4  ;;  %v232_v26 = vld [vmem:[%s3295_s0 + $0x700] sm:$0xff]  ;;  %v233_v49 = vld [vmem:[%s3295_s0 + $0x708] sm:$0x1] }
  0xf5   :  { %3365 = vst [vmem:[#allocation70_spill] sm:$0xff] %v2801_v48  ;;  %v1249_v1 = vmax.f32 %v1247_v14, %v1248_v32  ;;  %v1256_v5 = vsel %vm264_vm0, %v228_v33, -inf  ;;  %v1257_v8 = vsel %vm266_vm1, %v229_v37, -inf  ;;  %v2813_v61 = vmax.f32 %v1208_v31, %v1209_v63  ;;  %v235_v32 = vld [vmem:[%s3295_s0 + $0x718] sm:$0x1] }
  0xf6   :  { %v1218_v36 = vrot.slane %v1217_v53, 1  ;;  %v1226_v2 = vmax.f32 %v1224_v20, %v1225_v41  ;;  %v1234_v54 = vrot.slane %v1233_v28, 2  ;;  %v1242_v27 = vmax.f32 %v1240_v19, %v1241_v11  ;;  %v234_v20 = vld [vmem:[%s3295_s0 + $0x710] sm:$0xff] }
  0xf7   :  { %3366 = vst [vmem:[#allocation71_spill] sm:$0xff] %v2813_v61  ;;  %v1250_v60 = vrot.slane %v1249_v1, 4  ;;  %v1258_v18 = vmax.f32 %v1256_v5, %v1257_v8  ;;  %v1265_v33 = vsel %vm264_vm0, %v230_v16, -inf  ;;  %v1266_v41 = vsel %vm266_vm1, %v231_v10, -inf  ;;  %v236_v10 = vld [vmem:[%s3295_s0 + $0x720] sm:$0xff] }
  0xf8   :  { %v2822_v14 = vmax.f32 %v1217_v53, %v1218_v36  ;;  %v1227_v37 = vrot.slane %v1226_v2, 1  ;;  %v1235_v31 = vmax.f32 %v1233_v28, %v1234_v54  ;;  %v1243_v63 = vrot.slane %v1242_v27, 2  ;;  %v237_v36 = vld [vmem:[%s3295_s0 + $0x728] sm:$0x1] }
  0xf9   :  { %v1251_v19 = vmax.f32 %v1249_v1, %v1250_v60  ;;  %v1259_v11 = vrot.slane %v1258_v18, 4  ;;  %v1267_v5 = vmax.f32 %v1265_v33, %v1266_v41  ;;  %v1274_v16 = vsel %vm264_vm0, %v232_v26, -inf }
  0xfa   :  { %3367 = vst [vmem:[#allocation72_spill] sm:$0xff] %v2822_v14  ;;  %v2831_v8 = vmax.f32 %v1226_v2, %v1227_v37  ;;  %v1236_v53 = vrot.slane %v1235_v31, 1  ;;  %v1275_v28 = vsel %vm266_vm1, %v233_v49, -inf  ;;  %v1244_v54 = vmax.f32 %v1242_v27, %v1243_v63  ;;  %v238_v49 = vld [vmem:[%s3295_s0 + $0x730] sm:$0xff]  ;;  %v239_v27 = vld [vmem:[%s3295_s0 + $0x738] sm:$0x1] }
  0xfb   :  { %v1252_v48 = vrot.slane %v1251_v19, 2  ;;  %v1260_v1 = vmax.f32 %v1258_v18, %v1259_v11  ;;  %v1268_v60 = vrot.slane %v1267_v5, 4  ;;  %v1276_v2 = vmax.f32 %v1274_v16, %v1275_v28 }
  0xfc   :  { %3368 = vst [vmem:[#allocation73_spill] sm:$0xff] %v2831_v8  ;;  %v2841_v33 = vmax.f32 %v1235_v31, %v1236_v53  ;;  %v1283_v37 = vsel %vm264_vm0, %v234_v20, -inf  ;;  %v1284_v26 = vsel %vm266_vm1, %v235_v32, -inf  ;;  %v1245_v41 = vrot.slane %v1244_v54, 1 }
  0xfd   :  { %v1253_v8 = vmax.f32 %v1251_v19, %v1252_v48  ;;  %v1261_v14 = vrot.slane %v1260_v1, 2  ;;  %v1269_v61 = vmax.f32 %v1267_v5, %v1268_v60  ;;  %v1277_v18 = vrot.slane %v1276_v2, 4  ;;  %v240_v48 = vld [vmem:[%s3295_s0 + $0x740] sm:$0xff]  ;;  %v241_v19 = vld [vmem:[%s3295_s0 + $0x748] sm:$0x1] }
  0xfe   :  { %3369 = vst [vmem:[#allocation74_spill] sm:$0xff] %v2841_v33  ;;  %v1285_v31 = vmax.f32 %v1283_v37, %v1284_v26  ;;  %v1292_v63 = vsel %vm264_vm0, %v236_v10, -inf  ;;  %v1293_v20 = vsel %vm266_vm1, %v237_v36, -inf  ;;  %v2853_v11 = vmax.f32 %v1244_v54, %v1245_v41  ;;  %v243_v26 = vld [vmem:[%s3295_s0 + $0x758] sm:$0x1] }
  0xff   :  { %v1254_v32 = vrot.slane %v1253_v8, 1  ;;  %v1262_v53 = vmax.f32 %v1260_v1, %v1261_v14  ;;  %v1270_v16 = vrot.slane %v1269_v61, 2  ;;  %v1278_v5 = vmax.f32 %v1276_v2, %v1277_v18  ;;  %v242_v1 = vld [vmem:[%s3295_s0 + $0x750] sm:$0xff] }
 0x100   :  { %3370 = vst [vmem:[#allocation75_spill] sm:$0xff] %v2853_v11  ;;  %v1286_v28 = vrot.slane %v1285_v31, 4  ;;  %v1294_v60 = vmax.f32 %v1292_v63, %v1293_v20  ;;  %v1301_v10 = vsel %vm264_vm0, %v238_v49, -inf  ;;  %v1302_v14 = vsel %vm266_vm1, %v239_v27, -inf  ;;  %v244_v27 = vld [vmem:[%s3295_s0 + $0x760] sm:$0xff] }
 0x101   :  { %v2862_v37 = vmax.f32 %v1253_v8, %v1254_v32  ;;  %v1263_v36 = vrot.slane %v1262_v53, 1  ;;  %v1271_v54 = vmax.f32 %v1269_v61, %v1270_v16  ;;  %v1279_v41 = vrot.slane %v1278_v5, 2  ;;  %v245_v32 = vld [vmem:[%s3295_s0 + $0x768] sm:$0x1] }
 0x102   :  { %v1287_v2 = vmax.f32 %v1285_v31, %v1286_v28  ;;  %v1295_v18 = vrot.slane %v1294_v60, 4  ;;  %v1303_v63 = vmax.f32 %v1301_v10, %v1302_v14  ;;  %v1310_v49 = vsel %vm264_vm0, %v240_v48, -inf }
 0x103   :  { %3371 = vst [vmem:[#allocation76_spill] sm:$0xff] %v2862_v37  ;;  %v2871_v20 = vmax.f32 %v1262_v53, %v1263_v36  ;;  %v1272_v8 = vrot.slane %v1271_v54, 1  ;;  %v1311_v61 = vsel %vm266_vm1, %v241_v19, -inf  ;;  %v1280_v16 = vmax.f32 %v1278_v5, %v1279_v41  ;;  %v246_v19 = vld [vmem:[%s3295_s0 + $0x770] sm:$0xff]  ;;  %v247_v5 = vld [vmem:[%s3295_s0 + $0x778] sm:$0x1] }
 0x104   :  { %v1288_v37 = vrot.slane %v1287_v2, 2  ;;  %v1296_v31 = vmax.f32 %v1294_v60, %v1295_v18  ;;  %v1304_v28 = vrot.slane %v1303_v63, 4  ;;  %v1312_v53 = vmax.f32 %v1310_v49, %v1311_v61 }
 0x105   :  { %3372 = vst [vmem:[#allocation77_spill] sm:$0xff] %v2871_v20  ;;  %v2881_v10 = vmax.f32 %v1271_v54, %v1272_v8  ;;  %v1319_v36 = vsel %vm264_vm0, %v242_v1, -inf  ;;  %v1320_v48 = vsel %vm266_vm1, %v243_v26, -inf  ;;  %v1281_v14 = vrot.slane %v1280_v16, 1 }
 0x106   :  { %v1289_v20 = vmax.f32 %v1287_v2, %v1288_v37  ;;  %v1297_v11 = vrot.slane %v1296_v31, 2  ;;  %v1305_v33 = vmax.f32 %v1303_v63, %v1304_v28  ;;  %v1313_v60 = vrot.slane %v1312_v53, 4  ;;  %v248_v37 = vld [vmem:[%s3295_s0 + $0x780] sm:$0xff]  ;;  %v249_v2 = vld [vmem:[%s3295_s0 + $0x788] sm:$0x1] }
 0x107   :  { %3373 = vst [vmem:[#allocation78_spill] sm:$0xff] %v2881_v10  ;;  %v1321_v54 = vmax.f32 %v1319_v36, %v1320_v48  ;;  %v1328_v41 = vsel %vm264_vm0, %v244_v27, -inf  ;;  %v1329_v1 = vsel %vm266_vm1, %v245_v32, -inf  ;;  %v2893_v18 = vmax.f32 %v1280_v16, %v1281_v14  ;;  %v251_v48 = vld [vmem:[%s3295_s0 + $0x798] sm:$0x1] }
 0x108   :  { %v1290_v26 = vrot.slane %v1289_v20, 1  ;;  %v1298_v8 = vmax.f32 %v1296_v31, %v1297_v11  ;;  %v1306_v49 = vrot.slane %v1305_v33, 2  ;;  %v1314_v63 = vmax.f32 %v1312_v53, %v1313_v60  ;;  %v250_v31 = vld [vmem:[%s3295_s0 + $0x790] sm:$0xff] }
 0x109   :  { %3374 = vst [vmem:[#allocation79_spill] sm:$0xff] %v2893_v18  ;;  %v1322_v61 = vrot.slane %v1321_v54, 4  ;;  %v1330_v28 = vmax.f32 %v1328_v41, %v1329_v1  ;;  %v1337_v27 = vsel %vm264_vm0, %v246_v19, -inf  ;;  %v1338_v11 = vsel %vm266_vm1, %v247_v5, -inf  ;;  %v252_v5 = vld [vmem:[%s3295_s0 + $0x7a0] sm:$0xff] }
 0x10a   :  { %v2902_v36 = vmax.f32 %v1289_v20, %v1290_v26  ;;  %v1299_v32 = vrot.slane %v1298_v8, 1  ;;  %v1307_v16 = vmax.f32 %v1305_v33, %v1306_v49  ;;  %v1315_v14 = vrot.slane %v1314_v63, 2  ;;  %v253_v26 = vld [vmem:[%s3295_s0 + $0x7a8] sm:$0x1] }
 0x10b   :  { %v1323_v53 = vmax.f32 %v1321_v54, %v1322_v61  ;;  %v1331_v60 = vrot.slane %v1330_v28, 4  ;;  %v1339_v41 = vmax.f32 %v1337_v27, %v1338_v11  ;;  %v1346_v19 = vsel %vm264_vm0, %v248_v37, -inf }
 0x10c   :  { %3375 = vst [vmem:[#allocation80_spill] sm:$0xff] %v2902_v36  ;;  %v2911_v1 = vmax.f32 %v1298_v8, %v1299_v32  ;;  %v1308_v20 = vrot.slane %v1307_v16, 1  ;;  %v1347_v33 = vsel %vm266_vm1, %v249_v2, -inf  ;;  %v1316_v49 = vmax.f32 %v1314_v63, %v1315_v14  ;;  %v254_v2 = vld [vmem:[%s3295_s0 + $0x7b0] sm:$0xff]  ;;  %v255_v63 = vld [vmem:[%s3295_s0 + $0x7b8] sm:$0x1] }
 0x10d   :  { %v1324_v10 = vrot.slane %v1323_v53, 2  ;;  %v1332_v54 = vmax.f32 %v1330_v28, %v1331_v60  ;;  %v1340_v61 = vrot.slane %v1339_v41, 4  ;;  %v1348_v8 = vmax.f32 %v1346_v19, %v1347_v33 }
 0x10e   :  { %3376 = vst [vmem:[#allocation81_spill] sm:$0xff] %v2911_v1  ;;  %v2921_v27 = vmax.f32 %v1307_v16, %v1308_v20  ;;  %v1355_v32 = vsel %vm264_vm0, %v250_v31, -inf  ;;  %v1356_v37 = vsel %vm266_vm1, %v251_v48, -inf  ;;  %v1317_v11 = vrot.slane %v1316_v49, 1 }
 0x10f   :  { %v1325_v1 = vmax.f32 %v1323_v53, %v1324_v10  ;;  %v1333_v36 = vrot.slane %v1332_v54, 2  ;;  %v1341_v18 = vmax.f32 %v1339_v41, %v1340_v61  ;;  %v1349_v28 = vrot.slane %v1348_v8, 4  ;;  %v256_v10 = vld [vmem:[%s3295_s0 + $0x7c0] sm:$0xff]  ;;  %v257_v53 = vld [vmem:[%s3295_s0 + $0x7c8] sm:$0x1] }
 0x110   :  { %3377 = vst [vmem:[#allocation82_spill] sm:$0xff] %v2921_v27  ;;  %v1357_v16 = vmax.f32 %v1355_v32, %v1356_v37  ;;  %v1364_v14 = vsel %vm264_vm0, %v252_v5, -inf  ;;  %v1365_v31 = vsel %vm266_vm1, %v253_v26, -inf  ;;  %v2933_v60 = vmax.f32 %v1316_v49, %v1317_v11  ;;  %v259_v37 = vld [vmem:[%s3295_s0 + $0x7d8] sm:$0x1] }
 0x111   :  { %v1326_v48 = vrot.slane %v1325_v1, 1  ;;  %v1334_v20 = vmax.f32 %v1332_v54, %v1333_v36  ;;  %v1342_v19 = vrot.slane %v1341_v18, 2  ;;  %v1350_v41 = vmax.f32 %v1348_v8, %v1349_v28  ;;  %v258_v54 = vld [vmem:[%s3295_s0 + $0x7d0] sm:$0xff] }
 0x112   :  { %3378 = vst [vmem:[#allocation83_spill] sm:$0xff] %v2933_v60  ;;  %v1358_v33 = vrot.slane %v1357_v16, 4  ;;  %v1366_v61 = vmax.f32 %v1364_v14, %v1365_v31  ;;  %v1373_v5 = vsel %vm264_vm0, %v254_v2, -inf  ;;  %v1374_v36 = vsel %vm266_vm1, %v255_v63, -inf  ;;  %v260_v63 = vld [vmem:[%s3295_s0 + $0x7e0] sm:$0xff] }
 0x113   :  { %v2942_v32 = vmax.f32 %v1325_v1, %v1326_v48  ;;  %v1335_v26 = vrot.slane %v1334_v20, 1  ;;  %v1343_v49 = vmax.f32 %v1341_v18, %v1342_v19  ;;  %v1351_v11 = vrot.slane %v1350_v41, 2  ;;  %v261_v48 = vld [vmem:[%s3295_s0 + $0x7e8] sm:$0x1] }
 0x114   :  { %v1359_v8 = vmax.f32 %v1357_v16, %v1358_v33  ;;  %v1367_v28 = vrot.slane %v1366_v61, 4  ;;  %v1375_v14 = vmax.f32 %v1373_v5, %v1374_v36  ;;  %v1382_v2 = vsel %vm264_vm0, %v256_v10, -inf }
 0x115   :  { %3379 = vst [vmem:[#allocation84_spill] sm:$0xff] %v2942_v32  ;;  %v2951_v31 = vmax.f32 %v1334_v20, %v1335_v26  ;;  %v1344_v1 = vrot.slane %v1343_v49, 1  ;;  %v1383_v18 = vsel %vm266_vm1, %v257_v53, -inf  ;;  %v1352_v19 = vmax.f32 %v1350_v41, %v1351_v11  ;;  %v262_v53 = vld [vmem:[%s3295_s0 + $0x7f0] sm:$0xff]  ;;  %v263_v41 = vld [vmem:[%s3295_s0 + $0x7f8] sm:$0x1] }
 0x116   :  { %v1360_v32 = vrot.slane %v1359_v8, 2  ;;  %v1368_v16 = vmax.f32 %v1366_v61, %v1367_v28  ;;  %v1376_v33 = vrot.slane %v1375_v14, 4  ;;  %v1384_v20 = vmax.f32 %v1382_v2, %v1383_v18 }
 0x117   :  { %3380 = vst [vmem:[#allocation85_spill] sm:$0xff] %v2951_v31  ;;  %v2961_v5 = vmax.f32 %v1343_v49, %v1344_v1  ;;  %v1391_v26 = vsel %vm264_vm0, %v258_v54, -inf  ;;  %v1392_v10 = vsel %vm266_vm1, %v259_v37, -inf  ;;  %v1353_v36 = vrot.slane %v1352_v19, 1 }
 0x118   :  { %v1361_v31 = vmax.f32 %v1359_v8, %v1360_v32  ;;  %v1369_v60 = vrot.slane %v1368_v16, 2  ;;  %v1377_v27 = vmax.f32 %v1375_v14, %v1376_v33  ;;  %v1385_v61 = vrot.slane %v1384_v20, 4 }
 0x119   :  { %3381 = vst [vmem:[#allocation86_spill] sm:$0xff] %v2961_v5  ;;  %v1393_v49 = vmax.f32 %v1391_v26, %v1392_v10  ;;  %v1400_v11 = vsel %vm264_vm0, %v260_v63, -inf  ;;  %v1401_v54 = vsel %vm266_vm1, %v261_v48, -inf  ;;  %v2973_v28 = vmax.f32 %v1352_v19, %v1353_v36 }
 0x11a   :  { %v1362_v37 = vrot.slane %v1361_v31, 1  ;;  %v1370_v1 = vmax.f32 %v1368_v16, %v1369_v60  ;;  %v1378_v2 = vrot.slane %v1377_v27, 2  ;;  %v1386_v18 = vmax.f32 %v1384_v20, %v1385_v61 }
 0x11b   :  { %v1394_v5 = vrot.slane %v1393_v49, 4  ;;  %v1402_v32 = vmax.f32 %v1400_v11, %v1401_v54  ;;  %v1409_v8 = vsel %vm264_vm0, %v262_v53, -inf  ;;  %v1410_v26 = vsel %vm266_vm1, %v263_v41, -inf }
 0x11c   :  { %v2976_v14 = vmax.f32 %v1361_v31, %v1362_v37  ;;  %v1371_v33 = vrot.slane %v1370_v1, 1  ;;  %v1379_v3 = vmax.f32 %v1377_v27, %v1378_v2  ;;  %v1387_v10 = vrot.slane %v1386_v18, 2 }
 0x11d   :  { %v1395_v63 = vmax.f32 %v1393_v49, %v1394_v5  ;;  %v1403_v58 = vrot.slane %v1402_v32, 4  ;;  %v1411_v48 = vmax.f32 %v1409_v8, %v1410_v26  ;;  %v1547_v27 = vsel %vm1546_vm2, %v1834_v43, %v1832_v42 }
 0x11e   :  { %v2979_v19 = vmax.f32 %v1370_v1, %v1371_v33  ;;  %v1380_v36 = vrot.slane %v1379_v3, 1  ;;  %v1388_v60 = vmax.f32 %v1386_v18, %v1387_v10  ;;  %v1549_v11 = vsel %vm1548_vm3, %v1836_v44, %v1547_v27  ;;  %v3382_v10 = vld [vmem:[#allocation2_spill] sm:$0xff] }
 0x11f   :  { %v1396_v16 = vrot.slane %v1395_v63, 2  ;;  %v1404_v20 = vmax.f32 %v1402_v32, %v1403_v58  ;;  %v1412_v61 = vrot.slane %v1411_v48, 4  ;;  %vm1554_vm6 = vcmask 1045509  }
 0x120   :  { %v2981_v53 = vmax.f32 %v1379_v3, %v1380_v36  ;;  %v1389_v31 = vrot.slane %v1388_v60, 1  ;;  %vm1556_vm7 = vcmask 1046534   ;;  %vm1558_vm8 = vcmask 1047559  }
 0x121   :  { %v1397_v5 = vmax.f32 %v1395_v63, %v1396_v16  ;;  %v1405_v41 = vrot.slane %v1404_v20, 2  ;;  %v1413_v49 = vmax.f32 %v1411_v48, %v1412_v61  ;;  %v1551_v42 = vsel %vm1550_vm4, %v1860_v7, %v1549_v11  ;;  %v3387_v48 = vld [vmem:[#allocation15_spill] sm:$0xff]  ;;  %v3390_v16 = vld [vmem:[#allocation24_spill] sm:$0xff]  ;;  %v3394_v11 = vld [vmem:[#allocation25_spill] sm:$0xff] }
 0x122   :  { %v2988_v58 = vmax.f32 %v1388_v60, %v1389_v31  ;;  %v1560_v43 = vsel %vm1546_vm2, %v1903_v62, %v1894_v57  ;;  %v1567_v1 = vsel %vm1546_vm2, %v1958_v22, %v1956_v21  ;;  %v1574_v44 = vsel %vm1546_vm2, %v2027_v59, %v2016_v35  ;;  %v3389_v60 = vld [vmem:[#allocation23_spill] sm:$0xff]  ;;  %v3391_v61 = vld [vmem:[#allocation4_spill] sm:$0xff]  ;;  %v3392_v31 = vld [vmem:[#allocation10_spill] sm:$0xff] }
 0x123   :  { %v1398_v3 = vrot.slane %v1397_v5, 1  ;;  %v1406_v54 = vmax.f32 %v1404_v20, %v1405_v41  ;;  %v1414_v37 = vrot.slane %v1413_v49, 2  ;;  %v1553_v8 = vsel %vm1552_vm5, %v1869_v13, %v1551_v42  ;;  %v3393_v41 = vld [vmem:[#allocation17_spill] sm:$0xff]  ;;  %v3396_v42 = vld [vmem:[#allocation11_spill] sm:$0xff] }
 0x124   :  { %v1555_v7 = vsel %vm1554_vm6, %v1871_v17, %v1553_v8  ;;  %v1561_v57 = vsel %vm1548_vm3, %v1916_v24, %v1560_v43  ;;  %v1568_v62 = vsel %vm1548_vm3, %v1960_v23, %v1567_v1  ;;  %v1575_v21 = vsel %vm1548_vm3, %v2033_v6, %v1574_v44  ;;  %v3397_v1 = vld [vmem:[#allocation18_spill] sm:$0xff] }
 0x125   :  { %v3001_v2 = vmax.f32 %v1397_v5, %v1398_v3  ;;  %v1407_v18 = vrot.slane %v1406_v54, 1  ;;  %v1415_v32 = vmax.f32 %v1413_v49, %v1414_v37  ;;  %v1557_v59 = vsel %vm1556_vm7, %v1881_v29, %v1555_v7  ;;  %v3399_v8 = vld [vmem:[#allocation6_spill] sm:$0xff] }
 0x126   :  { %v1562_v13 = vsel %vm1550_vm4, %v1924_v45, %v1561_v57  ;;  %v1559_v17 = vsel %vm1558_vm8, %v1892_v56, %v1557_v59  ;;  %v1569_v23 = vsel %vm1550_vm4, %v1965_v30, %v1568_v62  ;;  %v1576_v6 = vsel %vm1550_vm4, %v2042_v25, %v1575_v21  ;;  %v3400_v57 = vld [vmem:[#allocation12_spill] sm:$0xff]  ;;  %v3401_v21 = vld [vmem:[#allocation19_spill] sm:$0xff] }
 0x127   :  { %v3013_v22 = vmax.f32 %v1406_v54, %v1407_v18  ;;  %v1416_v35 = vrot.slane %v1415_v32, 1  ;;  %v1563_v24 = vsel %vm1552_vm5, %v1926_v46, %v1562_v13  ;;  %v1570_v45 = vsel %vm1552_vm5, %v1974_v34, %v1569_v23  ;;  %1681 = vst.msk [vmem:[%s3296_s1] sm:$0xff] %vm264_vm0, %v1559_v17  ;;  %v3395_v54 = vld [vmem:[#allocation5_spill] sm:$0xff]  ;;  %v3398_v18 = vld [vmem:[#allocation26_spill] sm:$0xff]  ;;  %v3402_v59 = vld [vmem:[#allocation27_spill] sm:$0xff] }
 0x128   :  { %v1564_v29 = vsel %vm1554_vm6, %v1935_v51, %v1563_v24  ;;  %v1577_v56 = vsel %vm1552_vm5, %v2051_v40, %v1576_v6  ;;  %v1571_v30 = vsel %vm1554_vm6, %v1980_v39, %v1570_v45  ;;  %v1581_v34 = vsel %vm1546_vm2, %v2102_v12, %v2091_v50  ;;  %v3383_v12 = vld [vmem:[#allocation7_spill] sm:$0xff]  ;;  %v3403_v17 = vld [vmem:[#allocation13_spill] sm:$0xff]  ;;  %v3404_v23 = vld [vmem:[#allocation20_spill] sm:$0xff] }
 0x129   :  { %v3027_v33 = vmax.f32 %v1415_v32, %v1416_v35  ;;  %v1565_v46 = vsel %vm1556_vm7, %v1945_v9, %v1564_v29  ;;  %v1578_v51 = vsel %vm1554_vm6, %v2061_v52, %v1577_v56  ;;  %v1572_v40 = vsel %vm1556_vm7, %v1990_v55, %v1571_v30  ;;  %v3385_v55 = vld [vmem:[#allocation3_spill] sm:$0xff]  ;;  %v3405_v29 = vld [vmem:[#allocation28_spill] sm:$0xff] }
 0x12a   :  { %v1566_v25 = vsel %vm1558_vm8, %v1950_v15, %v1565_v46  ;;  %v1579_v26 = vsel %vm1556_vm7, %v2071_v4, %v1578_v51  ;;  %v1582_v9 = vsel %vm1548_vm3, %v2116_v47, %v1581_v34  ;;  %v1573_v39 = vsel %vm1558_vm8, %v2000_v0, %v1572_v40  ;;  %v3384_v15 = vld [vmem:[#allocation8_spill] sm:$0xff]  ;;  %v3386_v47 = vld [vmem:[#allocation9_spill] sm:$0xff]  ;;  %v3406_v56 = vld [vmem:[#allocation31_spill] sm:$0xff] }
 0x12b   :  { %v1580_v52 = vsel %vm1558_vm8, %v2086_v38, %v1579_v26  ;;  %v1583_v50 = vsel %vm1550_vm4, %v3382_v10, %v1582_v9  ;;  %v1588_v63 = vsel %vm1546_vm2, %v3384_v15, %v3383_v12  ;;  %1682 = vst.msk [vmem:[%s3296_s1 + $0x8] sm:$0xff] %vm264_vm0, %v1566_v25  ;;  %v3388_v38 = vld [vmem:[#allocation16_spill] sm:$0xff]  ;;  %v1602_v20 = vsel %vm1546_vm2, %v3390_v16, %v3389_v60  ;;  %v3408_v51 = vld [vmem:[#allocation14_spill] sm:$0xff]  ;;  %v3409_v25 = vld [vmem:[#allocation21_spill] sm:$0xff] }
 0x12c   :  { %v1584_v4 = vsel %vm1552_vm5, %v3385_v55, %v1583_v50  ;;  %v1589_v0 = vsel %vm1548_vm3, %v3386_v47, %v1588_v63  ;;  %v1595_v36 = vsel %vm1546_vm2, %v3388_v38, %v3387_v48  ;;  %1683 = vst.msk [vmem:[%s3296_s1 + $0x10] sm:$0xff] %vm264_vm0, %v1573_v39  ;;  %1684 = vst.msk [vmem:[%s3296_s1 + $0x18] sm:$0xff] %vm264_vm0, %v1580_v52  ;;  %v3407_v46 = vld [vmem:[#allocation32_spill] sm:$0xff]  ;;  %v3410_v26 = vld [vmem:[#allocation29_spill] sm:$0xff] }
 0x12d   :  { %v1585_v27 = vsel %vm1554_vm6, %v3391_v61, %v1584_v4  ;;  %v1590_v5 = vsel %vm1550_vm4, %v3392_v31, %v1589_v0  ;;  %v1596_v49 = vsel %vm1548_vm3, %v3393_v41, %v1595_v36  ;;  %v1603_v3 = vsel %vm1548_vm3, %v3394_v11, %v1602_v20  ;;  %v3411_v39 = vld [vmem:[#allocation33_spill] sm:$0xff]  ;;  %v3412_v10 = vld [vmem:[#allocation22_spill] sm:$0xff]  ;;  %v3415_v4 = vld [vmem:[#allocation39_spill] sm:$0xff] }
 0x12e   :  { %v1586_v37 = vsel %vm1556_vm7, %v3395_v54, %v1585_v27  ;;  %v1591_v43 = vsel %vm1552_vm5, %v3396_v42, %v1590_v5  ;;  %v1597_v44 = vsel %vm1550_vm4, %v3397_v1, %v1596_v49  ;;  %v1604_v32 = vsel %vm1550_vm4, %v3398_v18, %v1603_v3  ;;  %v3413_v12 = vld [vmem:[#allocation30_spill] sm:$0xff]  ;;  %v3416_v47 = vld [vmem:[#allocation40_spill] sm:$0xff]  ;;  %v3417_v48 = vld [vmem:[#allocation35_spill] sm:$0xff] }
 0x12f   :  { %v1587_v7 = vsel %vm1558_vm8, %v3399_v8, %v1586_v37  ;;  %v1592_v62 = vsel %vm1554_vm6, %v3400_v57, %v1591_v43  ;;  %v1598_v35 = vsel %vm1552_vm5, %v3401_v21, %v1597_v44  ;;  %v1605_v13 = vsel %vm1552_vm5, %v3402_v59, %v1604_v32  ;;  %v3414_v63 = vld [vmem:[#allocation34_spill] sm:$0xff]  ;;  %v3418_v36 = vld [vmem:[#allocation41_spill] sm:$0xff]  ;;  %v3419_v16 = vld [vmem:[#allocation47_spill] sm:$0xff] }
 0x130   :  { %v1593_v24 = vsel %vm1556_vm7, %v3403_v17, %v1592_v62  ;;  %v1599_v6 = vsel %vm1554_vm6, %v3404_v23, %v1598_v35  ;;  %v1606_v45 = vsel %vm1554_vm6, %v3405_v29, %v1605_v13  ;;  %v1609_v30 = vsel %vm1546_vm2, %v3407_v46, %v3406_v56  ;;  %1685 = vst.msk [vmem:[%s3296_s1 + $0x20] sm:$0xff] %vm264_vm0, %v1587_v7  ;;  %v3420_v20 = vld [vmem:[#allocation48_spill] sm:$0xff]  ;;  %v3421_v27 = vld [vmem:[#allocation55_spill] sm:$0xff]  ;;  %v3424_v11 = vld [vmem:[#allocation42_spill] sm:$0xff] }
 0x131   :  { %v1594_v34 = vsel %vm1558_vm8, %v3408_v51, %v1593_v24  ;;  %v1600_v40 = vsel %vm1556_vm7, %v3409_v25, %v1599_v6  ;;  %v1607_v9 = vsel %vm1556_vm7, %v3410_v26, %v1606_v45  ;;  %v1610_v52 = vsel %vm1548_vm3, %v3411_v39, %v1609_v30  ;;  %v3422_v31 = vld [vmem:[#allocation56_spill] sm:$0xff]  ;;  %v3425_v54 = vld [vmem:[#allocation49_spill] sm:$0xff]  ;;  %v3428_v18 = vld [vmem:[#allocation43_spill] sm:$0xff] }
 0x132   :  { %v1601_v50 = vsel %vm1558_vm8, %v3412_v10, %v1600_v40  ;;  %v1608_v15 = vsel %vm1558_vm8, %v3413_v12, %v1607_v9  ;;  %v1611_v55 = vsel %vm1550_vm4, %v3414_v63, %v1610_v52  ;;  %v1616_v0 = vsel %vm1546_vm2, %v3416_v47, %v3415_v4  ;;  %1686 = vst.msk [vmem:[%s3296_s1 + $0x28] sm:$0xff] %vm264_vm0, %v1594_v34  ;;  %v3423_v41 = vld [vmem:[#allocation36_spill] sm:$0xff]  ;;  %v3426_v42 = vld [vmem:[#allocation57_spill] sm:$0xff]  ;;  %v3429_v8 = vld [vmem:[#allocation50_spill] sm:$0xff] }
 0x133   :  { %v1612_v38 = vsel %vm1552_vm5, %v3417_v48, %v1611_v55  ;;  %v1617_v60 = vsel %vm1548_vm3, %v3418_v36, %v1616_v0  ;;  %v1623_v61 = vsel %vm1546_vm2, %v3420_v20, %v3419_v16  ;;  %v1630_v5 = vsel %vm1546_vm2, %v3422_v31, %v3421_v27  ;;  %1687 = vst.msk [vmem:[%s3296_s1 + $0x30] sm:$0xff] %vm264_vm0, %v1601_v50  ;;  %v3427_v1 = vld [vmem:[#allocation37_spill] sm:$0xff]  ;;  %v3430_v57 = vld [vmem:[#allocation58_spill] sm:$0xff]  ;;  %v3432_v59 = vld [vmem:[#allocation44_spill] sm:$0xff] }
 0x134   :  { %1688 = vst.msk [vmem:[%s3296_s1 + $0x38] sm:$0xff] %vm264_vm0, %v1608_v15  ;;  %v1613_v49 = vsel %vm1554_vm6, %v3423_v41, %v1612_v38  ;;  %v1618_v3 = vsel %vm1550_vm4, %v3424_v11, %v1617_v60  ;;  %v1624_v37 = vsel %vm1548_vm3, %v3425_v54, %v1623_v61  ;;  %v1631_v43 = vsel %vm1548_vm3, %v3426_v42, %v1630_v5  ;;  %v3431_v21 = vld [vmem:[#allocation38_spill] sm:$0xff]  ;;  %v3433_v17 = vld [vmem:[#allocation51_spill] sm:$0xff]  ;;  %v3435_v29 = vld [vmem:[#allocation45_spill] sm:$0xff] }
 0x135   :  { %v1614_v44 = vsel %vm1556_vm7, %v3427_v1, %v1613_v49  ;;  %v1619_v32 = vsel %vm1552_vm5, %v3428_v18, %v1618_v3  ;;  %v1625_v7 = vsel %vm1550_vm4, %v3429_v8, %v1624_v37  ;;  %v1632_v62 = vsel %vm1550_vm4, %v3430_v57, %v1631_v43  ;;  %v3434_v23 = vld [vmem:[#allocation59_spill] sm:$0xff]  ;;  %v3436_v56 = vld [vmem:[#allocation52_spill] sm:$0xff]  ;;  %v3440_v26 = vld [vmem:[#allocation46_spill] sm:$0xff] }
 0x136   :  { %v1615_v35 = vsel %vm1558_vm8, %v3431_v21, %v1614_v44  ;;  %v1620_v13 = vsel %vm1554_vm6, %v3432_v59, %v1619_v32  ;;  %v1626_v24 = vsel %vm1552_vm5, %v3433_v17, %v1625_v7  ;;  %v1633_v6 = vsel %vm1552_vm5, %v3434_v23, %v1632_v62  ;;  %v3437_v30 = vld [vmem:[#allocation60_spill] sm:$0xff]  ;;  %v3438_v34 = vld [vmem:[#allocation63_spill] sm:$0xff]  ;;  %v3441_v39 = vld [vmem:[#allocation53_spill] sm:$0xff] }
 0x137   :  { %v1621_v45 = vsel %vm1556_vm7, %v3435_v29, %v1620_v13  ;;  %v1627_v46 = vsel %vm1554_vm6, %v3436_v56, %v1626_v24  ;;  %v1634_v51 = vsel %vm1554_vm6, %v3437_v30, %v1633_v6  ;;  %v3439_v25 = vld [vmem:[#allocation64_spill] sm:$0xff]  ;;  %1689 = vst.msk [vmem:[%s3296_s1 + $0x40] sm:$0xff] %vm264_vm0, %v1615_v35  ;;  %v3442_v10 = vld [vmem:[#allocation61_spill] sm:$0xff]  ;;  %v3444_v63 = vld [vmem:[#allocation54_spill] sm:$0xff]  ;;  %v1658_v49 = vsel %vm1546_vm2, %v2976_v14, %v2973_v28 }
 0x138   :  { %v1637_v40 = vsel %vm1546_vm2, %v3439_v25, %v3438_v34  ;;  %v1622_v9 = vsel %vm1558_vm8, %v3440_v26, %v1621_v45  ;;  %v1628_v52 = vsel %vm1556_vm7, %v3441_v39, %v1627_v46  ;;  %v1635_v50 = vsel %vm1556_vm7, %v3442_v10, %v1634_v51  ;;  %v3443_v12 = vld [vmem:[#allocation65_spill] sm:$0xff]  ;;  %v3445_v4 = vld [vmem:[#allocation62_spill] sm:$0xff]  ;;  %v3447_v38 = vld [vmem:[#allocation71_spill] sm:$0xff] }
 0x139   :  { %v1638_v15 = vsel %vm1548_vm3, %v3443_v12, %v1637_v40  ;;  %v1629_v55 = vsel %vm1558_vm8, %v3444_v63, %v1628_v52  ;;  %v1636_v47 = vsel %vm1558_vm8, %v3445_v4, %v1635_v50  ;;  %v3446_v0 = vld [vmem:[#allocation66_spill] sm:$0xff]  ;;  %v3448_v36 = vld [vmem:[#allocation72_spill] sm:$0xff]  ;;  %1690 = vst.msk [vmem:[%s3296_s1 + $0x48] sm:$0xff] %vm264_vm0, %v1622_v9  ;;  %v3449_v16 = vld [vmem:[#allocation67_spill] sm:$0xff]  ;;  %v1659_v28 = vsel %vm1548_vm3, %v2979_v19, %v1658_v49 }
 0x13a   :  { %v1639_v48 = vsel %vm1550_vm4, %v3446_v0, %v1638_v15  ;;  %v1644_v60 = vsel %vm1546_vm2, %v3448_v36, %v3447_v38  ;;  %v3450_v61 = vld [vmem:[#allocation73_spill] sm:$0xff]  ;;  %v3451_v31 = vld [vmem:[#allocation79_spill] sm:$0xff]  ;;  %v3452_v5 = vld [vmem:[#allocation80_spill] sm:$0xff]  ;;  %1691 = vst.msk [vmem:[%s3296_s1 + $0x50] sm:$0xff] %vm264_vm0, %v1629_v55  ;;  %v1660_v7 = vsel %vm1550_vm4, %v2981_v53, %v1659_v28 }
 0x13b   :  { %v1640_v20 = vsel %vm1552_vm5, %v3449_v16, %v1639_v48  ;;  %v1645_v27 = vsel %vm1548_vm3, %v3450_v61, %v1644_v60  ;;  %v1651_v41 = vsel %vm1546_vm2, %v3452_v5, %v3451_v31  ;;  %1692 = vst.msk [vmem:[%s3296_s1 + $0x58] sm:$0xff] %vm264_vm0, %v1636_v47  ;;  %v3453_v11 = vld [vmem:[#allocation68_spill] sm:$0xff]  ;;  %v3454_v54 = vld [vmem:[#allocation74_spill] sm:$0xff]  ;;  %v3455_v42 = vld [vmem:[#allocation81_spill] sm:$0xff]  ;;  %v1661_v13 = vsel %vm1552_vm5, %v2988_v58, %v1660_v7 }
 0x13c   :  { %v1641_v3 = vsel %vm1554_vm6, %v3453_v11, %v1640_v20  ;;  %v1646_v37 = vsel %vm1550_vm4, %v3454_v54, %v1645_v27  ;;  %v1652_v43 = vsel %vm1548_vm3, %v3455_v42, %v1651_v41  ;;  %v3456_v14 = vld [vmem:[#allocation69_spill] sm:$0xff]  ;;  %v3457_v44 = vld [vmem:[#allocation75_spill] sm:$0xff]  ;;  %v3458_v32 = vld [vmem:[#allocation82_spill] sm:$0xff]  ;;  %v1662_v53 = vsel %vm1554_vm6, %v3001_v2, %v1661_v13 }
 0x13d   :  { %v1642_v1 = vsel %vm1556_vm7, %v3456_v14, %v1641_v3  ;;  %v1647_v18 = vsel %vm1552_vm5, %v3457_v44, %v1646_v37  ;;  %v1653_v8 = vsel %vm1550_vm4, %v3458_v32, %v1652_v43  ;;  %v3459_v57 = vld [vmem:[#allocation70_spill] sm:$0xff]  ;;  %v3460_v21 = vld [vmem:[#allocation76_spill] sm:$0xff]  ;;  %v3461_v59 = vld [vmem:[#allocation83_spill] sm:$0xff]  ;;  %v1663_v46 = vsel %vm1556_vm7, %v3013_v22, %v1662_v53 }
 0x13e   :  { %v1643_v62 = vsel %vm1558_vm8, %v3459_v57, %v1642_v1  ;;  %v1648_v35 = vsel %vm1554_vm6, %v3460_v21, %v1647_v18  ;;  %v1654_v19 = vsel %vm1552_vm5, %v3461_v59, %v1653_v8  ;;  %v3462_v17 = vld [vmem:[#allocation77_spill] sm:$0xff]  ;;  %v3463_v23 = vld [vmem:[#allocation84_spill] sm:$0xff]  ;;  %v3464_v29 = vld [vmem:[#allocation78_spill] sm:$0xff]  ;;  %v1664_v2 = vsel %vm1558_vm8, %v3027_v33, %v1663_v46 }
 0x13f   :  { %v1649_v24 = vsel %vm1556_vm7, %v3462_v17, %v1648_v35  ;;  %v1655_v6 = vsel %vm1554_vm6, %v3463_v23, %v1654_v19  ;;  %1693 = vst.msk [vmem:[%s3296_s1 + $0x60] sm:$0xff] %vm264_vm0, %v1643_v62  ;;  %v3465_v56 = vld [vmem:[#allocation85_spill] sm:$0xff]  ;;  %v3466_v30 = vld [vmem:[#allocation86_spill] sm:$0xff]  ;;  %1696 = vst.msk [vmem:[%s3296_s1 + $0x78] sm:$0xff] %vm264_vm0, %v1664_v2 }
 0x140   :  { %v1650_v45 = vsel %vm1558_vm8, %v3464_v29, %v1649_v24  ;;  %v1656_v58 = vsel %vm1556_vm7, %v3465_v56, %v1655_v6 }
 0x141   :  { %v1657_v51 = vsel %vm1558_vm8, %v3466_v30, %v1656_v58  ;;  %1694 = vst.msk [vmem:[%s3296_s1 + $0x68] sm:$0xff] %vm264_vm0, %v1650_v45 }
 0x142   :  { %1695 = vst.msk [vmem:[%s3296_s1 + $0x70] sm:$0xff] %vm264_vm0, %v1657_v51 }

// kernel: resnet_forward.33
= control target key start
LH: loop header
LB: loop body
LE: loop exit
PB: predicated region body
PF: predicated region fallthrough
CT: control target
= control target key end

     0   :  { %vm82_vm0 = vcmask 130048   ;;  %s491_s1 = inlined_call_operand.vmem [shape: bf16[16,16], index: 1, kind: input, shape index: {}]   ;;  %s492_s0 = inlined_call_operand.vmem [shape: bf16[128,16], index: 0, kind: input, shape index: {}]   ;;  %s493_s2 = inlined_call_operand.vmem [shape: f32[1,16], index: 2, kind: input, shape index: {}]   ;;  %s494_s3 = inlined_call_operand.vmem [shape: f32[1,16], index: 3, kind: input, shape index: {}]   ;;  %s495_s4 = inlined_call_operand.vmem [shape: f32[128,16], index: 4, kind: output, shape index: {}]  }
   0x1   :  { %v334_v0 = vld [vmem:[%s491_s1] sm:$0xff]   ;;  %v337_v3 = vld [vmem:[%s492_s0 + $0x8] sm:$0xff]   ;;  %v339_v5 = vld [vmem:[%s492_s0 + $0x10] sm:$0xff]  }
   0x2   :  { %v335_v1 = vld [vmem:[%s492_s0] sm:$0xff]   ;;  %314 = vmatprep.subr.bf16.mxu0 %v334_v0  ;;  %332 = vmatprep.subr.bf16.mxu1 %v334_v0  ;;  %v338_v4 = vld [vmem:[%s492_s0 + $0x28] sm:$0xff]   ;;  %v340_v6 = vld [vmem:[%s492_s0 + $0x30] sm:$0xff]  }
   0x3   :  { %v336_v2 = vld [vmem:[%s492_s0 + $0x20] sm:$0xff]   ;;  %315 = vmatpush3.bf16.msra.mxu0 %v334_v0  ;;  %333 = vmatpush3.bf16.msra.mxu1 %v334_v0  ;;  %v341_v7 = vld [vmem:[%s492_s0 + $0x18] sm:$0xff]  }
   0x4   :  { %316 = vmatprep.mubr.msk.bf16.mxu0 %vm82_vm0, %v335_v1  ;;  %324 = vmatprep.mubr.msk.bf16.mxu1 %vm82_vm0, %v336_v2  ;;  %v342_v8 = vld [vmem:[%s492_s0 + $0x38] sm:$0xff]   ;;  %v303_v9 = vld [vmem:[%s493_s2] ss:$0 sm:$0xff] }
   0x5   :  { %v409_v11 = vld [vmem:[%s494_s3] ss:$0 sm:$0xff] }
   0x6   :  { %317 = vmatmul.mubr.msk.bf16.vlgmr.msra.gmra.mrb[0].mxu0 %vm82_vm0, %v337_v3  ;;  %325 = vmatmul.mubr.msk.bf16.vlgmr.msra.gmra.mrb[0].mxu1 %vm82_vm0, %v338_v4 }
   0x7   :  { %320 = vmatprep.mubr.msk.bf16.mxu0 %vm82_vm0, %v339_v5  ;;  %328 = vmatprep.mubr.msk.bf16.mxu1 %vm82_vm0, %v340_v6 }
   0xe   :  { %321 = vmatmul.mubr.msk.bf16.gmra.mrb[4].mxu0 %vm82_vm0, %v341_v7  ;;  %329 = vmatmul.mubr.msk.bf16.gmra.mrb[4].mxu1 %vm82_vm0, %v342_v8 }
  0xd9   :  { %v318_v10 = vpop.f32.mrb[0].mxu0  ;;  %v326_v12 = vpop.f32.mrb[0].mxu1 }
  0xda   :  { %v213_v13 = vmul.f32 %v318_v10, %v303_v9  ;;  %v221_v14 = vmul.f32 %v326_v12, %v303_v9  ;;  %v141_v15 = vpop.f32.mrb[1].mxu0  ;;  %v173_v16 = vpop.f32.mrb[1].mxu1 }
  0xdb   :  { %v211_v17 = vmul.f32 %v303_v9, %v141_v15  ;;  %v219_v18 = vmul.f32 %v303_v9, %v173_v16  ;;  %v319_v19 = vpop.f32.mrb[2].mxu0  ;;  %v327_v20 = vpop.f32.mrb[2].mxu1 }
  0xdc   :  { %v236_v21 = vadd.f32 %v409_v11, %v213_v13  ;;  %v244_v22 = vadd.f32 %v409_v11, %v221_v14  ;;  %v214_v23 = vmul.f32 %v319_v19, %v303_v9  ;;  %v222_v24 = vmul.f32 %v327_v20, %v303_v9  ;;  %v144_v25 = vpop.f32.mrb[3].mxu0  ;;  %v176_v26 = vpop.f32.mrb[3].mxu1 }
  0xdd   :  { %v234_v27 = vadd.f32 %v409_v11, %v211_v17  ;;  %v242_v28 = vadd.f32 %v409_v11, %v219_v18  ;;  %v212_v29 = vmul.f32 %v303_v9, %v144_v25  ;;  %v220_v30 = vmul.f32 %v303_v9, %v176_v26 }
  0xde   :  { %v252_v31 = vmax.f32 %v236_v21, 0.0  ;;  %v260_v32 = vmax.f32 %v244_v22, 0.0  ;;  %v237_v33 = vadd.f32 %v409_v11, %v214_v23  ;;  %v245_v34 = vadd.f32 %v409_v11, %v222_v24 }
  0xdf   :  { %v250_v35 = vmax.f32 %v234_v27, 0.0  ;;  %v258_v36 = vmax.f32 %v242_v28, 0.0  ;;  %v235_v37 = vadd.f32 %v409_v11, %v212_v29  ;;  %v243_v38 = vadd.f32 %v409_v11, %v220_v30 }
  0xe0   :  { %268 = vst.msk [vmem:[%s495_s4 + $0x10] sm:$0xff] %vm82_vm0, %v252_v31  ;;  %276 = vst.msk [vmem:[%s495_s4 + $0x50] sm:$0xff] %vm82_vm0, %v260_v32  ;;  %v253_v39 = vmax.f32 %v237_v33, 0.0  ;;  %v261_v40 = vmax.f32 %v245_v34, 0.0 }
  0xe1   :  { %266 = vst.msk [vmem:[%s495_s4] sm:$0xff] %vm82_vm0, %v250_v35  ;;  %274 = vst.msk [vmem:[%s495_s4 + $0x40] sm:$0xff] %vm82_vm0, %v258_v36  ;;  %v251_v41 = vmax.f32 %v235_v37, 0.0  ;;  %v259_v42 = vmax.f32 %v243_v38, 0.0  ;;  %v322_v43 = vpop.f32.mrb[4].mxu0  ;;  %v330_v44 = vpop.f32.mrb[4].mxu1 }
  0xe2   :  { %269 = vst.msk [vmem:[%s495_s4 + $0x18] sm:$0xff] %vm82_vm0, %v253_v39  ;;  %277 = vst.msk [vmem:[%s495_s4 + $0x58] sm:$0xff] %vm82_vm0, %v261_v40  ;;  %v217_v45 = vmul.f32 %v322_v43, %v303_v9  ;;  %v225_v46 = vmul.f32 %v330_v44, %v303_v9  ;;  %v157_v47 = vpop.f32.mrb[5].mxu0  ;;  %v189_v48 = vpop.f32.mrb[5].mxu1 }
  0xe3   :  { %267 = vst.msk [vmem:[%s495_s4 + $0x8] sm:$0xff] %vm82_vm0, %v251_v41  ;;  %275 = vst.msk [vmem:[%s495_s4 + $0x48] sm:$0xff] %vm82_vm0, %v259_v42  ;;  %v215_v49 = vmul.f32 %v303_v9, %v157_v47  ;;  %v223_v50 = vmul.f32 %v303_v9, %v189_v48  ;;  %v323_v51 = vpop.f32.mrb[6].mxu0  ;;  %v331_v52 = vpop.f32.mrb[6].mxu1 }
  0xe4   :  { %v240_v53 = vadd.f32 %v409_v11, %v217_v45  ;;  %v248_v54 = vadd.f32 %v409_v11, %v225_v46  ;;  %v218_v55 = vmul.f32 %v323_v51, %v303_v9  ;;  %v226_v56 = vmul.f32 %v331_v52, %v303_v9  ;;  %v160_v57 = vpop.f32.mrb[7].mxu0  ;;  %v192_v58 = vpop.f32.mrb[7].mxu1 }
  0xe5   :  { %v238_v59 = vadd.f32 %v409_v11, %v215_v49  ;;  %v246_v60 = vadd.f32 %v409_v11, %v223_v50  ;;  %v216_v61 = vmul.f32 %v303_v9, %v160_v57  ;;  %v224_v62 = vmul.f32 %v303_v9, %v192_v58 }
  0xe6   :  { %v256_v63 = vmax.f32 %v240_v53, 0.0  ;;  %v264_v0 = vmax.f32 %v248_v54, 0.0  ;;  %v241_v1 = vadd.f32 %v409_v11, %v218_v55  ;;  %v249_v2 = vadd.f32 %v409_v11, %v226_v56 }
  0xe7   :  { %v254_v3 = vmax.f32 %v238_v59, 0.0  ;;  %v262_v4 = vmax.f32 %v246_v60, 0.0  ;;  %v239_v5 = vadd.f32 %v409_v11, %v216_v61  ;;  %v247_v6 = vadd.f32 %v409_v11, %v224_v62 }
  0xe8   :  { %272 = vst.msk [vmem:[%s495_s4 + $0x30] sm:$0xff] %vm82_vm0, %v256_v63  ;;  %280 = vst.msk [vmem:[%s495_s4 + $0x70] sm:$0xff] %vm82_vm0, %v264_v0  ;;  %v257_v7 = vmax.f32 %v241_v1, 0.0  ;;  %v265_v8 = vmax.f32 %v249_v2, 0.0 }
  0xe9   :  { %270 = vst.msk [vmem:[%s495_s4 + $0x20] sm:$0xff] %vm82_vm0, %v254_v3  ;;  %278 = vst.msk [vmem:[%s495_s4 + $0x60] sm:$0xff] %vm82_vm0, %v262_v4  ;;  %v255_v9 = vmax.f32 %v239_v5, 0.0  ;;  %v263_v10 = vmax.f32 %v247_v6, 0.0 }
  0xea   :  { %273 = vst.msk [vmem:[%s495_s4 + $0x38] sm:$0xff] %vm82_vm0, %v257_v7  ;;  %281 = vst.msk [vmem:[%s495_s4 + $0x78] sm:$0xff] %vm82_vm0, %v265_v8 }
  0xeb   :  { %271 = vst.msk [vmem:[%s495_s4 + $0x28] sm:$0xff] %vm82_vm0, %v255_v9  ;;  %279 = vst.msk [vmem:[%s495_s4 + $0x68] sm:$0xff] %vm82_vm0, %v263_v10 }

// kernel: resnet_forward.34
= control target key start
LH: loop header
LB: loop body
LE: loop exit
PB: predicated region body
PF: predicated region fallthrough
CT: control target
= control target key end

     0   :  { %v469_v0 = vmov 0   ;;  %vm178_vm0 = vcmask 130048   ;;  %s684_s1 = inlined_call_operand.vmem [shape: bf16[144,16], index: 1, kind: input, shape index: {}]   ;;  %s685_s0 = inlined_call_operand.vmem [shape: bf16[128,144], index: 0, kind: input, shape index: {}]   ;;  %s686_s2 = inlined_call_operand.vmem [shape: f32[1,16], index: 2, kind: input, shape index: {}]   ;;  %s687_s3 = inlined_call_operand.vmem [shape: f32[1,16], index: 3, kind: input, shape index: {}]   ;;  %s688_s4 = inlined_call_operand.vmem [shape: f32[128,16], index: 4, kind: output, shape index: {}]  }
   0x1   :  { %203 = vmatprep.subr.bf16.mxu0 %v469_v0  ;;  %417 = vmatprep.subr.bf16.mxu1 %v469_v0  ;;  %v436_v1 = vld [vmem:[%s684_s1] sm:$0xff]   ;;  %v437_v2 = vld [vmem:[%s684_s1 + $0x8] sm:$0xff]   ;;  %v438_v3 = vld [vmem:[%s684_s1 + $0x10] sm:$0xff]  }
   0x2   :  { %204 = vmatpush1.bf16.msra.mxu0 %v436_v1  ;;  %426 = vmatpush1.bf16.msra.mxu1 %v436_v1  ;;  %v439_v4 = vld [vmem:[%s684_s1 + $0x18] sm:$0xff]   ;;  %v447_v5 = vld [vmem:[%s685_s0 + $0x4] ss:$8 sps:$4 sm:$0xff]   ;;  %v442_v9 = vld [vmem:[%s684_s1 + $0x30] sm:$0xff]  }
   0x3   :  { %205 = vmatprep.subr.bf16.mxu0 %v469_v0  ;;  %418 = vmatprep.subr.bf16.mxu1 %v469_v0  ;;  %v450_v6 = vld [vmem:[%s685_s0 + $0x44] ss:$8 sps:$4 sm:$0xff]   ;;  %v443_v10 = vld [vmem:[%s684_s1 + $0x38] sm:$0xff]   ;;  %v445_v12 = vld [vmem:[%s685_s0] ss:$8 sps:$4 sm:$0xff]  }
   0x4   :  { %407 = vmatprep.mubr.msk.bf16.mxu0 %vm178_vm0, %v447_v5  ;;  %411 = vmatprep.mubr.msk.bf16.mxu1 %vm178_vm0, %v450_v6  ;;  %v440_v7 = vld [vmem:[%s684_s1 + $0x20] sm:$0xff]   ;;  %v441_v8 = vld [vmem:[%s684_s1 + $0x28] sm:$0xff]   ;;  %v451_v14 = vld [vmem:[%s685_s0 + $0x14] ss:$8 sps:$4 sm:$0xff]  }
   0x5   :  { %v444_v11 = vld [vmem:[%s684_s1 + $0x40] sm:$0xff]   ;;  %v453_v15 = vld [vmem:[%s685_s0 + $0x54] ss:$8 sps:$4 sm:$0xff]   ;;  %v455_v16 = vld [vmem:[%s685_s0 + $0x10] ss:$8 sps:$4 sm:$0xff]  }
   0x6   :  { %206 = vmatpush1.bf16.msra.mxu0 %v437_v2  ;;  %427 = vmatpush1.bf16.msra.mxu1 %v437_v2  ;;  %v448_v13 = vld [vmem:[%s685_s0 + $0x40] ss:$8 sps:$4 sm:$0xff]   ;;  %v456_v17 = vld [vmem:[%s685_s0 + $0x50] ss:$8 sps:$4 sm:$0xff]   ;;  %v457_v18 = vld [vmem:[%s685_s0 + $0x24] ss:$8 sps:$4 sm:$0xff]  }
   0x7   :  { %207 = vmatprep.subr.bf16.mxu0 %v469_v0  ;;  %419 = vmatprep.subr.bf16.mxu1 %v469_v0  ;;  %v459_v19 = vld [vmem:[%s685_s0 + $0x64] ss:$8 sps:$4 sm:$0xff]   ;;  %v461_v20 = vld [vmem:[%s685_s0 + $0x20] ss:$8 sps:$4 sm:$0xff]   ;;  %v463_v22 = vld [vmem:[%s685_s0 + $0x34] ss:$8 sps:$4 sm:$0xff]  }
   0x8   :  { %v462_v21 = vld [vmem:[%s685_s0 + $0x60] ss:$8 sps:$4 sm:$0xff]   ;;  %v465_v23 = vld [vmem:[%s685_s0 + $0x74] ss:$8 sps:$4 sm:$0xff]   ;;  %v467_v24 = vld [vmem:[%s685_s0 + $0x30] ss:$8 sps:$4 sm:$0xff]  }
   0x9   :  { %v468_v25 = vld [vmem:[%s685_s0 + $0x70] ss:$8 sps:$4 sm:$0xff]   ;;  %v581_v26 = vld [vmem:[%s686_s2] ss:$0 sm:$0xff] }
   0xa   :  { %208 = vmatpush1.bf16.msra.mxu0 %v438_v3  ;;  %428 = vmatpush1.bf16.msra.mxu1 %v438_v3  ;;  %v586_v28 = vld [vmem:[%s687_s3] ss:$0 sm:$0xff] }
   0xb   :  { %209 = vmatprep.subr.bf16.mxu0 %v469_v0  ;;  %420 = vmatprep.subr.bf16.mxu1 %v469_v0 }
   0xe   :  { %210 = vmatpush1.bf16.msra.mxu0 %v439_v4  ;;  %429 = vmatpush1.bf16.msra.mxu1 %v439_v4 }
   0xf   :  { %211 = vmatprep.subr.bf16.mxu0 %v469_v0  ;;  %421 = vmatprep.subr.bf16.mxu1 %v469_v0 }
  0x12   :  { %212 = vmatpush1.bf16.msra.mxu0 %v440_v7  ;;  %430 = vmatpush1.bf16.msra.mxu1 %v440_v7 }
  0x13   :  { %213 = vmatprep.subr.bf16.mxu0 %v469_v0  ;;  %422 = vmatprep.subr.bf16.mxu1 %v469_v0 }
  0x16   :  { %214 = vmatpush1.bf16.msra.mxu0 %v441_v8  ;;  %431 = vmatpush1.bf16.msra.mxu1 %v441_v8 }
  0x17   :  { %215 = vmatprep.subr.bf16.mxu0 %v469_v0  ;;  %423 = vmatprep.subr.bf16.mxu1 %v469_v0 }
  0x1a   :  { %216 = vmatpush1.bf16.msra.mxu0 %v442_v9  ;;  %432 = vmatpush1.bf16.msra.mxu1 %v442_v9 }
  0x1b   :  { %217 = vmatprep.subr.bf16.mxu0 %v469_v0  ;;  %424 = vmatprep.subr.bf16.mxu1 %v469_v0 }
  0x1e   :  { %218 = vmatpush1.bf16.msra.mxu0 %v443_v10  ;;  %433 = vmatpush1.bf16.msra.mxu1 %v443_v10 }
  0x1f   :  { %219 = vmatprep.subr.bf16.mxu0 %v469_v0  ;;  %425 = vmatprep.subr.bf16.mxu1 %v469_v0 }
  0x22   :  { %220 = vmatpush1.bf16.msra.mxu0 %v444_v11  ;;  %434 = vmatpush1.bf16.msra.mxu1 %v444_v11 }
  0x25   :  { %236 = vmatmul.mubr.bf16.vlgmr.msra.gmra.mrb[0].mxu0 %v445_v12  ;;  %268 = vmatmul.mubr.bf16.vlgmr.msra.gmra.mrb[0].mxu1 %v448_v13 }
  0x26   :  { %408 = vmatprep.mubr.msk.bf16.mxu0 %vm178_vm0, %v451_v14  ;;  %412 = vmatprep.mubr.msk.bf16.mxu1 %vm178_vm0, %v453_v15 }
  0x2d   :  { %244 = vmatmul.mubr.bf16.gmra.mrb[4].mxu0 %v455_v16  ;;  %276 = vmatmul.mubr.bf16.gmra.mrb[4].mxu1 %v456_v17 }
  0x2e   :  { %409 = vmatprep.mubr.msk.bf16.mxu0 %vm178_vm0, %v457_v18  ;;  %413 = vmatprep.mubr.msk.bf16.mxu1 %vm178_vm0, %v459_v19 }
  0x35   :  { %252 = vmatmul.mubr.bf16.gmra.mrb[8].mxu0 %v461_v20  ;;  %284 = vmatmul.mubr.bf16.gmra.mrb[8].mxu1 %v462_v21 }
  0x36   :  { %410 = vmatprep.mubr.msk.bf16.mxu0 %vm178_vm0, %v463_v22  ;;  %414 = vmatprep.mubr.msk.bf16.mxu1 %vm178_vm0, %v465_v23 }
  0x3d   :  { %260 = vmatmul.mubr.bf16.gmra.mrb[12].mxu0 %v467_v24  ;;  %292 = vmatmul.mubr.bf16.gmra.mrb[12].mxu1 %v468_v25 }
  0xf8   :  { %v237_v27 = vpop.f32.mrb[0].mxu0  ;;  %v269_v29 = vpop.f32.mrb[0].mxu1 }
  0xf9   :  { %v307_v30 = vmul.f32 %v581_v26, %v237_v27  ;;  %v315_v31 = vmul.f32 %v581_v26, %v269_v29  ;;  %v239_v32 = vpop.f32.mrb[1].mxu0  ;;  %v271_v33 = vpop.f32.mrb[1].mxu1 }
  0xfa   :  { %v240_v34 = vpop.f32.mrb[2].mxu0  ;;  %v272_v35 = vpop.f32.mrb[2].mxu1 }
  0xfb   :  { %v330_v36 = vadd.f32 %v586_v28, %v307_v30  ;;  %v338_v37 = vadd.f32 %v586_v28, %v315_v31  ;;  %v308_v38 = vmul.f32 %v581_v26, %v240_v34  ;;  %v316_v39 = vmul.f32 %v581_v26, %v272_v35  ;;  %v242_v40 = vpop.f32.mrb[3].mxu0  ;;  %v274_v41 = vpop.f32.mrb[3].mxu1 }
  0xfd   :  { %v346_v42 = vmax.f32 %v330_v36, 0.0  ;;  %v354_v43 = vmax.f32 %v338_v37, 0.0  ;;  %v331_v44 = vadd.f32 %v586_v28, %v308_v38  ;;  %v339_v45 = vadd.f32 %v586_v28, %v316_v39 }
  0xff   :  { %362 = vst.msk [vmem:[%s688_s4] sm:$0xff] %vm178_vm0, %v346_v42  ;;  %370 = vst.msk [vmem:[%s688_s4 + $0x40] sm:$0xff] %vm178_vm0, %v354_v43  ;;  %v347_v46 = vmax.f32 %v331_v44, 0.0  ;;  %v355_v47 = vmax.f32 %v339_v45, 0.0 }
 0x100   :  { %v245_v48 = vpop.f32.mrb[4].mxu0  ;;  %v277_v49 = vpop.f32.mrb[4].mxu1 }
 0x101   :  { %363 = vst.msk [vmem:[%s688_s4 + $0x8] sm:$0xff] %vm178_vm0, %v347_v46  ;;  %371 = vst.msk [vmem:[%s688_s4 + $0x48] sm:$0xff] %vm178_vm0, %v355_v47  ;;  %v309_v50 = vmul.f32 %v581_v26, %v245_v48  ;;  %v317_v51 = vmul.f32 %v581_v26, %v277_v49  ;;  %v247_v52 = vpop.f32.mrb[5].mxu0  ;;  %v279_v53 = vpop.f32.mrb[5].mxu1 }
 0x102   :  { %v248_v54 = vpop.f32.mrb[6].mxu0  ;;  %v280_v55 = vpop.f32.mrb[6].mxu1 }
 0x103   :  { %v332_v56 = vadd.f32 %v586_v28, %v309_v50  ;;  %v340_v57 = vadd.f32 %v586_v28, %v317_v51  ;;  %v310_v58 = vmul.f32 %v581_v26, %v248_v54  ;;  %v318_v59 = vmul.f32 %v581_v26, %v280_v55  ;;  %v250_v60 = vpop.f32.mrb[7].mxu0  ;;  %v282_v61 = vpop.f32.mrb[7].mxu1 }
 0x105   :  { %v348_v62 = vmax.f32 %v332_v56, 0.0  ;;  %v356_v63 = vmax.f32 %v340_v57, 0.0  ;;  %v333_v0 = vadd.f32 %v586_v28, %v310_v58  ;;  %v341_v1 = vadd.f32 %v586_v28, %v318_v59 }
 0x107   :  { %364 = vst.msk [vmem:[%s688_s4 + $0x10] sm:$0xff] %vm178_vm0, %v348_v62  ;;  %372 = vst.msk [vmem:[%s688_s4 + $0x50] sm:$0xff] %vm178_vm0, %v356_v63  ;;  %v349_v2 = vmax.f32 %v333_v0, 0.0  ;;  %v357_v3 = vmax.f32 %v341_v1, 0.0 }
 0x108   :  { %v253_v4 = vpop.f32.mrb[8].mxu0  ;;  %v285_v5 = vpop.f32.mrb[8].mxu1 }
 0x109   :  { %365 = vst.msk [vmem:[%s688_s4 + $0x18] sm:$0xff] %vm178_vm0, %v349_v2  ;;  %373 = vst.msk [vmem:[%s688_s4 + $0x58] sm:$0xff] %vm178_vm0, %v357_v3  ;;  %v311_v6 = vmul.f32 %v581_v26, %v253_v4  ;;  %v319_v7 = vmul.f32 %v581_v26, %v285_v5  ;;  %v255_v8 = vpop.f32.mrb[9].mxu0  ;;  %v287_v9 = vpop.f32.mrb[9].mxu1 }
 0x10a   :  { %v256_v10 = vpop.f32.mrb[10].mxu0  ;;  %v288_v11 = vpop.f32.mrb[10].mxu1 }
 0x10b   :  { %v334_v12 = vadd.f32 %v586_v28, %v311_v6  ;;  %v342_v13 = vadd.f32 %v586_v28, %v319_v7  ;;  %v312_v14 = vmul.f32 %v581_v26, %v256_v10  ;;  %v320_v15 = vmul.f32 %v581_v26, %v288_v11  ;;  %v258_v16 = vpop.f32.mrb[11].mxu0  ;;  %v290_v17 = vpop.f32.mrb[11].mxu1 }
 0x10d   :  { %v350_v18 = vmax.f32 %v334_v12, 0.0  ;;  %v358_v19 = vmax.f32 %v342_v13, 0.0  ;;  %v335_v20 = vadd.f32 %v586_v28, %v312_v14  ;;  %v343_v21 = vadd.f32 %v586_v28, %v320_v15 }
 0x10f   :  { %366 = vst.msk [vmem:[%s688_s4 + $0x20] sm:$0xff] %vm178_vm0, %v350_v18  ;;  %374 = vst.msk [vmem:[%s688_s4 + $0x60] sm:$0xff] %vm178_vm0, %v358_v19  ;;  %v351_v22 = vmax.f32 %v335_v20, 0.0  ;;  %v359_v23 = vmax.f32 %v343_v21, 0.0 }
 0x110   :  { %v261_v24 = vpop.f32.mrb[12].mxu0  ;;  %v293_v25 = vpop.f32.mrb[12].mxu1 }
 0x111   :  { %367 = vst.msk [vmem:[%s688_s4 + $0x28] sm:$0xff] %vm178_vm0, %v351_v22  ;;  %375 = vst.msk [vmem:[%s688_s4 + $0x68] sm:$0xff] %vm178_vm0, %v359_v23  ;;  %v313_v27 = vmul.f32 %v581_v26, %v261_v24  ;;  %v321_v29 = vmul.f32 %v581_v26, %v293_v25  ;;  %v263_v30 = vpop.f32.mrb[13].mxu0  ;;  %v295_v31 = vpop.f32.mrb[13].mxu1 }
 0x112   :  { %v264_v32 = vpop.f32.mrb[14].mxu0  ;;  %v296_v33 = vpop.f32.mrb[14].mxu1 }
 0x113   :  { %v336_v34 = vadd.f32 %v586_v28, %v313_v27  ;;  %v344_v35 = vadd.f32 %v586_v28, %v321_v29  ;;  %v314_v36 = vmul.f32 %v581_v26, %v264_v32  ;;  %v322_v37 = vmul.f32 %v581_v26, %v296_v33  ;;  %v266_v38 = vpop.f32.mrb[15].mxu0  ;;  %v298_v39 = vpop.f32.mrb[15].mxu1 }
 0x115   :  { %v352_v40 = vmax.f32 %v336_v34, 0.0  ;;  %v360_v41 = vmax.f32 %v344_v35, 0.0  ;;  %v337_v42 = vadd.f32 %v586_v28, %v314_v36  ;;  %v345_v43 = vadd.f32 %v586_v28, %v322_v37 }
 0x117   :  { %368 = vst.msk [vmem:[%s688_s4 + $0x30] sm:$0xff] %vm178_vm0, %v352_v40  ;;  %376 = vst.msk [vmem:[%s688_s4 + $0x70] sm:$0xff] %vm178_vm0, %v360_v41  ;;  %v353_v44 = vmax.f32 %v337_v42, 0.0  ;;  %v361_v26 = vmax.f32 %v345_v43, 0.0 }
 0x119   :  { %369 = vst.msk [vmem:[%s688_s4 + $0x38] sm:$0xff] %vm178_vm0, %v353_v44  ;;  %377 = vst.msk [vmem:[%s688_s4 + $0x78] sm:$0xff] %vm178_vm0, %v361_v26 }

// kernel: resnet_forward.35
= control target key start
LH: loop header
LB: loop body
LE: loop exit
PB: predicated region body
PF: predicated region fallthrough
CT: control target
= control target key end

     0   :  { %vm82_vm0 = vcmask 130048   ;;  %vm250_vm1 = vcmask 523264   ;;  %s458_s1 = inlined_call_operand.vmem [shape: bf16[16,64], index: 1, kind: input, shape index: {}]   ;;  %s459_s0 = inlined_call_operand.vmem [shape: bf16[128,16], index: 0, kind: input, shape index: {}]   ;;  %s460_s2 = inlined_call_operand.vmem [shape: f32[1,64], index: 2, kind: input, shape index: {}]   ;;  %s461_s3 = inlined_call_operand.vmem [shape: f32[1,64], index: 3, kind: input, shape index: {}]   ;;  %s462_s4 = inlined_call_operand.vmem [shape: f32[128,64], index: 4, kind: output, shape index: {}]  }
   0x1   :  { %v319_v0 = vld [vmem:[%s458_s1] sm:$0xff]   ;;  %v322_v3 = vld [vmem:[%s459_s0 + $0x8] sm:$0xff]   ;;  %v324_v5 = vld [vmem:[%s459_s0 + $0x10] sm:$0xff]  }
   0x2   :  { %v320_v1 = vld [vmem:[%s459_s0] sm:$0xff]   ;;  %299 = vmatprep.subr.bf16.mxu0 %v319_v0  ;;  %317 = vmatprep.subr.bf16.mxu1 %v319_v0  ;;  %v323_v4 = vld [vmem:[%s459_s0 + $0x28] sm:$0xff]   ;;  %v325_v6 = vld [vmem:[%s459_s0 + $0x30] sm:$0xff]  }
   0x3   :  { %v321_v2 = vld [vmem:[%s459_s0 + $0x20] sm:$0xff]   ;;  %300 = vmatpush3.bf16.msra.mxu0 %v319_v0  ;;  %318 = vmatpush3.bf16.msra.mxu1 %v319_v0  ;;  %v326_v7 = vld [vmem:[%s459_s0 + $0x18] sm:$0xff]  }
   0x4   :  { %301 = vmatprep.mubr.msk.bf16.mxu0 %vm82_vm0, %v320_v1  ;;  %309 = vmatprep.mubr.msk.bf16.mxu1 %vm82_vm0, %v321_v2  ;;  %v327_v8 = vld [vmem:[%s459_s0 + $0x38] sm:$0xff]   ;;  %v288_v9 = vld [vmem:[%s460_s2] ss:$0 sm:$0xff] }
   0x5   :  { %v289_v11 = vld [vmem:[%s461_s3] ss:$0 sm:$0xff] }
   0x6   :  { %302 = vmatmul.mubr.msk.bf16.vlgmr.msra.gmra.mrb[0].mxu0 %vm82_vm0, %v322_v3  ;;  %310 = vmatmul.mubr.msk.bf16.vlgmr.msra.gmra.mrb[0].mxu1 %vm82_vm0, %v323_v4 }
   0x7   :  { %305 = vmatprep.mubr.msk.bf16.mxu0 %vm82_vm0, %v324_v5  ;;  %313 = vmatprep.mubr.msk.bf16.mxu1 %vm82_vm0, %v325_v6 }
   0xe   :  { %306 = vmatmul.mubr.msk.bf16.gmra.mrb[4].mxu0 %vm82_vm0, %v326_v7  ;;  %314 = vmatmul.mubr.msk.bf16.gmra.mrb[4].mxu1 %vm82_vm0, %v327_v8 }
  0xd9   :  { %v303_v10 = vpop.f32.mrb[0].mxu0  ;;  %v311_v12 = vpop.f32.mrb[0].mxu1 }
  0xda   :  { %v213_v13 = vmul.f32 %v303_v10, %v288_v9  ;;  %v221_v14 = vmul.f32 %v311_v12, %v288_v9  ;;  %v141_v15 = vpop.f32.mrb[1].mxu0  ;;  %v173_v16 = vpop.f32.mrb[1].mxu1 }
  0xdb   :  { %v211_v17 = vmul.f32 %v288_v9, %v141_v15  ;;  %v219_v18 = vmul.f32 %v288_v9, %v173_v16  ;;  %v304_v19 = vpop.f32.mrb[2].mxu0  ;;  %v312_v20 = vpop.f32.mrb[2].mxu1 }
  0xdc   :  { %v236_v21 = vadd.f32 %v289_v11, %v213_v13  ;;  %v244_v22 = vadd.f32 %v289_v11, %v221_v14  ;;  %v214_v23 = vmul.f32 %v304_v19, %v288_v9  ;;  %v222_v24 = vmul.f32 %v312_v20, %v288_v9  ;;  %v144_v25 = vpop.f32.mrb[3].mxu0  ;;  %v176_v26 = vpop.f32.mrb[3].mxu1 }
  0xdd   :  { %v234_v27 = vadd.f32 %v289_v11, %v211_v17  ;;  %v242_v28 = vadd.f32 %v289_v11, %v219_v18  ;;  %v212_v29 = vmul.f32 %v288_v9, %v144_v25  ;;  %v220_v30 = vmul.f32 %v288_v9, %v176_v26 }
  0xde   :  { %253 = vst.msk [vmem:[%s462_s4 + $0x10] sm:$0xff] %vm250_vm1, %v236_v21  ;;  %261 = vst.msk [vmem:[%s462_s4 + $0x50] sm:$0xff] %vm250_vm1, %v244_v22  ;;  %v237_v31 = vadd.f32 %v289_v11, %v214_v23  ;;  %v245_v32 = vadd.f32 %v289_v11, %v222_v24 }
  0xdf   :  { %251 = vst.msk [vmem:[%s462_s4] sm:$0xff] %vm250_vm1, %v234_v27  ;;  %259 = vst.msk [vmem:[%s462_s4 + $0x40] sm:$0xff] %vm250_vm1, %v242_v28  ;;  %v235_v33 = vadd.f32 %v289_v11, %v212_v29  ;;  %v243_v34 = vadd.f32 %v289_v11, %v220_v30 }
  0xe0   :  { %254 = vst.msk [vmem:[%s462_s4 + $0x18] sm:$0xff] %vm250_vm1, %v237_v31  ;;  %262 = vst.msk [vmem:[%s462_s4 + $0x58] sm:$0xff] %vm250_vm1, %v245_v32 }
  0xe1   :  { %252 = vst.msk [vmem:[%s462_s4 + $0x8] sm:$0xff] %vm250_vm1, %v235_v33  ;;  %260 = vst.msk [vmem:[%s462_s4 + $0x48] sm:$0xff] %vm250_vm1, %v243_v34  ;;  %v307_v35 = vpop.f32.mrb[4].mxu0  ;;  %v315_v36 = vpop.f32.mrb[4].mxu1 }
  0xe2   :  { %v217_v37 = vmul.f32 %v307_v35, %v288_v9  ;;  %v225_v38 = vmul.f32 %v315_v36, %v288_v9  ;;  %v157_v39 = vpop.f32.mrb[5].mxu0  ;;  %v189_v40 = vpop.f32.mrb[5].mxu1 }
  0xe3   :  { %v215_v41 = vmul.f32 %v288_v9, %v157_v39  ;;  %v223_v42 = vmul.f32 %v288_v9, %v189_v40  ;;  %v308_v43 = vpop.f32.mrb[6].mxu0  ;;  %v316_v44 = vpop.f32.mrb[6].mxu1 }
  0xe4   :  { %v240_v45 = vadd.f32 %v289_v11, %v217_v37  ;;  %v248_v46 = vadd.f32 %v289_v11, %v225_v38  ;;  %v218_v47 = vmul.f32 %v308_v43, %v288_v9  ;;  %v226_v48 = vmul.f32 %v316_v44, %v288_v9  ;;  %v160_v49 = vpop.f32.mrb[7].mxu0  ;;  %v192_v50 = vpop.f32.mrb[7].mxu1 }
  0xe5   :  { %v238_v51 = vadd.f32 %v289_v11, %v215_v41  ;;  %v246_v52 = vadd.f32 %v289_v11, %v223_v42  ;;  %v216_v53 = vmul.f32 %v288_v9, %v160_v49  ;;  %v224_v54 = vmul.f32 %v288_v9, %v192_v50 }
  0xe6   :  { %257 = vst.msk [vmem:[%s462_s4 + $0x30] sm:$0xff] %vm250_vm1, %v240_v45  ;;  %265 = vst.msk [vmem:[%s462_s4 + $0x70] sm:$0xff] %vm250_vm1, %v248_v46  ;;  %v241_v55 = vadd.f32 %v289_v11, %v218_v47  ;;  %v249_v56 = vadd.f32 %v289_v11, %v226_v48 }
  0xe7   :  { %255 = vst.msk [vmem:[%s462_s4 + $0x20] sm:$0xff] %vm250_vm1, %v238_v51  ;;  %263 = vst.msk [vmem:[%s462_s4 + $0x60] sm:$0xff] %vm250_vm1, %v246_v52  ;;  %v239_v57 = vadd.f32 %v289_v11, %v216_v53  ;;  %v247_v58 = vadd.f32 %v289_v11, %v224_v54 }
  0xe8   :  { %258 = vst.msk [vmem:[%s462_s4 + $0x38] sm:$0xff] %vm250_vm1, %v241_v55  ;;  %266 = vst.msk [vmem:[%s462_s4 + $0x78] sm:$0xff] %vm250_vm1, %v249_v56 }
  0xe9   :  { %256 = vst.msk [vmem:[%s462_s4 + $0x28] sm:$0xff] %vm250_vm1, %v239_v57  ;;  %264 = vst.msk [vmem:[%s462_s4 + $0x68] sm:$0xff] %vm250_vm1, %v247_v58 }

// kernel: resnet_forward.36
= control target key start
LH: loop header
LB: loop body
LE: loop exit
PB: predicated region body
PF: predicated region fallthrough
CT: control target
= control target key end

     0   :  { %vm85_vm0 = vcmask 130048   ;;  %vm301_vm1 = vcmask 523264   ;;  %s598_s1 = inlined_call_operand.vmem [shape: bf16[16,64], index: 1, kind: input, shape index: {}]   ;;  %s599_s0 = inlined_call_operand.vmem [shape: bf16[128,16], index: 0, kind: input, shape index: {}]   ;;  %s600_s2 = inlined_call_operand.vmem [shape: f32[1,64], index: 2, kind: input, shape index: {}]   ;;  %s601_s3 = inlined_call_operand.vmem [shape: f32[1,64], index: 3, kind: input, shape index: {}]   ;;  %s602_s4 = inlined_call_operand.vmem [shape: f32[128,64], index: 4, kind: input, shape index: {}]   ;;  %s603_s5 = inlined_call_operand.vmem [shape: f32[128,64], index: 5, kind: output, shape index: {}]  }
   0x1   :  { %v370_v0 = vld [vmem:[%s598_s1] sm:$0xff]   ;;  %v373_v3 = vld [vmem:[%s599_s0 + $0x8] sm:$0xff]   ;;  %v375_v5 = vld [vmem:[%s599_s0 + $0x10] sm:$0xff]  }
   0x2   :  { %v371_v1 = vld [vmem:[%s599_s0] sm:$0xff]   ;;  %350 = vmatprep.subr.bf16.mxu0 %v370_v0  ;;  %368 = vmatprep.subr.bf16.mxu1 %v370_v0  ;;  %v374_v4 = vld [vmem:[%s599_s0 + $0x28] sm:$0xff]   ;;  %v376_v6 = vld [vmem:[%s599_s0 + $0x30] sm:$0xff]  }
   0x3   :  { %v372_v2 = vld [vmem:[%s599_s0 + $0x20] sm:$0xff]   ;;  %351 = vmatpush3.bf16.msra.mxu0 %v370_v0  ;;  %369 = vmatpush3.bf16.msra.mxu1 %v370_v0  ;;  %v377_v7 = vld [vmem:[%s599_s0 + $0x18] sm:$0xff]   ;;  %v255_v17 = vld [vmem:[%s602_s4 + $0x10] sm:$0xff] }
   0x4   :  { %352 = vmatprep.mubr.msk.bf16.mxu0 %vm85_vm0, %v371_v1  ;;  %360 = vmatprep.mubr.msk.bf16.mxu1 %vm85_vm0, %v372_v2  ;;  %v378_v8 = vld [vmem:[%s599_s0 + $0x38] sm:$0xff]   ;;  %v447_v9 = vld [vmem:[%s600_s2] ss:$0 sm:$0xff]  ;;  %v263_v18 = vld [vmem:[%s602_s4 + $0x50] sm:$0xff] }
   0x5   :  { %v452_v11 = vld [vmem:[%s601_s3] ss:$0 sm:$0xff]  ;;  %v256_v33 = vld [vmem:[%s602_s4 + $0x18] sm:$0xff]  ;;  %v254_v41 = vld [vmem:[%s602_s4 + $0x8] sm:$0xff] }
   0x6   :  { %353 = vmatmul.mubr.msk.bf16.vlgmr.msra.gmra.mrb[0].mxu0 %vm85_vm0, %v373_v3  ;;  %361 = vmatmul.mubr.msk.bf16.vlgmr.msra.gmra.mrb[0].mxu1 %vm85_vm0, %v374_v4  ;;  %v253_v25 = vld [vmem:[%s602_s4] sm:$0xff]  ;;  %v264_v34 = vld [vmem:[%s602_s4 + $0x58] sm:$0xff]  ;;  %v262_v42 = vld [vmem:[%s602_s4 + $0x48] sm:$0xff] }
   0x7   :  { %356 = vmatprep.mubr.msk.bf16.mxu0 %vm85_vm0, %v375_v5  ;;  %364 = vmatprep.mubr.msk.bf16.mxu1 %vm85_vm0, %v376_v6  ;;  %v261_v26 = vld [vmem:[%s602_s4 + $0x40] sm:$0xff]  ;;  %v259_v1 = vld [vmem:[%s602_s4 + $0x30] sm:$0xff] }
   0x8   :  { %v267_v2 = vld [vmem:[%s602_s4 + $0x70] sm:$0xff] }
   0xe   :  { %357 = vmatmul.mubr.msk.bf16.gmra.mrb[4].mxu0 %vm85_vm0, %v377_v7  ;;  %365 = vmatmul.mubr.msk.bf16.gmra.mrb[4].mxu1 %vm85_vm0, %v378_v8 }
  0xd9   :  { %v354_v10 = vpop.f32.mrb[0].mxu0  ;;  %v362_v12 = vpop.f32.mrb[0].mxu1 }
  0xda   :  { %v216_v13 = vmul.f32 %v354_v10, %v447_v9  ;;  %v224_v14 = vmul.f32 %v362_v12, %v447_v9  ;;  %v144_v15 = vpop.f32.mrb[1].mxu0  ;;  %v176_v16 = vpop.f32.mrb[1].mxu1  ;;  %v257_v10 = vld [vmem:[%s602_s4 + $0x20] sm:$0xff] }
  0xdb   :  { %v214_v19 = vmul.f32 %v447_v9, %v144_v15  ;;  %v222_v20 = vmul.f32 %v447_v9, %v176_v16  ;;  %v355_v21 = vpop.f32.mrb[2].mxu0  ;;  %v363_v22 = vpop.f32.mrb[2].mxu1  ;;  %v265_v12 = vld [vmem:[%s602_s4 + $0x60] sm:$0xff] }
  0xdc   :  { %v239_v23 = vadd.f32 %v452_v11, %v216_v13  ;;  %v247_v24 = vadd.f32 %v452_v11, %v224_v14  ;;  %v217_v27 = vmul.f32 %v355_v21, %v447_v9  ;;  %v225_v28 = vmul.f32 %v363_v22, %v447_v9  ;;  %v147_v29 = vpop.f32.mrb[3].mxu0  ;;  %v179_v30 = vpop.f32.mrb[3].mxu1 }
  0xdd   :  { %v237_v31 = vadd.f32 %v452_v11, %v214_v19  ;;  %v245_v32 = vadd.f32 %v452_v11, %v222_v20  ;;  %v215_v35 = vmul.f32 %v447_v9, %v147_v29  ;;  %v223_v36 = vmul.f32 %v447_v9, %v179_v30  ;;  %v260_v19 = vld [vmem:[%s602_s4 + $0x38] sm:$0xff] }
  0xde   :  { %v271_v37 = vadd.f32 %v255_v17, %v239_v23  ;;  %v279_v38 = vadd.f32 %v263_v18, %v247_v24  ;;  %v240_v39 = vadd.f32 %v452_v11, %v217_v27  ;;  %v248_v40 = vadd.f32 %v452_v11, %v225_v28  ;;  %v268_v20 = vld [vmem:[%s602_s4 + $0x78] sm:$0xff]  ;;  %v258_v27 = vld [vmem:[%s602_s4 + $0x28] sm:$0xff] }
  0xdf   :  { %v269_v43 = vadd.f32 %v253_v25, %v237_v31  ;;  %v277_v44 = vadd.f32 %v261_v26, %v245_v32  ;;  %v238_v45 = vadd.f32 %v452_v11, %v215_v35  ;;  %v246_v46 = vadd.f32 %v452_v11, %v223_v36  ;;  %v266_v28 = vld [vmem:[%s602_s4 + $0x68] sm:$0xff] }
  0xe0   :  { %v287_v47 = vmax.f32 %v271_v37, 0.0  ;;  %v295_v48 = vmax.f32 %v279_v38, 0.0  ;;  %v272_v49 = vadd.f32 %v256_v33, %v240_v39  ;;  %v280_v50 = vadd.f32 %v264_v34, %v248_v40 }
  0xe1   :  { %v285_v51 = vmax.f32 %v269_v43, 0.0  ;;  %v293_v52 = vmax.f32 %v277_v44, 0.0  ;;  %v270_v53 = vadd.f32 %v254_v41, %v238_v45  ;;  %v278_v54 = vadd.f32 %v262_v42, %v246_v46  ;;  %v358_v55 = vpop.f32.mrb[4].mxu0  ;;  %v366_v56 = vpop.f32.mrb[4].mxu1 }
  0xe2   :  { %304 = vst.msk [vmem:[%s603_s5 + $0x10] sm:$0xff] %vm301_vm1, %v287_v47  ;;  %312 = vst.msk [vmem:[%s603_s5 + $0x50] sm:$0xff] %vm301_vm1, %v295_v48  ;;  %v288_v57 = vmax.f32 %v272_v49, 0.0  ;;  %v296_v58 = vmax.f32 %v280_v50, 0.0  ;;  %v220_v59 = vmul.f32 %v358_v55, %v447_v9  ;;  %v228_v60 = vmul.f32 %v366_v56, %v447_v9  ;;  %v160_v61 = vpop.f32.mrb[5].mxu0  ;;  %v192_v62 = vpop.f32.mrb[5].mxu1 }
  0xe3   :  { %302 = vst.msk [vmem:[%s603_s5] sm:$0xff] %vm301_vm1, %v285_v51  ;;  %310 = vst.msk [vmem:[%s603_s5 + $0x40] sm:$0xff] %vm301_vm1, %v293_v52  ;;  %v286_v63 = vmax.f32 %v270_v53, 0.0  ;;  %v294_v0 = vmax.f32 %v278_v54, 0.0  ;;  %v218_v3 = vmul.f32 %v447_v9, %v160_v61  ;;  %v226_v4 = vmul.f32 %v447_v9, %v192_v62  ;;  %v359_v5 = vpop.f32.mrb[6].mxu0  ;;  %v367_v6 = vpop.f32.mrb[6].mxu1 }
  0xe4   :  { %305 = vst.msk [vmem:[%s603_s5 + $0x18] sm:$0xff] %vm301_vm1, %v288_v57  ;;  %313 = vst.msk [vmem:[%s603_s5 + $0x58] sm:$0xff] %vm301_vm1, %v296_v58  ;;  %v243_v7 = vadd.f32 %v452_v11, %v220_v59  ;;  %v251_v8 = vadd.f32 %v452_v11, %v228_v60  ;;  %v221_v13 = vmul.f32 %v359_v5, %v447_v9  ;;  %v163_v15 = vpop.f32.mrb[7].mxu0  ;;  %v195_v16 = vpop.f32.mrb[7].mxu1 }
  0xe5   :  { %v229_v14 = vmul.f32 %v367_v6, %v447_v9  ;;  %303 = vst.msk [vmem:[%s603_s5 + $0x8] sm:$0xff] %vm301_vm1, %v286_v63  ;;  %311 = vst.msk [vmem:[%s603_s5 + $0x48] sm:$0xff] %vm301_vm1, %v294_v0  ;;  %v241_v17 = vadd.f32 %v452_v11, %v218_v3  ;;  %v249_v18 = vadd.f32 %v452_v11, %v226_v4 }
  0xe6   :  { %v219_v21 = vmul.f32 %v447_v9, %v163_v15  ;;  %v227_v22 = vmul.f32 %v447_v9, %v195_v16  ;;  %v275_v23 = vadd.f32 %v259_v1, %v243_v7  ;;  %v283_v24 = vadd.f32 %v267_v2, %v251_v8 }
  0xe7   :  { %v244_v25 = vadd.f32 %v452_v11, %v221_v13  ;;  %v252_v26 = vadd.f32 %v452_v11, %v229_v14  ;;  %v273_v29 = vadd.f32 %v257_v10, %v241_v17  ;;  %v281_v30 = vadd.f32 %v265_v12, %v249_v18 }
  0xe8   :  { %v242_v31 = vadd.f32 %v452_v11, %v219_v21  ;;  %v250_v9 = vadd.f32 %v452_v11, %v227_v22  ;;  %v291_v32 = vmax.f32 %v275_v23, 0.0  ;;  %v299_v33 = vmax.f32 %v283_v24, 0.0 }
  0xe9   :  { %v276_v34 = vadd.f32 %v260_v19, %v244_v25  ;;  %v284_v35 = vadd.f32 %v268_v20, %v252_v26  ;;  %v289_v36 = vmax.f32 %v273_v29, 0.0  ;;  %v297_v37 = vmax.f32 %v281_v30, 0.0 }
  0xea   :  { %v274_v38 = vadd.f32 %v258_v27, %v242_v31  ;;  %v282_v39 = vadd.f32 %v266_v28, %v250_v9  ;;  %308 = vst.msk [vmem:[%s603_s5 + $0x30] sm:$0xff] %vm301_vm1, %v291_v32  ;;  %316 = vst.msk [vmem:[%s603_s5 + $0x70] sm:$0xff] %vm301_vm1, %v299_v33 }
  0xeb   :  { %v292_v40 = vmax.f32 %v276_v34, 0.0  ;;  %v300_v11 = vmax.f32 %v284_v35, 0.0  ;;  %306 = vst.msk [vmem:[%s603_s5 + $0x20] sm:$0xff] %vm301_vm1, %v289_v36  ;;  %314 = vst.msk [vmem:[%s603_s5 + $0x60] sm:$0xff] %vm301_vm1, %v297_v37 }
  0xec   :  { %v290_v41 = vmax.f32 %v274_v38, 0.0  ;;  %v298_v42 = vmax.f32 %v282_v39, 0.0 }
  0xed   :  { %309 = vst.msk [vmem:[%s603_s5 + $0x38] sm:$0xff] %vm301_vm1, %v292_v40  ;;  %317 = vst.msk [vmem:[%s603_s5 + $0x78] sm:$0xff] %vm301_vm1, %v300_v11 }
  0xee   :  { %307 = vst.msk [vmem:[%s603_s5 + $0x28] sm:$0xff] %vm301_vm1, %v290_v41  ;;  %315 = vst.msk [vmem:[%s603_s5 + $0x68] sm:$0xff] %vm301_vm1, %v298_v42 }

// kernel: resnet_forward.37
= control target key start
LH: loop header
LB: loop body
LE: loop exit
PB: predicated region body
PF: predicated region fallthrough
CT: control target
= control target key end

     0   :  { %vm106_vm0 = vcmask 523264   ;;  %vm290_vm1 = vcmask 130048   ;;  %s564_s1 = inlined_call_operand.vmem [shape: bf16[64,16], index: 1, kind: input, shape index: {}]   ;;  %s565_s0 = inlined_call_operand.vmem [shape: bf16[128,64], index: 0, kind: input, shape index: {}]   ;;  %s566_s2 = inlined_call_operand.vmem [shape: f32[1,16], index: 2, kind: input, shape index: {}]   ;;  %s567_s3 = inlined_call_operand.vmem [shape: f32[1,16], index: 3, kind: input, shape index: {}]   ;;  %s568_s4 = inlined_call_operand.vmem [shape: f32[128,16], index: 4, kind: output, shape index: {}]  }
   0x1   :  { %v377_v0 = vld [vmem:[%s564_s1] sm:$0xff]   ;;  %v378_v1 = vld [vmem:[%s564_s1 + $0x8] sm:$0xff]   ;;  %v379_v2 = vld [vmem:[%s564_s1 + $0x10] sm:$0xff]  }
   0x2   :  { %345 = vmatprep.subr.bf16.mxu0 %v377_v0  ;;  %369 = vmatprep.subr.bf16.mxu1 %v377_v0  ;;  %v381_v3 = vld [vmem:[%s565_s0] sm:$0xff]   ;;  %v380_v5 = vld [vmem:[%s564_s1 + $0x18] sm:$0xff]   ;;  %v383_v6 = vld [vmem:[%s565_s0 + $0x8] sm:$0xff]  }
   0x3   :  { %346 = vmatpush3.bf16.msra.mxu0 %v377_v0  ;;  %373 = vmatpush3.bf16.msra.mxu1 %v377_v0  ;;  %v382_v4 = vld [vmem:[%s565_s0 + $0x20] sm:$0xff]   ;;  %v384_v7 = vld [vmem:[%s565_s0 + $0x28] sm:$0xff]   ;;  %v385_v8 = vld [vmem:[%s565_s0 + $0x10] sm:$0xff]  }
   0x4   :  { %347 = vmatprep.subr.bf16.mxu0 %v378_v1  ;;  %370 = vmatprep.subr.bf16.mxu1 %v378_v1  ;;  %v386_v9 = vld [vmem:[%s565_s0 + $0x30] sm:$0xff]   ;;  %v387_v10 = vld [vmem:[%s565_s0 + $0x18] sm:$0xff]   ;;  %v461_v12 = vld [vmem:[%s566_s2] ss:$0 sm:$0xff] }
   0x5   :  { %353 = vmatprep.mubr.msk.bf16.mxu0 %vm106_vm0, %v381_v3  ;;  %361 = vmatprep.mubr.msk.bf16.mxu1 %vm106_vm0, %v382_v4  ;;  %v388_v11 = vld [vmem:[%s565_s0 + $0x38] sm:$0xff]   ;;  %v466_v14 = vld [vmem:[%s567_s3] ss:$0 sm:$0xff] }
   0x7   :  { %348 = vmatpush3.bf16.msra.mxu0 %v378_v1  ;;  %374 = vmatpush3.bf16.msra.mxu1 %v378_v1 }
   0x8   :  { %349 = vmatprep.subr.bf16.mxu0 %v379_v2  ;;  %371 = vmatprep.subr.bf16.mxu1 %v379_v2 }
   0xb   :  { %350 = vmatpush3.bf16.msra.mxu0 %v379_v2  ;;  %375 = vmatpush3.bf16.msra.mxu1 %v379_v2 }
   0xc   :  { %351 = vmatprep.subr.bf16.mxu0 %v380_v5  ;;  %372 = vmatprep.subr.bf16.mxu1 %v380_v5 }
   0xf   :  { %352 = vmatpush3.bf16.msra.mxu0 %v380_v5  ;;  %376 = vmatpush3.bf16.msra.mxu1 %v380_v5 }
  0x12   :  { %354 = vmatmul.mubr.msk.bf16.vlgmr.msra.gmra.mrb[0].mxu0 %vm106_vm0, %v383_v6  ;;  %362 = vmatmul.mubr.msk.bf16.vlgmr.msra.gmra.mrb[0].mxu1 %vm106_vm0, %v384_v7 }
  0x13   :  { %357 = vmatprep.mubr.msk.bf16.mxu0 %vm106_vm0, %v385_v8  ;;  %365 = vmatprep.mubr.msk.bf16.mxu1 %vm106_vm0, %v386_v9 }
  0x1a   :  { %358 = vmatmul.mubr.msk.bf16.gmra.mrb[4].mxu0 %vm106_vm0, %v387_v10  ;;  %366 = vmatmul.mubr.msk.bf16.gmra.mrb[4].mxu1 %vm106_vm0, %v388_v11 }
  0xe5   :  { %v355_v13 = vpop.f32.mrb[0].mxu0  ;;  %v363_v15 = vpop.f32.mrb[0].mxu1 }
  0xe6   :  { %v237_v16 = vmul.f32 %v355_v13, %v461_v12  ;;  %v245_v17 = vmul.f32 %v363_v15, %v461_v12  ;;  %v165_v18 = vpop.f32.mrb[1].mxu0  ;;  %v197_v19 = vpop.f32.mrb[1].mxu1 }
  0xe7   :  { %v235_v20 = vmul.f32 %v461_v12, %v165_v18  ;;  %v243_v21 = vmul.f32 %v461_v12, %v197_v19  ;;  %v356_v22 = vpop.f32.mrb[2].mxu0  ;;  %v364_v23 = vpop.f32.mrb[2].mxu1 }
  0xe8   :  { %v260_v24 = vadd.f32 %v466_v14, %v237_v16  ;;  %v268_v25 = vadd.f32 %v466_v14, %v245_v17  ;;  %v238_v26 = vmul.f32 %v356_v22, %v461_v12  ;;  %v246_v27 = vmul.f32 %v364_v23, %v461_v12  ;;  %v168_v28 = vpop.f32.mrb[3].mxu0  ;;  %v200_v29 = vpop.f32.mrb[3].mxu1 }
  0xe9   :  { %v258_v30 = vadd.f32 %v466_v14, %v235_v20  ;;  %v266_v31 = vadd.f32 %v466_v14, %v243_v21  ;;  %v236_v32 = vmul.f32 %v461_v12, %v168_v28  ;;  %v244_v33 = vmul.f32 %v461_v12, %v200_v29 }
  0xea   :  { %v276_v34 = vmax.f32 %v260_v24, 0.0  ;;  %v284_v35 = vmax.f32 %v268_v25, 0.0  ;;  %v261_v36 = vadd.f32 %v466_v14, %v238_v26  ;;  %v269_v37 = vadd.f32 %v466_v14, %v246_v27 }
  0xeb   :  { %v274_v38 = vmax.f32 %v258_v30, 0.0  ;;  %v282_v39 = vmax.f32 %v266_v31, 0.0  ;;  %v259_v40 = vadd.f32 %v466_v14, %v236_v32  ;;  %v267_v41 = vadd.f32 %v466_v14, %v244_v33 }
  0xec   :  { %293 = vst.msk [vmem:[%s568_s4 + $0x10] sm:$0xff] %vm290_vm1, %v276_v34  ;;  %301 = vst.msk [vmem:[%s568_s4 + $0x50] sm:$0xff] %vm290_vm1, %v284_v35  ;;  %v277_v42 = vmax.f32 %v261_v36, 0.0  ;;  %v285_v43 = vmax.f32 %v269_v37, 0.0 }
  0xed   :  { %291 = vst.msk [vmem:[%s568_s4] sm:$0xff] %vm290_vm1, %v274_v38  ;;  %299 = vst.msk [vmem:[%s568_s4 + $0x40] sm:$0xff] %vm290_vm1, %v282_v39  ;;  %v275_v44 = vmax.f32 %v259_v40, 0.0  ;;  %v283_v45 = vmax.f32 %v267_v41, 0.0  ;;  %v359_v46 = vpop.f32.mrb[4].mxu0  ;;  %v367_v47 = vpop.f32.mrb[4].mxu1 }
  0xee   :  { %294 = vst.msk [vmem:[%s568_s4 + $0x18] sm:$0xff] %vm290_vm1, %v277_v42  ;;  %302 = vst.msk [vmem:[%s568_s4 + $0x58] sm:$0xff] %vm290_vm1, %v285_v43  ;;  %v241_v48 = vmul.f32 %v359_v46, %v461_v12  ;;  %v249_v49 = vmul.f32 %v367_v47, %v461_v12  ;;  %v181_v50 = vpop.f32.mrb[5].mxu0  ;;  %v213_v51 = vpop.f32.mrb[5].mxu1 }
  0xef   :  { %292 = vst.msk [vmem:[%s568_s4 + $0x8] sm:$0xff] %vm290_vm1, %v275_v44  ;;  %300 = vst.msk [vmem:[%s568_s4 + $0x48] sm:$0xff] %vm290_vm1, %v283_v45  ;;  %v239_v52 = vmul.f32 %v461_v12, %v181_v50  ;;  %v247_v53 = vmul.f32 %v461_v12, %v213_v51  ;;  %v360_v54 = vpop.f32.mrb[6].mxu0  ;;  %v368_v55 = vpop.f32.mrb[6].mxu1 }
  0xf0   :  { %v264_v56 = vadd.f32 %v466_v14, %v241_v48  ;;  %v272_v57 = vadd.f32 %v466_v14, %v249_v49  ;;  %v242_v58 = vmul.f32 %v360_v54, %v461_v12  ;;  %v250_v59 = vmul.f32 %v368_v55, %v461_v12  ;;  %v184_v60 = vpop.f32.mrb[7].mxu0  ;;  %v216_v61 = vpop.f32.mrb[7].mxu1 }
  0xf1   :  { %v262_v62 = vadd.f32 %v466_v14, %v239_v52  ;;  %v270_v63 = vadd.f32 %v466_v14, %v247_v53  ;;  %v240_v0 = vmul.f32 %v461_v12, %v184_v60  ;;  %v248_v1 = vmul.f32 %v461_v12, %v216_v61 }
  0xf2   :  { %v280_v2 = vmax.f32 %v264_v56, 0.0  ;;  %v288_v3 = vmax.f32 %v272_v57, 0.0  ;;  %v265_v4 = vadd.f32 %v466_v14, %v242_v58  ;;  %v273_v5 = vadd.f32 %v466_v14, %v250_v59 }
  0xf3   :  { %v278_v6 = vmax.f32 %v262_v62, 0.0  ;;  %v286_v7 = vmax.f32 %v270_v63, 0.0  ;;  %v263_v8 = vadd.f32 %v466_v14, %v240_v0  ;;  %v271_v9 = vadd.f32 %v466_v14, %v248_v1 }
  0xf4   :  { %297 = vst.msk [vmem:[%s568_s4 + $0x30] sm:$0xff] %vm290_vm1, %v280_v2  ;;  %305 = vst.msk [vmem:[%s568_s4 + $0x70] sm:$0xff] %vm290_vm1, %v288_v3  ;;  %v281_v10 = vmax.f32 %v265_v4, 0.0  ;;  %v289_v11 = vmax.f32 %v273_v5, 0.0 }
  0xf5   :  { %295 = vst.msk [vmem:[%s568_s4 + $0x20] sm:$0xff] %vm290_vm1, %v278_v6  ;;  %303 = vst.msk [vmem:[%s568_s4 + $0x60] sm:$0xff] %vm290_vm1, %v286_v7  ;;  %v279_v12 = vmax.f32 %v263_v8, 0.0  ;;  %v287_v13 = vmax.f32 %v271_v9, 0.0 }
  0xf6   :  { %298 = vst.msk [vmem:[%s568_s4 + $0x38] sm:$0xff] %vm290_vm1, %v281_v10  ;;  %306 = vst.msk [vmem:[%s568_s4 + $0x78] sm:$0xff] %vm290_vm1, %v289_v11 }
  0xf7   :  { %296 = vst.msk [vmem:[%s568_s4 + $0x28] sm:$0xff] %vm290_vm1, %v279_v12  ;;  %304 = vst.msk [vmem:[%s568_s4 + $0x68] sm:$0xff] %vm290_vm1, %v287_v13 }

// kernel: resnet_forward.40
= control target key start
LH: loop header
LB: loop body
LE: loop exit
PB: predicated region body
PF: predicated region fallthrough
CT: control target
= control target key end

     0   :  { %vm106_vm0 = vcmask 523264   ;;  %vm290_vm1 = vcmask 261120   ;;  %s564_s1 = inlined_call_operand.vmem [shape: bf16[64,32], index: 1, kind: input, shape index: {}]   ;;  %s565_s0 = inlined_call_operand.vmem [shape: bf16[128,64], index: 0, kind: input, shape index: {}]   ;;  %s566_s2 = inlined_call_operand.vmem [shape: f32[1,32], index: 2, kind: input, shape index: {}]   ;;  %s567_s3 = inlined_call_operand.vmem [shape: f32[1,32], index: 3, kind: input, shape index: {}]   ;;  %s568_s4 = inlined_call_operand.vmem [shape: f32[128,32], index: 4, kind: output, shape index: {}]  }
   0x1   :  { %v377_v0 = vld [vmem:[%s564_s1] sm:$0xff]   ;;  %v378_v1 = vld [vmem:[%s564_s1 + $0x8] sm:$0xff]   ;;  %v379_v2 = vld [vmem:[%s564_s1 + $0x10] sm:$0xff]  }
   0x2   :  { %345 = vmatprep.subr.bf16.mxu0 %v377_v0  ;;  %369 = vmatprep.subr.bf16.mxu1 %v377_v0  ;;  %v381_v3 = vld [vmem:[%s565_s0] sm:$0xff]   ;;  %v380_v5 = vld [vmem:[%s564_s1 + $0x18] sm:$0xff]   ;;  %v383_v6 = vld [vmem:[%s565_s0 + $0x8] sm:$0xff]  }
   0x3   :  { %346 = vmatpush3.bf16.msra.mxu0 %v377_v0  ;;  %373 = vmatpush3.bf16.msra.mxu1 %v377_v0  ;;  %v382_v4 = vld [vmem:[%s565_s0 + $0x20] sm:$0xff]   ;;  %v384_v7 = vld [vmem:[%s565_s0 + $0x28] sm:$0xff]   ;;  %v385_v8 = vld [vmem:[%s565_s0 + $0x10] sm:$0xff]  }
   0x4   :  { %347 = vmatprep.subr.bf16.mxu0 %v378_v1  ;;  %370 = vmatprep.subr.bf16.mxu1 %v378_v1  ;;  %v386_v9 = vld [vmem:[%s565_s0 + $0x30] sm:$0xff]   ;;  %v387_v10 = vld [vmem:[%s565_s0 + $0x18] sm:$0xff]   ;;  %v461_v12 = vld [vmem:[%s566_s2] ss:$0 sm:$0xff] }
   0x5   :  { %353 = vmatprep.mubr.msk.bf16.mxu0 %vm106_vm0, %v381_v3  ;;  %361 = vmatprep.mubr.msk.bf16.mxu1 %vm106_vm0, %v382_v4  ;;  %v388_v11 = vld [vmem:[%s565_s0 + $0x38] sm:$0xff]   ;;  %v466_v14 = vld [vmem:[%s567_s3] ss:$0 sm:$0xff] }
   0x7   :  { %348 = vmatpush3.bf16.msra.mxu0 %v378_v1  ;;  %374 = vmatpush3.bf16.msra.mxu1 %v378_v1 }
   0x8   :  { %349 = vmatprep.subr.bf16.mxu0 %v379_v2  ;;  %371 = vmatprep.subr.bf16.mxu1 %v379_v2 }
   0xb   :  { %350 = vmatpush3.bf16.msra.mxu0 %v379_v2  ;;  %375 = vmatpush3.bf16.msra.mxu1 %v379_v2 }
   0xc   :  { %351 = vmatprep.subr.bf16.mxu0 %v380_v5  ;;  %372 = vmatprep.subr.bf16.mxu1 %v380_v5 }
   0xf   :  { %352 = vmatpush3.bf16.msra.mxu0 %v380_v5  ;;  %376 = vmatpush3.bf16.msra.mxu1 %v380_v5 }
  0x12   :  { %354 = vmatmul.mubr.msk.bf16.vlgmr.msra.gmra.mrb[0].mxu0 %vm106_vm0, %v383_v6  ;;  %362 = vmatmul.mubr.msk.bf16.vlgmr.msra.gmra.mrb[0].mxu1 %vm106_vm0, %v384_v7 }
  0x13   :  { %357 = vmatprep.mubr.msk.bf16.mxu0 %vm106_vm0, %v385_v8  ;;  %365 = vmatprep.mubr.msk.bf16.mxu1 %vm106_vm0, %v386_v9 }
  0x1a   :  { %358 = vmatmul.mubr.msk.bf16.gmra.mrb[4].mxu0 %vm106_vm0, %v387_v10  ;;  %366 = vmatmul.mubr.msk.bf16.gmra.mrb[4].mxu1 %vm106_vm0, %v388_v11 }
  0xe5   :  { %v355_v13 = vpop.f32.mrb[0].mxu0  ;;  %v363_v15 = vpop.f32.mrb[0].mxu1 }
  0xe6   :  { %v237_v16 = vmul.f32 %v355_v13, %v461_v12  ;;  %v245_v17 = vmul.f32 %v363_v15, %v461_v12  ;;  %v165_v18 = vpop.f32.mrb[1].mxu0  ;;  %v197_v19 = vpop.f32.mrb[1].mxu1 }
  0xe7   :  { %v235_v20 = vmul.f32 %v461_v12, %v165_v18  ;;  %v243_v21 = vmul.f32 %v461_v12, %v197_v19  ;;  %v356_v22 = vpop.f32.mrb[2].mxu0  ;;  %v364_v23 = vpop.f32.mrb[2].mxu1 }
  0xe8   :  { %v260_v24 = vadd.f32 %v466_v14, %v237_v16  ;;  %v268_v25 = vadd.f32 %v466_v14, %v245_v17  ;;  %v238_v26 = vmul.f32 %v356_v22, %v461_v12  ;;  %v246_v27 = vmul.f32 %v364_v23, %v461_v12  ;;  %v168_v28 = vpop.f32.mrb[3].mxu0  ;;  %v200_v29 = vpop.f32.mrb[3].mxu1 }
  0xe9   :  { %v258_v30 = vadd.f32 %v466_v14, %v235_v20  ;;  %v266_v31 = vadd.f32 %v466_v14, %v243_v21  ;;  %v236_v32 = vmul.f32 %v461_v12, %v168_v28  ;;  %v244_v33 = vmul.f32 %v461_v12, %v200_v29 }
  0xea   :  { %v276_v34 = vmax.f32 %v260_v24, 0.0  ;;  %v284_v35 = vmax.f32 %v268_v25, 0.0  ;;  %v261_v36 = vadd.f32 %v466_v14, %v238_v26  ;;  %v269_v37 = vadd.f32 %v466_v14, %v246_v27 }
  0xeb   :  { %v274_v38 = vmax.f32 %v258_v30, 0.0  ;;  %v282_v39 = vmax.f32 %v266_v31, 0.0  ;;  %v259_v40 = vadd.f32 %v466_v14, %v236_v32  ;;  %v267_v41 = vadd.f32 %v466_v14, %v244_v33 }
  0xec   :  { %293 = vst.msk [vmem:[%s568_s4 + $0x10] sm:$0xff] %vm290_vm1, %v276_v34  ;;  %301 = vst.msk [vmem:[%s568_s4 + $0x50] sm:$0xff] %vm290_vm1, %v284_v35  ;;  %v277_v42 = vmax.f32 %v261_v36, 0.0  ;;  %v285_v43 = vmax.f32 %v269_v37, 0.0 }
  0xed   :  { %291 = vst.msk [vmem:[%s568_s4] sm:$0xff] %vm290_vm1, %v274_v38  ;;  %299 = vst.msk [vmem:[%s568_s4 + $0x40] sm:$0xff] %vm290_vm1, %v282_v39  ;;  %v275_v44 = vmax.f32 %v259_v40, 0.0  ;;  %v283_v45 = vmax.f32 %v267_v41, 0.0  ;;  %v359_v46 = vpop.f32.mrb[4].mxu0  ;;  %v367_v47 = vpop.f32.mrb[4].mxu1 }
  0xee   :  { %294 = vst.msk [vmem:[%s568_s4 + $0x18] sm:$0xff] %vm290_vm1, %v277_v42  ;;  %302 = vst.msk [vmem:[%s568_s4 + $0x58] sm:$0xff] %vm290_vm1, %v285_v43  ;;  %v241_v48 = vmul.f32 %v359_v46, %v461_v12  ;;  %v249_v49 = vmul.f32 %v367_v47, %v461_v12  ;;  %v181_v50 = vpop.f32.mrb[5].mxu0  ;;  %v213_v51 = vpop.f32.mrb[5].mxu1 }
  0xef   :  { %292 = vst.msk [vmem:[%s568_s4 + $0x8] sm:$0xff] %vm290_vm1, %v275_v44  ;;  %300 = vst.msk [vmem:[%s568_s4 + $0x48] sm:$0xff] %vm290_vm1, %v283_v45  ;;  %v239_v52 = vmul.f32 %v461_v12, %v181_v50  ;;  %v247_v53 = vmul.f32 %v461_v12, %v213_v51  ;;  %v360_v54 = vpop.f32.mrb[6].mxu0  ;;  %v368_v55 = vpop.f32.mrb[6].mxu1 }
  0xf0   :  { %v264_v56 = vadd.f32 %v466_v14, %v241_v48  ;;  %v272_v57 = vadd.f32 %v466_v14, %v249_v49  ;;  %v242_v58 = vmul.f32 %v360_v54, %v461_v12  ;;  %v250_v59 = vmul.f32 %v368_v55, %v461_v12  ;;  %v184_v60 = vpop.f32.mrb[7].mxu0  ;;  %v216_v61 = vpop.f32.mrb[7].mxu1 }
  0xf1   :  { %v262_v62 = vadd.f32 %v466_v14, %v239_v52  ;;  %v270_v63 = vadd.f32 %v466_v14, %v247_v53  ;;  %v240_v0 = vmul.f32 %v461_v12, %v184_v60  ;;  %v248_v1 = vmul.f32 %v461_v12, %v216_v61 }
  0xf2   :  { %v280_v2 = vmax.f32 %v264_v56, 0.0  ;;  %v288_v3 = vmax.f32 %v272_v57, 0.0  ;;  %v265_v4 = vadd.f32 %v466_v14, %v242_v58  ;;  %v273_v5 = vadd.f32 %v466_v14, %v250_v59 }
  0xf3   :  { %v278_v6 = vmax.f32 %v262_v62, 0.0  ;;  %v286_v7 = vmax.f32 %v270_v63, 0.0  ;;  %v263_v8 = vadd.f32 %v466_v14, %v240_v0  ;;  %v271_v9 = vadd.f32 %v466_v14, %v248_v1 }
  0xf4   :  { %297 = vst.msk [vmem:[%s568_s4 + $0x30] sm:$0xff] %vm290_vm1, %v280_v2  ;;  %305 = vst.msk [vmem:[%s568_s4 + $0x70] sm:$0xff] %vm290_vm1, %v288_v3  ;;  %v281_v10 = vmax.f32 %v265_v4, 0.0  ;;  %v289_v11 = vmax.f32 %v273_v5, 0.0 }
  0xf5   :  { %295 = vst.msk [vmem:[%s568_s4 + $0x20] sm:$0xff] %vm290_vm1, %v278_v6  ;;  %303 = vst.msk [vmem:[%s568_s4 + $0x60] sm:$0xff] %vm290_vm1, %v286_v7  ;;  %v279_v12 = vmax.f32 %v263_v8, 0.0  ;;  %v287_v13 = vmax.f32 %v271_v9, 0.0 }
  0xf6   :  { %298 = vst.msk [vmem:[%s568_s4 + $0x38] sm:$0xff] %vm290_vm1, %v281_v10  ;;  %306 = vst.msk [vmem:[%s568_s4 + $0x78] sm:$0xff] %vm290_vm1, %v289_v11 }
  0xf7   :  { %296 = vst.msk [vmem:[%s568_s4 + $0x28] sm:$0xff] %vm290_vm1, %v279_v12  ;;  %304 = vst.msk [vmem:[%s568_s4 + $0x68] sm:$0xff] %vm290_vm1, %v287_v13 }

// kernel: resnet_forward.41
= control target key start
LH: loop header
LB: loop body
LE: loop exit
PB: predicated region body
PF: predicated region fallthrough
CT: control target
= control target key end

     0   :  { %vm200_vm0 = vcmask 261120   ;;  %s554_s1 = inlined_call_operand.vmem [shape: bf16[288,32], index: 1, kind: input, shape index: {}]   ;;  %s555_s0 = inlined_call_operand.vmem [shape: bf16[32,288], index: 0, kind: input, shape index: {}]   ;;  %s556_s2 = inlined_call_operand.vmem [shape: f32[1,32], index: 2, kind: input, shape index: {}]   ;;  %s557_s3 = inlined_call_operand.vmem [shape: f32[1,32], index: 3, kind: input, shape index: {}]   ;;  %s558_s4 = inlined_call_operand.vmem [shape: f32[32,32], index: 4, kind: output, shape index: {}]  }
   0x1   :  { %v407_v0 = vld [vmem:[%s554_s1 + $0x40] sm:$0xff]   ;;  %v409_v2 = vld [vmem:[%s554_s1 + $0x48] sm:$0xff]   ;;  %v411_v4 = vld [vmem:[%s554_s1 + $0x50] sm:$0xff]  }
   0x2   :  { %v408_v1 = vld [vmem:[%s554_s1] sm:$0xff]   ;;  %367 = vmatprep.subr.bf16.mxu0 %v407_v0  ;;  %v410_v3 = vld [vmem:[%s554_s1 + $0x8] sm:$0xff]   ;;  %v412_v5 = vld [vmem:[%s554_s1 + $0x10] sm:$0xff]  }
   0x3   :  { %368 = vmatpush3.bf16.msra.mxu0 %v408_v1  ;;  %v413_v6 = vld [vmem:[%s554_s1 + $0x58] sm:$0xff]   ;;  %v415_v8 = vld [vmem:[%s554_s1 + $0x60] sm:$0xff]   ;;  %v417_v11 = vld [vmem:[%s554_s1 + $0x68] sm:$0xff]  }
   0x4   :  { %369 = vmatprep.subr.bf16.mxu0 %v409_v2  ;;  %v414_v7 = vld [vmem:[%s554_s1 + $0x18] sm:$0xff]   ;;  %v421_v9 = vld [vmem:[%s554_s1 + $0x80] sm:$0xff]   ;;  %v418_v12 = vld [vmem:[%s554_s1 + $0x28] sm:$0xff]  }
   0x5   :  { %v416_v10 = vld [vmem:[%s554_s1 + $0x20] sm:$0xff]   ;;  %399 = vmatprep.subr.bf16.mxu1 %v421_v9  ;;  %v424_v13 = vld [vmem:[%s554_s1 + $0x88] sm:$0xff]   ;;  %v419_v14 = vld [vmem:[%s554_s1 + $0x70] sm:$0xff]  }
   0x6   :  { %400 = vmatpush3.bf16.msra.mxu1 %v421_v9  ;;  %v427_v15 = vld [vmem:[%s555_s0 + $0x4] ss:$12 sps:$4 sm:$0xff]   ;;  %v428_v16 = vld [vmem:[%s555_s0 + $0x8] ss:$12 sps:$4 sm:$0xff]   ;;  %v429_v17 = vld [vmem:[%s555_s0 + $0x20] ss:$12 sps:$4 sm:$0xff]  }
   0x7   :  { %370 = vmatpush3.bf16.msra.mxu0 %v410_v3  ;;  %401 = vmatprep.subr.bf16.mxu1 %v424_v13  ;;  %v420_v18 = vld [vmem:[%s554_s1 + $0x30] sm:$0xff]   ;;  %v422_v19 = vld [vmem:[%s554_s1 + $0x78] sm:$0xff]   ;;  %v425_v21 = vld [vmem:[%s555_s0] ss:$12 sps:$4 sm:$0xff]  }
   0x8   :  { %371 = vmatprep.subr.bf16.mxu0 %v411_v4  ;;  %239 = vmatprep.mubr.bf16.mxu0 %v427_v15  ;;  %v423_v20 = vld [vmem:[%s554_s1 + $0x38] sm:$0xff]   ;;  %v365_v33 = vld [vmem:[%s556_s2] ss:$0 sm:$0xff] }
   0x9   :  { %403 = vmatprep.mubr.msk.bf16.mxu1 %vm200_vm0, %v428_v16  ;;  %v430_v22 = vld [vmem:[%s555_s0 + $0x1c] ss:$12 sps:$4 sm:$0xff]   ;;  %v432_v23 = vld [vmem:[%s555_s0 + $0x18] ss:$12 sps:$4 sm:$0xff]   ;;  %v366_v36 = vld [vmem:[%s557_s3] ss:$0 sm:$0xff] }
   0xa   :  { %402 = vmatpush3.bf16.msra.mxu1 %v424_v13 }
   0xb   :  { %372 = vmatpush3.bf16.msra.mxu0 %v412_v5 }
   0xc   :  { %373 = vmatprep.subr.bf16.mxu0 %v413_v6 }
   0xd   :  { %404 = vmatmul.mubr.msk.bf16.vlgmr.msra.gmra.mrb[0].mxu1 %vm200_vm0, %v429_v17 }
   0xf   :  { %374 = vmatpush3.bf16.msra.mxu0 %v414_v7 }
  0x10   :  { %375 = vmatprep.subr.bf16.mxu0 %v415_v8 }
  0x13   :  { %376 = vmatpush3.bf16.msra.mxu0 %v416_v10 }
  0x14   :  { %377 = vmatprep.subr.bf16.mxu0 %v417_v11 }
  0x17   :  { %378 = vmatpush3.bf16.msra.mxu0 %v418_v12 }
  0x18   :  { %379 = vmatprep.subr.bf16.mxu0 %v419_v14 }
  0x1b   :  { %380 = vmatpush3.bf16.msra.mxu0 %v420_v18 }
  0x1c   :  { %381 = vmatprep.subr.bf16.mxu0 %v422_v19 }
  0x1f   :  { %382 = vmatpush3.bf16.msra.mxu0 %v423_v20 }
  0x22   :  { %240 = vmatmul.mubr.bf16.vlgmr.msra.gmra.mrb[0].mxu0 %v425_v21 }
  0x23   :  { %247 = vmatprep.mubr.bf16.mxu0 %v430_v22 }
  0x2a   :  { %248 = vmatmul.mubr.bf16.gmra.mrb[4].mxu0 %v432_v23 }
  0xe0   :  { %v405_v24 = vpop.f32.mrb[0].mxu1 }
  0xe1   :  { %v290_v25 = vpop.f32.mrb[1].mxu1 }
  0xe2   :  { %v406_v26 = vpop.f32.mrb[2].mxu1 }
  0xe3   :  { %v293_v27 = vpop.f32.mrb[3].mxu1 }
  0xf5   :  { %v383_v28 = vpop.f32.mrb[0].mxu0 }
  0xf6   :  { %v384_v29 = vpop.f32.mrb[1].mxu0 }
  0xf7   :  { %v385_v30 = vadd.f32 %v384_v29, %v383_v28  ;;  %v386_v31 = vpop.f32.mrb[2].mxu0 }
  0xf8   :  { %v387_v32 = vpop.f32.mrb[3].mxu0 }
  0xf9   :  { %v388_v34 = vadd.f32 %v387_v32, %v386_v31  ;;  %v291_v35 = vadd.f32 %v385_v30, %v290_v25 }
  0xfb   :  { %v312_v37 = vmul.f32 %v365_v33, %v291_v35  ;;  %v294_v38 = vadd.f32 %v388_v34, %v293_v27 }
  0xfd   :  { %v323_v39 = vadd.f32 %v366_v36, %v312_v37  ;;  %v313_v40 = vmul.f32 %v365_v33, %v294_v38  ;;  %v389_v41 = vpop.f32.mrb[4].mxu0 }
  0xfe   :  { %v390_v42 = vpop.f32.mrb[5].mxu0 }
  0xff   :  { %v327_v43 = vmax.f32 %v323_v39, 0.0  ;;  %v324_v44 = vadd.f32 %v366_v36, %v313_v40  ;;  %v391_v45 = vadd.f32 %v390_v42, %v389_v41  ;;  %v392_v46 = vpop.f32.mrb[6].mxu0 }
 0x100   :  { %v393_v47 = vpop.f32.mrb[7].mxu0 }
 0x101   :  { %331 = vst.msk [vmem:[%s558_s4] sm:$0xff] %vm200_vm0, %v327_v43  ;;  %v328_v48 = vmax.f32 %v324_v44, 0.0  ;;  %v299_v49 = vadd.f32 %v405_v24, %v391_v45  ;;  %v394_v50 = vadd.f32 %v393_v47, %v392_v46 }
 0x103   :  { %332 = vst.msk [vmem:[%s558_s4 + $0x8] sm:$0xff] %vm200_vm0, %v328_v48  ;;  %v314_v51 = vmul.f32 %v365_v33, %v299_v49  ;;  %v302_v52 = vadd.f32 %v406_v26, %v394_v50 }
 0x105   :  { %v325_v53 = vadd.f32 %v366_v36, %v314_v51  ;;  %v315_v54 = vmul.f32 %v365_v33, %v302_v52 }
 0x107   :  { %v329_v55 = vmax.f32 %v325_v53, 0.0  ;;  %v326_v56 = vadd.f32 %v366_v36, %v315_v54 }
 0x109   :  { %333 = vst.msk [vmem:[%s558_s4 + $0x10] sm:$0xff] %vm200_vm0, %v329_v55  ;;  %v330_v57 = vmax.f32 %v326_v56, 0.0 }
 0x10b   :  { %334 = vst.msk [vmem:[%s558_s4 + $0x18] sm:$0xff] %vm200_vm0, %v330_v57 }

// kernel: resnet_forward.42
= control target key start
LH: loop header
LB: loop body
LE: loop exit
PB: predicated region body
PF: predicated region fallthrough
CT: control target
= control target key end

     0   :  { %vm64_vm0 = vcmask 523264   ;;  %s245_s1 = inlined_call_operand.vmem [shape: bf16[64,128], index: 1, kind: input, shape index: {}]   ;;  %s246_s0 = inlined_call_operand.vmem [shape: bf16[32,64], index: 0, kind: input, shape index: {}]   ;;  %s247_s2 = inlined_call_operand.vmem [shape: f32[1,128], index: 2, kind: input, shape index: {}]   ;;  %s248_s3 = inlined_call_operand.vmem [shape: f32[1,128], index: 3, kind: input, shape index: {}]   ;;  %s249_s4 = inlined_call_operand.vmem [shape: f32[32,128], index: 4, kind: output, shape index: {}]  }
   0x1   :  { %v178_v0 = vld [vmem:[%s245_s1] sm:$0xff]   ;;  %v179_v1 = vld [vmem:[%s245_s1 + $0x8] sm:$0xff]   ;;  %v180_v2 = vld [vmem:[%s245_s1 + $0x10] sm:$0xff]  }
   0x2   :  { %166 = vmatprep.subr.bf16.mxu0 %v178_v0  ;;  %v182_v3 = vld [vmem:[%s246_s0] sm:$0xff]   ;;  %v181_v4 = vld [vmem:[%s245_s1 + $0x18] sm:$0xff]   ;;  %v183_v5 = vld [vmem:[%s246_s0 + $0x8] sm:$0xff]  }
   0x3   :  { %167 = vmatpush3.bf16.msra.mxu0 %v178_v0  ;;  %174 = vmatprep.mubr.msk.bf16.mxu0 %vm64_vm0, %v182_v3  ;;  %v158_v6 = vld [vmem:[%s247_s2] ss:$0 sm:$0xff] }
   0x4   :  { %168 = vmatprep.subr.bf16.mxu0 %v179_v1  ;;  %v159_v8 = vld [vmem:[%s248_s3] ss:$0 sm:$0xff] }
   0x7   :  { %169 = vmatpush3.bf16.msra.mxu0 %v179_v1 }
   0x8   :  { %170 = vmatprep.subr.bf16.mxu0 %v180_v2 }
   0xb   :  { %171 = vmatpush3.bf16.msra.mxu0 %v180_v2 }
   0xc   :  { %172 = vmatprep.subr.bf16.mxu0 %v181_v4 }
   0xf   :  { %173 = vmatpush3.bf16.msra.mxu0 %v181_v4 }
  0x12   :  { %175 = vmatmul.mubr.msk.bf16.vlgmr.msra.gmra.mrb[0].mxu0 %vm64_vm0, %v183_v5 }
  0xe5   :  { %v176_v7 = vpop.f32.mrb[0].mxu0 }
  0xe6   :  { %v129_v9 = vmul.f32 %v176_v7, %v158_v6  ;;  %v105_v10 = vpop.f32.mrb[1].mxu0 }
  0xe7   :  { %v127_v11 = vmul.f32 %v158_v6, %v105_v10  ;;  %v177_v12 = vpop.f32.mrb[2].mxu0 }
  0xe8   :  { %v140_v13 = vadd.f32 %v159_v8, %v129_v9  ;;  %v130_v14 = vmul.f32 %v177_v12, %v158_v6  ;;  %v108_v15 = vpop.f32.mrb[3].mxu0 }
  0xe9   :  { %v138_v16 = vadd.f32 %v159_v8, %v127_v11  ;;  %v128_v17 = vmul.f32 %v158_v6, %v108_v15 }
  0xea   :  { %144 = vst [vmem:[%s249_s4 + $0x10] sm:$0xff] %v140_v13  ;;  %v141_v18 = vadd.f32 %v159_v8, %v130_v14 }
  0xeb   :  { %142 = vst [vmem:[%s249_s4] sm:$0xff] %v138_v16  ;;  %v139_v19 = vadd.f32 %v159_v8, %v128_v17 }
  0xec   :  { %145 = vst [vmem:[%s249_s4 + $0x18] sm:$0xff] %v141_v18 }
  0xed   :  { %143 = vst [vmem:[%s249_s4 + $0x8] sm:$0xff] %v139_v19 }

// kernel: resnet_forward.43
= control target key start
LH: loop header
LB: loop body
LE: loop exit
PB: predicated region body
PF: predicated region fallthrough
CT: control target
= control target key end

     0   :  { %vm51_vm0 = vcmask 261120   ;;  %s245_s1 = inlined_call_operand.vmem [shape: bf16[32,128], index: 1, kind: input, shape index: {}]   ;;  %s246_s0 = inlined_call_operand.vmem [shape: bf16[32,32], index: 0, kind: input, shape index: {}]   ;;  %s247_s2 = inlined_call_operand.vmem [shape: f32[1,128], index: 2, kind: input, shape index: {}]   ;;  %s248_s3 = inlined_call_operand.vmem [shape: f32[1,128], index: 3, kind: input, shape index: {}]   ;;  %s249_s4 = inlined_call_operand.vmem [shape: f32[32,128], index: 4, kind: input, shape index: {}]   ;;  %s250_s5 = inlined_call_operand.vmem [shape: f32[32,128], index: 5, kind: output, shape index: {}]  }
   0x1   :  { %v169_v0 = vld [vmem:[%s245_s1] sm:$0xff]   ;;  %v170_v1 = vld [vmem:[%s245_s1 + $0x8] sm:$0xff]   ;;  %v131_v9 = vld [vmem:[%s249_s4 + $0x10] sm:$0xff] }
   0x2   :  { %161 = vmatprep.subr.bf16.mxu0 %v169_v0  ;;  %v171_v2 = vld [vmem:[%s246_s0] sm:$0xff]   ;;  %v172_v3 = vld [vmem:[%s246_s0 + $0x8] sm:$0xff]   ;;  %v132_v17 = vld [vmem:[%s249_s4 + $0x18] sm:$0xff] }
   0x3   :  { %162 = vmatpush3.bf16.msra.mxu0 %v169_v0  ;;  %165 = vmatprep.mubr.msk.bf16.mxu0 %vm51_vm0, %v171_v2  ;;  %v155_v4 = vld [vmem:[%s247_s2] ss:$0 sm:$0xff]  ;;  %v130_v21 = vld [vmem:[%s249_s4 + $0x8] sm:$0xff] }
   0x4   :  { %163 = vmatprep.subr.bf16.mxu0 %v170_v1  ;;  %v156_v6 = vld [vmem:[%s248_s3] ss:$0 sm:$0xff] }
   0x5   :  { %v129_v13 = vld [vmem:[%s249_s4] sm:$0xff] }
   0x7   :  { %164 = vmatpush3.bf16.msra.mxu0 %v170_v1 }
   0xa   :  { %166 = vmatmul.mubr.msk.bf16.vlgmr.msra.gmra.mrb[0].mxu0 %vm51_vm0, %v172_v3 }
  0xdd   :  { %v167_v5 = vpop.f32.mrb[0].mxu0 }
  0xde   :  { %v116_v7 = vmul.f32 %v167_v5, %v155_v4  ;;  %v92_v8 = vpop.f32.mrb[1].mxu0 }
  0xdf   :  { %v114_v10 = vmul.f32 %v155_v4, %v92_v8  ;;  %v168_v11 = vpop.f32.mrb[2].mxu0 }
  0xe0   :  { %v127_v12 = vadd.f32 %v156_v6, %v116_v7  ;;  %v117_v14 = vmul.f32 %v168_v11, %v155_v4  ;;  %v95_v15 = vpop.f32.mrb[3].mxu0 }
  0xe1   :  { %v125_v16 = vadd.f32 %v156_v6, %v114_v10  ;;  %v115_v18 = vmul.f32 %v155_v4, %v95_v15 }
  0xe2   :  { %v135_v19 = vadd.f32 %v131_v9, %v127_v12  ;;  %v128_v20 = vadd.f32 %v156_v6, %v117_v14 }
  0xe3   :  { %v133_v22 = vadd.f32 %v129_v13, %v125_v16  ;;  %v126_v23 = vadd.f32 %v156_v6, %v115_v18 }
  0xe4   :  { %v139_v24 = vmax.f32 %v135_v19, 0.0  ;;  %v136_v25 = vadd.f32 %v132_v17, %v128_v20 }
  0xe5   :  { %v137_v26 = vmax.f32 %v133_v22, 0.0  ;;  %v134_v27 = vadd.f32 %v130_v21, %v126_v23 }
  0xe6   :  { %143 = vst [vmem:[%s250_s5 + $0x10] sm:$0xff] %v139_v24  ;;  %v140_v28 = vmax.f32 %v136_v25, 0.0 }
  0xe7   :  { %141 = vst [vmem:[%s250_s5] sm:$0xff] %v137_v26  ;;  %v138_v29 = vmax.f32 %v134_v27, 0.0 }
  0xe8   :  { %144 = vst [vmem:[%s250_s5 + $0x18] sm:$0xff] %v140_v28 }
  0xe9   :  { %142 = vst [vmem:[%s250_s5 + $0x8] sm:$0xff] %v138_v29 }

// kernel: resnet_forward.44
= control target key start
LH: loop header
LB: loop body
LE: loop exit
PB: predicated region body
PF: predicated region fallthrough
CT: control target
= control target key end

     0   :  { %vm173_vm0 = vcmask 261120   ;;  %s307_s1 = inlined_call_operand.vmem [shape: bf16[128,32], index: 1, kind: input, shape index: {}]   ;;  %s308_s0 = inlined_call_operand.vmem [shape: bf16[32,128], index: 0, kind: input, shape index: {}]   ;;  %s309_s2 = inlined_call_operand.vmem [shape: f32[1,32], index: 2, kind: input, shape index: {}]   ;;  %s310_s3 = inlined_call_operand.vmem [shape: f32[1,32], index: 3, kind: input, shape index: {}]   ;;  %s311_s4 = inlined_call_operand.vmem [shape: f32[32,32], index: 4, kind: output, shape index: {}]  }
   0x1   :  { %v224_v0 = vld [vmem:[%s307_s1] sm:$0xff]   ;;  %v225_v1 = vld [vmem:[%s307_s1 + $0x8] sm:$0xff]   ;;  %v226_v2 = vld [vmem:[%s307_s1 + $0x10] sm:$0xff]  }
   0x2   :  { %204 = vmatprep.subr.bf16.mxu0 %v224_v0  ;;  %v227_v3 = vld [vmem:[%s307_s1 + $0x18] sm:$0xff]   ;;  %v232_v4 = vld [vmem:[%s308_s0] sm:$0xff]   ;;  %v229_v6 = vld [vmem:[%s307_s1 + $0x28] sm:$0xff]  }
   0x3   :  { %205 = vmatpush3.bf16.msra.mxu0 %v224_v0  ;;  %220 = vmatprep.mubr.bf16.mxu0 %v232_v4  ;;  %v228_v5 = vld [vmem:[%s307_s1 + $0x20] sm:$0xff]   ;;  %v230_v7 = vld [vmem:[%s307_s1 + $0x30] sm:$0xff]   ;;  %v231_v8 = vld [vmem:[%s307_s1 + $0x38] sm:$0xff]  }
   0x4   :  { %206 = vmatprep.subr.bf16.mxu0 %v225_v1  ;;  %v233_v9 = vld [vmem:[%s308_s0 + $0x8] sm:$0xff]   ;;  %v192_v10 = vld [vmem:[%s309_s2] ss:$0 sm:$0xff] }
   0x5   :  { %v193_v12 = vld [vmem:[%s310_s3] ss:$0 sm:$0xff] }
   0x7   :  { %207 = vmatpush3.bf16.msra.mxu0 %v225_v1 }
   0x8   :  { %208 = vmatprep.subr.bf16.mxu0 %v226_v2 }
   0xb   :  { %209 = vmatpush3.bf16.msra.mxu0 %v226_v2 }
   0xc   :  { %210 = vmatprep.subr.bf16.mxu0 %v227_v3 }
   0xf   :  { %211 = vmatpush3.bf16.msra.mxu0 %v227_v3 }
  0x10   :  { %212 = vmatprep.subr.bf16.mxu0 %v228_v5 }
  0x13   :  { %213 = vmatpush3.bf16.msra.mxu0 %v228_v5 }
  0x14   :  { %214 = vmatprep.subr.bf16.mxu0 %v229_v6 }
  0x17   :  { %215 = vmatpush3.bf16.msra.mxu0 %v229_v6 }
  0x18   :  { %216 = vmatprep.subr.bf16.mxu0 %v230_v7 }
  0x1b   :  { %217 = vmatpush3.bf16.msra.mxu0 %v230_v7 }
  0x1c   :  { %218 = vmatprep.subr.bf16.mxu0 %v231_v8 }
  0x1f   :  { %219 = vmatpush3.bf16.msra.mxu0 %v231_v8 }
  0x22   :  { %221 = vmatmul.mubr.bf16.vlgmr.msra.gmra.mrb[0].mxu0 %v233_v9 }
  0xf5   :  { %v222_v11 = vpop.f32.mrb[0].mxu0 }
  0xf6   :  { %v156_v13 = vmul.f32 %v222_v11, %v192_v10  ;;  %v132_v14 = vpop.f32.mrb[1].mxu0 }
  0xf7   :  { %v154_v15 = vmul.f32 %v192_v10, %v132_v14  ;;  %v223_v16 = vpop.f32.mrb[2].mxu0 }
  0xf8   :  { %v167_v17 = vadd.f32 %v193_v12, %v156_v13  ;;  %v157_v18 = vmul.f32 %v223_v16, %v192_v10  ;;  %v135_v19 = vpop.f32.mrb[3].mxu0 }
  0xf9   :  { %v165_v20 = vadd.f32 %v193_v12, %v154_v15  ;;  %v155_v21 = vmul.f32 %v192_v10, %v135_v19 }
  0xfa   :  { %v171_v22 = vmax.f32 %v167_v17, 0.0  ;;  %v168_v23 = vadd.f32 %v193_v12, %v157_v18 }
  0xfb   :  { %v169_v24 = vmax.f32 %v165_v20, 0.0  ;;  %v166_v25 = vadd.f32 %v193_v12, %v155_v21 }
  0xfc   :  { %176 = vst.msk [vmem:[%s311_s4 + $0x10] sm:$0xff] %vm173_vm0, %v171_v22  ;;  %v172_v26 = vmax.f32 %v168_v23, 0.0 }
  0xfd   :  { %174 = vst.msk [vmem:[%s311_s4] sm:$0xff] %vm173_vm0, %v169_v24  ;;  %v170_v27 = vmax.f32 %v166_v25, 0.0 }
  0xfe   :  { %177 = vst.msk [vmem:[%s311_s4 + $0x18] sm:$0xff] %vm173_vm0, %v172_v26 }
  0xff   :  { %175 = vst.msk [vmem:[%s311_s4 + $0x8] sm:$0xff] %vm173_vm0, %v170_v27 }

// kernel: resnet_forward.47
= control target key start
LH: loop header
LB: loop body
LE: loop exit
PB: predicated region body
PF: predicated region fallthrough
CT: control target
= control target key end

     0   :  { %vm173_vm0 = vcmask 523264   ;;  %s307_s1 = inlined_call_operand.vmem [shape: bf16[128,64], index: 1, kind: input, shape index: {}]   ;;  %s308_s0 = inlined_call_operand.vmem [shape: bf16[32,128], index: 0, kind: input, shape index: {}]   ;;  %s309_s2 = inlined_call_operand.vmem [shape: f32[1,64], index: 2, kind: input, shape index: {}]   ;;  %s310_s3 = inlined_call_operand.vmem [shape: f32[1,64], index: 3, kind: input, shape index: {}]   ;;  %s311_s4 = inlined_call_operand.vmem [shape: f32[32,64], index: 4, kind: output, shape index: {}]  }
   0x1   :  { %v224_v0 = vld [vmem:[%s307_s1] sm:$0xff]   ;;  %v225_v1 = vld [vmem:[%s307_s1 + $0x8] sm:$0xff]   ;;  %v226_v2 = vld [vmem:[%s307_s1 + $0x10] sm:$0xff]  }
   0x2   :  { %204 = vmatprep.subr.bf16.mxu0 %v224_v0  ;;  %v227_v3 = vld [vmem:[%s307_s1 + $0x18] sm:$0xff]   ;;  %v232_v4 = vld [vmem:[%s308_s0] sm:$0xff]   ;;  %v229_v6 = vld [vmem:[%s307_s1 + $0x28] sm:$0xff]  }
   0x3   :  { %205 = vmatpush3.bf16.msra.mxu0 %v224_v0  ;;  %220 = vmatprep.mubr.bf16.mxu0 %v232_v4  ;;  %v228_v5 = vld [vmem:[%s307_s1 + $0x20] sm:$0xff]   ;;  %v230_v7 = vld [vmem:[%s307_s1 + $0x30] sm:$0xff]   ;;  %v231_v8 = vld [vmem:[%s307_s1 + $0x38] sm:$0xff]  }
   0x4   :  { %206 = vmatprep.subr.bf16.mxu0 %v225_v1  ;;  %v233_v9 = vld [vmem:[%s308_s0 + $0x8] sm:$0xff]   ;;  %v192_v10 = vld [vmem:[%s309_s2] ss:$0 sm:$0xff] }
   0x5   :  { %v193_v12 = vld [vmem:[%s310_s3] ss:$0 sm:$0xff] }
   0x7   :  { %207 = vmatpush3.bf16.msra.mxu0 %v225_v1 }
   0x8   :  { %208 = vmatprep.subr.bf16.mxu0 %v226_v2 }
   0xb   :  { %209 = vmatpush3.bf16.msra.mxu0 %v226_v2 }
   0xc   :  { %210 = vmatprep.subr.bf16.mxu0 %v227_v3 }
   0xf   :  { %211 = vmatpush3.bf16.msra.mxu0 %v227_v3 }
  0x10   :  { %212 = vmatprep.subr.bf16.mxu0 %v228_v5 }
  0x13   :  { %213 = vmatpush3.bf16.msra.mxu0 %v228_v5 }
  0x14   :  { %214 = vmatprep.subr.bf16.mxu0 %v229_v6 }
  0x17   :  { %215 = vmatpush3.bf16.msra.mxu0 %v229_v6 }
  0x18   :  { %216 = vmatprep.subr.bf16.mxu0 %v230_v7 }
  0x1b   :  { %217 = vmatpush3.bf16.msra.mxu0 %v230_v7 }
  0x1c   :  { %218 = vmatprep.subr.bf16.mxu0 %v231_v8 }
  0x1f   :  { %219 = vmatpush3.bf16.msra.mxu0 %v231_v8 }
  0x22   :  { %221 = vmatmul.mubr.bf16.vlgmr.msra.gmra.mrb[0].mxu0 %v233_v9 }
  0xf5   :  { %v222_v11 = vpop.f32.mrb[0].mxu0 }
  0xf6   :  { %v156_v13 = vmul.f32 %v222_v11, %v192_v10  ;;  %v132_v14 = vpop.f32.mrb[1].mxu0 }
  0xf7   :  { %v154_v15 = vmul.f32 %v192_v10, %v132_v14  ;;  %v223_v16 = vpop.f32.mrb[2].mxu0 }
  0xf8   :  { %v167_v17 = vadd.f32 %v193_v12, %v156_v13  ;;  %v157_v18 = vmul.f32 %v223_v16, %v192_v10  ;;  %v135_v19 = vpop.f32.mrb[3].mxu0 }
  0xf9   :  { %v165_v20 = vadd.f32 %v193_v12, %v154_v15  ;;  %v155_v21 = vmul.f32 %v192_v10, %v135_v19 }
  0xfa   :  { %v171_v22 = vmax.f32 %v167_v17, 0.0  ;;  %v168_v23 = vadd.f32 %v193_v12, %v157_v18 }
  0xfb   :  { %v169_v24 = vmax.f32 %v165_v20, 0.0  ;;  %v166_v25 = vadd.f32 %v193_v12, %v155_v21 }
  0xfc   :  { %176 = vst.msk [vmem:[%s311_s4 + $0x10] sm:$0xff] %vm173_vm0, %v171_v22  ;;  %v172_v26 = vmax.f32 %v168_v23, 0.0 }
  0xfd   :  { %174 = vst.msk [vmem:[%s311_s4] sm:$0xff] %vm173_vm0, %v169_v24  ;;  %v170_v27 = vmax.f32 %v166_v25, 0.0 }
  0xfe   :  { %177 = vst.msk [vmem:[%s311_s4 + $0x18] sm:$0xff] %vm173_vm0, %v172_v26 }
  0xff   :  { %175 = vst.msk [vmem:[%s311_s4 + $0x8] sm:$0xff] %vm173_vm0, %v170_v27 }

// kernel: resnet_forward.48
= control target key start
LH: loop header
LB: loop body
LE: loop exit
PB: predicated region body
PF: predicated region fallthrough
CT: control target
= control target key end

     0   :  { %v620_v36 = vmov 0.0   ;;  %vm621_vm0 = vmmov 0   ;;  %vm326_vm1 = vcmask 523264   ;;  %s775_s1 = inlined_call_operand.vmem [shape: bf16[576,64], index: 1, kind: input, shape index: {}]   ;;  %s776_s0 = inlined_call_operand.vmem [shape: bf16[8,576], index: 0, kind: input, shape index: {}]   ;;  %s777_s2 = inlined_call_operand.vmem [shape: f32[1,64], index: 2, kind: input, shape index: {}]   ;;  %s778_s3 = inlined_call_operand.vmem [shape: f32[1,64], index: 3, kind: input, shape index: {}]   ;;  %s779_s4 = inlined_call_operand.vmem [shape: f32[8,64], index: 4, kind: output, shape index: {}]  }
   0x1   :  { %v579_v0 = vld [vmem:[%s775_s1 + $0x40] sm:$0xff]   ;;  %v583_v4 = vld [vmem:[%s775_s1 + $0x48] sm:$0xff]   ;;  %v587_v8 = vld [vmem:[%s775_s1 + $0x50] sm:$0xff]  }
   0x2   :  { %v580_v1 = vld [vmem:[%s775_s1 + $0xc0] sm:$0xff]   ;;  %516 = vmatprep.subr.bf16.mxu0 %v579_v0  ;;  %v584_v5 = vld [vmem:[%s775_s1 + $0xc8] sm:$0xff]   ;;  %v588_v9 = vld [vmem:[%s775_s1 + $0xd0] sm:$0xff]  }
   0x3   :  { %v581_v2 = vld [vmem:[%s775_s1] sm:$0xff]   ;;  %538 = vmatprep.subr.bf16.mxu1 %v580_v1  ;;  %v585_v6 = vld [vmem:[%s775_s1 + $0x8] sm:$0xff]   ;;  %v589_v10 = vld [vmem:[%s775_s1 + $0x10] sm:$0xff]  }
   0x4   :  { %v582_v3 = vld [vmem:[%s775_s1 + $0x80] sm:$0xff]   ;;  %517 = vmatpush3.bf16.msra.mxu0 %v581_v2  ;;  %v586_v7 = vld [vmem:[%s775_s1 + $0x88] sm:$0xff]   ;;  %v590_v11 = vld [vmem:[%s775_s1 + $0x90] sm:$0xff]  }
   0x5   :  { %539 = vmatpush3.bf16.msra.mxu1 %v582_v3  ;;  %518 = vmatprep.subr.bf16.mxu0 %v583_v4  ;;  %v591_v12 = vld [vmem:[%s775_s1 + $0x58] sm:$0xff]   ;;  %v595_v16 = vld [vmem:[%s775_s1 + $0x60] sm:$0xff]   ;;  %v599_v20 = vld [vmem:[%s775_s1 + $0x68] sm:$0xff]  }
   0x6   :  { %540 = vmatprep.subr.bf16.mxu1 %v584_v5  ;;  %v592_v13 = vld [vmem:[%s775_s1 + $0xd8] sm:$0xff]   ;;  %v596_v17 = vld [vmem:[%s775_s1 + $0xe0] sm:$0xff]   ;;  %v600_v21 = vld [vmem:[%s775_s1 + $0xe8] sm:$0xff]  }
   0x7   :  { %v593_v14 = vld [vmem:[%s775_s1 + $0x18] sm:$0xff]   ;;  %v597_v18 = vld [vmem:[%s775_s1 + $0x20] sm:$0xff]   ;;  %v601_v22 = vld [vmem:[%s775_s1 + $0x28] sm:$0xff]  }
   0x8   :  { %519 = vmatpush3.bf16.msra.mxu0 %v585_v6  ;;  %v594_v15 = vld [vmem:[%s775_s1 + $0x98] sm:$0xff]   ;;  %v598_v19 = vld [vmem:[%s775_s1 + $0xa0] sm:$0xff]   ;;  %v602_v23 = vld [vmem:[%s775_s1 + $0xa8] sm:$0xff]  }
   0x9   :  { %541 = vmatpush3.bf16.msra.mxu1 %v586_v7  ;;  %520 = vmatprep.subr.bf16.mxu0 %v587_v8  ;;  %v603_v24 = vld [vmem:[%s775_s1 + $0x70] sm:$0xff]   ;;  %v607_v28 = vld [vmem:[%s775_s1 + $0x78] sm:$0xff]   ;;  %v18_v32 = vld [vmem:[%s776_s0] sm:$0xff] }
   0xa   :  { %542 = vmatprep.subr.bf16.mxu1 %v588_v9  ;;  %v604_v25 = vld [vmem:[%s775_s1 + $0xf0] sm:$0xff]   ;;  %v608_v29 = vld [vmem:[%s775_s1 + $0xf8] sm:$0xff]   ;;  %v472_v33 = vcombine.low %v18_v32, %v18_v32  ;;  %v473_v34 = vcombine.high %v18_v32, %v18_v32  ;;  %v19_v35 = vld [vmem:[%s776_s0 + $0x8] sm:$0xff] }
   0xb   :  { %v605_v26 = vld [vmem:[%s775_s1 + $0x30] sm:$0xff]   ;;  %v609_v30 = vld [vmem:[%s775_s1 + $0x38] sm:$0xff]   ;;  %v474_v37 = vcombine.low %v19_v35, %v19_v35  ;;  %v475_v38 = vcombine.high %v19_v35, %v19_v35  ;;  %v616_v39 = vld [vmem:[%s775_s1 + $0x100] sm:$0xff]  }
   0xc   :  { %521 = vmatpush3.bf16.msra.mxu0 %v589_v10  ;;  %v606_v27 = vld [vmem:[%s775_s1 + $0xb0] sm:$0xff]   ;;  %v610_v31 = vld [vmem:[%s775_s1 + $0xb8] sm:$0xff]   ;;  %362 = vmatprep.mubr.bf16.mxu0 %v473_v34  ;;  %v617_v40 = vld [vmem:[%s775_s1 + $0x108] sm:$0xff]  }
   0xd   :  { %543 = vmatpush3.bf16.msra.mxu1 %v590_v11  ;;  %522 = vmatprep.subr.bf16.mxu0 %v591_v12  ;;  %v618_v41 = vld [vmem:[%s775_s1 + $0x110] sm:$0xff]   ;;  %v619_v42 = vld [vmem:[%s775_s1 + $0x118] sm:$0xff]   ;;  %v514_v56 = vld [vmem:[%s777_s2] ss:$0 sm:$0xff] }
   0xe   :  { %544 = vmatprep.subr.bf16.mxu1 %v592_v13  ;;  %402 = vmatprep.mubr.bf16.mxu1 %v475_v38  ;;  %v613_v43 = vld [vmem:[%s776_s0 + $0x10] ss:$0 sps:$4 sm:$0xff]   ;;  %v515_v59 = vld [vmem:[%s778_s3] ss:$0 sm:$0xff] }
  0x10   :  { %523 = vmatpush3.bf16.msra.mxu0 %v593_v14 }
  0x11   :  { %545 = vmatpush3.bf16.msra.mxu1 %v594_v15  ;;  %524 = vmatprep.subr.bf16.mxu0 %v595_v16 }
  0x12   :  { %546 = vmatprep.subr.bf16.mxu1 %v596_v17 }
  0x14   :  { %525 = vmatpush3.bf16.msra.mxu0 %v597_v18 }
  0x15   :  { %547 = vmatpush3.bf16.msra.mxu1 %v598_v19  ;;  %526 = vmatprep.subr.bf16.mxu0 %v599_v20 }
  0x16   :  { %548 = vmatprep.subr.bf16.mxu1 %v600_v21 }
  0x18   :  { %527 = vmatpush3.bf16.msra.mxu0 %v601_v22 }
  0x19   :  { %549 = vmatpush3.bf16.msra.mxu1 %v602_v23  ;;  %528 = vmatprep.subr.bf16.mxu0 %v603_v24 }
  0x1a   :  { %550 = vmatprep.subr.bf16.mxu1 %v604_v25 }
  0x1c   :  { %529 = vmatpush3.bf16.msra.mxu0 %v605_v26 }
  0x1d   :  { %551 = vmatpush3.bf16.msra.mxu1 %v606_v27  ;;  %530 = vmatprep.subr.bf16.mxu0 %v607_v28 }
  0x1e   :  { %552 = vmatprep.subr.bf16.mxu1 %v608_v29 }
  0x20   :  { %531 = vmatpush3.bf16.msra.mxu0 %v609_v30 }
  0x21   :  { %553 = vmatpush3.bf16.msra.mxu1 %v610_v31  ;;  %565 = vmatprep.subr.bf16.mxu0 %v620_v36 }
  0x23   :  { %363 = vmatmul.mubr.bf16.vlgmr.msra.gmra.mrb[0].mxu0 %v472_v33 }
  0x24   :  { %403 = vmatmul.mubr.bf16.vlgmr.msra.gmra.mrb[0].mxu1 %v474_v37  ;;  %566 = vmatpush3.bf16.msra.mxu0 %v616_v39 }
  0x25   :  { %567 = vmatprep.subr.bf16.mxu0 %v620_v36  ;;  %573 = vmatprep.mubr.msk.bf16.mxu0 %vm621_vm0, %v620_v36 }
  0x28   :  { %568 = vmatpush3.bf16.msra.mxu0 %v617_v40 }
  0x29   :  { %569 = vmatprep.subr.bf16.mxu0 %v620_v36 }
  0x2c   :  { %570 = vmatpush3.bf16.msra.mxu0 %v618_v41 }
  0x2d   :  { %571 = vmatprep.subr.bf16.mxu0 %v620_v36 }
  0x30   :  { %572 = vmatpush3.bf16.msra.mxu0 %v619_v42 }
  0x33   :  { %574 = vmatmul.mubr.msk.bf16.vlgmr.msra.gmra.mrb[4].mxu0 %vm326_vm1, %v613_v43 }
  0xf6   :  { %v532_v44 = vpop.f32.mrb[0].mxu0 }
  0xf7   :  { %v554_v45 = vpop.f32.mrb[0].mxu1  ;;  %v533_v46 = vpop.f32.mrb[1].mxu0 }
  0xf8   :  { %v534_v47 = vadd.f32 %v533_v46, %v532_v44  ;;  %v555_v48 = vpop.f32.mrb[1].mxu1  ;;  %v535_v49 = vpop.f32.mrb[2].mxu0 }
  0xf9   :  { %v556_v50 = vadd.f32 %v555_v48, %v554_v45  ;;  %v536_v51 = vpop.f32.mrb[3].mxu0  ;;  %v557_v52 = vpop.f32.mrb[2].mxu1 }
  0xfa   :  { %v558_v53 = vpop.f32.mrb[3].mxu1 }
  0xfb   :  { %v405_v54 = vadd.f32 %v556_v50, %v534_v47 }
 0x106   :  { %v444_v55 = vpop.f32.mrb[4].mxu0 }
 0x107   :  { %v445_v57 = vadd.f32 %v444_v55, %v405_v54  ;;  %v575_v58 = vpop.f32.mrb[5].mxu0 }
 0x108   :  { %v447_v60 = vpop.f32.mrb[6].mxu0 }
 0x109   :  { %v457_v61 = vmul.f32 %v514_v56, %v445_v57  ;;  %v576_v62 = vpop.f32.mrb[7].mxu0 }
 0x10b   :  { %v465_v63 = vadd.f32 %v515_v59, %v457_v61 }
 0x10d   :  { %v466_v0 = vmax.f32 %v465_v63, 0.0 }
 0x10f   :  { %467 = vst.msk [vmem:[%s779_s4] sm:$0xff] %vm326_vm1, %v466_v0 }

// kernel: resnet_forward.49
= control target key start
LH: loop header
LB: loop body
LE: loop exit
PB: predicated region body
PF: predicated region fallthrough
CT: control target
= control target key end

     0   :  { %v231_v1 = vmov 0   ;;  %v158_v18 = vlaneseq  ;;  %s320_s1 = inlined_call_operand.vmem [shape: bf16[128,256], index: 1, kind: input, shape index: {}]   ;;  %s321_s0 = inlined_call_operand.vmem [shape: bf16[8,128], index: 0, kind: input, shape index: {}]   ;;  %s322_s2 = inlined_call_operand.vmem [shape: f32[1,256], index: 2, kind: input, shape index: {}]   ;;  %s323_s3 = inlined_call_operand.vmem [shape: f32[1,256], index: 3, kind: input, shape index: {}]   ;;  %s324_s4 = inlined_call_operand.vmem [shape: f32[8,256], index: 4, kind: output, shape index: {}]  }
   0x1   :  { %v207_v0 = vld [vmem:[%s320_s1 + $0x4] ss:$8 sps:$4 sm:$0xff]   ;;  %147 = vmatprep.mubr.bf16.mxu0 %v231_v1  ;;  %v209_v2 = vld [vmem:[%s320_s1] ss:$8 sps:$4 sm:$0xff]   ;;  %v210_v3 = vld [vmem:[%s320_s1 + $0x14] ss:$8 sps:$4 sm:$0xff]  }
   0x2   :  { %115 = vmatprep.subr.bf16.mxu0 %v207_v0  ;;  %v212_v4 = vld [vmem:[%s320_s1 + $0x10] ss:$8 sps:$4 sm:$0xff]   ;;  %v213_v5 = vld [vmem:[%s320_s1 + $0x24] ss:$8 sps:$4 sm:$0xff]   ;;  %v215_v6 = vld [vmem:[%s320_s1 + $0x20] ss:$8 sps:$4 sm:$0xff]  }
   0x3   :  { %116 = vmatpush1.bf16.msra.mxu0 %v209_v2  ;;  %v216_v7 = vld [vmem:[%s320_s1 + $0x34] ss:$8 sps:$4 sm:$0xff]   ;;  %v218_v8 = vld [vmem:[%s320_s1 + $0x30] ss:$8 sps:$4 sm:$0xff]   ;;  %v219_v9 = vld [vmem:[%s320_s1 + $0x44] ss:$8 sps:$4 sm:$0xff]  }
   0x4   :  { %117 = vmatprep.subr.bf16.mxu0 %v210_v3  ;;  %v221_v10 = vld [vmem:[%s320_s1 + $0x40] ss:$8 sps:$4 sm:$0xff]   ;;  %v222_v11 = vld [vmem:[%s320_s1 + $0x54] ss:$8 sps:$4 sm:$0xff]   ;;  %v224_v12 = vld [vmem:[%s320_s1 + $0x50] ss:$8 sps:$4 sm:$0xff]  }
   0x5   :  { %v225_v13 = vld [vmem:[%s320_s1 + $0x64] ss:$8 sps:$4 sm:$0xff]   ;;  %v227_v14 = vld [vmem:[%s320_s1 + $0x60] ss:$8 sps:$4 sm:$0xff]   ;;  %v228_v15 = vld [vmem:[%s320_s1 + $0x74] ss:$8 sps:$4 sm:$0xff]  }
   0x6   :  { %v230_v16 = vld [vmem:[%s320_s1 + $0x70] ss:$8 sps:$4 sm:$0xff]   ;;  %v18_v17 = vld [vmem:[%s321_s0] sm:$0xf]  ;;  %v159_v19 = vshrl.u32 %v158_v18, 7 }
   0x7   :  { %118 = vmatpush1.bf16.msra.mxu0 %v212_v4  ;;  %v156_v21 = vld [vmem:[%s322_s2] sm:$0x3] }
   0x8   :  { %119 = vmatprep.subr.bf16.mxu0 %v213_v5  ;;  %v160_v20 = vsub.s32 0, %v159_v19  ;;  %v164_v22 = vsub.s32 1, %v159_v19  ;;  %v170_v23 = vld [vmem:[%s323_s3] sm:$0x3] }
   0xa   :  { %v161_v24 = vrot.slane %v156_v21, %v160_v20  ;;  %v165_v25 = vrot.slane %v156_v21, %v164_v22  ;;  %v175_v26 = vrot.slane %v170_v23, %v160_v20  ;;  %v179_v28 = vrot.slane %v170_v23, %v164_v22 }
   0xb   :  { %120 = vmatpush1.bf16.msra.mxu0 %v215_v6 }
   0xc   :  { %121 = vmatprep.subr.bf16.mxu0 %v216_v7 }
   0xf   :  { %122 = vmatpush1.bf16.msra.mxu0 %v218_v8 }
  0x10   :  { %123 = vmatprep.subr.bf16.mxu0 %v219_v9 }
  0x13   :  { %124 = vmatpush1.bf16.msra.mxu0 %v221_v10 }
  0x14   :  { %125 = vmatprep.subr.bf16.mxu0 %v222_v11 }
  0x17   :  { %126 = vmatpush1.bf16.msra.mxu0 %v224_v12 }
  0x18   :  { %127 = vmatprep.subr.bf16.mxu0 %v225_v13 }
  0x1b   :  { %128 = vmatpush1.bf16.msra.mxu0 %v227_v14 }
  0x1c   :  { %129 = vmatprep.subr.bf16.mxu0 %v228_v15 }
  0x1f   :  { %130 = vmatpush1.bf16.msra.mxu0 %v230_v16 }
  0x22   :  { %148 = vmatmul.mubr.bf16.vlgmr.msra.gmra.mrb[0].mxu0 %v18_v17 }
  0xf5   :  { %v149_v27 = vpop.f32.mrb[0].mxu0 }
  0xf6   :  { %v168_v29 = vmul.f32 %v161_v24, %v149_v27  ;;  %v151_v30 = vpop.f32.mrb[1].mxu0 }
  0xf7   :  { %v169_v31 = vmul.f32 %v165_v25, %v151_v30  ;;  %v153_v32 = vpop.f32.mrb[2].mxu0 }
  0xf8   :  { %v182_v33 = vadd.f32 %v175_v26, %v168_v29  ;;  %v154_v34 = vpop.f32.mrb[3].mxu0 }
  0xf9   :  { %v183_v35 = vadd.f32 %v179_v28, %v169_v31 }
  0xfa   :  { %184 = vst [vmem:[%s324_s4] sm:$0xff] %v182_v33 }
  0xfb   :  { %185 = vst [vmem:[%s324_s4 + $0x8] sm:$0xff] %v183_v35 }

// kernel: resnet_forward.50
= control target key start
LH: loop header
LB: loop body
LE: loop exit
PB: predicated region body
PF: predicated region fallthrough
CT: control target
= control target key end

     0   :  { %v177_v1 = vmov 0   ;;  %vm70_vm0 = vcmask 523264   ;;  %v117_v10 = vlaneseq  ;;  %s253_s1 = inlined_call_operand.vmem [shape: bf16[64,256], index: 1, kind: input, shape index: {}]   ;;  %s254_s0 = inlined_call_operand.vmem [shape: bf16[8,64], index: 0, kind: input, shape index: {}]   ;;  %s255_s2 = inlined_call_operand.vmem [shape: f32[1,256], index: 2, kind: input, shape index: {}]   ;;  %s256_s3 = inlined_call_operand.vmem [shape: f32[1,256], index: 3, kind: input, shape index: {}]   ;;  %s257_s4 = inlined_call_operand.vmem [shape: f32[8,256], index: 4, kind: input, shape index: {}]   ;;  %s258_s5 = inlined_call_operand.vmem [shape: f32[8,256], index: 5, kind: output, shape index: {}]  }
   0x1   :  { %v165_v0 = vld [vmem:[%s253_s1 + $0x4] ss:$8 sps:$4 sm:$0xff]   ;;  %106 = vmatprep.mubr.bf16.mxu0 %v177_v1  ;;  %v167_v2 = vld [vmem:[%s253_s1] ss:$8 sps:$4 sm:$0xff]   ;;  %v168_v3 = vld [vmem:[%s253_s1 + $0x14] ss:$8 sps:$4 sm:$0xff]  }
   0x2   :  { %74 = vmatprep.subr.bf16.mxu0 %v165_v0  ;;  %v170_v4 = vld [vmem:[%s253_s1 + $0x10] ss:$8 sps:$4 sm:$0xff]   ;;  %v171_v5 = vld [vmem:[%s253_s1 + $0x24] ss:$8 sps:$4 sm:$0xff]   ;;  %v173_v6 = vld [vmem:[%s253_s1 + $0x20] ss:$8 sps:$4 sm:$0xff]  }
   0x3   :  { %75 = vmatpush1.bf16.msra.mxu0 %v167_v2  ;;  %v174_v7 = vld [vmem:[%s253_s1 + $0x34] ss:$8 sps:$4 sm:$0xff]   ;;  %v176_v8 = vld [vmem:[%s253_s1 + $0x30] ss:$8 sps:$4 sm:$0xff]   ;;  %v21_v9 = vld [vmem:[%s254_s0] sm:$0xf] }
   0x4   :  { %76 = vmatprep.subr.bf16.mxu0 %v168_v3  ;;  %v118_v11 = vshrl.u32 %v117_v10, 7  ;;  %v115_v13 = vld [vmem:[%s255_s2] sm:$0x3]  ;;  %v144_v27 = vld [vmem:[%s257_s4 + $0x8] sm:$0xff] }
   0x5   :  { %v129_v15 = vld [vmem:[%s256_s3] sm:$0x3] }
   0x6   :  { %v119_v12 = vsub.s32 0, %v118_v11  ;;  %v123_v14 = vsub.s32 1, %v118_v11  ;;  %v143_v23 = vld [vmem:[%s257_s4] sm:$0xff] }
   0x7   :  { %77 = vmatpush1.bf16.msra.mxu0 %v170_v4 }
   0x8   :  { %78 = vmatprep.subr.bf16.mxu0 %v171_v5  ;;  %v120_v16 = vrot.slane %v115_v13, %v119_v12  ;;  %v124_v17 = vrot.slane %v115_v13, %v123_v14  ;;  %v134_v18 = vrot.slane %v129_v15, %v119_v12  ;;  %v138_v20 = vrot.slane %v129_v15, %v123_v14 }
   0xb   :  { %79 = vmatpush1.bf16.msra.mxu0 %v173_v6 }
   0xc   :  { %80 = vmatprep.subr.bf16.mxu0 %v174_v7 }
   0xf   :  { %81 = vmatpush1.bf16.msra.mxu0 %v176_v8 }
  0x12   :  { %163 = vmatmul.mubr.msk.bf16.vlgmr.msra.gmra.mrb[0].mxu0 %vm70_vm0, %v21_v9 }
  0xe5   :  { %v108_v19 = vpop.f32.mrb[0].mxu0 }
  0xe6   :  { %v127_v21 = vmul.f32 %v120_v16, %v108_v19  ;;  %v110_v22 = vpop.f32.mrb[1].mxu0 }
  0xe7   :  { %v128_v24 = vmul.f32 %v124_v17, %v110_v22  ;;  %v112_v25 = vpop.f32.mrb[2].mxu0 }
  0xe8   :  { %v141_v26 = vadd.f32 %v134_v18, %v127_v21  ;;  %v113_v28 = vpop.f32.mrb[3].mxu0 }
  0xe9   :  { %v142_v29 = vadd.f32 %v138_v20, %v128_v24 }
  0xea   :  { %v145_v30 = vadd.f32 %v143_v23, %v141_v26 }
  0xeb   :  { %v146_v31 = vadd.f32 %v144_v27, %v142_v29 }
  0xec   :  { %v147_v32 = vmax.f32 %v145_v30, 0.0 }
  0xed   :  { %v148_v33 = vmax.f32 %v146_v31, 0.0 }
  0xee   :  { %149 = vst [vmem:[%s258_s5] sm:$0xff] %v147_v32 }
  0xef   :  { %150 = vst [vmem:[%s258_s5 + $0x8] sm:$0xff] %v148_v33 }

// kernel: reverse
= control target key start
LH: loop header
LB: loop body
LE: loop exit
PB: predicated region body
PF: predicated region fallthrough
CT: control target
= control target key end

     0   :  { %s5265_s0 = inlined_call_operand.vmem [shape: bf16[3,3,64,576], index: 0, kind: input, shape index: {}]   ;;  %s5266_s1 = inlined_call_operand.vmem [shape: bf16[3,3,64,576], index: 1, kind: output, shape index: {}]  }
   0x1   :  { %v3815_v0 = vld [vmem:[%s5265_s0 + $0x500] sm:$0xff]   ;;  %v3824_v9 = vld [vmem:[%s5265_s0 + $0x514] sm:$0xff]   ;;  %v3833_v18 = vld [vmem:[%s5265_s0 + $0x528] sm:$0xff]  }
   0x2   :  { %v3816_v1 = vld [vmem:[%s5265_s0 + $0x320] sm:$0xff]   ;;  %3026 = vst [vmem:[%s5266_s1] sm:$0xff] %v3815_v0  ;;  %v3825_v10 = vld [vmem:[%s5265_s0 + $0x334] sm:$0xff]   ;;  %3062 = vst [vmem:[%s5266_s1 + $0x14] sm:$0xff] %v3824_v9 }
   0x3   :  { %v3817_v2 = vld [vmem:[%s5265_s0 + $0x140] sm:$0xff]   ;;  %3030 = vst [vmem:[%s5266_s1 + $0x1e0] sm:$0xff] %v3816_v1  ;;  %v3826_v11 = vld [vmem:[%s5265_s0 + $0x154] sm:$0xff]   ;;  %3066 = vst [vmem:[%s5266_s1 + $0x1f4] sm:$0xff] %v3825_v10 }
   0x4   :  { %v3818_v3 = vld [vmem:[%s5265_s0 + $0x460] sm:$0xff]   ;;  %3034 = vst [vmem:[%s5266_s1 + $0x3c0] sm:$0xff] %v3817_v2  ;;  %v3827_v12 = vld [vmem:[%s5265_s0 + $0x474] sm:$0xff]   ;;  %3070 = vst [vmem:[%s5266_s1 + $0x3d4] sm:$0xff] %v3826_v11 }
   0x5   :  { %v3819_v4 = vld [vmem:[%s5265_s0 + $0x280] sm:$0xff]   ;;  %3038 = vst [vmem:[%s5266_s1 + $0xa0] sm:$0xff] %v3818_v3  ;;  %v3828_v13 = vld [vmem:[%s5265_s0 + $0x294] sm:$0xff]   ;;  %3074 = vst [vmem:[%s5266_s1 + $0xb4] sm:$0xff] %v3827_v12 }
   0x6   :  { %v3820_v5 = vld [vmem:[%s5265_s0 + $0xa0] sm:$0xff]   ;;  %3042 = vst [vmem:[%s5266_s1 + $0x280] sm:$0xff] %v3819_v4  ;;  %v3829_v14 = vld [vmem:[%s5265_s0 + $0xb4] sm:$0xff]   ;;  %3078 = vst [vmem:[%s5266_s1 + $0x294] sm:$0xff] %v3828_v13 }
   0x7   :  { %v3821_v6 = vld [vmem:[%s5265_s0 + $0x3c0] sm:$0xff]   ;;  %3046 = vst [vmem:[%s5266_s1 + $0x460] sm:$0xff] %v3820_v5  ;;  %v3830_v15 = vld [vmem:[%s5265_s0 + $0x3d4] sm:$0xff]   ;;  %3082 = vst [vmem:[%s5266_s1 + $0x474] sm:$0xff] %v3829_v14 }
   0x8   :  { %v3822_v7 = vld [vmem:[%s5265_s0 + $0x1e0] sm:$0xff]   ;;  %3050 = vst [vmem:[%s5266_s1 + $0x140] sm:$0xff] %v3821_v6  ;;  %v3831_v16 = vld [vmem:[%s5265_s0 + $0x1f4] sm:$0xff]   ;;  %3086 = vst [vmem:[%s5266_s1 + $0x154] sm:$0xff] %v3830_v15 }
   0x9   :  { %v3823_v8 = vld [vmem:[%s5265_s0] sm:$0xff]   ;;  %3054 = vst [vmem:[%s5266_s1 + $0x320] sm:$0xff] %v3822_v7  ;;  %v3832_v17 = vld [vmem:[%s5265_s0 + $0x14] sm:$0xff]   ;;  %3090 = vst [vmem:[%s5266_s1 + $0x334] sm:$0xff] %v3831_v16 }
   0xa   :  { %3058 = vst [vmem:[%s5266_s1 + $0x500] sm:$0xff] %v3823_v8  ;;  %3094 = vst [vmem:[%s5266_s1 + $0x514] sm:$0xff] %v3832_v17  ;;  %v3834_v19 = vld [vmem:[%s5265_s0 + $0x348] sm:$0xff]   ;;  %v3842_v27 = vld [vmem:[%s5265_s0 + $0x53c] sm:$0xff]  }
   0xb   :  { %v3835_v20 = vld [vmem:[%s5265_s0 + $0x168] sm:$0xff]   ;;  %3098 = vst [vmem:[%s5266_s1 + $0x28] sm:$0xff] %v3833_v18  ;;  %3102 = vst [vmem:[%s5266_s1 + $0x208] sm:$0xff] %v3834_v19  ;;  %v3843_v28 = vld [vmem:[%s5265_s0 + $0x35c] sm:$0xff]  }
   0xc   :  { %v3836_v21 = vld [vmem:[%s5265_s0 + $0x488] sm:$0xff]   ;;  %3106 = vst [vmem:[%s5266_s1 + $0x3e8] sm:$0xff] %v3835_v20  ;;  %v3844_v29 = vld [vmem:[%s5265_s0 + $0x17c] sm:$0xff]   ;;  %3134 = vst [vmem:[%s5266_s1 + $0x3c] sm:$0xff] %v3842_v27 }
   0xd   :  { %v3837_v22 = vld [vmem:[%s5265_s0 + $0x2a8] sm:$0xff]   ;;  %3110 = vst [vmem:[%s5266_s1 + $0xc8] sm:$0xff] %v3836_v21  ;;  %v3845_v30 = vld [vmem:[%s5265_s0 + $0x49c] sm:$0xff]   ;;  %3138 = vst [vmem:[%s5266_s1 + $0x21c] sm:$0xff] %v3843_v28 }
   0xe   :  { %v3838_v23 = vld [vmem:[%s5265_s0 + $0xc8] sm:$0xff]   ;;  %3114 = vst [vmem:[%s5266_s1 + $0x2a8] sm:$0xff] %v3837_v22  ;;  %3142 = vst [vmem:[%s5266_s1 + $0x3fc] sm:$0xff] %v3844_v29  ;;  %v3846_v31 = vld [vmem:[%s5265_s0 + $0x2bc] sm:$0xff]  }
   0xf   :  { %v3839_v24 = vld [vmem:[%s5265_s0 + $0x3e8] sm:$0xff]   ;;  %3118 = vst [vmem:[%s5266_s1 + $0x488] sm:$0xff] %v3838_v23  ;;  %v3847_v32 = vld [vmem:[%s5265_s0 + $0xdc] sm:$0xff]   ;;  %3146 = vst [vmem:[%s5266_s1 + $0xdc] sm:$0xff] %v3845_v30 }
  0x10   :  { %v3840_v25 = vld [vmem:[%s5265_s0 + $0x208] sm:$0xff]   ;;  %3122 = vst [vmem:[%s5266_s1 + $0x168] sm:$0xff] %v3839_v24  ;;  %v3848_v33 = vld [vmem:[%s5265_s0 + $0x3fc] sm:$0xff]   ;;  %3150 = vst [vmem:[%s5266_s1 + $0x2bc] sm:$0xff] %v3846_v31 }
  0x11   :  { %v3841_v26 = vld [vmem:[%s5265_s0 + $0x28] sm:$0xff]   ;;  %3126 = vst [vmem:[%s5266_s1 + $0x348] sm:$0xff] %v3840_v25  ;;  %3154 = vst [vmem:[%s5266_s1 + $0x49c] sm:$0xff] %v3847_v32  ;;  %v3849_v34 = vld [vmem:[%s5265_s0 + $0x21c] sm:$0xff]  }
  0x12   :  { %3130 = vst [vmem:[%s5266_s1 + $0x528] sm:$0xff] %v3841_v26  ;;  %v3850_v35 = vld [vmem:[%s5265_s0 + $0x3c] sm:$0xff]   ;;  %3158 = vst [vmem:[%s5266_s1 + $0x17c] sm:$0xff] %v3848_v33  ;;  %v3851_v36 = vld [vmem:[%s5265_s0 + $0x550] sm:$0xff]  }
  0x13   :  { %3162 = vst [vmem:[%s5266_s1 + $0x35c] sm:$0xff] %v3849_v34  ;;  %3166 = vst [vmem:[%s5266_s1 + $0x53c] sm:$0xff] %v3850_v35  ;;  %v3852_v37 = vld [vmem:[%s5265_s0 + $0x370] sm:$0xff]   ;;  %v3860_v45 = vld [vmem:[%s5265_s0 + $0x564] sm:$0xff]  }
  0x14   :  { %v3853_v38 = vld [vmem:[%s5265_s0 + $0x190] sm:$0xff]   ;;  %3170 = vst [vmem:[%s5266_s1 + $0x50] sm:$0xff] %v3851_v36  ;;  %3174 = vst [vmem:[%s5266_s1 + $0x230] sm:$0xff] %v3852_v37  ;;  %v3861_v46 = vld [vmem:[%s5265_s0 + $0x384] sm:$0xff]  }
  0x15   :  { %v3854_v39 = vld [vmem:[%s5265_s0 + $0x4b0] sm:$0xff]   ;;  %3178 = vst [vmem:[%s5266_s1 + $0x410] sm:$0xff] %v3853_v38  ;;  %v3862_v47 = vld [vmem:[%s5265_s0 + $0x1a4] sm:$0xff]   ;;  %3206 = vst [vmem:[%s5266_s1 + $0x64] sm:$0xff] %v3860_v45 }
  0x16   :  { %v3855_v40 = vld [vmem:[%s5265_s0 + $0x2d0] sm:$0xff]   ;;  %3182 = vst [vmem:[%s5266_s1 + $0xf0] sm:$0xff] %v3854_v39  ;;  %v3863_v48 = vld [vmem:[%s5265_s0 + $0x4c4] sm:$0xff]   ;;  %3210 = vst [vmem:[%s5266_s1 + $0x244] sm:$0xff] %v3861_v46 }
  0x17   :  { %v3856_v41 = vld [vmem:[%s5265_s0 + $0xf0] sm:$0xff]   ;;  %3186 = vst [vmem:[%s5266_s1 + $0x2d0] sm:$0xff] %v3855_v40  ;;  %3214 = vst [vmem:[%s5266_s1 + $0x424] sm:$0xff] %v3862_v47  ;;  %v3864_v49 = vld [vmem:[%s5265_s0 + $0x2e4] sm:$0xff]  }
  0x18   :  { %v3857_v42 = vld [vmem:[%s5265_s0 + $0x410] sm:$0xff]   ;;  %3190 = vst [vmem:[%s5266_s1 + $0x4b0] sm:$0xff] %v3856_v41  ;;  %v3865_v50 = vld [vmem:[%s5265_s0 + $0x104] sm:$0xff]   ;;  %3218 = vst [vmem:[%s5266_s1 + $0x104] sm:$0xff] %v3863_v48 }
  0x19   :  { %v3858_v43 = vld [vmem:[%s5265_s0 + $0x230] sm:$0xff]   ;;  %3194 = vst [vmem:[%s5266_s1 + $0x190] sm:$0xff] %v3857_v42  ;;  %v3866_v51 = vld [vmem:[%s5265_s0 + $0x424] sm:$0xff]   ;;  %3222 = vst [vmem:[%s5266_s1 + $0x2e4] sm:$0xff] %v3864_v49 }
  0x1a   :  { %v3859_v44 = vld [vmem:[%s5265_s0 + $0x50] sm:$0xff]   ;;  %3198 = vst [vmem:[%s5266_s1 + $0x370] sm:$0xff] %v3858_v43  ;;  %3226 = vst [vmem:[%s5266_s1 + $0x4c4] sm:$0xff] %v3865_v50  ;;  %v3867_v52 = vld [vmem:[%s5265_s0 + $0x244] sm:$0xff]  }
  0x1b   :  { %3202 = vst [vmem:[%s5266_s1 + $0x550] sm:$0xff] %v3859_v44  ;;  %v3868_v53 = vld [vmem:[%s5265_s0 + $0x64] sm:$0xff]   ;;  %3230 = vst [vmem:[%s5266_s1 + $0x1a4] sm:$0xff] %v3866_v51  ;;  %v3869_v54 = vld [vmem:[%s5265_s0 + $0x578] sm:$0xff]  }
  0x1c   :  { %3234 = vst [vmem:[%s5266_s1 + $0x384] sm:$0xff] %v3867_v52  ;;  %3238 = vst [vmem:[%s5266_s1 + $0x564] sm:$0xff] %v3868_v53  ;;  %v3870_v55 = vld [vmem:[%s5265_s0 + $0x398] sm:$0xff]   ;;  %v3878_v63 = vld [vmem:[%s5265_s0 + $0x58c] sm:$0xff]  }
  0x1d   :  { %v3871_v56 = vld [vmem:[%s5265_s0 + $0x1b8] sm:$0xff]   ;;  %3242 = vst [vmem:[%s5266_s1 + $0x78] sm:$0xff] %v3869_v54  ;;  %3246 = vst [vmem:[%s5266_s1 + $0x258] sm:$0xff] %v3870_v55  ;;  %v3879_v0 = vld [vmem:[%s5265_s0 + $0x3ac] sm:$0xff]  }
  0x1e   :  { %v3872_v57 = vld [vmem:[%s5265_s0 + $0x4d8] sm:$0xff]   ;;  %3250 = vst [vmem:[%s5266_s1 + $0x438] sm:$0xff] %v3871_v56  ;;  %v3880_v1 = vld [vmem:[%s5265_s0 + $0x1cc] sm:$0xff]   ;;  %3278 = vst [vmem:[%s5266_s1 + $0x8c] sm:$0xff] %v3878_v63 }
  0x1f   :  { %v3873_v58 = vld [vmem:[%s5265_s0 + $0x2f8] sm:$0xff]   ;;  %3254 = vst [vmem:[%s5266_s1 + $0x118] sm:$0xff] %v3872_v57  ;;  %v3881_v2 = vld [vmem:[%s5265_s0 + $0x4ec] sm:$0xff]   ;;  %3282 = vst [vmem:[%s5266_s1 + $0x26c] sm:$0xff] %v3879_v0 }
  0x20   :  { %v3874_v59 = vld [vmem:[%s5265_s0 + $0x118] sm:$0xff]   ;;  %3258 = vst [vmem:[%s5266_s1 + $0x2f8] sm:$0xff] %v3873_v58  ;;  %3286 = vst [vmem:[%s5266_s1 + $0x44c] sm:$0xff] %v3880_v1  ;;  %v3882_v3 = vld [vmem:[%s5265_s0 + $0x30c] sm:$0xff]  }
  0x21   :  { %v3875_v60 = vld [vmem:[%s5265_s0 + $0x438] sm:$0xff]   ;;  %3262 = vst [vmem:[%s5266_s1 + $0x4d8] sm:$0xff] %v3874_v59  ;;  %v3883_v4 = vld [vmem:[%s5265_s0 + $0x12c] sm:$0xff]   ;;  %3290 = vst [vmem:[%s5266_s1 + $0x12c] sm:$0xff] %v3881_v2 }
  0x22   :  { %v3876_v61 = vld [vmem:[%s5265_s0 + $0x258] sm:$0xff]   ;;  %3266 = vst [vmem:[%s5266_s1 + $0x1b8] sm:$0xff] %v3875_v60  ;;  %v3884_v5 = vld [vmem:[%s5265_s0 + $0x44c] sm:$0xff]   ;;  %3294 = vst [vmem:[%s5266_s1 + $0x30c] sm:$0xff] %v3882_v3 }
  0x23   :  { %v3877_v62 = vld [vmem:[%s5265_s0 + $0x78] sm:$0xff]   ;;  %3270 = vst [vmem:[%s5266_s1 + $0x398] sm:$0xff] %v3876_v61  ;;  %3298 = vst [vmem:[%s5266_s1 + $0x4ec] sm:$0xff] %v3883_v4  ;;  %v3885_v6 = vld [vmem:[%s5265_s0 + $0x26c] sm:$0xff]  }
  0x24   :  { %3274 = vst [vmem:[%s5266_s1 + $0x578] sm:$0xff] %v3877_v62  ;;  %v3886_v7 = vld [vmem:[%s5265_s0 + $0x8c] sm:$0xff]   ;;  %3302 = vst [vmem:[%s5266_s1 + $0x1cc] sm:$0xff] %v3884_v5  ;;  %v3896_v17 = vld [vmem:[%s5265_s0 + $0x51c] sm:$0xff]  }
  0x25   :  { %3306 = vst [vmem:[%s5266_s1 + $0x3ac] sm:$0xff] %v3885_v6  ;;  %3310 = vst [vmem:[%s5266_s1 + $0x58c] sm:$0xff] %v3886_v7  ;;  %v3887_v8 = vld [vmem:[%s5265_s0 + $0x508] sm:$0xff]   ;;  %v3897_v18 = vld [vmem:[%s5265_s0 + $0x33c] sm:$0xff]  }
  0x26   :  { %v3888_v9 = vld [vmem:[%s5265_s0 + $0x328] sm:$0xff]   ;;  %3386 = vst [vmem:[%s5266_s1 + $0x8] sm:$0xff] %v3887_v8  ;;  %v3898_v19 = vld [vmem:[%s5265_s0 + $0x15c] sm:$0xff]   ;;  %3422 = vst [vmem:[%s5266_s1 + $0x1c] sm:$0xff] %v3896_v17 }
  0x27   :  { %v3889_v10 = vld [vmem:[%s5265_s0 + $0x148] sm:$0xff]   ;;  %3390 = vst [vmem:[%s5266_s1 + $0x1e8] sm:$0xff] %v3888_v9  ;;  %v3899_v20 = vld [vmem:[%s5265_s0 + $0x47c] sm:$0xff]   ;;  %3426 = vst [vmem:[%s5266_s1 + $0x1fc] sm:$0xff] %v3897_v18 }
  0x28   :  { %v3890_v11 = vld [vmem:[%s5265_s0 + $0x468] sm:$0xff]   ;;  %3394 = vst [vmem:[%s5266_s1 + $0x3c8] sm:$0xff] %v3889_v10  ;;  %3430 = vst [vmem:[%s5266_s1 + $0x3dc] sm:$0xff] %v3898_v19  ;;  %v3900_v21 = vld [vmem:[%s5265_s0 + $0x29c] sm:$0xff]  }
  0x29   :  { %v3891_v12 = vld [vmem:[%s5265_s0 + $0x288] sm:$0xff]   ;;  %3398 = vst [vmem:[%s5266_s1 + $0xa8] sm:$0xff] %v3890_v11  ;;  %v3901_v22 = vld [vmem:[%s5265_s0 + $0xbc] sm:$0xff]   ;;  %3434 = vst [vmem:[%s5266_s1 + $0xbc] sm:$0xff] %v3899_v20 }
  0x2a   :  { %v3892_v13 = vld [vmem:[%s5265_s0 + $0xa8] sm:$0xff]   ;;  %3402 = vst [vmem:[%s5266_s1 + $0x288] sm:$0xff] %v3891_v12  ;;  %v3902_v23 = vld [vmem:[%s5265_s0 + $0x3dc] sm:$0xff]   ;;  %3438 = vst [vmem:[%s5266_s1 + $0x29c] sm:$0xff] %v3900_v21 }
  0x2b   :  { %v3893_v14 = vld [vmem:[%s5265_s0 + $0x3c8] sm:$0xff]   ;;  %3406 = vst [vmem:[%s5266_s1 + $0x468] sm:$0xff] %v3892_v13  ;;  %3442 = vst [vmem:[%s5266_s1 + $0x47c] sm:$0xff] %v3901_v22  ;;  %v3903_v24 = vld [vmem:[%s5265_s0 + $0x1fc] sm:$0xff]  }
  0x2c   :  { %v3894_v15 = vld [vmem:[%s5265_s0 + $0x1e8] sm:$0xff]   ;;  %3410 = vst [vmem:[%s5266_s1 + $0x148] sm:$0xff] %v3893_v14  ;;  %v3904_v25 = vld [vmem:[%s5265_s0 + $0x1c] sm:$0xff]   ;;  %3446 = vst [vmem:[%s5266_s1 + $0x15c] sm:$0xff] %v3902_v23 }
  0x2d   :  { %v3895_v16 = vld [vmem:[%s5265_s0 + $0x8] sm:$0xff]   ;;  %3414 = vst [vmem:[%s5266_s1 + $0x328] sm:$0xff] %v3894_v15  ;;  %v3905_v26 = vld [vmem:[%s5265_s0 + $0x530] sm:$0xff]   ;;  %3450 = vst [vmem:[%s5266_s1 + $0x33c] sm:$0xff] %v3903_v24 }
  0x2e   :  { %3418 = vst [vmem:[%s5266_s1 + $0x508] sm:$0xff] %v3895_v16  ;;  %3454 = vst [vmem:[%s5266_s1 + $0x51c] sm:$0xff] %v3904_v25  ;;  %v3906_v27 = vld [vmem:[%s5265_s0 + $0x350] sm:$0xff]   ;;  %v3914_v35 = vld [vmem:[%s5265_s0 + $0x544] sm:$0xff]  }
  0x2f   :  { %v3907_v28 = vld [vmem:[%s5265_s0 + $0x170] sm:$0xff]   ;;  %3458 = vst [vmem:[%s5266_s1 + $0x30] sm:$0xff] %v3905_v26  ;;  %3462 = vst [vmem:[%s5266_s1 + $0x210] sm:$0xff] %v3906_v27  ;;  %v3915_v36 = vld [vmem:[%s5265_s0 + $0x364] sm:$0xff]  }
  0x30   :  { %v3908_v29 = vld [vmem:[%s5265_s0 + $0x490] sm:$0xff]   ;;  %3466 = vst [vmem:[%s5266_s1 + $0x3f0] sm:$0xff] %v3907_v28  ;;  %v3916_v37 = vld [vmem:[%s5265_s0 + $0x184] sm:$0xff]   ;;  %3494 = vst [vmem:[%s5266_s1 + $0x44] sm:$0xff] %v3914_v35 }
  0x31   :  { %v3909_v30 = vld [vmem:[%s5265_s0 + $0x2b0] sm:$0xff]   ;;  %3470 = vst [vmem:[%s5266_s1 + $0xd0] sm:$0xff] %v3908_v29  ;;  %v3917_v38 = vld [vmem:[%s5265_s0 + $0x4a4] sm:$0xff]   ;;  %3498 = vst [vmem:[%s5266_s1 + $0x224] sm:$0xff] %v3915_v36 }
  0x32   :  { %v3910_v31 = vld [vmem:[%s5265_s0 + $0xd0] sm:$0xff]   ;;  %3474 = vst [vmem:[%s5266_s1 + $0x2b0] sm:$0xff] %v3909_v30  ;;  %3502 = vst [vmem:[%s5266_s1 + $0x404] sm:$0xff] %v3916_v37  ;;  %v3918_v39 = vld [vmem:[%s5265_s0 + $0x2c4] sm:$0xff]  }
  0x33   :  { %v3911_v32 = vld [vmem:[%s5265_s0 + $0x3f0] sm:$0xff]   ;;  %3478 = vst [vmem:[%s5266_s1 + $0x490] sm:$0xff] %v3910_v31  ;;  %v3919_v40 = vld [vmem:[%s5265_s0 + $0xe4] sm:$0xff]   ;;  %3506 = vst [vmem:[%s5266_s1 + $0xe4] sm:$0xff] %v3917_v38 }
  0x34   :  { %v3912_v33 = vld [vmem:[%s5265_s0 + $0x210] sm:$0xff]   ;;  %3482 = vst [vmem:[%s5266_s1 + $0x170] sm:$0xff] %v3911_v32  ;;  %v3920_v41 = vld [vmem:[%s5265_s0 + $0x404] sm:$0xff]   ;;  %3510 = vst [vmem:[%s5266_s1 + $0x2c4] sm:$0xff] %v3918_v39 }
  0x35   :  { %v3913_v34 = vld [vmem:[%s5265_s0 + $0x30] sm:$0xff]   ;;  %3486 = vst [vmem:[%s5266_s1 + $0x350] sm:$0xff] %v3912_v33  ;;  %3514 = vst [vmem:[%s5266_s1 + $0x4a4] sm:$0xff] %v3919_v40  ;;  %v3921_v42 = vld [vmem:[%s5265_s0 + $0x224] sm:$0xff]  }
  0x36   :  { %3490 = vst [vmem:[%s5266_s1 + $0x530] sm:$0xff] %v3913_v34  ;;  %v3922_v43 = vld [vmem:[%s5265_s0 + $0x44] sm:$0xff]   ;;  %3518 = vst [vmem:[%s5266_s1 + $0x184] sm:$0xff] %v3920_v41  ;;  %v3923_v44 = vld [vmem:[%s5265_s0 + $0x558] sm:$0xff]  }
  0x37   :  { %3522 = vst [vmem:[%s5266_s1 + $0x364] sm:$0xff] %v3921_v42  ;;  %3526 = vst [vmem:[%s5266_s1 + $0x544] sm:$0xff] %v3922_v43  ;;  %v3924_v45 = vld [vmem:[%s5265_s0 + $0x378] sm:$0xff]   ;;  %v3932_v53 = vld [vmem:[%s5265_s0 + $0x56c] sm:$0xff]  }
  0x38   :  { %v3925_v46 = vld [vmem:[%s5265_s0 + $0x198] sm:$0xff]   ;;  %3530 = vst [vmem:[%s5266_s1 + $0x58] sm:$0xff] %v3923_v44  ;;  %3534 = vst [vmem:[%s5266_s1 + $0x238] sm:$0xff] %v3924_v45  ;;  %v3933_v54 = vld [vmem:[%s5265_s0 + $0x38c] sm:$0xff]  }
  0x39   :  { %v3926_v47 = vld [vmem:[%s5265_s0 + $0x4b8] sm:$0xff]   ;;  %3538 = vst [vmem:[%s5266_s1 + $0x418] sm:$0xff] %v3925_v46  ;;  %v3934_v55 = vld [vmem:[%s5265_s0 + $0x1ac] sm:$0xff]   ;;  %3566 = vst [vmem:[%s5266_s1 + $0x6c] sm:$0xff] %v3932_v53 }
  0x3a   :  { %v3927_v48 = vld [vmem:[%s5265_s0 + $0x2d8] sm:$0xff]   ;;  %3542 = vst [vmem:[%s5266_s1 + $0xf8] sm:$0xff] %v3926_v47  ;;  %v3935_v56 = vld [vmem:[%s5265_s0 + $0x4cc] sm:$0xff]   ;;  %3570 = vst [vmem:[%s5266_s1 + $0x24c] sm:$0xff] %v3933_v54 }
  0x3b   :  { %v3928_v49 = vld [vmem:[%s5265_s0 + $0xf8] sm:$0xff]   ;;  %3546 = vst [vmem:[%s5266_s1 + $0x2d8] sm:$0xff] %v3927_v48  ;;  %3574 = vst [vmem:[%s5266_s1 + $0x42c] sm:$0xff] %v3934_v55  ;;  %v3936_v57 = vld [vmem:[%s5265_s0 + $0x2ec] sm:$0xff]  }
  0x3c   :  { %v3929_v50 = vld [vmem:[%s5265_s0 + $0x418] sm:$0xff]   ;;  %3550 = vst [vmem:[%s5266_s1 + $0x4b8] sm:$0xff] %v3928_v49  ;;  %v3937_v58 = vld [vmem:[%s5265_s0 + $0x10c] sm:$0xff]   ;;  %3578 = vst [vmem:[%s5266_s1 + $0x10c] sm:$0xff] %v3935_v56 }
  0x3d   :  { %v3930_v51 = vld [vmem:[%s5265_s0 + $0x238] sm:$0xff]   ;;  %3554 = vst [vmem:[%s5266_s1 + $0x198] sm:$0xff] %v3929_v50  ;;  %v3938_v59 = vld [vmem:[%s5265_s0 + $0x42c] sm:$0xff]   ;;  %3582 = vst [vmem:[%s5266_s1 + $0x2ec] sm:$0xff] %v3936_v57 }
  0x3e   :  { %v3931_v52 = vld [vmem:[%s5265_s0 + $0x58] sm:$0xff]   ;;  %3558 = vst [vmem:[%s5266_s1 + $0x378] sm:$0xff] %v3930_v51  ;;  %3586 = vst [vmem:[%s5266_s1 + $0x4cc] sm:$0xff] %v3937_v58  ;;  %v3939_v60 = vld [vmem:[%s5265_s0 + $0x24c] sm:$0xff]  }
  0x3f   :  { %3562 = vst [vmem:[%s5266_s1 + $0x558] sm:$0xff] %v3931_v52  ;;  %v3940_v61 = vld [vmem:[%s5265_s0 + $0x6c] sm:$0xff]   ;;  %3590 = vst [vmem:[%s5266_s1 + $0x1ac] sm:$0xff] %v3938_v59  ;;  %v3941_v62 = vld [vmem:[%s5265_s0 + $0x580] sm:$0xff]  }
  0x40   :  { %3594 = vst [vmem:[%s5266_s1 + $0x38c] sm:$0xff] %v3939_v60  ;;  %3598 = vst [vmem:[%s5266_s1 + $0x56c] sm:$0xff] %v3940_v61  ;;  %v3942_v63 = vld [vmem:[%s5265_s0 + $0x3a0] sm:$0xff]   ;;  %v3950_v7 = vld [vmem:[%s5265_s0 + $0x594] sm:$0xff]  }
  0x41   :  { %v3943_v0 = vld [vmem:[%s5265_s0 + $0x1c0] sm:$0xff]   ;;  %3602 = vst [vmem:[%s5266_s1 + $0x80] sm:$0xff] %v3941_v62  ;;  %3606 = vst [vmem:[%s5266_s1 + $0x260] sm:$0xff] %v3942_v63  ;;  %v3951_v8 = vld [vmem:[%s5265_s0 + $0x3b4] sm:$0xff]  }
  0x42   :  { %v3944_v1 = vld [vmem:[%s5265_s0 + $0x4e0] sm:$0xff]   ;;  %3610 = vst [vmem:[%s5266_s1 + $0x440] sm:$0xff] %v3943_v0  ;;  %v3952_v9 = vld [vmem:[%s5265_s0 + $0x1d4] sm:$0xff]   ;;  %3638 = vst [vmem:[%s5266_s1 + $0x94] sm:$0xff] %v3950_v7 }
  0x43   :  { %v3945_v2 = vld [vmem:[%s5265_s0 + $0x300] sm:$0xff]   ;;  %3614 = vst [vmem:[%s5266_s1 + $0x120] sm:$0xff] %v3944_v1  ;;  %v3953_v10 = vld [vmem:[%s5265_s0 + $0x4f4] sm:$0xff]   ;;  %3642 = vst [vmem:[%s5266_s1 + $0x274] sm:$0xff] %v3951_v8 }
  0x44   :  { %v3946_v3 = vld [vmem:[%s5265_s0 + $0x120] sm:$0xff]   ;;  %3618 = vst [vmem:[%s5266_s1 + $0x300] sm:$0xff] %v3945_v2  ;;  %3646 = vst [vmem:[%s5266_s1 + $0x454] sm:$0xff] %v3952_v9  ;;  %v3954_v11 = vld [vmem:[%s5265_s0 + $0x314] sm:$0xff]  }
  0x45   :  { %v3947_v4 = vld [vmem:[%s5265_s0 + $0x440] sm:$0xff]   ;;  %3622 = vst [vmem:[%s5266_s1 + $0x4e0] sm:$0xff] %v3946_v3  ;;  %v3955_v12 = vld [vmem:[%s5265_s0 + $0x134] sm:$0xff]   ;;  %3650 = vst [vmem:[%s5266_s1 + $0x134] sm:$0xff] %v3953_v10 }
  0x46   :  { %v3948_v5 = vld [vmem:[%s5265_s0 + $0x260] sm:$0xff]   ;;  %3626 = vst [vmem:[%s5266_s1 + $0x1c0] sm:$0xff] %v3947_v4  ;;  %v3956_v13 = vld [vmem:[%s5265_s0 + $0x454] sm:$0xff]   ;;  %3654 = vst [vmem:[%s5266_s1 + $0x314] sm:$0xff] %v3954_v11 }
  0x47   :  { %v3949_v6 = vld [vmem:[%s5265_s0 + $0x80] sm:$0xff]   ;;  %3630 = vst [vmem:[%s5266_s1 + $0x3a0] sm:$0xff] %v3948_v5  ;;  %3658 = vst [vmem:[%s5266_s1 + $0x4f4] sm:$0xff] %v3955_v12  ;;  %v3957_v14 = vld [vmem:[%s5265_s0 + $0x274] sm:$0xff]  }
  0x48   :  { %3634 = vst [vmem:[%s5266_s1 + $0x580] sm:$0xff] %v3949_v6  ;;  %v3958_v15 = vld [vmem:[%s5265_s0 + $0x94] sm:$0xff]   ;;  %3662 = vst [vmem:[%s5266_s1 + $0x1d4] sm:$0xff] %v3956_v13  ;;  %v3671_v16 = vld [vmem:[%s5265_s0 + $0x510] sm:$0xf] }
  0x49   :  { %v3673_v17 = vld [vmem:[%s5265_s0 + $0x330] sm:$0xf]  ;;  %3666 = vst [vmem:[%s5266_s1 + $0x3b4] sm:$0xff] %v3957_v14  ;;  %3670 = vst [vmem:[%s5266_s1 + $0x594] sm:$0xff] %v3958_v15  ;;  %v3689_v25 = vld [vmem:[%s5265_s0 + $0x524] sm:$0xf] }
  0x4a   :  { %v3675_v18 = vld [vmem:[%s5265_s0 + $0x150] sm:$0xf]  ;;  %3672 = vst [vmem:[%s5266_s1 + $0x10] sm:$0xf] %v3671_v16  ;;  %3674 = vst [vmem:[%s5266_s1 + $0x1f0] sm:$0xf] %v3673_v17 }
  0x4b   :  { %3676 = vst [vmem:[%s5266_s1 + $0x3d0] sm:$0xf] %v3675_v18  ;;  %v3677_v19 = vld [vmem:[%s5265_s0 + $0x470] sm:$0xf]  ;;  %v3691_v26 = vld [vmem:[%s5265_s0 + $0x344] sm:$0xf] }
  0x4c   :  { %v3679_v20 = vld [vmem:[%s5265_s0 + $0x290] sm:$0xf]  ;;  %3678 = vst [vmem:[%s5266_s1 + $0xb0] sm:$0xf] %v3677_v19  ;;  %v3693_v27 = vld [vmem:[%s5265_s0 + $0x164] sm:$0xf] }
  0x4d   :  { %v3681_v21 = vld [vmem:[%s5265_s0 + $0xb0] sm:$0xf]  ;;  %3680 = vst [vmem:[%s5266_s1 + $0x290] sm:$0xf] %v3679_v20  ;;  %3690 = vst [vmem:[%s5266_s1 + $0x24] sm:$0xf] %v3689_v25 }
  0x4e   :  { %3682 = vst [vmem:[%s5266_s1 + $0x470] sm:$0xf] %v3681_v21  ;;  %v3683_v22 = vld [vmem:[%s5265_s0 + $0x3d0] sm:$0xf]  ;;  %3692 = vst [vmem:[%s5266_s1 + $0x204] sm:$0xf] %v3691_v26 }
  0x4f   :  { %v3685_v23 = vld [vmem:[%s5265_s0 + $0x1f0] sm:$0xf]  ;;  %3684 = vst [vmem:[%s5266_s1 + $0x150] sm:$0xf] %v3683_v22  ;;  %3694 = vst [vmem:[%s5266_s1 + $0x3e4] sm:$0xf] %v3693_v27 }
  0x50   :  { %v3687_v24 = vld [vmem:[%s5265_s0 + $0x10] sm:$0xf]  ;;  %3686 = vst [vmem:[%s5266_s1 + $0x330] sm:$0xf] %v3685_v23  ;;  %v3695_v28 = vld [vmem:[%s5265_s0 + $0x484] sm:$0xf] }
  0x51   :  { %3688 = vst [vmem:[%s5266_s1 + $0x510] sm:$0xf] %v3687_v24  ;;  %v3697_v29 = vld [vmem:[%s5265_s0 + $0x2a4] sm:$0xf]  ;;  %3696 = vst [vmem:[%s5266_s1 + $0xc4] sm:$0xf] %v3695_v28 }
  0x52   :  { %v3699_v30 = vld [vmem:[%s5265_s0 + $0xc4] sm:$0xf]  ;;  %3698 = vst [vmem:[%s5266_s1 + $0x2a4] sm:$0xf] %v3697_v29  ;;  %v3707_v34 = vld [vmem:[%s5265_s0 + $0x538] sm:$0xf] }
  0x53   :  { %3700 = vst [vmem:[%s5266_s1 + $0x484] sm:$0xf] %v3699_v30  ;;  %v3701_v31 = vld [vmem:[%s5265_s0 + $0x3e4] sm:$0xf]  ;;  %v3709_v35 = vld [vmem:[%s5265_s0 + $0x358] sm:$0xf] }
  0x54   :  { %v3703_v32 = vld [vmem:[%s5265_s0 + $0x204] sm:$0xf]  ;;  %3702 = vst [vmem:[%s5266_s1 + $0x164] sm:$0xf] %v3701_v31  ;;  %v3711_v36 = vld [vmem:[%s5265_s0 + $0x178] sm:$0xf] }
  0x55   :  { %v3705_v33 = vld [vmem:[%s5265_s0 + $0x24] sm:$0xf]  ;;  %3704 = vst [vmem:[%s5266_s1 + $0x344] sm:$0xf] %v3703_v32  ;;  %3708 = vst [vmem:[%s5266_s1 + $0x38] sm:$0xf] %v3707_v34 }
  0x56   :  { %3706 = vst [vmem:[%s5266_s1 + $0x524] sm:$0xf] %v3705_v33  ;;  %3710 = vst [vmem:[%s5266_s1 + $0x218] sm:$0xf] %v3709_v35  ;;  %v3713_v37 = vld [vmem:[%s5265_s0 + $0x498] sm:$0xf] }
  0x57   :  { %3712 = vst [vmem:[%s5266_s1 + $0x3f8] sm:$0xf] %v3711_v36  ;;  %v3715_v38 = vld [vmem:[%s5265_s0 + $0x2b8] sm:$0xf]  ;;  %3714 = vst [vmem:[%s5266_s1 + $0xd8] sm:$0xf] %v3713_v37 }
  0x58   :  { %v3717_v39 = vld [vmem:[%s5265_s0 + $0xd8] sm:$0xf]  ;;  %3716 = vst [vmem:[%s5266_s1 + $0x2b8] sm:$0xf] %v3715_v38  ;;  %v3725_v43 = vld [vmem:[%s5265_s0 + $0x54c] sm:$0xf] }
  0x59   :  { %3718 = vst [vmem:[%s5266_s1 + $0x498] sm:$0xf] %v3717_v39  ;;  %v3719_v40 = vld [vmem:[%s5265_s0 + $0x3f8] sm:$0xf]  ;;  %v3727_v44 = vld [vmem:[%s5265_s0 + $0x36c] sm:$0xf] }
  0x5a   :  { %v3721_v41 = vld [vmem:[%s5265_s0 + $0x218] sm:$0xf]  ;;  %3720 = vst [vmem:[%s5266_s1 + $0x178] sm:$0xf] %v3719_v40  ;;  %v3729_v45 = vld [vmem:[%s5265_s0 + $0x18c] sm:$0xf] }
  0x5b   :  { %v3723_v42 = vld [vmem:[%s5265_s0 + $0x38] sm:$0xf]  ;;  %3722 = vst [vmem:[%s5266_s1 + $0x358] sm:$0xf] %v3721_v41  ;;  %3726 = vst [vmem:[%s5266_s1 + $0x4c] sm:$0xf] %v3725_v43 }
  0x5c   :  { %3724 = vst [vmem:[%s5266_s1 + $0x538] sm:$0xf] %v3723_v42  ;;  %3728 = vst [vmem:[%s5266_s1 + $0x22c] sm:$0xf] %v3727_v44  ;;  %v3731_v46 = vld [vmem:[%s5265_s0 + $0x4ac] sm:$0xf] }
  0x5d   :  { %3730 = vst [vmem:[%s5266_s1 + $0x40c] sm:$0xf] %v3729_v45  ;;  %v3733_v47 = vld [vmem:[%s5265_s0 + $0x2cc] sm:$0xf]  ;;  %3732 = vst [vmem:[%s5266_s1 + $0xec] sm:$0xf] %v3731_v46 }
  0x5e   :  { %v3735_v48 = vld [vmem:[%s5265_s0 + $0xec] sm:$0xf]  ;;  %3734 = vst [vmem:[%s5266_s1 + $0x2cc] sm:$0xf] %v3733_v47  ;;  %v3743_v52 = vld [vmem:[%s5265_s0 + $0x560] sm:$0xf] }
  0x5f   :  { %3736 = vst [vmem:[%s5266_s1 + $0x4ac] sm:$0xf] %v3735_v48  ;;  %v3737_v49 = vld [vmem:[%s5265_s0 + $0x40c] sm:$0xf]  ;;  %v3745_v53 = vld [vmem:[%s5265_s0 + $0x380] sm:$0xf] }
  0x60   :  { %v3739_v50 = vld [vmem:[%s5265_s0 + $0x22c] sm:$0xf]  ;;  %3738 = vst [vmem:[%s5266_s1 + $0x18c] sm:$0xf] %v3737_v49  ;;  %v3747_v54 = vld [vmem:[%s5265_s0 + $0x1a0] sm:$0xf] }
  0x61   :  { %v3741_v51 = vld [vmem:[%s5265_s0 + $0x4c] sm:$0xf]  ;;  %3740 = vst [vmem:[%s5266_s1 + $0x36c] sm:$0xf] %v3739_v50  ;;  %3744 = vst [vmem:[%s5266_s1 + $0x60] sm:$0xf] %v3743_v52 }
  0x62   :  { %3742 = vst [vmem:[%s5266_s1 + $0x54c] sm:$0xf] %v3741_v51  ;;  %3746 = vst [vmem:[%s5266_s1 + $0x240] sm:$0xf] %v3745_v53  ;;  %v3749_v55 = vld [vmem:[%s5265_s0 + $0x4c0] sm:$0xf] }
  0x63   :  { %3748 = vst [vmem:[%s5266_s1 + $0x420] sm:$0xf] %v3747_v54  ;;  %v3751_v56 = vld [vmem:[%s5265_s0 + $0x2e0] sm:$0xf]  ;;  %3750 = vst [vmem:[%s5266_s1 + $0x100] sm:$0xf] %v3749_v55 }
  0x64   :  { %v3753_v57 = vld [vmem:[%s5265_s0 + $0x100] sm:$0xf]  ;;  %3752 = vst [vmem:[%s5266_s1 + $0x2e0] sm:$0xf] %v3751_v56  ;;  %v3761_v61 = vld [vmem:[%s5265_s0 + $0x574] sm:$0xf] }
  0x65   :  { %3754 = vst [vmem:[%s5266_s1 + $0x4c0] sm:$0xf] %v3753_v57  ;;  %v3755_v58 = vld [vmem:[%s5265_s0 + $0x420] sm:$0xf]  ;;  %v3763_v62 = vld [vmem:[%s5265_s0 + $0x394] sm:$0xf] }
  0x66   :  { %v3757_v59 = vld [vmem:[%s5265_s0 + $0x240] sm:$0xf]  ;;  %3756 = vst [vmem:[%s5266_s1 + $0x1a0] sm:$0xf] %v3755_v58  ;;  %v3765_v63 = vld [vmem:[%s5265_s0 + $0x1b4] sm:$0xf] }
  0x67   :  { %v3759_v60 = vld [vmem:[%s5265_s0 + $0x60] sm:$0xf]  ;;  %3758 = vst [vmem:[%s5266_s1 + $0x380] sm:$0xf] %v3757_v59  ;;  %3762 = vst [vmem:[%s5266_s1 + $0x74] sm:$0xf] %v3761_v61 }
  0x68   :  { %3760 = vst [vmem:[%s5266_s1 + $0x560] sm:$0xf] %v3759_v60  ;;  %3764 = vst [vmem:[%s5266_s1 + $0x254] sm:$0xf] %v3763_v62  ;;  %v3767_v0 = vld [vmem:[%s5265_s0 + $0x4d4] sm:$0xf] }
  0x69   :  { %3766 = vst [vmem:[%s5266_s1 + $0x434] sm:$0xf] %v3765_v63  ;;  %v3769_v1 = vld [vmem:[%s5265_s0 + $0x2f4] sm:$0xf]  ;;  %3768 = vst [vmem:[%s5266_s1 + $0x114] sm:$0xf] %v3767_v0 }
  0x6a   :  { %v3771_v2 = vld [vmem:[%s5265_s0 + $0x114] sm:$0xf]  ;;  %3770 = vst [vmem:[%s5266_s1 + $0x2f4] sm:$0xf] %v3769_v1  ;;  %v3779_v6 = vld [vmem:[%s5265_s0 + $0x588] sm:$0xf] }
  0x6b   :  { %3772 = vst [vmem:[%s5266_s1 + $0x4d4] sm:$0xf] %v3771_v2  ;;  %v3773_v3 = vld [vmem:[%s5265_s0 + $0x434] sm:$0xf]  ;;  %v3781_v7 = vld [vmem:[%s5265_s0 + $0x3a8] sm:$0xf] }
  0x6c   :  { %v3775_v4 = vld [vmem:[%s5265_s0 + $0x254] sm:$0xf]  ;;  %3774 = vst [vmem:[%s5266_s1 + $0x1b4] sm:$0xf] %v3773_v3  ;;  %v3783_v8 = vld [vmem:[%s5265_s0 + $0x1c8] sm:$0xf] }
  0x6d   :  { %v3777_v5 = vld [vmem:[%s5265_s0 + $0x74] sm:$0xf]  ;;  %3776 = vst [vmem:[%s5266_s1 + $0x394] sm:$0xf] %v3775_v4  ;;  %3780 = vst [vmem:[%s5266_s1 + $0x88] sm:$0xf] %v3779_v6 }
  0x6e   :  { %3778 = vst [vmem:[%s5266_s1 + $0x574] sm:$0xf] %v3777_v5  ;;  %3782 = vst [vmem:[%s5266_s1 + $0x268] sm:$0xf] %v3781_v7  ;;  %v3785_v9 = vld [vmem:[%s5265_s0 + $0x4e8] sm:$0xf] }
  0x6f   :  { %3784 = vst [vmem:[%s5266_s1 + $0x448] sm:$0xf] %v3783_v8  ;;  %v3787_v10 = vld [vmem:[%s5265_s0 + $0x308] sm:$0xf]  ;;  %3786 = vst [vmem:[%s5266_s1 + $0x128] sm:$0xf] %v3785_v9 }
  0x70   :  { %v3789_v11 = vld [vmem:[%s5265_s0 + $0x128] sm:$0xf]  ;;  %3788 = vst [vmem:[%s5266_s1 + $0x308] sm:$0xf] %v3787_v10  ;;  %v3797_v15 = vld [vmem:[%s5265_s0 + $0x59c] sm:$0xf] }
  0x71   :  { %3790 = vst [vmem:[%s5266_s1 + $0x4e8] sm:$0xf] %v3789_v11  ;;  %v3791_v12 = vld [vmem:[%s5265_s0 + $0x448] sm:$0xf]  ;;  %v3799_v16 = vld [vmem:[%s5265_s0 + $0x3bc] sm:$0xf] }
  0x72   :  { %v3793_v13 = vld [vmem:[%s5265_s0 + $0x268] sm:$0xf]  ;;  %3792 = vst [vmem:[%s5266_s1 + $0x1c8] sm:$0xf] %v3791_v12  ;;  %v3801_v17 = vld [vmem:[%s5265_s0 + $0x1dc] sm:$0xf] }
  0x73   :  { %v3795_v14 = vld [vmem:[%s5265_s0 + $0x88] sm:$0xf]  ;;  %3794 = vst [vmem:[%s5266_s1 + $0x3a8] sm:$0xf] %v3793_v13  ;;  %3798 = vst [vmem:[%s5266_s1 + $0x9c] sm:$0xf] %v3797_v15 }
  0x74   :  { %3796 = vst [vmem:[%s5266_s1 + $0x588] sm:$0xf] %v3795_v14  ;;  %3800 = vst [vmem:[%s5266_s1 + $0x27c] sm:$0xf] %v3799_v16  ;;  %v3803_v18 = vld [vmem:[%s5265_s0 + $0x4fc] sm:$0xf] }
  0x75   :  { %3802 = vst [vmem:[%s5266_s1 + $0x45c] sm:$0xf] %v3801_v17  ;;  %v3805_v19 = vld [vmem:[%s5265_s0 + $0x31c] sm:$0xf]  ;;  %3804 = vst [vmem:[%s5266_s1 + $0x13c] sm:$0xf] %v3803_v18 }
  0x76   :  { %v3807_v20 = vld [vmem:[%s5265_s0 + $0x13c] sm:$0xf]  ;;  %3806 = vst [vmem:[%s5266_s1 + $0x31c] sm:$0xf] %v3805_v19 }
  0x77   :  { %3808 = vst [vmem:[%s5266_s1 + $0x4fc] sm:$0xf] %v3807_v20  ;;  %v3809_v21 = vld [vmem:[%s5265_s0 + $0x45c] sm:$0xf] }
  0x78   :  { %v3811_v22 = vld [vmem:[%s5265_s0 + $0x27c] sm:$0xf]  ;;  %3810 = vst [vmem:[%s5266_s1 + $0x1dc] sm:$0xf] %v3809_v21 }
  0x79   :  { %v3813_v23 = vld [vmem:[%s5265_s0 + $0x9c] sm:$0xf]  ;;  %3812 = vst [vmem:[%s5266_s1 + $0x3bc] sm:$0xf] %v3811_v22 }
  0x7a   :  { %3814 = vst [vmem:[%s5266_s1 + $0x59c] sm:$0xf] %v3813_v23 }

// kernel: resnet_forward.51
= control target key start
LH: loop header
LB: loop body
LE: loop exit
PB: predicated region body
PF: predicated region fallthrough
CT: control target
= control target key end

     0   :  { %vm211_vm0 = vcmask 523264   ;;  %s362_s1 = inlined_call_operand.vmem [shape: bf16[256,64], index: 1, kind: input, shape index: {}]   ;;  %s363_s0 = inlined_call_operand.vmem [shape: bf16[8,256], index: 0, kind: input, shape index: {}]   ;;  %s364_s2 = inlined_call_operand.vmem [shape: f32[1,64], index: 2, kind: input, shape index: {}]   ;;  %s365_s3 = inlined_call_operand.vmem [shape: f32[1,64], index: 3, kind: input, shape index: {}]   ;;  %s366_s4 = inlined_call_operand.vmem [shape: f32[8,64], index: 4, kind: output, shape index: {}]  }
   0x1   :  { %v259_v0 = vld [vmem:[%s362_s1 + $0x40] sm:$0xff]   ;;  %v261_v2 = vld [vmem:[%s362_s1 + $0x48] sm:$0xff]   ;;  %v263_v4 = vld [vmem:[%s362_s1 + $0x50] sm:$0xff]  }
   0x2   :  { %v260_v1 = vld [vmem:[%s362_s1] sm:$0xff]   ;;  %237 = vmatprep.subr.bf16.mxu0 %v259_v0  ;;  %v262_v3 = vld [vmem:[%s362_s1 + $0x8] sm:$0xff]   ;;  %v264_v5 = vld [vmem:[%s362_s1 + $0x10] sm:$0xff]  }
   0x3   :  { %238 = vmatpush3.bf16.msra.mxu0 %v260_v1  ;;  %v265_v6 = vld [vmem:[%s362_s1 + $0x58] sm:$0xff]   ;;  %v267_v8 = vld [vmem:[%s362_s1 + $0x60] sm:$0xff]   ;;  %v269_v10 = vld [vmem:[%s362_s1 + $0x68] sm:$0xff]  }
   0x4   :  { %239 = vmatprep.subr.bf16.mxu0 %v261_v2  ;;  %v266_v7 = vld [vmem:[%s362_s1 + $0x18] sm:$0xff]   ;;  %v268_v9 = vld [vmem:[%s362_s1 + $0x20] sm:$0xff]   ;;  %v270_v13 = vld [vmem:[%s362_s1 + $0x28] sm:$0xff]  }
   0x5   :  { %v18_v11 = vld [vmem:[%s363_s0] sm:$0xff]  ;;  %v271_v14 = vld [vmem:[%s362_s1 + $0x70] sm:$0xff]   ;;  %v273_v16 = vld [vmem:[%s362_s1 + $0x78] sm:$0xff]  }
   0x6   :  { %v218_v12 = vcombine.high %v18_v11, %v18_v11  ;;  %v272_v15 = vld [vmem:[%s362_s1 + $0x30] sm:$0xff]   ;;  %v274_v17 = vld [vmem:[%s362_s1 + $0x38] sm:$0xff]   ;;  %v217_v18 = vcombine.low %v18_v11, %v18_v11  ;;  %v235_v21 = vld [vmem:[%s364_s2] ss:$0 sm:$0xff] }
   0x7   :  { %240 = vmatpush3.bf16.msra.mxu0 %v262_v3  ;;  %v236_v24 = vld [vmem:[%s365_s3] ss:$0 sm:$0xff] }
   0x8   :  { %241 = vmatprep.subr.bf16.mxu0 %v263_v4  ;;  %186 = vmatprep.mubr.bf16.mxu0 %v218_v12 }
   0xb   :  { %242 = vmatpush3.bf16.msra.mxu0 %v264_v5 }
   0xc   :  { %243 = vmatprep.subr.bf16.mxu0 %v265_v6 }
   0xf   :  { %244 = vmatpush3.bf16.msra.mxu0 %v266_v7 }
  0x10   :  { %245 = vmatprep.subr.bf16.mxu0 %v267_v8 }
  0x13   :  { %246 = vmatpush3.bf16.msra.mxu0 %v268_v9 }
  0x14   :  { %247 = vmatprep.subr.bf16.mxu0 %v269_v10 }
  0x17   :  { %248 = vmatpush3.bf16.msra.mxu0 %v270_v13 }
  0x18   :  { %249 = vmatprep.subr.bf16.mxu0 %v271_v14 }
  0x1b   :  { %250 = vmatpush3.bf16.msra.mxu0 %v272_v15 }
  0x1c   :  { %251 = vmatprep.subr.bf16.mxu0 %v273_v16 }
  0x1f   :  { %252 = vmatpush3.bf16.msra.mxu0 %v274_v17 }
  0x22   :  { %187 = vmatmul.mubr.bf16.vlgmr.msra.gmra.mrb[0].mxu0 %v217_v18 }
  0xf5   :  { %v253_v19 = vpop.f32.mrb[0].mxu0 }
  0xf6   :  { %v254_v20 = vpop.f32.mrb[1].mxu0 }
  0xf7   :  { %v255_v22 = vadd.f32 %v254_v20, %v253_v19  ;;  %v256_v23 = vpop.f32.mrb[2].mxu0 }
  0xf8   :  { %v257_v25 = vpop.f32.mrb[3].mxu0 }
  0xf9   :  { %v201_v26 = vmul.f32 %v255_v22, %v235_v21 }
  0xfb   :  { %v209_v27 = vadd.f32 %v236_v24, %v201_v26 }
  0xfd   :  { %v210_v28 = vmax.f32 %v209_v27, 0.0 }
  0xff   :  { %212 = vst.msk [vmem:[%s366_s4] sm:$0xff] %vm211_vm0, %v210_v28 }

// kernel: resnet_forward.54
= control target key start
LH: loop header
LB: loop body
LE: loop exit
PB: predicated region body
PF: predicated region fallthrough
CT: control target
= control target key end

     0   :  { %s361_s1 = inlined_call_operand.vmem [shape: bf16[256,128], index: 1, kind: input, shape index: {}]   ;;  %s362_s0 = inlined_call_operand.vmem [shape: bf16[8,256], index: 0, kind: input, shape index: {}]   ;;  %s363_s2 = inlined_call_operand.vmem [shape: f32[1,128], index: 2, kind: input, shape index: {}]   ;;  %s364_s3 = inlined_call_operand.vmem [shape: f32[1,128], index: 3, kind: input, shape index: {}]   ;;  %s365_s4 = inlined_call_operand.vmem [shape: f32[8,128], index: 4, kind: output, shape index: {}]  }
   0x1   :  { %v258_v0 = vld [vmem:[%s361_s1 + $0x40] sm:$0xff]   ;;  %v260_v2 = vld [vmem:[%s361_s1 + $0x48] sm:$0xff]   ;;  %v262_v4 = vld [vmem:[%s361_s1 + $0x50] sm:$0xff]  }
   0x2   :  { %v259_v1 = vld [vmem:[%s361_s1] sm:$0xff]   ;;  %236 = vmatprep.subr.bf16.mxu0 %v258_v0  ;;  %v261_v3 = vld [vmem:[%s361_s1 + $0x8] sm:$0xff]   ;;  %v263_v5 = vld [vmem:[%s361_s1 + $0x10] sm:$0xff]  }
   0x3   :  { %237 = vmatpush3.bf16.msra.mxu0 %v259_v1  ;;  %v264_v6 = vld [vmem:[%s361_s1 + $0x58] sm:$0xff]   ;;  %v266_v8 = vld [vmem:[%s361_s1 + $0x60] sm:$0xff]   ;;  %v268_v10 = vld [vmem:[%s361_s1 + $0x68] sm:$0xff]  }
   0x4   :  { %238 = vmatprep.subr.bf16.mxu0 %v260_v2  ;;  %v265_v7 = vld [vmem:[%s361_s1 + $0x18] sm:$0xff]   ;;  %v267_v9 = vld [vmem:[%s361_s1 + $0x20] sm:$0xff]   ;;  %v269_v13 = vld [vmem:[%s361_s1 + $0x28] sm:$0xff]  }
   0x5   :  { %v18_v11 = vld [vmem:[%s362_s0] sm:$0xff]  ;;  %v270_v14 = vld [vmem:[%s361_s1 + $0x70] sm:$0xff]   ;;  %v272_v16 = vld [vmem:[%s361_s1 + $0x78] sm:$0xff]  }
   0x6   :  { %v217_v12 = vcombine.high %v18_v11, %v18_v11  ;;  %v271_v15 = vld [vmem:[%s361_s1 + $0x30] sm:$0xff]   ;;  %v273_v17 = vld [vmem:[%s361_s1 + $0x38] sm:$0xff]   ;;  %v216_v18 = vcombine.low %v18_v11, %v18_v11  ;;  %v234_v21 = vld [vmem:[%s363_s2] ss:$0 sm:$0xff] }
   0x7   :  { %239 = vmatpush3.bf16.msra.mxu0 %v261_v3  ;;  %v235_v24 = vld [vmem:[%s364_s3] ss:$0 sm:$0xff] }
   0x8   :  { %240 = vmatprep.subr.bf16.mxu0 %v262_v4  ;;  %186 = vmatprep.mubr.bf16.mxu0 %v217_v12 }
   0xb   :  { %241 = vmatpush3.bf16.msra.mxu0 %v263_v5 }
   0xc   :  { %242 = vmatprep.subr.bf16.mxu0 %v264_v6 }
   0xf   :  { %243 = vmatpush3.bf16.msra.mxu0 %v265_v7 }
  0x10   :  { %244 = vmatprep.subr.bf16.mxu0 %v266_v8 }
  0x13   :  { %245 = vmatpush3.bf16.msra.mxu0 %v267_v9 }
  0x14   :  { %246 = vmatprep.subr.bf16.mxu0 %v268_v10 }
  0x17   :  { %247 = vmatpush3.bf16.msra.mxu0 %v269_v13 }
  0x18   :  { %248 = vmatprep.subr.bf16.mxu0 %v270_v14 }
  0x1b   :  { %249 = vmatpush3.bf16.msra.mxu0 %v271_v15 }
  0x1c   :  { %250 = vmatprep.subr.bf16.mxu0 %v272_v16 }
  0x1f   :  { %251 = vmatpush3.bf16.msra.mxu0 %v273_v17 }
  0x22   :  { %187 = vmatmul.mubr.bf16.vlgmr.msra.gmra.mrb[0].mxu0 %v216_v18 }
  0xf5   :  { %v252_v19 = vpop.f32.mrb[0].mxu0 }
  0xf6   :  { %v253_v20 = vpop.f32.mrb[1].mxu0 }
  0xf7   :  { %v254_v22 = vadd.f32 %v253_v20, %v252_v19  ;;  %v255_v23 = vpop.f32.mrb[2].mxu0 }
  0xf8   :  { %v256_v25 = vpop.f32.mrb[3].mxu0 }
  0xf9   :  { %v201_v26 = vmul.f32 %v254_v22, %v234_v21 }
  0xfb   :  { %v209_v27 = vadd.f32 %v235_v24, %v201_v26 }
  0xfd   :  { %v210_v28 = vmax.f32 %v209_v27, 0.0 }
  0xff   :  { %211 = vst [vmem:[%s365_s4] sm:$0xff] %v210_v28 }

// kernel: resnet_forward.55
= control target key start
LH: loop header
LB: loop body
LE: loop exit
PB: predicated region body
PF: predicated region fallthrough
CT: control target
= control target key end

     0   :  { %v1160_v22 = vmov 1966171168   ;;  %v170_v24 = vlaneseq  ;;  %vm1162_vm0 = vmmov 0   ;;  %s1433_s1 = inlined_call_operand.vmem [shape: bf16[1152,128], index: 1, kind: input, shape index: {}]   ;;  %s1434_s0 = inlined_call_operand.vmem [shape: bf16[2,1152], index: 0, kind: input, shape index: {}]   ;;  %s1435_s2 = inlined_call_operand.vmem [shape: f32[1,128], index: 2, kind: input, shape index: {}]   ;;  %s1436_s3 = inlined_call_operand.vmem [shape: f32[1,128], index: 3, kind: input, shape index: {}]   ;;  %s1437_s4 = inlined_call_operand.vmem [shape: f32[2,128], index: 4, kind: output, shape index: {}]  }
   0x1   :  { %v1087_v0 = vld [vmem:[%s1433_s1 + $0x40] sm:$0xff]   ;;  %v1091_v4 = vld [vmem:[%s1433_s1 + $0x48] sm:$0xff]   ;;  %v1095_v8 = vld [vmem:[%s1433_s1 + $0x50] sm:$0xff]   ;;  %v168_v23 = vunpack.c.l.s4 %v1160_v22 }
   0x2   :  { %v1088_v1 = vld [vmem:[%s1433_s1 + $0xc0] sm:$0xff]   ;;  %967 = vmatprep.subr.bf16.mxu0 %v1087_v0  ;;  %v1092_v5 = vld [vmem:[%s1433_s1 + $0xc8] sm:$0xff]   ;;  %v1096_v9 = vld [vmem:[%s1433_s1 + $0xd0] sm:$0xff]   ;;  %v171_v30 = vshrl.u32 %v170_v24, 7 }
   0x3   :  { %v1089_v2 = vld [vmem:[%s1433_s1] sm:$0xff]   ;;  %989 = vmatprep.subr.bf16.mxu1 %v1088_v1  ;;  %v1093_v6 = vld [vmem:[%s1433_s1 + $0x8] sm:$0xff]   ;;  %v1097_v10 = vld [vmem:[%s1433_s1 + $0x10] sm:$0xff]   ;;  %v169_v29 = vunpack.c.0.s8 %v168_v23 }
   0x4   :  { %v1090_v3 = vld [vmem:[%s1433_s1 + $0x80] sm:$0xff]   ;;  %968 = vmatpush3.bf16.msra.mxu0 %v1089_v2  ;;  %v1094_v7 = vld [vmem:[%s1433_s1 + $0x88] sm:$0xff]   ;;  %v1098_v11 = vld [vmem:[%s1433_s1 + $0x90] sm:$0xff]  }
   0x5   :  { %990 = vmatpush3.bf16.msra.mxu1 %v1090_v3  ;;  %969 = vmatprep.subr.bf16.mxu0 %v1091_v4  ;;  %v1099_v12 = vld [vmem:[%s1433_s1 + $0x58] sm:$0xff]   ;;  %v1103_v16 = vld [vmem:[%s1433_s1 + $0x60] sm:$0xff]   ;;  %v1107_v20 = vld [vmem:[%s1433_s1 + $0x68] sm:$0xff]   ;;  %v1278_v35 = vsub.s32 %v169_v29, %v171_v30 }
   0x6   :  { %991 = vmatprep.subr.bf16.mxu1 %v1092_v5  ;;  %v1100_v13 = vld [vmem:[%s1433_s1 + $0xd8] sm:$0xff]   ;;  %v1104_v17 = vld [vmem:[%s1433_s1 + $0xe0] sm:$0xff]   ;;  %v1108_v21 = vld [vmem:[%s1433_s1 + $0xe8] sm:$0xff]  }
   0x7   :  { %v1101_v14 = vld [vmem:[%s1433_s1 + $0x18] sm:$0xff]   ;;  %v1105_v18 = vld [vmem:[%s1433_s1 + $0x20] sm:$0xff]   ;;  %v1109_v25 = vld [vmem:[%s1433_s1 + $0x28] sm:$0xff]  }
   0x8   :  { %970 = vmatpush3.bf16.msra.mxu0 %v1093_v6  ;;  %v1102_v15 = vld [vmem:[%s1433_s1 + $0x98] sm:$0xff]   ;;  %v1106_v19 = vld [vmem:[%s1433_s1 + $0xa0] sm:$0xff]   ;;  %v1110_v26 = vld [vmem:[%s1433_s1 + $0xa8] sm:$0xff]  }
   0x9   :  { %992 = vmatpush3.bf16.msra.mxu1 %v1094_v7  ;;  %971 = vmatprep.subr.bf16.mxu0 %v1095_v8  ;;  %v1111_v27 = vld [vmem:[%s1433_s1 + $0x70] sm:$0xff]   ;;  %v1115_v33 = vld [vmem:[%s1433_s1 + $0x78] sm:$0xff]   ;;  %v18_v38 = vld [vmem:[%s1434_s0] sm:$0xff] }
   0xa   :  { %993 = vmatprep.subr.bf16.mxu1 %v1096_v9  ;;  %v1112_v28 = vld [vmem:[%s1433_s1 + $0xf0] sm:$0xff]   ;;  %v1116_v34 = vld [vmem:[%s1433_s1 + $0xf8] sm:$0xff]   ;;  %v166_v39 = vcombine.high %v18_v38, %v18_v38  ;;  %v173_v40 = vrot.slane %v18_v38, %v1278_v35  ;;  %v1120_v41 = vld [vmem:[%s1433_s1 + $0x140] sm:$0xff]  }
   0xb   :  { %v1113_v31 = vld [vmem:[%s1433_s1 + $0x30] sm:$0xff]   ;;  %v1117_v36 = vld [vmem:[%s1433_s1 + $0x38] sm:$0xff]   ;;  %v1122_v44 = vld [vmem:[%s1433_s1 + $0x1c0] sm:$0xff]  }
   0xc   :  { %972 = vmatpush3.bf16.msra.mxu0 %v1097_v10  ;;  %v1114_v32 = vld [vmem:[%s1433_s1 + $0xb0] sm:$0xff]   ;;  %v1118_v37 = vld [vmem:[%s1433_s1 + $0xb8] sm:$0xff]   ;;  %v181_v42 = vcombine.high %v173_v40, %v173_v40  ;;  %v189_v43 = vrot.slane %v173_v40, %v1278_v35  ;;  %v1298_v45 = vrot.slane %v166_v39, %v1278_v35  ;;  %v1121_v47 = vld [vmem:[%s1433_s1 + $0x100] sm:$0xff]  }
   0xd   :  { %994 = vmatpush3.bf16.msra.mxu1 %v1098_v11  ;;  %973 = vmatprep.subr.bf16.mxu0 %v1099_v12  ;;  %v1124_v50 = vld [vmem:[%s1433_s1 + $0x148] sm:$0xff]   ;;  %v1123_v52 = vld [vmem:[%s1433_s1 + $0x180] sm:$0xff]   ;;  %v1128_v57 = vld [vmem:[%s1433_s1 + $0x150] sm:$0xff]  }
   0xe   :  { %995 = vmatprep.subr.bf16.mxu1 %v1100_v13  ;;  %v203_v46 = vrot.slane %v181_v42, %v1278_v35  ;;  %v182_v48 = vcombine.high %v1298_v45, %v1298_v45  ;;  %v211_v49 = vcombine.high %v189_v43, %v189_v43  ;;  %v1126_v54 = vld [vmem:[%s1433_s1 + $0x1c8] sm:$0xff]   ;;  %v1130_v59 = vld [vmem:[%s1433_s1 + $0x1d0] sm:$0xff]   ;;  %v1132_v61 = vld [vmem:[%s1433_s1 + $0x158] sm:$0xff]  }
   0xf   :  { %v1125_v55 = vld [vmem:[%s1433_s1 + $0x108] sm:$0xff]   ;;  %v1129_v60 = vld [vmem:[%s1433_s1 + $0x110] sm:$0xff]   ;;  %v1134_v63 = vld [vmem:[%s1433_s1 + $0x1d8] sm:$0xff]  }
  0x10   :  { %974 = vmatpush3.bf16.msra.mxu0 %v1101_v14  ;;  %702 = vmatprep.mubr.bf16.mxu0 %v203_v46  ;;  %v213_v51 = vcombine.high %v203_v46, %v203_v46  ;;  %v210_v53 = vrot.slane %v182_v48, %v1278_v35  ;;  %v1127_v58 = vld [vmem:[%s1433_s1 + $0x188] sm:$0xff]   ;;  %v1131_v62 = vld [vmem:[%s1433_s1 + $0x190] sm:$0xff]   ;;  %v1133_v0 = vld [vmem:[%s1433_s1 + $0x118] sm:$0xff]  }
  0x11   :  { %996 = vmatpush3.bf16.msra.mxu1 %v1102_v15  ;;  %975 = vmatprep.subr.bf16.mxu0 %v1103_v16  ;;  %v1136_v1 = vld [vmem:[%s1433_s1 + $0x160] sm:$0xff]   ;;  %v1135_v2 = vld [vmem:[%s1433_s1 + $0x198] sm:$0xff]   ;;  %v1140_v5 = vld [vmem:[%s1433_s1 + $0x168] sm:$0xff]  }
  0x12   :  { %997 = vmatprep.subr.bf16.mxu1 %v1104_v17  ;;  %742 = vmatprep.mubr.bf16.mxu1 %v213_v51  ;;  %v214_v56 = vcombine.high %v210_v53, %v210_v53  ;;  %v1138_v3 = vld [vmem:[%s1433_s1 + $0x1e0] sm:$0xff]   ;;  %v1142_v7 = vld [vmem:[%s1433_s1 + $0x1e8] sm:$0xff]   ;;  %v1144_v9 = vld [vmem:[%s1433_s1 + $0x170] sm:$0xff]   ;;  %v196_v17 = vrot.slane %v1298_v45, %v1278_v35 }
  0x13   :  { %v1137_v4 = vld [vmem:[%s1433_s1 + $0x120] sm:$0xff]   ;;  %v1141_v8 = vld [vmem:[%s1433_s1 + $0x128] sm:$0xff]   ;;  %v1146_v11 = vld [vmem:[%s1433_s1 + $0x1f0] sm:$0xff]  }
  0x14   :  { %976 = vmatpush3.bf16.msra.mxu0 %v1105_v18  ;;  %v1139_v6 = vld [vmem:[%s1433_s1 + $0x1a0] sm:$0xff]   ;;  %v1143_v10 = vld [vmem:[%s1433_s1 + $0x1a8] sm:$0xff]   ;;  %v1145_v12 = vld [vmem:[%s1433_s1 + $0x130] sm:$0xff]  }
  0x15   :  { %998 = vmatpush3.bf16.msra.mxu1 %v1106_v19  ;;  %977 = vmatprep.subr.bf16.mxu0 %v1107_v20  ;;  %v1148_v13 = vld [vmem:[%s1433_s1 + $0x178] sm:$0xff]   ;;  %v1147_v14 = vld [vmem:[%s1433_s1 + $0x1b0] sm:$0xff]   ;;  %v1152_v19 = vld [vmem:[%s1433_s1 + $0x200] sm:$0xff]   ;;  %v1161_v20 = vmov 0.0  }
  0x16   :  { %999 = vmatprep.subr.bf16.mxu1 %v1108_v21  ;;  %v1150_v15 = vld [vmem:[%s1433_s1 + $0x1f8] sm:$0xff]   ;;  %v212_v21 = vcombine.high %v196_v17, %v196_v17  ;;  %v892_v22 = vld.sshfl [vmem:[%s1434_s0 + $0x8] sm:$0x1 pattern:$0x75316420]  ;;  %v1158_v29 = vld [vmem:[%s1433_s1 + $0x230] sm:$0xff]  }
  0x17   :  { %v1149_v16 = vld [vmem:[%s1433_s1 + $0x138] sm:$0xff]   ;;  %v1153_v23 = vld [vmem:[%s1433_s1 + $0x208] sm:$0xff]   ;;  %v228_v24 = vrot.slane %v892_v22, %v1278_v35 }
  0x18   :  { %978 = vmatpush3.bf16.msra.mxu0 %v1109_v25  ;;  %v1151_v18 = vld [vmem:[%s1433_s1 + $0x1b8] sm:$0xff]   ;;  %v1154_v25 = vld [vmem:[%s1433_s1 + $0x210] sm:$0xff]  }
  0x19   :  { %1000 = vmatpush3.bf16.msra.mxu1 %v1110_v26  ;;  %979 = vmatprep.subr.bf16.mxu0 %v1111_v27  ;;  %v1155_v26 = vld [vmem:[%s1433_s1 + $0x218] sm:$0xff]   ;;  %v1156_v27 = vld [vmem:[%s1433_s1 + $0x220] sm:$0xff]  }
  0x1a   :  { %1001 = vmatprep.subr.bf16.mxu1 %v1112_v28  ;;  %v1157_v28 = vld [vmem:[%s1433_s1 + $0x228] sm:$0xff]   ;;  %v1159_v30 = vld [vmem:[%s1433_s1 + $0x238] sm:$0xff]  }
  0x1c   :  { %980 = vmatpush3.bf16.msra.mxu0 %v1113_v31 }
  0x1d   :  { %1002 = vmatpush3.bf16.msra.mxu1 %v1114_v32  ;;  %981 = vmatprep.subr.bf16.mxu0 %v1115_v33 }
  0x1e   :  { %1003 = vmatprep.subr.bf16.mxu1 %v1116_v34 }
  0x20   :  { %982 = vmatpush3.bf16.msra.mxu0 %v1117_v36 }
  0x21   :  { %1004 = vmatpush3.bf16.msra.mxu1 %v1118_v37  ;;  %1011 = vmatprep.subr.bf16.mxu0 %v1120_v41 }
  0x22   :  { %1033 = vmatprep.subr.bf16.mxu1 %v1122_v44 }
  0x23   :  { %703 = vmatmul.mubr.bf16.vlgmr.msra.gmra.mrb[0].mxu0 %v189_v43 }
  0x24   :  { %1012 = vmatpush3.bf16.msra.mxu0 %v1121_v47  ;;  %743 = vmatmul.mubr.bf16.vlgmr.msra.gmra.mrb[0].mxu1 %v211_v49 }
  0x25   :  { %1013 = vmatprep.subr.bf16.mxu0 %v1124_v50  ;;  %1034 = vmatpush3.bf16.msra.mxu1 %v1123_v52 }
  0x26   :  { %782 = vmatprep.mubr.bf16.mxu0 %v210_v53  ;;  %1035 = vmatprep.subr.bf16.mxu1 %v1126_v54 }
  0x27   :  { %822 = vmatprep.mubr.bf16.mxu1 %v214_v56 }
  0x28   :  { %1014 = vmatpush3.bf16.msra.mxu0 %v1125_v55  ;;  %v965_v55 = vld [vmem:[%s1435_s2] ss:$0 sm:$0xff] }
  0x29   :  { %1015 = vmatprep.subr.bf16.mxu0 %v1128_v57  ;;  %1036 = vmatpush3.bf16.msra.mxu1 %v1127_v58  ;;  %v966_v58 = vld [vmem:[%s1436_s3] ss:$0 sm:$0xff] }
  0x2a   :  { %1037 = vmatprep.subr.bf16.mxu1 %v1130_v59 }
  0x2c   :  { %1016 = vmatpush3.bf16.msra.mxu0 %v1129_v60 }
  0x2d   :  { %1017 = vmatprep.subr.bf16.mxu0 %v1132_v61  ;;  %1038 = vmatpush3.bf16.msra.mxu1 %v1131_v62 }
  0x2e   :  { %1039 = vmatprep.subr.bf16.mxu1 %v1134_v63 }
  0x30   :  { %1018 = vmatpush3.bf16.msra.mxu0 %v1133_v0 }
  0x31   :  { %1019 = vmatprep.subr.bf16.mxu0 %v1136_v1  ;;  %1040 = vmatpush3.bf16.msra.mxu1 %v1135_v2 }
  0x32   :  { %1041 = vmatprep.subr.bf16.mxu1 %v1138_v3 }
  0x34   :  { %1020 = vmatpush3.bf16.msra.mxu0 %v1137_v4 }
  0x35   :  { %1021 = vmatprep.subr.bf16.mxu0 %v1140_v5  ;;  %1042 = vmatpush3.bf16.msra.mxu1 %v1139_v6 }
  0x36   :  { %1043 = vmatprep.subr.bf16.mxu1 %v1142_v7 }
  0x38   :  { %1022 = vmatpush3.bf16.msra.mxu0 %v1141_v8 }
  0x39   :  { %1023 = vmatprep.subr.bf16.mxu0 %v1144_v9  ;;  %1044 = vmatpush3.bf16.msra.mxu1 %v1143_v10 }
  0x3a   :  { %1045 = vmatprep.subr.bf16.mxu1 %v1146_v11 }
  0x3c   :  { %1024 = vmatpush3.bf16.msra.mxu0 %v1145_v12 }
  0x3d   :  { %1025 = vmatprep.subr.bf16.mxu0 %v1148_v13  ;;  %1046 = vmatpush3.bf16.msra.mxu1 %v1147_v14 }
  0x3e   :  { %1047 = vmatprep.subr.bf16.mxu1 %v1150_v15 }
  0x40   :  { %1026 = vmatpush3.bf16.msra.mxu0 %v1149_v16 }
  0x41   :  { %1064 = vmatprep.subr.bf16.mxu0 %v1161_v20  ;;  %1048 = vmatpush3.bf16.msra.mxu1 %v1151_v18 }
  0x43   :  { %783 = vmatmul.mubr.bf16.vlgmr.msra.gmra.mrb[4].mxu0 %v196_v17 }
  0x44   :  { %1065 = vmatpush3.bf16.msra.mxu0 %v1152_v19  ;;  %1080 = vmatprep.mubr.msk.bf16.mxu0 %vm1162_vm0, %v1161_v20 }
  0x45   :  { %823 = vmatmul.mubr.bf16.vlgmr.msra.gmra.mrb[4].mxu1 %v212_v21  ;;  %1066 = vmatprep.subr.bf16.mxu0 %v1161_v20 }
  0x48   :  { %1067 = vmatpush3.bf16.msra.mxu0 %v1153_v23 }
  0x49   :  { %1068 = vmatprep.subr.bf16.mxu0 %v1161_v20 }
  0x4c   :  { %1069 = vmatpush3.bf16.msra.mxu0 %v1154_v25 }
  0x4d   :  { %1070 = vmatprep.subr.bf16.mxu0 %v1161_v20 }
  0x50   :  { %1071 = vmatpush3.bf16.msra.mxu0 %v1155_v26 }
  0x51   :  { %1072 = vmatprep.subr.bf16.mxu0 %v1161_v20 }
  0x54   :  { %1073 = vmatpush3.bf16.msra.mxu0 %v1156_v27 }
  0x55   :  { %1074 = vmatprep.subr.bf16.mxu0 %v1161_v20 }
  0x58   :  { %1075 = vmatpush3.bf16.msra.mxu0 %v1157_v28 }
  0x59   :  { %1076 = vmatprep.subr.bf16.mxu0 %v1161_v20 }
  0x5c   :  { %1077 = vmatpush3.bf16.msra.mxu0 %v1158_v29 }
  0x5d   :  { %1078 = vmatprep.subr.bf16.mxu0 %v1161_v20 }
  0x60   :  { %1079 = vmatpush3.bf16.msra.mxu0 %v1159_v30 }
  0x63   :  { %1081 = vmatmul.mubr.bf16.vlgmr.msra.gmra.mrb[8].mxu0 %v228_v24 }
  0xf6   :  { %v983_v31 = vpop.f32.mrb[0].mxu0 }
  0xf7   :  { %v984_v32 = vpop.f32.mrb[1].mxu0  ;;  %v1005_v33 = vpop.f32.mrb[0].mxu1 }
  0xf8   :  { %v985_v34 = vadd.f32 %v984_v32, %v983_v31  ;;  %v986_v35 = vpop.f32.mrb[2].mxu0  ;;  %v1006_v36 = vpop.f32.mrb[1].mxu1 }
  0xf9   :  { %v987_v37 = vpop.f32.mrb[3].mxu0  ;;  %v1007_v38 = vadd.f32 %v1006_v36, %v1005_v33  ;;  %v1008_v39 = vpop.f32.mrb[2].mxu1 }
  0xfa   :  { %v1009_v40 = vpop.f32.mrb[3].mxu1 }
  0xfb   :  { %v745_v41 = vadd.f32 %v1007_v38, %v985_v34 }
 0x116   :  { %v1027_v42 = vpop.f32.mrb[4].mxu0 }
 0x117   :  { %v1028_v43 = vpop.f32.mrb[5].mxu0 }
 0x118   :  { %v1029_v44 = vadd.f32 %v1028_v43, %v1027_v42  ;;  %v1030_v45 = vpop.f32.mrb[6].mxu0  ;;  %v1049_v46 = vpop.f32.mrb[4].mxu1 }
 0x119   :  { %v1031_v47 = vpop.f32.mrb[7].mxu0  ;;  %v1050_v48 = vpop.f32.mrb[5].mxu1 }
 0x11a   :  { %v785_v49 = vadd.f32 %v1029_v44, %v745_v41  ;;  %v1051_v50 = vadd.f32 %v1050_v48, %v1049_v46  ;;  %v1052_v51 = vpop.f32.mrb[6].mxu1 }
 0x11b   :  { %v1053_v52 = vpop.f32.mrb[7].mxu1 }
 0x11c   :  { %v825_v53 = vadd.f32 %v1051_v50, %v785_v49 }
 0x136   :  { %v864_v54 = vpop.f32.mrb[8].mxu0 }
 0x137   :  { %v865_v56 = vadd.f32 %v864_v54, %v825_v53  ;;  %v1082_v57 = vpop.f32.mrb[9].mxu0 }
 0x138   :  { %v867_v59 = vpop.f32.mrb[10].mxu0 }
 0x139   :  { %v877_v60 = vmul.f32 %v965_v55, %v865_v56  ;;  %v1083_v61 = vpop.f32.mrb[11].mxu0 }
 0x13b   :  { %v885_v62 = vadd.f32 %v966_v58, %v877_v60 }
 0x13d   :  { %v886_v63 = vmax.f32 %v885_v62, 0.0 }
 0x13f   :  { %887 = vst [vmem:[%s1437_s4] sm:$0x3] %v886_v63 }

// kernel: resnet_forward.57
= control target key start
LH: loop header
LB: loop body
LE: loop exit
PB: predicated region body
PF: predicated region fallthrough
CT: control target
= control target key end

     0   :  { %v489_v1 = vmov 0   ;;  %v298_v34 = vlaneseq  ;;  %v490_v35 = vmov 1983009808   ;;  %s632_s1 = inlined_call_operand.vmem [shape: bf16[128,512], index: 1, kind: input, shape index: {}]   ;;  %s633_s0 = inlined_call_operand.vmem [shape: bf16[2,128], index: 0, kind: input, shape index: {}]   ;;  %s634_s4 = inlined_call_operand.vmem [shape: f32[2,512], index: 4, kind: input, shape index: {}]   ;;  %s635_s2 = inlined_call_operand.vmem [shape: f32[1,512], index: 2, kind: input, shape index: {}]   ;;  %s636_s3 = inlined_call_operand.vmem [shape: f32[1,512], index: 3, kind: input, shape index: {}]   ;;  %s637_s5 = inlined_call_operand.vmem [shape: f32[2,512], index: 5, kind: output, shape index: {}]  }
   0x1   :  { %v440_v0 = vld [vmem:[%s632_s1 + $0x4] ss:$16 sps:$4 sm:$0xff]   ;;  %246 = vmatprep.mubr.bf16.mxu0 %v489_v1  ;;  %287 = vmatprep.mubr.bf16.mxu1 %v489_v1  ;;  %v442_v2 = vld [vmem:[%s632_s1 + $0xc] ss:$16 sps:$4 sm:$0xff]   ;;  %v444_v3 = vld [vmem:[%s632_s1] ss:$16 sps:$4 sm:$0xff]   ;;  %v352_v36 = vunpack.c.l.s4 %v490_v35 }
   0x2   :  { %214 = vmatprep.subr.bf16.mxu0 %v440_v0  ;;  %v445_v4 = vld [vmem:[%s632_s1 + $0x8] ss:$16 sps:$4 sm:$0xff]   ;;  %255 = vmatprep.subr.bf16.mxu1 %v442_v2  ;;  %v446_v5 = vld [vmem:[%s632_s1 + $0x24] ss:$16 sps:$4 sm:$0xff]   ;;  %v448_v6 = vld [vmem:[%s632_s1 + $0x2c] ss:$16 sps:$4 sm:$0xff]  }
   0x3   :  { %215 = vmatpush1.bf16.msra.mxu0 %v444_v3  ;;  %256 = vmatpush1.bf16.msra.mxu1 %v445_v4  ;;  %v450_v7 = vld [vmem:[%s632_s1 + $0x20] ss:$16 sps:$4 sm:$0xff]   ;;  %v451_v8 = vld [vmem:[%s632_s1 + $0x28] ss:$16 sps:$4 sm:$0xff]   ;;  %v452_v9 = vld [vmem:[%s632_s1 + $0x44] ss:$16 sps:$4 sm:$0xff]   ;;  %v353_v38 = vunpack.c.0.s8 %v352_v36 }
   0x4   :  { %216 = vmatprep.subr.bf16.mxu0 %v446_v5  ;;  %257 = vmatprep.subr.bf16.mxu1 %v448_v6  ;;  %v454_v10 = vld [vmem:[%s632_s1 + $0x4c] ss:$16 sps:$4 sm:$0xff]   ;;  %v456_v11 = vld [vmem:[%s632_s1 + $0x40] ss:$16 sps:$4 sm:$0xff]   ;;  %v457_v12 = vld [vmem:[%s632_s1 + $0x48] ss:$16 sps:$4 sm:$0xff]  }
   0x5   :  { %v458_v13 = vld [vmem:[%s632_s1 + $0x64] ss:$16 sps:$4 sm:$0xff]   ;;  %v460_v14 = vld [vmem:[%s632_s1 + $0x6c] ss:$16 sps:$4 sm:$0xff]   ;;  %v462_v15 = vld [vmem:[%s632_s1 + $0x60] ss:$16 sps:$4 sm:$0xff]  }
   0x6   :  { %v463_v16 = vld [vmem:[%s632_s1 + $0x68] ss:$16 sps:$4 sm:$0xff]   ;;  %v464_v17 = vld [vmem:[%s632_s1 + $0x84] ss:$16 sps:$4 sm:$0xff]   ;;  %v466_v18 = vld [vmem:[%s632_s1 + $0x8c] ss:$16 sps:$4 sm:$0xff]  }
   0x7   :  { %217 = vmatpush1.bf16.msra.mxu0 %v450_v7  ;;  %258 = vmatpush1.bf16.msra.mxu1 %v451_v8  ;;  %v468_v19 = vld [vmem:[%s632_s1 + $0x80] ss:$16 sps:$4 sm:$0xff]   ;;  %v469_v20 = vld [vmem:[%s632_s1 + $0x88] ss:$16 sps:$4 sm:$0xff]   ;;  %v470_v21 = vld [vmem:[%s632_s1 + $0xa4] ss:$16 sps:$4 sm:$0xff]  }
   0x8   :  { %218 = vmatprep.subr.bf16.mxu0 %v452_v9  ;;  %259 = vmatprep.subr.bf16.mxu1 %v454_v10  ;;  %v472_v22 = vld [vmem:[%s632_s1 + $0xac] ss:$16 sps:$4 sm:$0xff]   ;;  %v474_v23 = vld [vmem:[%s632_s1 + $0xa0] ss:$16 sps:$4 sm:$0xff]   ;;  %v475_v24 = vld [vmem:[%s632_s1 + $0xa8] ss:$16 sps:$4 sm:$0xff]  }
   0x9   :  { %v476_v25 = vld [vmem:[%s632_s1 + $0xc4] ss:$16 sps:$4 sm:$0xff]   ;;  %v478_v26 = vld [vmem:[%s632_s1 + $0xcc] ss:$16 sps:$4 sm:$0xff]   ;;  %v480_v27 = vld [vmem:[%s632_s1 + $0xc0] ss:$16 sps:$4 sm:$0xff]  }
   0xa   :  { %v481_v28 = vld [vmem:[%s632_s1 + $0xc8] ss:$16 sps:$4 sm:$0xff]   ;;  %v482_v29 = vld [vmem:[%s632_s1 + $0xe4] ss:$16 sps:$4 sm:$0xff]   ;;  %v484_v30 = vld [vmem:[%s632_s1 + $0xec] ss:$16 sps:$4 sm:$0xff]  }
   0xb   :  { %219 = vmatpush1.bf16.msra.mxu0 %v456_v11  ;;  %260 = vmatpush1.bf16.msra.mxu1 %v457_v12  ;;  %v486_v31 = vld [vmem:[%s632_s1 + $0xe0] ss:$16 sps:$4 sm:$0xff]   ;;  %v487_v32 = vld [vmem:[%s632_s1 + $0xe8] ss:$16 sps:$4 sm:$0xff]   ;;  %v299_v37 = vshrl.u32 %v298_v34, 7 }
   0xc   :  { %220 = vmatprep.subr.bf16.mxu0 %v458_v13  ;;  %261 = vmatprep.subr.bf16.mxu1 %v460_v14  ;;  %v21_v33 = vld [vmem:[%s633_s0] sm:$0x1] }
   0xd   :  { %v348_v39 = vld [vmem:[%s634_s4] sm:$0xff]  ;;  %v300_v40 = vsub.s32 0, %v299_v37  ;;  %v308_v41 = vsub.s32 2, %v299_v37  ;;  %v356_v43 = vsub.s32 %v353_v38, %v299_v37  ;;  %v304_v45 = vsub.s32 1, %v299_v37 }
   0xe   :  { %v296_v42 = vld [vmem:[%s635_s2] sm:$0xf]  ;;  %v350_v44 = vcombine.high %v348_v39, %v348_v39  ;;  %v312_v46 = vsub.s32 3, %v299_v37 }
   0xf   :  { %221 = vmatpush1.bf16.msra.mxu0 %v462_v15  ;;  %262 = vmatpush1.bf16.msra.mxu1 %v463_v16  ;;  %v322_v47 = vld [vmem:[%s636_s3] sm:$0xf]  ;;  %v301_v48 = vrot.slane %v296_v42, %v300_v40  ;;  %v309_v49 = vrot.slane %v296_v42, %v308_v41  ;;  %v357_v50 = vrot.slane %v348_v39, %v356_v43 }
  0x10   :  { %222 = vmatprep.subr.bf16.mxu0 %v464_v17  ;;  %263 = vmatprep.subr.bf16.mxu1 %v466_v18  ;;  %v364_v51 = vrot.slane %v350_v44, %v356_v43  ;;  %v305_v52 = vrot.slane %v296_v42, %v304_v45  ;;  %v313_v53 = vrot.slane %v296_v42, %v312_v46 }
  0x11   :  { %v327_v54 = vrot.slane %v322_v47, %v300_v40  ;;  %v335_v55 = vrot.slane %v322_v47, %v308_v41  ;;  %v331_v58 = vrot.slane %v322_v47, %v304_v45  ;;  %v339_v59 = vrot.slane %v322_v47, %v312_v46 }
  0x12   :  { %v365_v1 = vcombine.high %v357_v50, %v357_v50  ;;  %v366_v3 = vcombine.high %v364_v51, %v364_v51 }
  0x13   :  { %223 = vmatpush1.bf16.msra.mxu0 %v468_v19  ;;  %264 = vmatpush1.bf16.msra.mxu1 %v469_v20 }
  0x14   :  { %224 = vmatprep.subr.bf16.mxu0 %v470_v21  ;;  %265 = vmatprep.subr.bf16.mxu1 %v472_v22 }
  0x17   :  { %225 = vmatpush1.bf16.msra.mxu0 %v474_v23  ;;  %266 = vmatpush1.bf16.msra.mxu1 %v475_v24 }
  0x18   :  { %226 = vmatprep.subr.bf16.mxu0 %v476_v25  ;;  %267 = vmatprep.subr.bf16.mxu1 %v478_v26 }
  0x1b   :  { %227 = vmatpush1.bf16.msra.mxu0 %v480_v27  ;;  %268 = vmatpush1.bf16.msra.mxu1 %v481_v28 }
  0x1c   :  { %228 = vmatprep.subr.bf16.mxu0 %v482_v29  ;;  %269 = vmatprep.subr.bf16.mxu1 %v484_v30 }
  0x1f   :  { %229 = vmatpush1.bf16.msra.mxu0 %v486_v31  ;;  %270 = vmatpush1.bf16.msra.mxu1 %v487_v32 }
  0x22   :  { %247 = vmatmul.mubr.bf16.vlgmr.msra.gmra.mrb[0].mxu0 %v21_v33  ;;  %288 = vmatmul.mubr.bf16.vlgmr.msra.gmra.mrb[0].mxu1 %v21_v33 }
  0xf5   :  { %v248_v56 = vpop.f32.mrb[0].mxu0  ;;  %v289_v57 = vpop.f32.mrb[0].mxu1 }
  0xf6   :  { %v318_v60 = vmul.f32 %v301_v48, %v248_v56  ;;  %v320_v61 = vmul.f32 %v309_v49, %v289_v57  ;;  %v250_v62 = vpop.f32.mrb[1].mxu0  ;;  %v291_v63 = vpop.f32.mrb[1].mxu1 }
  0xf7   :  { %v319_v0 = vmul.f32 %v305_v52, %v250_v62  ;;  %v321_v2 = vmul.f32 %v313_v53, %v291_v63  ;;  %v252_v4 = vpop.f32.mrb[2].mxu0  ;;  %v293_v5 = vpop.f32.mrb[2].mxu1 }
  0xf8   :  { %v344_v6 = vadd.f32 %v327_v54, %v318_v60  ;;  %v346_v7 = vadd.f32 %v335_v55, %v320_v61  ;;  %v253_v8 = vpop.f32.mrb[3].mxu0  ;;  %v294_v9 = vpop.f32.mrb[3].mxu1 }
  0xf9   :  { %v345_v10 = vadd.f32 %v331_v58, %v319_v0  ;;  %v347_v11 = vadd.f32 %v339_v59, %v321_v2 }
  0xfa   :  { %v371_v12 = vadd.f32 %v357_v50, %v344_v6  ;;  %v373_v13 = vadd.f32 %v364_v51, %v346_v7 }
  0xfb   :  { %v372_v14 = vadd.f32 %v365_v1, %v345_v10  ;;  %v374_v15 = vadd.f32 %v366_v3, %v347_v11 }
  0xfc   :  { %v375_v16 = vmax.f32 %v371_v12, 0.0  ;;  %v377_v17 = vmax.f32 %v373_v13, 0.0 }
  0xfd   :  { %v376_v18 = vmax.f32 %v372_v14, 0.0  ;;  %v378_v19 = vmax.f32 %v374_v15, 0.0 }
  0xff   :  { %v383_v20 = vcombine.low %v375_v16, %v376_v18  ;;  %v384_v21 = vcombine.low %v377_v17, %v378_v19 }
 0x101   :  { %v391_v22 = vrot.slane %v383_v20, %v356_v43  ;;  %v398_v23 = vrot.slane %v384_v21, %v356_v43 }
 0x103   :  { %v399_v24 = vcombine.low %v391_v22, %v398_v23 }
 0x105   :  { %401 = vst [vmem:[%s637_s5] sm:$0xff] %v399_v24 }

// kernel: resnet_forward.56
= control target key start
LH: loop header
LB: loop body
LE: loop exit
PB: predicated region body
PF: predicated region fallthrough
CT: control target
= control target key end

     0   :  { %v751_v38 = vmov 1966171168   ;;  %v94_v40 = vlaneseq  ;;  %s990_s1 = inlined_call_operand.vmem [shape: bf16[256,512], index: 1, kind: input, shape index: {}]   ;;  %s991_s0 = inlined_call_operand.vmem [shape: bf16[2,256], index: 0, kind: input, shape index: {}]   ;;  %s992_s2 = inlined_call_operand.vmem [shape: f32[1,512], index: 2, kind: input, shape index: {}]   ;;  %s993_s3 = inlined_call_operand.vmem [shape: f32[1,512], index: 3, kind: input, shape index: {}]   ;;  %s994_s4 = inlined_call_operand.vmem [shape: f32[2,512], index: 4, kind: output, shape index: {}]  }
   0x1   :  { %v655_v0 = vld [vmem:[%s990_s1 + $0x4] ss:$16 sps:$4 sm:$0xff]   ;;  %v657_v1 = vld [vmem:[%s990_s1 + $0xc] ss:$16 sps:$4 sm:$0xff]   ;;  %v659_v2 = vld [vmem:[%s990_s1] ss:$16 sps:$4 sm:$0xff]   ;;  %v92_v39 = vunpack.c.l.s4 %v751_v38 }
   0x2   :  { %427 = vmatprep.subr.bf16.mxu0 %v655_v0  ;;  %v660_v3 = vld [vmem:[%s990_s1 + $0x8] ss:$16 sps:$4 sm:$0xff]   ;;  %468 = vmatprep.subr.bf16.mxu1 %v657_v1  ;;  %v661_v4 = vld [vmem:[%s990_s1 + $0x24] ss:$16 sps:$4 sm:$0xff]   ;;  %v663_v5 = vld [vmem:[%s990_s1 + $0x2c] ss:$16 sps:$4 sm:$0xff]  }
   0x3   :  { %428 = vmatpush1.bf16.msra.mxu0 %v659_v2  ;;  %469 = vmatpush1.bf16.msra.mxu1 %v660_v3  ;;  %v665_v6 = vld [vmem:[%s990_s1 + $0x20] ss:$16 sps:$4 sm:$0xff]   ;;  %v666_v7 = vld [vmem:[%s990_s1 + $0x28] ss:$16 sps:$4 sm:$0xff]   ;;  %v667_v8 = vld [vmem:[%s990_s1 + $0x44] ss:$16 sps:$4 sm:$0xff]   ;;  %v93_v45 = vunpack.c.0.s8 %v92_v39 }
   0x4   :  { %429 = vmatprep.subr.bf16.mxu0 %v661_v4  ;;  %470 = vmatprep.subr.bf16.mxu1 %v663_v5  ;;  %v669_v9 = vld [vmem:[%s990_s1 + $0x4c] ss:$16 sps:$4 sm:$0xff]   ;;  %v671_v10 = vld [vmem:[%s990_s1 + $0x40] ss:$16 sps:$4 sm:$0xff]   ;;  %v672_v11 = vld [vmem:[%s990_s1 + $0x48] ss:$16 sps:$4 sm:$0xff]  }
   0x5   :  { %v673_v12 = vld [vmem:[%s990_s1 + $0x64] ss:$16 sps:$4 sm:$0xff]   ;;  %v675_v13 = vld [vmem:[%s990_s1 + $0x6c] ss:$16 sps:$4 sm:$0xff]   ;;  %v677_v14 = vld [vmem:[%s990_s1 + $0x60] ss:$16 sps:$4 sm:$0xff]  }
   0x6   :  { %v678_v15 = vld [vmem:[%s990_s1 + $0x68] ss:$16 sps:$4 sm:$0xff]   ;;  %v679_v16 = vld [vmem:[%s990_s1 + $0x84] ss:$16 sps:$4 sm:$0xff]   ;;  %v681_v17 = vld [vmem:[%s990_s1 + $0x8c] ss:$16 sps:$4 sm:$0xff]  }
   0x7   :  { %430 = vmatpush1.bf16.msra.mxu0 %v665_v6  ;;  %471 = vmatpush1.bf16.msra.mxu1 %v666_v7  ;;  %v683_v18 = vld [vmem:[%s990_s1 + $0x80] ss:$16 sps:$4 sm:$0xff]   ;;  %v684_v19 = vld [vmem:[%s990_s1 + $0x88] ss:$16 sps:$4 sm:$0xff]   ;;  %v685_v20 = vld [vmem:[%s990_s1 + $0xa4] ss:$16 sps:$4 sm:$0xff]  }
   0x8   :  { %431 = vmatprep.subr.bf16.mxu0 %v667_v8  ;;  %472 = vmatprep.subr.bf16.mxu1 %v669_v9  ;;  %v687_v21 = vld [vmem:[%s990_s1 + $0xac] ss:$16 sps:$4 sm:$0xff]   ;;  %v689_v22 = vld [vmem:[%s990_s1 + $0xa0] ss:$16 sps:$4 sm:$0xff]   ;;  %v690_v23 = vld [vmem:[%s990_s1 + $0xa8] ss:$16 sps:$4 sm:$0xff]  }
   0x9   :  { %v691_v24 = vld [vmem:[%s990_s1 + $0xc4] ss:$16 sps:$4 sm:$0xff]   ;;  %v693_v25 = vld [vmem:[%s990_s1 + $0xcc] ss:$16 sps:$4 sm:$0xff]   ;;  %v695_v26 = vld [vmem:[%s990_s1 + $0xc0] ss:$16 sps:$4 sm:$0xff]  }
   0xa   :  { %v696_v27 = vld [vmem:[%s990_s1 + $0xc8] ss:$16 sps:$4 sm:$0xff]   ;;  %v697_v28 = vld [vmem:[%s990_s1 + $0xe4] ss:$16 sps:$4 sm:$0xff]   ;;  %v699_v29 = vld [vmem:[%s990_s1 + $0xec] ss:$16 sps:$4 sm:$0xff]  }
   0xb   :  { %432 = vmatpush1.bf16.msra.mxu0 %v671_v10  ;;  %473 = vmatpush1.bf16.msra.mxu1 %v672_v11  ;;  %v701_v30 = vld [vmem:[%s990_s1 + $0xe0] ss:$16 sps:$4 sm:$0xff]   ;;  %v702_v31 = vld [vmem:[%s990_s1 + $0xe8] ss:$16 sps:$4 sm:$0xff]   ;;  %v703_v32 = vld [vmem:[%s990_s1 + $0x104] ss:$16 sps:$4 sm:$0xff]  }
   0xc   :  { %433 = vmatprep.subr.bf16.mxu0 %v673_v12  ;;  %474 = vmatprep.subr.bf16.mxu1 %v675_v13  ;;  %v705_v33 = vld [vmem:[%s990_s1 + $0x10c] ss:$16 sps:$4 sm:$0xff]   ;;  %v707_v34 = vld [vmem:[%s990_s1 + $0x100] ss:$16 sps:$4 sm:$0xff]   ;;  %v708_v35 = vld [vmem:[%s990_s1 + $0x108] ss:$16 sps:$4 sm:$0xff]  }
   0xd   :  { %v709_v36 = vld [vmem:[%s990_s1 + $0x124] ss:$16 sps:$4 sm:$0xff]   ;;  %v711_v37 = vld [vmem:[%s990_s1 + $0x12c] ss:$16 sps:$4 sm:$0xff]   ;;  %v713_v41 = vld [vmem:[%s990_s1 + $0x120] ss:$16 sps:$4 sm:$0xff]  }
   0xe   :  { %v714_v42 = vld [vmem:[%s990_s1 + $0x128] ss:$16 sps:$4 sm:$0xff]   ;;  %v715_v43 = vld [vmem:[%s990_s1 + $0x144] ss:$16 sps:$4 sm:$0xff]   ;;  %v717_v44 = vld [vmem:[%s990_s1 + $0x14c] ss:$16 sps:$4 sm:$0xff]  }
   0xf   :  { %434 = vmatpush1.bf16.msra.mxu0 %v677_v14  ;;  %475 = vmatpush1.bf16.msra.mxu1 %v678_v15  ;;  %v904_v46 = vshrl.u32 %v94_v40, 7  ;;  %v719_v47 = vld [vmem:[%s990_s1 + $0x140] ss:$16 sps:$4 sm:$0xff]   ;;  %v720_v48 = vld [vmem:[%s990_s1 + $0x148] ss:$16 sps:$4 sm:$0xff]  }
  0x10   :  { %435 = vmatprep.subr.bf16.mxu0 %v679_v16  ;;  %476 = vmatprep.subr.bf16.mxu1 %v681_v17  ;;  %v721_v49 = vld [vmem:[%s990_s1 + $0x164] ss:$16 sps:$4 sm:$0xff]   ;;  %v723_v50 = vld [vmem:[%s990_s1 + $0x16c] ss:$16 sps:$4 sm:$0xff]   ;;  %v725_v53 = vld [vmem:[%s990_s1 + $0x160] ss:$16 sps:$4 sm:$0xff]  }
  0x11   :  { %v96_v51 = vsub.s32 %v93_v45, %v904_v46  ;;  %v588_v52 = vld.sshfl [vmem:[%s991_s0] sm:$0x11 pattern:$0x75316420]  ;;  %v726_v54 = vld [vmem:[%s990_s1 + $0x168] ss:$16 sps:$4 sm:$0xff]  }
  0x12   :  { %v90_v55 = vcombine.high %v588_v52, %v588_v52  ;;  %v727_v56 = vld [vmem:[%s990_s1 + $0x184] ss:$16 sps:$4 sm:$0xff]   ;;  %v729_v57 = vld [vmem:[%s990_s1 + $0x18c] ss:$16 sps:$4 sm:$0xff]   ;;  %v731_v59 = vld [vmem:[%s990_s1 + $0x180] ss:$16 sps:$4 sm:$0xff]  }
  0x13   :  { %436 = vmatpush1.bf16.msra.mxu0 %v683_v18  ;;  %477 = vmatpush1.bf16.msra.mxu1 %v684_v19  ;;  %v732_v60 = vld [vmem:[%s990_s1 + $0x188] ss:$16 sps:$4 sm:$0xff]   ;;  %v733_v61 = vld [vmem:[%s990_s1 + $0x1a4] ss:$16 sps:$4 sm:$0xff]   ;;  %v735_v62 = vld [vmem:[%s990_s1 + $0x1ac] ss:$16 sps:$4 sm:$0xff]   ;;  %v97_v9 = vrot.slane %v588_v52, %v96_v51 }
  0x14   :  { %437 = vmatprep.subr.bf16.mxu0 %v685_v20  ;;  %478 = vmatprep.subr.bf16.mxu1 %v687_v21  ;;  %v104_v58 = vrot.slane %v90_v55, %v96_v51  ;;  %v737_v63 = vld [vmem:[%s990_s1 + $0x1a0] ss:$16 sps:$4 sm:$0xff]   ;;  %v738_v0 = vld [vmem:[%s990_s1 + $0x1a8] ss:$16 sps:$4 sm:$0xff]   ;;  %v739_v1 = vld [vmem:[%s990_s1 + $0x1c4] ss:$16 sps:$4 sm:$0xff]  }
  0x15   :  { %v741_v2 = vld [vmem:[%s990_s1 + $0x1cc] ss:$16 sps:$4 sm:$0xff]   ;;  %v743_v3 = vld [vmem:[%s990_s1 + $0x1c0] ss:$16 sps:$4 sm:$0xff]   ;;  %v744_v4 = vld [vmem:[%s990_s1 + $0x1c8] ss:$16 sps:$4 sm:$0xff]  }
  0x16   :  { %459 = vmatprep.mubr.bf16.mxu0 %v104_v58  ;;  %500 = vmatprep.mubr.bf16.mxu1 %v104_v58  ;;  %v745_v5 = vld [vmem:[%s990_s1 + $0x1e4] ss:$16 sps:$4 sm:$0xff]   ;;  %v747_v6 = vld [vmem:[%s990_s1 + $0x1ec] ss:$16 sps:$4 sm:$0xff]   ;;  %v749_v7 = vld [vmem:[%s990_s1 + $0x1e0] ss:$16 sps:$4 sm:$0xff]  }
  0x17   :  { %438 = vmatpush1.bf16.msra.mxu0 %v689_v22  ;;  %479 = vmatpush1.bf16.msra.mxu1 %v690_v23  ;;  %v750_v8 = vld [vmem:[%s990_s1 + $0x1e8] ss:$16 sps:$4 sm:$0xff]   ;;  %v513_v10 = vsub.s32 0, %v904_v46  ;;  %v521_v11 = vsub.s32 2, %v904_v46  ;;  %v509_v12 = vld [vmem:[%s992_s2] sm:$0xf] }
  0x18   :  { %439 = vmatprep.subr.bf16.mxu0 %v691_v24  ;;  %480 = vmatprep.subr.bf16.mxu1 %v693_v25  ;;  %v517_v13 = vsub.s32 1, %v904_v46  ;;  %v525_v14 = vsub.s32 3, %v904_v46  ;;  %v535_v15 = vld [vmem:[%s993_s3] sm:$0xf]  ;;  %v752_v16 = vmov 1983009808  }
  0x19   :  { %v568_v17 = vunpack.c.l.s4 %v752_v16  ;;  %v514_v18 = vrot.slane %v509_v12, %v513_v10  ;;  %v522_v19 = vrot.slane %v509_v12, %v521_v11  ;;  %v540_v22 = vrot.slane %v535_v15, %v513_v10 }
  0x1a   :  { %v518_v20 = vrot.slane %v509_v12, %v517_v13  ;;  %v526_v21 = vrot.slane %v509_v12, %v525_v14  ;;  %v548_v23 = vrot.slane %v535_v15, %v521_v11 }
  0x1b   :  { %440 = vmatpush1.bf16.msra.mxu0 %v695_v26  ;;  %481 = vmatpush1.bf16.msra.mxu1 %v696_v27  ;;  %v544_v26 = vrot.slane %v535_v15, %v517_v13  ;;  %v569_v27 = vunpack.c.0.s8 %v568_v17 }
  0x1c   :  { %441 = vmatprep.subr.bf16.mxu0 %v697_v28  ;;  %482 = vmatprep.subr.bf16.mxu1 %v699_v29  ;;  %v552_v28 = vrot.slane %v535_v15, %v525_v14 }
  0x1f   :  { %442 = vmatpush1.bf16.msra.mxu0 %v701_v30  ;;  %483 = vmatpush1.bf16.msra.mxu1 %v702_v31 }
  0x20   :  { %443 = vmatprep.subr.bf16.mxu0 %v703_v32  ;;  %484 = vmatprep.subr.bf16.mxu1 %v705_v33 }
  0x23   :  { %444 = vmatpush1.bf16.msra.mxu0 %v707_v34  ;;  %485 = vmatpush1.bf16.msra.mxu1 %v708_v35 }
  0x24   :  { %445 = vmatprep.subr.bf16.mxu0 %v709_v36  ;;  %486 = vmatprep.subr.bf16.mxu1 %v711_v37 }
  0x27   :  { %446 = vmatpush1.bf16.msra.mxu0 %v713_v41  ;;  %487 = vmatpush1.bf16.msra.mxu1 %v714_v42  ;;  %v572_v42 = vsub.s32 %v569_v27, %v904_v46 }
  0x28   :  { %447 = vmatprep.subr.bf16.mxu0 %v715_v43  ;;  %488 = vmatprep.subr.bf16.mxu1 %v717_v44 }
  0x2b   :  { %448 = vmatpush1.bf16.msra.mxu0 %v719_v47  ;;  %489 = vmatpush1.bf16.msra.mxu1 %v720_v48 }
  0x2c   :  { %449 = vmatprep.subr.bf16.mxu0 %v721_v49  ;;  %490 = vmatprep.subr.bf16.mxu1 %v723_v50 }
  0x2f   :  { %450 = vmatpush1.bf16.msra.mxu0 %v725_v53  ;;  %491 = vmatpush1.bf16.msra.mxu1 %v726_v54 }
  0x30   :  { %451 = vmatprep.subr.bf16.mxu0 %v727_v56  ;;  %492 = vmatprep.subr.bf16.mxu1 %v729_v57 }
  0x33   :  { %452 = vmatpush1.bf16.msra.mxu0 %v731_v59  ;;  %493 = vmatpush1.bf16.msra.mxu1 %v732_v60 }
  0x34   :  { %453 = vmatprep.subr.bf16.mxu0 %v733_v61  ;;  %494 = vmatprep.subr.bf16.mxu1 %v735_v62 }
  0x37   :  { %454 = vmatpush1.bf16.msra.mxu0 %v737_v63  ;;  %495 = vmatpush1.bf16.msra.mxu1 %v738_v0 }
  0x38   :  { %455 = vmatprep.subr.bf16.mxu0 %v739_v1  ;;  %496 = vmatprep.subr.bf16.mxu1 %v741_v2 }
  0x3b   :  { %456 = vmatpush1.bf16.msra.mxu0 %v743_v3  ;;  %497 = vmatpush1.bf16.msra.mxu1 %v744_v4 }
  0x3c   :  { %457 = vmatprep.subr.bf16.mxu0 %v745_v5  ;;  %498 = vmatprep.subr.bf16.mxu1 %v747_v6 }
  0x3f   :  { %458 = vmatpush1.bf16.msra.mxu0 %v749_v7  ;;  %499 = vmatpush1.bf16.msra.mxu1 %v750_v8 }
  0x42   :  { %460 = vmatmul.mubr.bf16.vlgmr.msra.gmra.mrb[0].mxu0 %v97_v9  ;;  %501 = vmatmul.mubr.bf16.vlgmr.msra.gmra.mrb[0].mxu1 %v97_v9 }
 0x115   :  { %v461_v24 = vpop.f32.mrb[0].mxu0  ;;  %v502_v25 = vpop.f32.mrb[0].mxu1 }
 0x116   :  { %v531_v29 = vmul.f32 %v514_v18, %v461_v24  ;;  %v533_v30 = vmul.f32 %v522_v19, %v502_v25  ;;  %v463_v31 = vpop.f32.mrb[1].mxu0  ;;  %v504_v32 = vpop.f32.mrb[1].mxu1 }
 0x117   :  { %v532_v33 = vmul.f32 %v518_v20, %v463_v31  ;;  %v534_v34 = vmul.f32 %v526_v21, %v504_v32  ;;  %v465_v35 = vpop.f32.mrb[2].mxu0  ;;  %v506_v36 = vpop.f32.mrb[2].mxu1 }
 0x118   :  { %v557_v37 = vadd.f32 %v540_v22, %v531_v29  ;;  %v559_v38 = vadd.f32 %v548_v23, %v533_v30  ;;  %v466_v39 = vpop.f32.mrb[3].mxu0  ;;  %v507_v40 = vpop.f32.mrb[3].mxu1 }
 0x119   :  { %v558_v41 = vadd.f32 %v544_v26, %v532_v33  ;;  %v560_v43 = vadd.f32 %v552_v28, %v534_v34 }
 0x11b   :  { %v565_v44 = vcombine.low %v557_v37, %v558_v41  ;;  %v566_v45 = vcombine.low %v559_v38, %v560_v43 }
 0x11d   :  { %v573_v47 = vrot.slane %v565_v44, %v572_v42  ;;  %v580_v48 = vrot.slane %v566_v45, %v572_v42 }
 0x11f   :  { %v581_v49 = vcombine.low %v573_v47, %v580_v48 }
 0x121   :  { %583 = vst [vmem:[%s994_s4] sm:$0xff] %v581_v49 }

// kernel: resnet_forward.58
= control target key start
LH: loop header
LB: loop body
LE: loop exit
PB: predicated region body
PF: predicated region fallthrough
CT: control target
= control target key end

     0   :  { %v518_v22 = vmov 1966171168   ;;  %v95_v24 = vlaneseq  ;;  %s652_s1 = inlined_call_operand.vmem [shape: bf16[512,128], index: 1, kind: input, shape index: {}]   ;;  %s653_s0 = inlined_call_operand.vmem [shape: bf16[2,512], index: 0, kind: input, shape index: {}]   ;;  %s654_s2 = inlined_call_operand.vmem [shape: f32[1,128], index: 2, kind: input, shape index: {}]   ;;  %s655_s3 = inlined_call_operand.vmem [shape: f32[1,128], index: 3, kind: input, shape index: {}]   ;;  %s656_s4 = inlined_call_operand.vmem [shape: f32[2,128], index: 4, kind: output, shape index: {}]  }
   0x1   :  { %v486_v0 = vld [vmem:[%s652_s1 + $0x40] sm:$0xff]   ;;  %v490_v4 = vld [vmem:[%s652_s1 + $0x48] sm:$0xff]   ;;  %v494_v8 = vld [vmem:[%s652_s1 + $0x50] sm:$0xff]   ;;  %v93_v23 = vunpack.c.l.s4 %v518_v22 }
   0x2   :  { %v487_v1 = vld [vmem:[%s652_s1 + $0xc0] sm:$0xff]   ;;  %441 = vmatprep.subr.bf16.mxu0 %v486_v0  ;;  %v491_v5 = vld [vmem:[%s652_s1 + $0xc8] sm:$0xff]   ;;  %v495_v9 = vld [vmem:[%s652_s1 + $0xd0] sm:$0xff]   ;;  %v96_v30 = vshrl.u32 %v95_v24, 7 }
   0x3   :  { %v488_v2 = vld [vmem:[%s652_s1] sm:$0xff]   ;;  %463 = vmatprep.subr.bf16.mxu1 %v487_v1  ;;  %v492_v6 = vld [vmem:[%s652_s1 + $0x8] sm:$0xff]   ;;  %v496_v10 = vld [vmem:[%s652_s1 + $0x10] sm:$0xff]   ;;  %v94_v29 = vunpack.c.0.s8 %v93_v23 }
   0x4   :  { %v489_v3 = vld [vmem:[%s652_s1 + $0x80] sm:$0xff]   ;;  %442 = vmatpush3.bf16.msra.mxu0 %v488_v2  ;;  %v493_v7 = vld [vmem:[%s652_s1 + $0x88] sm:$0xff]   ;;  %v497_v11 = vld [vmem:[%s652_s1 + $0x90] sm:$0xff]  }
   0x5   :  { %464 = vmatpush3.bf16.msra.mxu1 %v489_v3  ;;  %443 = vmatprep.subr.bf16.mxu0 %v490_v4  ;;  %v498_v12 = vld [vmem:[%s652_s1 + $0x58] sm:$0xff]   ;;  %v502_v16 = vld [vmem:[%s652_s1 + $0x60] sm:$0xff]   ;;  %v506_v20 = vld [vmem:[%s652_s1 + $0x68] sm:$0xff]   ;;  %v97_v35 = vsub.s32 %v94_v29, %v96_v30 }
   0x6   :  { %465 = vmatprep.subr.bf16.mxu1 %v491_v5  ;;  %v499_v13 = vld [vmem:[%s652_s1 + $0xd8] sm:$0xff]   ;;  %v503_v17 = vld [vmem:[%s652_s1 + $0xe0] sm:$0xff]   ;;  %v507_v21 = vld [vmem:[%s652_s1 + $0xe8] sm:$0xff]  }
   0x7   :  { %v500_v14 = vld [vmem:[%s652_s1 + $0x18] sm:$0xff]   ;;  %v504_v18 = vld [vmem:[%s652_s1 + $0x20] sm:$0xff]   ;;  %v508_v25 = vld [vmem:[%s652_s1 + $0x28] sm:$0xff]  }
   0x8   :  { %444 = vmatpush3.bf16.msra.mxu0 %v492_v6  ;;  %v501_v15 = vld [vmem:[%s652_s1 + $0x98] sm:$0xff]   ;;  %v505_v19 = vld [vmem:[%s652_s1 + $0xa0] sm:$0xff]   ;;  %v509_v26 = vld [vmem:[%s652_s1 + $0xa8] sm:$0xff]  }
   0x9   :  { %466 = vmatpush3.bf16.msra.mxu1 %v493_v7  ;;  %445 = vmatprep.subr.bf16.mxu0 %v494_v8  ;;  %v510_v27 = vld [vmem:[%s652_s1 + $0x70] sm:$0xff]   ;;  %v514_v33 = vld [vmem:[%s652_s1 + $0x78] sm:$0xff]   ;;  %v406_v38 = vld.sshfl [vmem:[%s653_s0] sm:$0x33 pattern:$0x75316420] }
   0xa   :  { %467 = vmatprep.subr.bf16.mxu1 %v495_v9  ;;  %v511_v28 = vld [vmem:[%s652_s1 + $0xf0] sm:$0xff]   ;;  %v515_v34 = vld [vmem:[%s652_s1 + $0xf8] sm:$0xff]   ;;  %v91_v39 = vcombine.high %v406_v38, %v406_v38  ;;  %v98_v40 = vrot.slane %v406_v38, %v97_v35  ;;  %v439_v53 = vld [vmem:[%s654_s2] ss:$0 sm:$0xff] }
   0xb   :  { %v512_v31 = vld [vmem:[%s652_s1 + $0x30] sm:$0xff]   ;;  %v516_v36 = vld [vmem:[%s652_s1 + $0x38] sm:$0xff]   ;;  %v440_v56 = vld [vmem:[%s655_s3] ss:$0 sm:$0xff] }
   0xc   :  { %446 = vmatpush3.bf16.msra.mxu0 %v496_v10  ;;  %v513_v32 = vld [vmem:[%s652_s1 + $0xb0] sm:$0xff]   ;;  %v517_v37 = vld [vmem:[%s652_s1 + $0xb8] sm:$0xff]   ;;  %v105_v41 = vrot.slane %v91_v39, %v97_v35  ;;  %v106_v42 = vcombine.high %v98_v40, %v98_v40 }
   0xd   :  { %468 = vmatpush3.bf16.msra.mxu1 %v497_v11  ;;  %447 = vmatprep.subr.bf16.mxu0 %v498_v12 }
   0xe   :  { %469 = vmatprep.subr.bf16.mxu1 %v499_v13  ;;  %336 = vmatprep.mubr.bf16.mxu0 %v105_v41  ;;  %v107_v43 = vcombine.high %v105_v41, %v105_v41 }
  0x10   :  { %448 = vmatpush3.bf16.msra.mxu0 %v500_v14  ;;  %376 = vmatprep.mubr.bf16.mxu1 %v107_v43 }
  0x11   :  { %470 = vmatpush3.bf16.msra.mxu1 %v501_v15  ;;  %449 = vmatprep.subr.bf16.mxu0 %v502_v16 }
  0x12   :  { %471 = vmatprep.subr.bf16.mxu1 %v503_v17 }
  0x14   :  { %450 = vmatpush3.bf16.msra.mxu0 %v504_v18 }
  0x15   :  { %472 = vmatpush3.bf16.msra.mxu1 %v505_v19  ;;  %451 = vmatprep.subr.bf16.mxu0 %v506_v20 }
  0x16   :  { %473 = vmatprep.subr.bf16.mxu1 %v507_v21 }
  0x18   :  { %452 = vmatpush3.bf16.msra.mxu0 %v508_v25 }
  0x19   :  { %474 = vmatpush3.bf16.msra.mxu1 %v509_v26  ;;  %453 = vmatprep.subr.bf16.mxu0 %v510_v27 }
  0x1a   :  { %475 = vmatprep.subr.bf16.mxu1 %v511_v28 }
  0x1c   :  { %454 = vmatpush3.bf16.msra.mxu0 %v512_v31 }
  0x1d   :  { %476 = vmatpush3.bf16.msra.mxu1 %v513_v32  ;;  %455 = vmatprep.subr.bf16.mxu0 %v514_v33 }
  0x1e   :  { %477 = vmatprep.subr.bf16.mxu1 %v515_v34 }
  0x20   :  { %456 = vmatpush3.bf16.msra.mxu0 %v516_v36 }
  0x21   :  { %478 = vmatpush3.bf16.msra.mxu1 %v517_v37 }
  0x23   :  { %337 = vmatmul.mubr.bf16.vlgmr.msra.gmra.mrb[0].mxu0 %v98_v40 }
  0x24   :  { %377 = vmatmul.mubr.bf16.vlgmr.msra.gmra.mrb[0].mxu1 %v106_v42 }
  0xf6   :  { %v457_v44 = vpop.f32.mrb[0].mxu0 }
  0xf7   :  { %v458_v45 = vpop.f32.mrb[1].mxu0  ;;  %v479_v46 = vpop.f32.mrb[0].mxu1 }
  0xf8   :  { %v459_v47 = vadd.f32 %v458_v45, %v457_v44  ;;  %v460_v48 = vpop.f32.mrb[2].mxu0  ;;  %v480_v49 = vpop.f32.mrb[1].mxu1 }
  0xf9   :  { %v461_v50 = vpop.f32.mrb[3].mxu0  ;;  %v481_v51 = vadd.f32 %v480_v49, %v479_v46  ;;  %v482_v52 = vpop.f32.mrb[2].mxu1 }
  0xfa   :  { %v483_v54 = vpop.f32.mrb[3].mxu1 }
  0xfb   :  { %v379_v55 = vadd.f32 %v481_v51, %v459_v47 }
  0xfd   :  { %v391_v57 = vmul.f32 %v439_v53, %v379_v55 }
  0xff   :  { %v399_v58 = vadd.f32 %v440_v56, %v391_v57 }
 0x101   :  { %v400_v59 = vmax.f32 %v399_v58, 0.0 }
 0x103   :  { %401 = vst [vmem:[%s656_s4] sm:$0x3] %v400_v59 }

// kernel: resnet_forward.61
= control target key start
LH: loop header
LB: loop body
LE: loop exit
PB: predicated region body
PF: predicated region fallthrough
CT: control target
= control target key end

     0   :  { %v439_v51 = vmov 1966171168   ;;  %v96_v53 = vlaneseq  ;;  %s671_s0 = inlined_call_operand.vmem [shape: f32[2,1,512], index: 0, kind: input, shape index: {}]   ;;  %s672_s1 = inlined_call_operand.vmem [shape: f32[512,128], index: 1, kind: input, shape index: {}]   ;;  %s673_s2 = inlined_call_operand.vmem [shape: f32[1,128], index: 2, kind: input, shape index: {}]   ;;  %s674_s3 = inlined_call_operand.hbm [shape: f32[2,128], index: 3, kind: output, shape index: {}]  }
   0x1   :  { %v35_v0 = vld [vmem:[%s672_s1 + $0x80] sm:$0xff]  ;;  %v36_v1 = vld [vmem:[%s672_s1 + $0x88] sm:$0xff]  ;;  %v37_v11 = vld [vmem:[%s672_s1 + $0x90] sm:$0xff]  ;;  %v94_v52 = vunpack.c.l.s4 %v439_v51 }
   0x2   :  { %v19_v2 = vld [vmem:[%s672_s1] sm:$0xff]  ;;  %v347_v3 = vpack.c.bf16 %v36_v1, %v35_v0  ;;  %v20_v4 = vld [vmem:[%s672_s1 + $0x8] sm:$0xff]  ;;  %v38_v13 = vld [vmem:[%s672_s1 + $0x98] sm:$0xff] }
   0x3   :  { %v67_v5 = vld [vmem:[%s672_s1 + $0x180] sm:$0xff]  ;;  %v68_v6 = vld [vmem:[%s672_s1 + $0x188] sm:$0xff]  ;;  %v349_v7 = vpack.c.bf16 %v20_v4, %v19_v2  ;;  %v21_v14 = vld [vmem:[%s672_s1 + $0x10] sm:$0xff]  ;;  %v351_v16 = vpack.c.bf16 %v38_v13, %v37_v11  ;;  %v95_v2 = vunpack.c.0.s8 %v94_v52 }
   0x4   :  { %v379_v8 = vpack.c.bf16 %v68_v6, %v67_v5  ;;  %v51_v9 = vld [vmem:[%s672_s1 + $0x100] sm:$0xff]  ;;  %v52_v10 = vld [vmem:[%s672_s1 + $0x108] sm:$0xff]  ;;  %348 = vmatprep.subr.bf16.mxu0 %v347_v3  ;;  %v22_v15 = vld [vmem:[%s672_s1 + $0x18] sm:$0xff]  ;;  %v97_v3 = vshrl.u32 %v96_v53, 7 }
   0x5   :  { %v381_v12 = vpack.c.bf16 %v52_v10, %v51_v9  ;;  %350 = vmatpush3.bf16.msra.mxu0 %v349_v7  ;;  %v353_v17 = vpack.c.bf16 %v22_v15, %v21_v14  ;;  %v69_v18 = vld [vmem:[%s672_s1 + $0x190] sm:$0xff]  ;;  %v70_v19 = vld [vmem:[%s672_s1 + $0x198] sm:$0xff]  ;;  %v39_v23 = vld [vmem:[%s672_s1 + $0xa0] sm:$0xff] }
   0x6   :  { %380 = vmatprep.subr.bf16.mxu1 %v379_v8  ;;  %v53_v20 = vld [vmem:[%s672_s1 + $0x110] sm:$0xff]  ;;  %v383_v21 = vpack.c.bf16 %v70_v19, %v69_v18  ;;  %v54_v22 = vld [vmem:[%s672_s1 + $0x118] sm:$0xff]  ;;  %v40_v24 = vld [vmem:[%s672_s1 + $0xa8] sm:$0xff]  ;;  %352 = vmatprep.subr.bf16.mxu0 %v351_v16 }
   0x7   :  { %382 = vmatpush3.bf16.msra.mxu1 %v381_v12  ;;  %v385_v25 = vpack.c.bf16 %v54_v22, %v53_v20  ;;  %v355_v26 = vpack.c.bf16 %v40_v24, %v39_v23  ;;  %v23_v27 = vld [vmem:[%s672_s1 + $0x20] sm:$0xff]  ;;  %v24_v28 = vld [vmem:[%s672_s1 + $0x28] sm:$0xff]  ;;  %v41_v35 = vld [vmem:[%s672_s1 + $0xb0] sm:$0xff]  ;;  %v98_v20 = vsub.s32 %v95_v2, %v97_v3 }
   0x8   :  { %v71_v29 = vld [vmem:[%s672_s1 + $0x1a0] sm:$0xff]  ;;  %384 = vmatprep.subr.bf16.mxu1 %v383_v21  ;;  %v72_v30 = vld [vmem:[%s672_s1 + $0x1a8] sm:$0xff]  ;;  %v357_v33 = vpack.c.bf16 %v24_v28, %v23_v27  ;;  %v42_v36 = vld [vmem:[%s672_s1 + $0xb8] sm:$0xff] }
   0x9   :  { %v55_v31 = vld [vmem:[%s672_s1 + $0x120] sm:$0xff]  ;;  %v56_v32 = vld [vmem:[%s672_s1 + $0x128] sm:$0xff]  ;;  %354 = vmatpush3.bf16.msra.mxu0 %v353_v17  ;;  %v387_v34 = vpack.c.bf16 %v72_v30, %v71_v29  ;;  %v25_v37 = vld [vmem:[%s672_s1 + $0x30] sm:$0xff]  ;;  %v359_v39 = vpack.c.bf16 %v42_v36, %v41_v35 }
   0xa   :  { %356 = vmatprep.subr.bf16.mxu0 %v355_v26  ;;  %v389_v38 = vpack.c.bf16 %v56_v32, %v55_v31  ;;  %v26_v40 = vld [vmem:[%s672_s1 + $0x38] sm:$0xff]  ;;  %v73_v41 = vld [vmem:[%s672_s1 + $0x1b0] sm:$0xff]  ;;  %v43_v46 = vld [vmem:[%s672_s1 + $0xc0] sm:$0xff] }
   0xb   :  { %386 = vmatpush3.bf16.msra.mxu1 %v385_v25  ;;  %v74_v42 = vld [vmem:[%s672_s1 + $0x1b8] sm:$0xff]  ;;  %v57_v44 = vld [vmem:[%s672_s1 + $0x130] sm:$0xff]  ;;  %v44_v47 = vld [vmem:[%s672_s1 + $0xc8] sm:$0xff]  ;;  %v361_v48 = vpack.c.bf16 %v26_v40, %v25_v37 }
   0xc   :  { %388 = vmatprep.subr.bf16.mxu1 %v387_v34  ;;  %v391_v43 = vpack.c.bf16 %v74_v42, %v73_v41  ;;  %v58_v45 = vld [vmem:[%s672_s1 + $0x138] sm:$0xff]  ;;  %v75_v49 = vld [vmem:[%s672_s1 + $0x1c0] sm:$0xff]  ;;  %v76_v50 = vld [vmem:[%s672_s1 + $0x1c8] sm:$0xff]  ;;  %v363_v55 = vpack.c.bf16 %v44_v47, %v43_v46 }
   0xd   :  { %358 = vmatpush3.bf16.msra.mxu0 %v357_v33  ;;  %v393_v54 = vpack.c.bf16 %v58_v45, %v57_v44  ;;  %v27_v56 = vld [vmem:[%s672_s1 + $0x40] sm:$0xff]  ;;  %v28_v57 = vld [vmem:[%s672_s1 + $0x48] sm:$0xff]  ;;  %v395_v59 = vpack.c.bf16 %v76_v50, %v75_v49  ;;  %v45_v61 = vld [vmem:[%s672_s1 + $0xd0] sm:$0xff] }
   0xe   :  { %360 = vmatprep.subr.bf16.mxu0 %v359_v39  ;;  %v59_v58 = vld [vmem:[%s672_s1 + $0x140] sm:$0xff]  ;;  %v60_v60 = vld [vmem:[%s672_s1 + $0x148] sm:$0xff]  ;;  %v46_v62 = vld [vmem:[%s672_s1 + $0xd8] sm:$0xff]  ;;  %v365_v1 = vpack.c.bf16 %v28_v57, %v27_v56 }
   0xf   :  { %390 = vmatpush3.bf16.msra.mxu1 %v389_v38  ;;  %v77_v63 = vld [vmem:[%s672_s1 + $0x1d0] sm:$0xff]  ;;  %v78_v0 = vld [vmem:[%s672_s1 + $0x1d8] sm:$0xff]  ;;  %v397_v4 = vpack.c.bf16 %v60_v60, %v59_v58  ;;  %v367_v5 = vpack.c.bf16 %v46_v62, %v45_v61  ;;  %v47_v11 = vld [vmem:[%s672_s1 + $0xe0] sm:$0xff] }
  0x10   :  { %392 = vmatprep.subr.bf16.mxu1 %v391_v43  ;;  %v29_v6 = vld [vmem:[%s672_s1 + $0x50] sm:$0xff]  ;;  %v30_v7 = vld [vmem:[%s672_s1 + $0x58] sm:$0xff]  ;;  %v399_v9 = vpack.c.bf16 %v78_v0, %v77_v63  ;;  %v48_v12 = vld [vmem:[%s672_s1 + $0xe8] sm:$0xff] }
  0x11   :  { %362 = vmatpush3.bf16.msra.mxu0 %v361_v48  ;;  %v61_v8 = vld [vmem:[%s672_s1 + $0x150] sm:$0xff]  ;;  %v62_v10 = vld [vmem:[%s672_s1 + $0x158] sm:$0xff]  ;;  %v31_v13 = vld [vmem:[%s672_s1 + $0x60] sm:$0xff]  ;;  %v369_v16 = vpack.c.bf16 %v30_v7, %v29_v6  ;;  %v371_v22 = vpack.c.bf16 %v48_v12, %v47_v11 }
  0x12   :  { %364 = vmatprep.subr.bf16.mxu0 %v363_v55  ;;  %v79_v14 = vld [vmem:[%s672_s1 + $0x1e0] sm:$0xff]  ;;  %v80_v15 = vld [vmem:[%s672_s1 + $0x1e8] sm:$0xff]  ;;  %v401_v21 = vpack.c.bf16 %v62_v10, %v61_v8  ;;  %v49_v23 = vld [vmem:[%s672_s1 + $0xf0] sm:$0xff] }
  0x13   :  { %394 = vmatpush3.bf16.msra.mxu1 %v393_v54  ;;  %v32_v17 = vld [vmem:[%s672_s1 + $0x68] sm:$0xff]  ;;  %v63_v18 = vld [vmem:[%s672_s1 + $0x160] sm:$0xff]  ;;  %v403_v24 = vpack.c.bf16 %v80_v15, %v79_v14  ;;  %v50_v25 = vld [vmem:[%s672_s1 + $0xf8] sm:$0xff] }
  0x14   :  { %396 = vmatprep.subr.bf16.mxu1 %v395_v59  ;;  %v64_v19 = vld [vmem:[%s672_s1 + $0x168] sm:$0xff]  ;;  %v414_v26 = vld.sshfl [vmem:[%s671_s0] sm:$0xff pattern:$0x75316420] }
  0x15   :  { %366 = vmatpush3.bf16.msra.mxu0 %v365_v1 }
  0x16   :  { %368 = vmatprep.subr.bf16.mxu0 %v367_v5 }
  0x17   :  { %398 = vmatpush3.bf16.msra.mxu1 %v397_v4 }
  0x18   :  { %400 = vmatprep.subr.bf16.mxu1 %v399_v9 }
  0x19   :  { %8 = vsyncpa [#allocation3], 0  ;;  %v81_v27 = vld [vmem:[%s672_s1 + $0x1f0] sm:$0xff]  ;;  %v82_v28 = vld [vmem:[%s672_s1 + $0x1f8] sm:$0xff]  ;;  %370 = vmatpush3.bf16.msra.mxu0 %v369_v16  ;;  %v373_v29 = vpack.c.bf16 %v32_v17, %v31_v13  ;;  %v405_v30 = vpack.c.bf16 %v64_v19, %v63_v18  ;;  %v375_v31 = vpack.c.bf16 %v50_v25, %v49_v23  ;;  %v100_v37 = vcombine.high %v414_v26, %v414_v26  ;;  %s440_s7 = smov [#allocation2]  }
  0x1a   :  { %372 = vmatprep.subr.bf16.mxu0 %v371_v22  ;;  %v33_v32 = vld [vmem:[%s672_s1 + $0x70] sm:$0xff]  ;;  %v34_v33 = vld [vmem:[%s672_s1 + $0x78] sm:$0xff]  ;;  %v407_v34 = vpack.c.bf16 %v82_v28, %v81_v27  ;;  %v107_v40 = vrot.slane %v414_v26, %v98_v20  ;;  %v276_v45 = vld [vmem:[%s673_s2] ss:$0 sm:$0xff]  ;;  %s268_s8 = sshll.u32 %s440_s7, 4  ;;  %s269_s8 = int_to_ptr.vmem [resolvable:$true] %s268_s8 }
  0x1b   :  { %402 = vmatpush3.bf16.msra.mxu1 %v401_v21  ;;  %v65_v35 = vld [vmem:[%s672_s1 + $0x170] sm:$0xff]  ;;  %v66_v36 = vld [vmem:[%s672_s1 + $0x178] sm:$0xff]  ;;  %v377_v38 = vpack.c.bf16 %v34_v33, %v33_v32  ;;  %v114_v39 = vrot.slane %v100_v37, %v98_v20  ;;  %s415_s9 = scalar_lea.vmem %s269_s8, 32  ;;  %p420_p1 = scmp.lt.s32.totalorder %s269_s8, %s269_s8 }
  0x1c   :  { %404 = vmatprep.subr.bf16.mxu1 %v403_v24  ;;  %v409_v41 = vpack.c.bf16 %v66_v36, %v65_v35  ;;  %v115_v43 = vcombine.high %v107_v40, %v107_v40  ;;  %p416_p0 = scmp.ne.s32.totalorder %s269_s8, %s415_s9  ;;  %p421_p2 = scmp.lt.s32.totalorder %s415_s9, %s415_s9 }
  0x1d   :  { %374 = vmatpush3.bf16.msra.mxu0 %v373_v29  ;;  %185 = vmatprep.mubr.f32.mxu0 %v114_v39  ;;  %v116_v42 = vcombine.high %v114_v39, %v114_v39 }
  0x1e   :  { %376 = vmatprep.subr.bf16.mxu0 %v375_v31  ;;  %p422_p3 = por %p421_p2, %p420_p1 }
  0x1f   :  { %406 = vmatpush3.bf16.msra.mxu1 %v405_v30  ;;  %255 = vmatprep.mubr.f32.mxu1 %v116_v42 }
  0x20   :  { %408 = vmatprep.subr.bf16.mxu1 %v407_v34  ;;  %p423_p4 = pnand %p422_p3, %p416_p0 }
  0x21   :  { %378 = vmatpush3.bf16.msra.mxu0 %v377_v38 }
  0x23   :  { %410 = vmatpush3.bf16.msra.mxu1 %v409_v41 }
  0x24   :  { %186 = vmatmul.mubr.f32.vlgmr.msra.gmra.mrb[0].mxu0 %v107_v40 }
  0x26   :  { %256 = vmatmul.mubr.f32.vlgmr.msra.gmra.mrb[0].mxu1 %v115_v43 }
  0xf7   :  { %v309_v44 = vpop.f32.mrb[0].mxu0 }
  0xf8   :  { %v310_v46 = vpop.f32.mrb[1].mxu0 }
  0xf9   :  { %v344_v47 = vpop.f32.mrb[0].mxu1  ;;  %v311_v48 = vadd.f32 %v310_v46, %v309_v44 }
  0xfa   :  { %v345_v49 = vpop.f32.mrb[1].mxu1 }
  0xfb   :  { %v346_v50 = vadd.f32 %v345_v49, %v344_v47  ;;  %v188_v51 = vadd.f32 %v311_v48, %v276_v45 }
  0xfd   :  { %v258_v52 = vadd.f32 %v346_v50, %v188_v51 }
  0xff   :  { %261 = vst [vmem:[#allocation2] sm:$0x3] %v258_v52 }
 0x100   :  { %426 = shalt.err (!%p423_p4)
}
 0x101   :  { %s427_s11 = scalar_lea.hbm %s674_s3, 32 }
 0x102   :  { %p428_p5 = scmp.ne.s32.totalorder %s674_s3, %s427_s11  ;;  %p431_p6 = scmp.lt.u32.totalorder %s427_s11, %s674_s3 }
 0x104   :  { %p433_p7 = pnand %p431_p6, %p428_p5 }
 0x106   :  { %436 = shalt.err (!%p433_p7)
}
 0x107   :  { %271 = dma.vmem_to_hbm [thread:$0]  %s269_s8, 32, %s674_s3, [#allocation3]  }
 0x108   :  { %437 = dma.done.wait [#allocation3], 32  }
 0x109   :  { %438 = vsyncadd [#allocation3], 4294967264 }
 0x10a   :  { %275 = vsyncpa [#allocation3], 1 }

</bundles_post_ra>
